<compile_context>
chip_gen: v6e
topology: v6e:2x2x1
jax: 0.10.0
libtpu: 0.0.40
codegen_flags: <defaults>
</compile_context>

<pallas_src>
import functools
from collections import namedtuple

import jax
import jax.numpy as jnp
import numpy as np
from jax.experimental import pallas as pl
from jax.experimental.pallas import tpu as pltpu

# ----------------------------------------------------------------------------
# Genotype (an argument of the PyTorch module; defined in-script)
# ----------------------------------------------------------------------------
Genotype = namedtuple("Genotype", "normal normal_concat reduce reduce_concat")

GENOTYPE = Genotype(
    normal=[("sep_conv_3x3", 0), ("skip_connect", 1),
            ("sep_conv_3x3", 1), ("avg_pool_3x3", 0)],
    normal_concat=[2, 3],
    reduce=[("max_pool_3x3", 0), ("skip_connect", 1),
            ("sep_conv_3x3", 1), ("avg_pool_3x3", 2)],
    reduce_concat=[2, 3],
)

NEG = np.float32(-1e30)  # stands in for -inf in max-pool edge masks


# ----------------------------------------------------------------------------
# In-kernel helpers (traced inside the Pallas body; values live in VMEM/vregs)
# ----------------------------------------------------------------------------
def _mm(a, b):
    return jnp.dot(a, b, preferred_element_type=jnp.float32)


def _relu(x):
    return jnp.maximum(x, 0.0)


# ----------------------------------------------------------------------------
# Host-side (build-time) constructors for structured matrices, numpy only.
# Activation layout: per sample, a 2-D array (H, W*C) with lane index w*C + c.
# ----------------------------------------------------------------------------
def _eye_shift(n, d):
    """S with (S @ x)[i] = x[i + d] (zero-filled when out of range)."""
    S = np.zeros((n, n), np.float32)
    for i in range(n):
        if 0 <= i + d < n:
            S[i, i + d] = 1.0
    return S


def _lane_shift(W, C, d):
    """T with (x @ T)[:, w*C+c] = x[:, (w+d)*C+c] (zero when w+d out of range)."""
    L = W * C
    T = np.zeros((L, L), np.float32)
    for w in range(W):
        if 0 <= w + d < W:
            for c in range(C):
                T[(w + d) * C + c, w * C + c] = 1.0
    return T


def _rowsel(H, parity):
    S = np.zeros((H // 2, H), np.float32)
    for i in range(H // 2):
        S[i, 2 * i + parity] = 1.0
    return S


def _colsel(W, C, parity):
    M = np.zeros((W * C, (W // 2) * C), np.float32)
    for j in range(W // 2):
        for c in range(C):
            M[(2 * j + parity) * C + c, j * C + c] = 1.0
    return M


def _pointwise_mat(w, W_in, W_out, w_map, co_off, cout_total):
    """1x1 conv (optionally with spatial remap / channel offset) as a lane matmul:
       (x @ M)[:, j*cout_total + co_off + co] = sum_ci x[:, w_map(j)*Cin+ci] * w[ci, co]."""
    Cin, Cout = w.shape
    M = np.zeros((W_in * Cin, W_out * cout_total), np.float32)
    for j in range(W_out):
        wi = w_map(j)
        M[wi * Cin:(wi + 1) * Cin,
          j * cout_total + co_off:j * cout_total + co_off + Cout] = w
    return M


def _dw_band(dw, W, dh):
    """Depthwise 3x3 row-band: (x @ B)[:, wo*C+c] = sum_kw x[:, (wo+kw-1)*C+c]*dw[dh+1,kw,c]."""
    C = dw.shape[2]
    B = np.zeros((W * C, W * C), np.float32)
    for wo in range(W):
        for kw in range(3):
            wi = wo + kw - 1
            if 0 <= wi < W:
                for c in range(C):
                    B[wi * C + c, wo * C + c] = dw[dh + 1, kw, c]
    return B


def _dense_band(w, W, dh):
    """Dense 3x3 row-band: (x @ B)[:, wo*Cout+co] = sum_{kw,ci} x[:, (wo+kw-1)*Cin+ci]*w[dh+1,kw,ci,co]."""
    Cin, Cout = w.shape[2], w.shape[3]
    B = np.zeros((W * Cin, W * Cout), np.float32)
    for wo in range(W):
        for kw in range(3):
            wi = wo + kw - 1
            if 0 <= wi < W:
                B[wi * Cin:(wi + 1) * Cin, wo * Cout:(wo + 1) * Cout] += w[dh + 1, kw]
    return B


def _tile_bias(b, W):
    return np.tile(np.asarray(b, np.float32), W)[None, :]


def _row_mask(H, d):
    m = np.zeros((H, 1), np.float32)
    for h in range(H):
        if not (0 <= h + d < H):
            m[h, 0] = NEG
    return m


def _col_mask(W, C, d):
    m = np.zeros((1, W * C), np.float32)
    for w in range(W):
        if not (0 <= w + d < W):
            m[0, w * C:(w + 1) * C] = NEG
    return m


def _bn_fold(rng, C, eps=1e-5):
    gamma = 1.0 + 0.05 * rng.standard_normal(C)
    beta = 0.05 * rng.standard_normal(C)
    mean = 0.05 * rng.standard_normal(C)
    var = 1.0 + np.abs(0.05 * rng.standard_normal(C))
    scale = (gamma / np.sqrt(var + eps)).astype(np.float32)
    bias = (beta - mean * scale).astype(np.float32)
    return scale, bias


# ----------------------------------------------------------------------------
# Module builders: each returns (params: dict of np arrays, fn: traced closure)
# ----------------------------------------------------------------------------
def build_stem(rng, Cin, Cout, H, W):
    """Conv2d(3x3, pad=1, bias=False) + BatchNorm (folded)."""
    w = (0.1 * rng.standard_normal((3, 3, Cin, Cout))).astype(np.float32)
    scale, bias = _bn_fold(rng, Cout)
    wf = (w * scale).astype(np.float32)
    p = {"rows": [_eye_shift(H, d) for d in (-1, 0, 1)],
         "bands": [_dense_band(wf, W, d) for d in (-1, 0, 1)],
         "bias": _tile_bias(bias, W)}

    def fn(p, parts):
        x = parts[0]
        acc = p["bias"]
        for r, b in zip(p["rows"], p["bands"]):
            acc = acc + _mm(_mm(r, x), b)
        return acc

    return p, fn


def build_relu_conv_bn(rng, in_ch, Cout, W):
    """ReLU -> Conv2d(1x1, bias=False) -> BatchNorm (folded). Multi-part input."""
    Cin = sum(in_ch)
    w = (0.1 * rng.standard_normal((Cin, Cout))).astype(np.float32)
    scale, bias = _bn_fold(rng, Cout)
    wf = (w * scale).astype(np.float32)
    mats, off = [], 0
    for c in in_ch:
        mats.append(_pointwise_mat(wf[off:off + c], W, W, lambda j: j, 0, Cout))
        off += c
    p = {"mats": mats, "bias": _tile_bias(bias, W)}

    def fn(p, parts):
        acc = p["bias"]
        for xp, M in zip(parts, p["mats"]):
            acc = acc + _mm(_relu(xp), M)
        return acc

    return p, fn


def build_factorized_reduce(rng, in_ch, Cout, H, W):
    """ReLU -> [conv1x1 s2 (x) | conv1x1 s2 (x[1:,1:])] concat -> BN (folded)."""
    Cin = sum(in_ch)
    half = Cout // 2
    w1 = (0.1 * rng.standard_normal((Cin, half))).astype(np.float32)
    w2 = (0.1 * rng.standard_normal((Cin, half))).astype(np.float32)
    scale, bias = _bn_fold(rng, Cout)
    w1f = (w1 * scale[:half]).astype(np.float32)
    w2f = (w2 * scale[half:]).astype(np.float32)
    W_out = W // 2
    m1, m2, off = [], [], 0
    for c in in_ch:
        m1.append(_pointwise_mat(w1f[off:off + c], W, W_out,
                                 lambda j: 2 * j, 0, Cout))
        m2.append(_pointwise_mat(w2f[off:off + c], W, W_out,
                                 lambda j: 2 * j + 1, half, Cout))
        off += c
    p = {"re": _rowsel(H, 0), "ro": _rowsel(H, 1),
         "m1": m1, "m2": m2, "bias": _tile_bias(bias, W_out)}

    def fn(p, parts):
        acc = p["bias"]
        for xp, M1, M2 in zip(parts, p["m1"], p["m2"]):
            xr = _relu(xp)
            acc = acc + _mm(_mm(p["re"], xr), M1) + _mm(_mm(p["ro"], xr), M2)
        return acc

    return p, fn


def build_sep_conv(rng, C, H, W, stride):
    """ReLU-dw3x3(s)-pw1x1-BN-ReLU-dw3x3(1)-pw1x1-BN, fully folded into
    3 row matrices + 3 lane matrices per half (stride-2 subsample folded in)."""
    dw1 = (0.1 * rng.standard_normal((3, 3, C))).astype(np.float32)
    pw1 = (0.1 * rng.standard_normal((C, C))).astype(np.float32)
    s1, b1 = _bn_fold(rng, C)
    dw2 = (0.1 * rng.standard_normal((3, 3, C))).astype(np.float32)
    pw2 = (0.1 * rng.standard_normal((C, C))).astype(np.float32)
    s2, b2 = _bn_fold(rng, C)
    H_out, W_out = H // stride, W // stride

    if stride == 1:
        rbase = np.eye(H, dtype=np.float32)
        m_pw1 = _pointwise_mat(pw1 * s1, W, W, lambda j: j, 0, C)
    else:
        rbase = _rowsel(H, 0)
        m_pw1 = _pointwise_mat(pw1 * s1, W, W_out, lambda j: 2 * j, 0, C)
    rows1 = [(rbase @ _eye_shift(H, d)).astype(np.float32) for d in (-1, 0, 1)]
    cols1 = [(_dw_band(dw1, W, d) @ m_pw1).astype(np.float32) for d in (-1, 0, 1)]

    m_pw2 = _pointwise_mat(pw2 * s2, W_out, W_out, lambda j: j, 0, C)
    rows2 = [_eye_shift(H_out, d) for d in (-1, 0, 1)]
    cols2 = [(_dw_band(dw2, W_out, d) @ m_pw2).astype(np.float32)
             for d in (-1, 0, 1)]

    p = {"rows1": rows1, "cols1": cols1, "b1": _tile_bias(b1, W_out),
         "rows2": rows2, "cols2": cols2, "b2": _tile_bias(b2, W_out)}

    def fn(p, x):
        xr = _relu(x)
        h = p["b1"]
        for r, c in zip(p["rows1"], p["cols1"]):
            h = h + _mm(_mm(r, xr), c)
        hr = _relu(h)
        out = p["b2"]
        for r, c in zip(p["rows2"], p["cols2"]):
            out = out + _mm(_mm(r, hr), c)
        return out

    return p, fn


def build_max_pool(C, H, W, stride):
    """MaxPool2d(3, stride, padding=1): separable max with -1e30 edge masks."""
    p = {"rows": [_eye_shift(H, d) for d in (-1, 0, 1)],
         "rmask": [_row_mask(H, d) for d in (-1, 0, 1)],
         "cols": [_lane_shift(W, C, d) for d in (-1, 0, 1)],
         "cmask": [_col_mask(W, C, d) for d in (-1, 0, 1)]}
    if stride == 2:
        p["rowsel"] = _rowsel(H, 0)
        p["colsel"] = _colsel(W, C, 0)

    def fn(p, x):
        m = None
        for r, km in zip(p["rows"], p["rmask"]):
            cand = _mm(r, x) + km
            m = cand if m is None else jnp.maximum(m, cand)
        y = None
        for t, km in zip(p["cols"], p["cmask"]):
            cand = _mm(m, t) + km
            y = cand if y is None else jnp.maximum(y, cand)
        if stride == 2:
            y = _mm(_mm(p["rowsel"], y), p["colsel"])
        return y

    return p, fn


def build_avg_pool(C, H, W, stride):
    """AvgPool2d(3, stride, padding=1, count_include_pad=False), folded into
    one row matrix + one lane matrix + a precomputed reciprocal-count map."""
    H_out, W_out = H // stride, W // stride
    Ssum = sum(_eye_shift(H, d) for d in (-1, 0, 1))
    Tsum = sum(_lane_shift(W, C, d) for d in (-1, 0, 1))
    if stride == 2:
        Ssum = _rowsel(H, 0) @ Ssum
        Tsum = Tsum @ _colsel(W, C, 0)
    rc = np.zeros((H_out, W_out * C), np.float32)
    for ho in range(H_out):
        hcnt = sum(1 for d in (-1, 0, 1) if 0 <= ho * stride + d < H)
        for wo in range(W_out):
            wcnt = sum(1 for d in (-1, 0, 1) if 0 <= wo * stride + d < W)
            rc[ho, wo * C:(wo + 1) * C] = 1.0 / (hcnt * wcnt)
    p = {"S": Ssum.astype(np.float32), "T": Tsum.astype(np.float32), "rc": rc}

    def fn(p, x):
        return _mm(_mm(p["S"], x), p["T"]) * p["rc"]

    return p, fn


def build_head(rng, in_ch, H, W, num_classes):
    """AdaptiveAvgPool2d(1) + Linear, fused (GAP folded into classifier weights)."""
    Cprev = sum(in_ch)
    w = (0.1 * rng.standard_normal((Cprev, num_classes))).astype(np.float32)
    b = (0.1 * rng.standard_normal((num_classes,))).astype(np.float32)
    mats, off = [], 0
    for c in in_ch:
        mats.append((np.tile(w[off:off + c], (W, 1)) / float(H * W))
                    .astype(np.float32))
        off += c
    p = {"mats": mats, "b": b[None, :]}

    def fn(p, parts):
        acc = p["b"]
        for xp, M in zip(parts, p["mats"]):
            acc = acc + jnp.sum(_mm(xp, M), axis=0, keepdims=True)
        return acc

    return p, fn


# ----------------------------------------------------------------------------
# Cell / network builders (DARTS op set)
# ----------------------------------------------------------------------------
def build_op(rng, name, C, H, W, stride):
    if name == "sep_conv_3x3":
        return build_sep_conv(rng, C, H, W, stride)
    if name == "skip_connect":
        if stride == 1:
            return {}, (lambda p, x: x)
        p, fr = build_factorized_reduce(rng, [C], C, H, W)
        return p, (lambda p, x, _fr=fr: _fr(p, [x]))
    if name == "max_pool_3x3":
        return build_max_pool(C, H, W, stride)
    if name == "avg_pool_3x3":
        return build_avg_pool(C, H, W, stride)
    raise ValueError(f"unknown op {name}")


def build_cell(rng, gseq, concat, info0, info1, C, reduction, reduction_prev):
    (ch0, H0, W0), (ch1, H1, W1) = info0, info1
    p, plan = {}, {}
    if reduction_prev:
        p["pre0"], plan["pre0"] = build_factorized_reduce(rng, ch0, C, H0, W0)
    else:
        p["pre0"], plan["pre0"] = build_relu_conv_bn(rng, ch0, C, W0)
    p["pre1"], plan["pre1"] = build_relu_conv_bn(rng, ch1, C, W1)

    Hc, Wc = H1, W1                         # post-preprocess spatial size
    red = 2 if reduction else 1
    Ho, Wo = Hc // red, Wc // red
    spatial = [(Hc, Wc), (Hc, Wc), (Ho, Wo), (Ho, Wo)]

    ops_p, ops_plan = [], []
    for name, index in gseq:
        stride = 2 if (reduction and index < 2) else 1
        Hin, Win = spatial[index]
        op_p, op_fn = build_op(rng, name, C, Hin, Win, stride)
        ops_p.append(op_p)
        ops_plan.append((op_fn, index))
    p["ops"] = ops_p
    plan["ops"] = ops_plan
    plan["concat"] = list(concat)
    return p, plan, ([C] * len(concat), Ho, Wo)


def build_network(seed=0, C=4, num_classes=10, layers=3, in_channels=3,
                  stem_multiplier=3, H=16, W=16):
    rng = np.random.default_rng(seed)
    params, plan = {}, {}
    C_curr = stem_multiplier * C
    params["stem"], plan["stem"] = build_stem(rng, in_channels, C_curr, H, W)
    info_pp = info_p = ([C_curr], H, W)
    cells_p, cells_plan = [], []
    reduction_prev = False
    C_curr = C
    for i in range(layers):
        if i in (layers // 3, 2 * layers // 3):
            C_curr *= 2
            reduction = True
            gseq, gcat = GENOTYPE.reduce, GENOTYPE.reduce_concat
        else:
            reduction = False
            gseq, gcat = GENOTYPE.normal, GENOTYPE.normal_concat
        cp, cl, out_info = build_cell(rng, gseq, gcat, info_pp, info_p,
                                      C_curr, reduction, reduction_prev)
        cells_p.append(cp)
        cells_plan.append(cl)
        reduction_prev = reduction
        info_pp, info_p = info_p, out_info
    params["cells"] = cells_p
    plan["cells"] = cells_plan
    ch_f, H_f, W_f = info_p
    params["head"], plan["head"] = build_head(rng, ch_f, H_f, W_f, num_classes)
    return params, plan


# ----------------------------------------------------------------------------
# The single fused Pallas kernel (whole network, one sample per grid step)
# ----------------------------------------------------------------------------
def forward_net(x, params, plan):
    """Whole-network forward for one sample; x: (H, W*Cin) float32 in VMEM."""
    s = plan["stem"](params["stem"], [x])
    s0, s1 = [s], [s]                              # states between cells: part lists
    for cp, cl in zip(params["cells"], plan["cells"]):
        t0 = cl["pre0"](cp["pre0"], s0)
        t1 = cl["pre1"](cp["pre1"], s1)
        states = [t0, t1]
        ops_p, ops_plan = cp["ops"], cl["ops"]
        for i in range(len(ops_plan) // 2):
            f1, i1 = ops_plan[2 * i]
            f2, i2 = ops_plan[2 * i + 1]
            h1 = f1(ops_p[2 * i], states[i1])
            h2 = f2(ops_p[2 * i + 1], states[i2])
            states.append(h1 + h2)                 # drop_path: no-op in eval
        s0, s1 = s1, [states[j] for j in cl["concat"]]
    return plan["head"](params["head"], s1)        # (1, num_classes)


def _net_kernel(*refs, treedef, n_leaves, plan):
    x_ref = refs[0]
    w_refs = refs[1:1 + n_leaves]
    out_ref = refs[1 + n_leaves]
    leaves = [r[...] for r in w_refs]              # all weights -> VMEM values
    params = jax.tree_util.tree_unflatten(treedef, leaves)
    logits = forward_net(x_ref[0], params, plan)   # (1, num_classes)
    out_ref[0] = logits


def _const_index_map(ndim):
    def imap(b):
        return (0,) * ndim
    return imap


def make_network_forward(plan, treedef, n_leaves, H, W, Cin, num_classes):
    kernel = functools.partial(_net_kernel, treedef=treedef,
                               n_leaves=n_leaves, plan=plan)

    def fwd(x_nchw, leaves):
        # layout: accept NCHW (PyTorch), compute in lane-dense (H, W*C).
        x = jnp.transpose(x_nchw, (0, 2, 3, 1)).astype(jnp.float32)
        B = x.shape[0]
        x2 = x.reshape(B, H, W * Cin)
        in_specs = [pl.BlockSpec((1, H, W * Cin), lambda b: (b, 0, 0))]
        for leaf in leaves:
            in_specs.append(pl.BlockSpec(leaf.shape, _const_index_map(leaf.ndim)))
        out = pl.pallas_call(
            kernel,
            out_shape=jax.ShapeDtypeStruct((B, 1, num_classes), jnp.float32),
            grid=(B,),
            in_specs=in_specs,
            out_specs=pl.BlockSpec((1, 1, num_classes), lambda b: (b, 0, 0)),
            compiler_params=pltpu.CompilerParams(
                dimension_semantics=("parallel",)),  # v7x: one sample per TC
        )(x2, *leaves)
        logits = out.reshape(B, num_classes)
        return logits, None  # eval mode: auxiliary head not evaluated

    return jax.jit(fwd)


# ----------------------------------------------------------------------------
if __name__ == "__main__":
    H = W = 16
    IN_CH, NUM_CLASSES, LAYERS, C0, STEM_MULT = 3, 10, 3, 4, 3

    key = jax.random.PRNGKey(0)
    x = jax.random.normal(key, (2, IN_CH, H, W), dtype=jnp.float32)  # NCHW

    params, plan = build_network(seed=0, C=C0, num_classes=NUM_CLASSES,
                                 layers=LAYERS, in_channels=IN_CH,
                                 stem_multiplier=STEM_MULT, H=H, W=W)
    leaves, treedef = jax.tree_util.tree_flatten(params)
    leaves = [jnp.asarray(l, jnp.float32) for l in leaves]

    fwd = make_network_forward(plan, treedef, len(leaves), H, W, IN_CH,
                               NUM_CLASSES)
    logits, logits_aux = fwd(x, leaves)
    jax.block_until_ready(logits)

    assert logits.shape == (2, NUM_CLASSES), logits.shape
    assert logits_aux is None
    assert bool(jnp.all(jnp.isfinite(logits)))
    print("KERNEL_OK")
</pallas_src>

<mosaic_0001>
module attributes {stable_mosaic.version = 11 : i64} {
  func.func @_net_kernel(%arg0: i32, %arg1: memref<1x16x48xf32, #tpu.memory_space<vmem>>, %arg2: memref<1x64xf32, #tpu.memory_space<vmem>>, %arg3: memref<1x64xf32, #tpu.memory_space<vmem>>, %arg4: memref<64x64xf32, #tpu.memory_space<vmem>>, %arg5: memref<64x64xf32, #tpu.memory_space<vmem>>, %arg6: memref<64x64xf32, #tpu.memory_space<vmem>>, %arg7: memref<64x64xf32, #tpu.memory_space<vmem>>, %arg8: memref<64x64xf32, #tpu.memory_space<vmem>>, %arg9: memref<64x64xf32, #tpu.memory_space<vmem>>, %arg10: memref<16x16xf32, #tpu.memory_space<vmem>>, %arg11: memref<16x16xf32, #tpu.memory_space<vmem>>, %arg12: memref<16x16xf32, #tpu.memory_space<vmem>>, %arg13: memref<16x16xf32, #tpu.memory_space<vmem>>, %arg14: memref<16x16xf32, #tpu.memory_space<vmem>>, %arg15: memref<16x16xf32, #tpu.memory_space<vmem>>, %arg16: memref<1x64xf32, #tpu.memory_space<vmem>>, %arg17: memref<1x64xf32, #tpu.memory_space<vmem>>, %arg18: memref<64x64xf32, #tpu.memory_space<vmem>>, %arg19: memref<64x64xf32, #tpu.memory_space<vmem>>, %arg20: memref<64x64xf32, #tpu.memory_space<vmem>>, %arg21: memref<64x64xf32, #tpu.memory_space<vmem>>, %arg22: memref<64x64xf32, #tpu.memory_space<vmem>>, %arg23: memref<64x64xf32, #tpu.memory_space<vmem>>, %arg24: memref<16x16xf32, #tpu.memory_space<vmem>>, %arg25: memref<16x16xf32, #tpu.memory_space<vmem>>, %arg26: memref<16x16xf32, #tpu.memory_space<vmem>>, %arg27: memref<16x16xf32, #tpu.memory_space<vmem>>, %arg28: memref<16x16xf32, #tpu.memory_space<vmem>>, %arg29: memref<16x16xf32, #tpu.memory_space<vmem>>, %arg30: memref<16x16xf32, #tpu.memory_space<vmem>>, %arg31: memref<64x64xf32, #tpu.memory_space<vmem>>, %arg32: memref<16x64xf32, #tpu.memory_space<vmem>>, %arg33: memref<1x64xf32, #tpu.memory_space<vmem>>, %arg34: memref<192x64xf32, #tpu.memory_space<vmem>>, %arg35: memref<1x64xf32, #tpu.memory_space<vmem>>, %arg36: memref<192x64xf32, #tpu.memory_space<vmem>>, %arg37: memref<1x128xf32, #tpu.memory_space<vmem>>, %arg38: memref<1x128xf32, #tpu.memory_space<vmem>>, %arg39: memref<1x128xf32, #tpu.memory_space<vmem>>, %arg40: memref<128x128xf32, #tpu.memory_space<vmem>>, %arg41: memref<128x128xf32, #tpu.memory_space<vmem>>, %arg42: memref<128x128xf32, #tpu.memory_space<vmem>>, %arg43: memref<128x64xf32, #tpu.memory_space<vmem>>, %arg44: memref<16x1xf32, #tpu.memory_space<vmem>>, %arg45: memref<16x1xf32, #tpu.memory_space<vmem>>, %arg46: memref<16x1xf32, #tpu.memory_space<vmem>>, %arg47: memref<16x16xf32, #tpu.memory_space<vmem>>, %arg48: memref<16x16xf32, #tpu.memory_space<vmem>>, %arg49: memref<16x16xf32, #tpu.memory_space<vmem>>, %arg50: memref<8x16xf32, #tpu.memory_space<vmem>>, %arg51: memref<1x64xf32, #tpu.memory_space<vmem>>, %arg52: memref<128x64xf32, #tpu.memory_space<vmem>>, %arg53: memref<128x64xf32, #tpu.memory_space<vmem>>, %arg54: memref<8x16xf32, #tpu.memory_space<vmem>>, %arg55: memref<8x16xf32, #tpu.memory_space<vmem>>, %arg56: memref<1x64xf32, #tpu.memory_space<vmem>>, %arg57: memref<1x64xf32, #tpu.memory_space<vmem>>, %arg58: memref<128x64xf32, #tpu.memory_space<vmem>>, %arg59: memref<128x64xf32, #tpu.memory_space<vmem>>, %arg60: memref<128x64xf32, #tpu.memory_space<vmem>>, %arg61: memref<64x64xf32, #tpu.memory_space<vmem>>, %arg62: memref<64x64xf32, #tpu.memory_space<vmem>>, %arg63: memref<64x64xf32, #tpu.memory_space<vmem>>, %arg64: memref<8x16xf32, #tpu.memory_space<vmem>>, %arg65: memref<8x16xf32, #tpu.memory_space<vmem>>, %arg66: memref<8x16xf32, #tpu.memory_space<vmem>>, %arg67: memref<8x8xf32, #tpu.memory_space<vmem>>, %arg68: memref<8x8xf32, #tpu.memory_space<vmem>>, %arg69: memref<8x8xf32, #tpu.memory_space<vmem>>, %arg70: memref<8x8xf32, #tpu.memory_space<vmem>>, %arg71: memref<64x64xf32, #tpu.memory_space<vmem>>, %arg72: memref<8x64xf32, #tpu.memory_space<vmem>>, %arg73: memref<1x128xf32, #tpu.memory_space<vmem>>, %arg74: memref<192x128xf32, #tpu.memory_space<vmem>>, %arg75: memref<1x128xf32, #tpu.memory_space<vmem>>, %arg76: memref<64x128xf32, #tpu.memory_space<vmem>>, %arg77: memref<64x128xf32, #tpu.memory_space<vmem>>, %arg78: memref<1x128xf32, #tpu.memory_space<vmem>>, %arg79: memref<1x128xf32, #tpu.memory_space<vmem>>, %arg80: memref<1x128xf32, #tpu.memory_space<vmem>>, %arg81: memref<128x128xf32, #tpu.memory_space<vmem>>, %arg82: memref<128x128xf32, #tpu.memory_space<vmem>>, %arg83: memref<128x128xf32, #tpu.memory_space<vmem>>, %arg84: memref<128x64xf32, #tpu.memory_space<vmem>>, %arg85: memref<8x1xf32, #tpu.memory_space<vmem>>, %arg86: memref<8x1xf32, #tpu.memory_space<vmem>>, %arg87: memref<8x1xf32, #tpu.memory_space<vmem>>, %arg88: memref<8x8xf32, #tpu.memory_space<vmem>>, %arg89: memref<8x8xf32, #tpu.memory_space<vmem>>, %arg90: memref<8x8xf32, #tpu.memory_space<vmem>>, %arg91: memref<4x8xf32, #tpu.memory_space<vmem>>, %arg92: memref<1x64xf32, #tpu.memory_space<vmem>>, %arg93: memref<128x64xf32, #tpu.memory_space<vmem>>, %arg94: memref<128x64xf32, #tpu.memory_space<vmem>>, %arg95: memref<4x8xf32, #tpu.memory_space<vmem>>, %arg96: memref<4x8xf32, #tpu.memory_space<vmem>>, %arg97: memref<1x64xf32, #tpu.memory_space<vmem>>, %arg98: memref<1x64xf32, #tpu.memory_space<vmem>>, %arg99: memref<128x64xf32, #tpu.memory_space<vmem>>, %arg100: memref<128x64xf32, #tpu.memory_space<vmem>>, %arg101: memref<128x64xf32, #tpu.memory_space<vmem>>, %arg102: memref<64x64xf32, #tpu.memory_space<vmem>>, %arg103: memref<64x64xf32, #tpu.memory_space<vmem>>, %arg104: memref<64x64xf32, #tpu.memory_space<vmem>>, %arg105: memref<4x8xf32, #tpu.memory_space<vmem>>, %arg106: memref<4x8xf32, #tpu.memory_space<vmem>>, %arg107: memref<4x8xf32, #tpu.memory_space<vmem>>, %arg108: memref<4x4xf32, #tpu.memory_space<vmem>>, %arg109: memref<4x4xf32, #tpu.memory_space<vmem>>, %arg110: memref<4x4xf32, #tpu.memory_space<vmem>>, %arg111: memref<4x4xf32, #tpu.memory_space<vmem>>, %arg112: memref<64x64xf32, #tpu.memory_space<vmem>>, %arg113: memref<4x64xf32, #tpu.memory_space<vmem>>, %arg114: memref<1x128xf32, #tpu.memory_space<vmem>>, %arg115: memref<64x128xf32, #tpu.memory_space<vmem>>, %arg116: memref<64x128xf32, #tpu.memory_space<vmem>>, %arg117: memref<64x128xf32, #tpu.memory_space<vmem>>, %arg118: memref<64x128xf32, #tpu.memory_space<vmem>>, %arg119: memref<8x16xf32, #tpu.memory_space<vmem>>, %arg120: memref<8x16xf32, #tpu.memory_space<vmem>>, %arg121: memref<1x128xf32, #tpu.memory_space<vmem>>, %arg122: memref<64x128xf32, #tpu.memory_space<vmem>>, %arg123: memref<64x128xf32, #tpu.memory_space<vmem>>, %arg124: memref<1x10xf32, #tpu.memory_space<vmem>>, %arg125: memref<64x10xf32, #tpu.memory_space<vmem>>, %arg126: memref<64x10xf32, #tpu.memory_space<vmem>>, %arg127: memref<48x192xf32, #tpu.memory_space<vmem>>, %arg128: memref<48x192xf32, #tpu.memory_space<vmem>>, %arg129: memref<48x192xf32, #tpu.memory_space<vmem>>, %arg130: memref<1x192xf32, #tpu.memory_space<vmem>>, %arg131: memref<16x16xf32, #tpu.memory_space<vmem>>, %arg132: memref<16x16xf32, #tpu.memory_space<vmem>>, %arg133: memref<16x16xf32, #tpu.memory_space<vmem>>, %arg134: memref<1x1x10xf32, #tpu.memory_space<vmem>>) attributes {dimension_semantics = [#tpu.dimension_semantics<parallel>], iteration_bounds = array<i64: 2>, scalar_prefetch = 0 : i64, scratch_operands = 0 : i64, tpu.core_type = #tpu.core_type<tc>, window_params = [{transform_indices = @transform_0, window_bounds = array<i64: 1, 16, 48>}, {pipeline_mode = #tpu.pipeline_mode<synchronous>, transform_indices = @transform_1, window_bounds = array<i64: 1, 64>}, {pipeline_mode = #tpu.pipeline_mode<synchronous>, transform_indices = @transform_2, window_bounds = array<i64: 1, 64>}, {pipeline_mode = #tpu.pipeline_mode<synchronous>, transform_indices = @transform_3, window_bounds = array<i64: 64, 64>}, {pipeline_mode = #tpu.pipeline_mode<synchronous>, transform_indices = @transform_4, window_bounds = array<i64: 64, 64>}, {pipeline_mode = #tpu.pipeline_mode<synchronous>, transform_indices = @transform_5, window_bounds = array<i64: 64, 64>}, {pipeline_mode = #tpu.pipeline_mode<synchronous>, transform_indices = @transform_6, window_bounds = array<i64: 64, 64>}, {pipeline_mode = #tpu.pipeline_mode<synchronous>, transform_indices = @transform_7, window_bounds = array<i64: 64, 64>}, {pipeline_mode = #tpu.pipeline_mode<synchronous>, transform_indices = @transform_8, window_bounds = array<i64: 64, 64>}, {pipeline_mode = #tpu.pipeline_mode<synchronous>, transform_indices = @transform_9, window_bounds = array<i64: 16, 16>}, {pipeline_mode = #tpu.pipeline_mode<synchronous>, transform_indices = @transform_10, window_bounds = array<i64: 16, 16>}, {pipeline_mode = #tpu.pipeline_mode<synchronous>, transform_indices = @transform_11, window_bounds = array<i64: 16, 16>}, {pipeline_mode = #tpu.pipeline_mode<synchronous>, transform_indices = @transform_12, window_bounds = array<i64: 16, 16>}, {pipeline_mode = #tpu.pipeline_mode<synchronous>, transform_indices = @transform_13, window_bounds = array<i64: 16, 16>}, {pipeline_mode = #tpu.pipeline_mode<synchronous>, transform_indices = @transform_14, window_bounds = array<i64: 16, 16>}, {pipeline_mode = #tpu.pipeline_mode<synchronous>, transform_indices = @transform_15, window_bounds = array<i64: 1, 64>}, {pipeline_mode = #tpu.pipeline_mode<synchronous>, transform_indices = @transform_16, window_bounds = array<i64: 1, 64>}, {pipeline_mode = #tpu.pipeline_mode<synchronous>, transform_indices = @transform_17, window_bounds = array<i64: 64, 64>}, {pipeline_mode = #tpu.pipeline_mode<synchronous>, transform_indices = @transform_18, window_bounds = array<i64: 64, 64>}, {pipeline_mode = #tpu.pipeline_mode<synchronous>, transform_indices = @transform_19, window_bounds = array<i64: 64, 64>}, {pipeline_mode = #tpu.pipeline_mode<synchronous>, transform_indices = @transform_20, window_bounds = array<i64: 64, 64>}, {pipeline_mode = #tpu.pipeline_mode<synchronous>, transform_indices = @transform_21, window_bounds = array<i64: 64, 64>}, {pipeline_mode = #tpu.pipeline_mode<synchronous>, transform_indices = @transform_22, window_bounds = array<i64: 64, 64>}, {pipeline_mode = #tpu.pipeline_mode<synchronous>, transform_indices = @transform_23, window_bounds = array<i64: 16, 16>}, {pipeline_mode = #tpu.pipeline_mode<synchronous>, transform_indices = @transform_24, window_bounds = array<i64: 16, 16>}, {pipeline_mode = #tpu.pipeline_mode<synchronous>, transform_indices = @transform_25, window_bounds = array<i64: 16, 16>}, {pipeline_mode = #tpu.pipeline_mode<synchronous>, transform_indices = @transform_26, window_bounds = array<i64: 16, 16>}, {pipeline_mode = #tpu.pipeline_mode<synchronous>, transform_indices = @transform_27, window_bounds = array<i64: 16, 16>}, {pipeline_mode = #tpu.pipeline_mode<synchronous>, transform_indices = @transform_28, window_bounds = array<i64: 16, 16>}, {pipeline_mode = #tpu.pipeline_mode<synchronous>, transform_indices = @transform_29, window_bounds = array<i64: 16, 16>}, {pipeline_mode = #tpu.pipeline_mode<synchronous>, transform_indices = @transform_30, window_bounds = array<i64: 64, 64>}, {pipeline_mode = #tpu.pipeline_mode<synchronous>, transform_indices = @transform_31, window_bounds = array<i64: 16, 64>}, {pipeline_mode = #tpu.pipeline_mode<synchronous>, transform_indices = @transform_32, window_bounds = array<i64: 1, 64>}, {pipeline_mode = #tpu.pipeline_mode<synchronous>, transform_indices = @transform_33, window_bounds = array<i64: 192, 64>}, {pipeline_mode = #tpu.pipeline_mode<synchronous>, transform_indices = @transform_34, window_bounds = array<i64: 1, 64>}, {pipeline_mode = #tpu.pipeline_mode<synchronous>, transform_indices = @transform_35, window_bounds = array<i64: 192, 64>}, {pipeline_mode = #tpu.pipeline_mode<synchronous>, transform_indices = @transform_36, window_bounds = array<i64: 1, 128>}, {pipeline_mode = #tpu.pipeline_mode<synchronous>, transform_indices = @transform_37, window_bounds = array<i64: 1, 128>}, {pipeline_mode = #tpu.pipeline_mode<synchronous>, transform_indices = @transform_38, window_bounds = array<i64: 1, 128>}, {pipeline_mode = #tpu.pipeline_mode<synchronous>, transform_indices = @transform_39, window_bounds = array<i64: 128, 128>}, {pipeline_mode = #tpu.pipeline_mode<synchronous>, transform_indices = @transform_40, window_bounds = array<i64: 128, 128>}, {pipeline_mode = #tpu.pipeline_mode<synchronous>, transform_indices = @transform_41, window_bounds = array<i64: 128, 128>}, {pipeline_mode = #tpu.pipeline_mode<synchronous>, transform_indices = @transform_42, window_bounds = array<i64: 128, 64>}, {pipeline_mode = #tpu.pipeline_mode<synchronous>, transform_indices = @transform_43, window_bounds = array<i64: 16, 1>}, {pipeline_mode = #tpu.pipeline_mode<synchronous>, transform_indices = @transform_44, window_bounds = array<i64: 16, 1>}, {pipeline_mode = #tpu.pipeline_mode<synchronous>, transform_indices = @transform_45, window_bounds = array<i64: 16, 1>}, {pipeline_mode = #tpu.pipeline_mode<synchronous>, transform_indices = @transform_46, window_bounds = array<i64: 16, 16>}, {pipeline_mode = #tpu.pipeline_mode<synchronous>, transform_indices = @transform_47, window_bounds = array<i64: 16, 16>}, {pipeline_mode = #tpu.pipeline_mode<synchronous>, transform_indices = @transform_48, window_bounds = array<i64: 16, 16>}, {pipeline_mode = #tpu.pipeline_mode<synchronous>, transform_indices = @transform_49, window_bounds = array<i64: 8, 16>}, {pipeline_mode = #tpu.pipeline_mode<synchronous>, transform_indices = @transform_50, window_bounds = array<i64: 1, 64>}, {pipeline_mode = #tpu.pipeline_mode<synchronous>, transform_indices = @transform_51, window_bounds = array<i64: 128, 64>}, {pipeline_mode = #tpu.pipeline_mode<synchronous>, transform_indices = @transform_52, window_bounds = array<i64: 128, 64>}, {pipeline_mode = #tpu.pipeline_mode<synchronous>, transform_indices = @transform_53, window_bounds = array<i64: 8, 16>}, {pipeline_mode = #tpu.pipeline_mode<synchronous>, transform_indices = @transform_54, window_bounds = array<i64: 8, 16>}, {pipeline_mode = #tpu.pipeline_mode<synchronous>, transform_indices = @transform_55, window_bounds = array<i64: 1, 64>}, {pipeline_mode = #tpu.pipeline_mode<synchronous>, transform_indices = @transform_56, window_bounds = array<i64: 1, 64>}, {pipeline_mode = #tpu.pipeline_mode<synchronous>, transform_indices = @transform_57, window_bounds = array<i64: 128, 64>}, {pipeline_mode = #tpu.pipeline_mode<synchronous>, transform_indices = @transform_58, window_bounds = array<i64: 128, 64>}, {pipeline_mode = #tpu.pipeline_mode<synchronous>, transform_indices = @transform_59, window_bounds = array<i64: 128, 64>}, {pipeline_mode = #tpu.pipeline_mode<synchronous>, transform_indices = @transform_60, window_bounds = array<i64: 64, 64>}, {pipeline_mode = #tpu.pipeline_mode<synchronous>, transform_indices = @transform_61, window_bounds = array<i64: 64, 64>}, {pipeline_mode = #tpu.pipeline_mode<synchronous>, transform_indices = @transform_62, window_bounds = array<i64: 64, 64>}, {pipeline_mode = #tpu.pipeline_mode<synchronous>, transform_indices = @transform_63, window_bounds = array<i64: 8, 16>}, {pipeline_mode = #tpu.pipeline_mode<synchronous>, transform_indices = @transform_64, window_bounds = array<i64: 8, 16>}, {pipeline_mode = #tpu.pipeline_mode<synchronous>, transform_indices = @transform_65, window_bounds = array<i64: 8, 16>}, {pipeline_mode = #tpu.pipeline_mode<synchronous>, transform_indices = @transform_66, window_bounds = array<i64: 8, 8>}, {pipeline_mode = #tpu.pipeline_mode<synchronous>, transform_indices = @transform_67, window_bounds = array<i64: 8, 8>}, {pipeline_mode = #tpu.pipeline_mode<synchronous>, transform_indices = @transform_68, window_bounds = array<i64: 8, 8>}, {pipeline_mode = #tpu.pipeline_mode<synchronous>, transform_indices = @transform_69, window_bounds = array<i64: 8, 8>}, {pipeline_mode = #tpu.pipeline_mode<synchronous>, transform_indices = @transform_70, window_bounds = array<i64: 64, 64>}, {pipeline_mode = #tpu.pipeline_mode<synchronous>, transform_indices = @transform_71, window_bounds = array<i64: 8, 64>}, {pipeline_mode = #tpu.pipeline_mode<synchronous>, transform_indices = @transform_72, window_bounds = array<i64: 1, 128>}, {pipeline_mode = #tpu.pipeline_mode<synchronous>, transform_indices = @transform_73, window_bounds = array<i64: 192, 128>}, {pipeline_mode = #tpu.pipeline_mode<synchronous>, transform_indices = @transform_74, window_bounds = array<i64: 1, 128>}, {pipeline_mode = #tpu.pipeline_mode<synchronous>, transform_indices = @transform_75, window_bounds = array<i64: 64, 128>}, {pipeline_mode = #tpu.pipeline_mode<synchronous>, transform_indices = @transform_76, window_bounds = array<i64: 64, 128>}, {pipeline_mode = #tpu.pipeline_mode<synchronous>, transform_indices = @transform_77, window_bounds = array<i64: 1, 128>}, {pipeline_mode = #tpu.pipeline_mode<synchronous>, transform_indices = @transform_78, window_bounds = array<i64: 1, 128>}, {pipeline_mode = #tpu.pipeline_mode<synchronous>, transform_indices = @transform_79, window_bounds = array<i64: 1, 128>}, {pipeline_mode = #tpu.pipeline_mode<synchronous>, transform_indices = @transform_80, window_bounds = array<i64: 128, 128>}, {pipeline_mode = #tpu.pipeline_mode<synchronous>, transform_indices = @transform_81, window_bounds = array<i64: 128, 128>}, {pipeline_mode = #tpu.pipeline_mode<synchronous>, transform_indices = @transform_82, window_bounds = array<i64: 128, 128>}, {pipeline_mode = #tpu.pipeline_mode<synchronous>, transform_indices = @transform_83, window_bounds = array<i64: 128, 64>}, {pipeline_mode = #tpu.pipeline_mode<synchronous>, transform_indices = @transform_84, window_bounds = array<i64: 8, 1>}, {pipeline_mode = #tpu.pipeline_mode<synchronous>, transform_indices = @transform_85, window_bounds = array<i64: 8, 1>}, {pipeline_mode = #tpu.pipeline_mode<synchronous>, transform_indices = @transform_86, window_bounds = array<i64: 8, 1>}, {pipeline_mode = #tpu.pipeline_mode<synchronous>, transform_indices = @transform_87, window_bounds = array<i64: 8, 8>}, {pipeline_mode = #tpu.pipeline_mode<synchronous>, transform_indices = @transform_88, window_bounds = array<i64: 8, 8>}, {pipeline_mode = #tpu.pipeline_mode<synchronous>, transform_indices = @transform_89, window_bounds = array<i64: 8, 8>}, {pipeline_mode = #tpu.pipeline_mode<synchronous>, transform_indices = @transform_90, window_bounds = array<i64: 4, 8>}, {pipeline_mode = #tpu.pipeline_mode<synchronous>, transform_indices = @transform_91, window_bounds = array<i64: 1, 64>}, {pipeline_mode = #tpu.pipeline_mode<synchronous>, transform_indices = @transform_92, window_bounds = array<i64: 128, 64>}, {pipeline_mode = #tpu.pipeline_mode<synchronous>, transform_indices = @transform_93, window_bounds = array<i64: 128, 64>}, {pipeline_mode = #tpu.pipeline_mode<synchronous>, transform_indices = @transform_94, window_bounds = array<i64: 4, 8>}, {pipeline_mode = #tpu.pipeline_mode<synchronous>, transform_indices = @transform_95, window_bounds = array<i64: 4, 8>}, {pipeline_mode = #tpu.pipeline_mode<synchronous>, transform_indices = @transform_96, window_bounds = array<i64: 1, 64>}, {pipeline_mode = #tpu.pipeline_mode<synchronous>, transform_indices = @transform_97, window_bounds = array<i64: 1, 64>}, {pipeline_mode = #tpu.pipeline_mode<synchronous>, transform_indices = @transform_98, window_bounds = array<i64: 128, 64>}, {pipeline_mode = #tpu.pipeline_mode<synchronous>, transform_indices = @transform_99, window_bounds = array<i64: 128, 64>}, {pipeline_mode = #tpu.pipeline_mode<synchronous>, transform_indices = @transform_100, window_bounds = array<i64: 128, 64>}, {pipeline_mode = #tpu.pipeline_mode<synchronous>, transform_indices = @transform_101, window_bounds = array<i64: 64, 64>}, {pipeline_mode = #tpu.pipeline_mode<synchronous>, transform_indices = @transform_102, window_bounds = array<i64: 64, 64>}, {pipeline_mode = #tpu.pipeline_mode<synchronous>, transform_indices = @transform_103, window_bounds = array<i64: 64, 64>}, {pipeline_mode = #tpu.pipeline_mode<synchronous>, transform_indices = @transform_104, window_bounds = array<i64: 4, 8>}, {pipeline_mode = #tpu.pipeline_mode<synchronous>, transform_indices = @transform_105, window_bounds = array<i64: 4, 8>}, {pipeline_mode = #tpu.pipeline_mode<synchronous>, transform_indices = @transform_106, window_bounds = array<i64: 4, 8>}, {pipeline_mode = #tpu.pipeline_mode<synchronous>, transform_indices = @transform_107, window_bounds = array<i64: 4, 4>}, {pipeline_mode = #tpu.pipeline_mode<synchronous>, transform_indices = @transform_108, window_bounds = array<i64: 4, 4>}, {pipeline_mode = #tpu.pipeline_mode<synchronous>, transform_indices = @transform_109, window_bounds = array<i64: 4, 4>}, {pipeline_mode = #tpu.pipeline_mode<synchronous>, transform_indices = @transform_110, window_bounds = array<i64: 4, 4>}, {pipeline_mode = #tpu.pipeline_mode<synchronous>, transform_indices = @transform_111, window_bounds = array<i64: 64, 64>}, {pipeline_mode = #tpu.pipeline_mode<synchronous>, transform_indices = @transform_112, window_bounds = array<i64: 4, 64>}, {pipeline_mode = #tpu.pipeline_mode<synchronous>, transform_indices = @transform_113, window_bounds = array<i64: 1, 128>}, {pipeline_mode = #tpu.pipeline_mode<synchronous>, transform_indices = @transform_114, window_bounds = array<i64: 64, 128>}, {pipeline_mode = #tpu.pipeline_mode<synchronous>, transform_indices = @transform_115, window_bounds = array<i64: 64, 128>}, {pipeline_mode = #tpu.pipeline_mode<synchronous>, transform_indices = @transform_116, window_bounds = array<i64: 64, 128>}, {pipeline_mode = #tpu.pipeline_mode<synchronous>, transform_indices = @transform_117, window_bounds = array<i64: 64, 128>}, {pipeline_mode = #tpu.pipeline_mode<synchronous>, transform_indices = @transform_118, window_bounds = array<i64: 8, 16>}, {pipeline_mode = #tpu.pipeline_mode<synchronous>, transform_indices = @transform_119, window_bounds = array<i64: 8, 16>}, {pipeline_mode = #tpu.pipeline_mode<synchronous>, transform_indices = @transform_120, window_bounds = array<i64: 1, 128>}, {pipeline_mode = #tpu.pipeline_mode<synchronous>, transform_indices = @transform_121, window_bounds = array<i64: 64, 128>}, {pipeline_mode = #tpu.pipeline_mode<synchronous>, transform_indices = @transform_122, window_bounds = array<i64: 64, 128>}, {pipeline_mode = #tpu.pipeline_mode<synchronous>, transform_indices = @transform_123, window_bounds = array<i64: 1, 10>}, {pipeline_mode = #tpu.pipeline_mode<synchronous>, transform_indices = @transform_124, window_bounds = array<i64: 64, 10>}, {pipeline_mode = #tpu.pipeline_mode<synchronous>, transform_indices = @transform_125, window_bounds = array<i64: 64, 10>}, {pipeline_mode = #tpu.pipeline_mode<synchronous>, transform_indices = @transform_126, window_bounds = array<i64: 48, 192>}, {pipeline_mode = #tpu.pipeline_mode<synchronous>, transform_indices = @transform_127, window_bounds = array<i64: 48, 192>}, {pipeline_mode = #tpu.pipeline_mode<synchronous>, transform_indices = @transform_128, window_bounds = array<i64: 48, 192>}, {pipeline_mode = #tpu.pipeline_mode<synchronous>, transform_indices = @transform_129, window_bounds = array<i64: 1, 192>}, {pipeline_mode = #tpu.pipeline_mode<synchronous>, transform_indices = @transform_130, window_bounds = array<i64: 16, 16>}, {pipeline_mode = #tpu.pipeline_mode<synchronous>, transform_indices = @transform_131, window_bounds = array<i64: 16, 16>}, {pipeline_mode = #tpu.pipeline_mode<synchronous>, transform_indices = @transform_132, window_bounds = array<i64: 16, 16>}, {transform_indices = @transform_133, window_bounds = array<i64: 1, 1, 10>}]} {
    %c0 = arith.constant 0 : index
    %c0_0 = arith.constant 0 : index
    %0 = vector.load %arg2[%c0, %c0_0] : memref<1x64xf32, #tpu.memory_space<vmem>>, vector<1x64xf32>
    %c0_1 = arith.constant 0 : index
    %c0_2 = arith.constant 0 : index
    %1 = vector.load %arg3[%c0_1, %c0_2] : memref<1x64xf32, #tpu.memory_space<vmem>>, vector<1x64xf32>
    %c0_3 = arith.constant 0 : index
    %c0_4 = arith.constant 0 : index
    %2 = vector.load %arg4[%c0_3, %c0_4] : memref<64x64xf32, #tpu.memory_space<vmem>>, vector<64x64xf32>
    %c0_5 = arith.constant 0 : index
    %c0_6 = arith.constant 0 : index
    %3 = vector.load %arg5[%c0_5, %c0_6] : memref<64x64xf32, #tpu.memory_space<vmem>>, vector<64x64xf32>
    %c0_7 = arith.constant 0 : index
    %c0_8 = arith.constant 0 : index
    %4 = vector.load %arg6[%c0_7, %c0_8] : memref<64x64xf32, #tpu.memory_space<vmem>>, vector<64x64xf32>
    %c0_9 = arith.constant 0 : index
    %c0_10 = arith.constant 0 : index
    %5 = vector.load %arg7[%c0_9, %c0_10] : memref<64x64xf32, #tpu.memory_space<vmem>>, vector<64x64xf32>
    %c0_11 = arith.constant 0 : index
    %c0_12 = arith.constant 0 : index
    %6 = vector.load %arg8[%c0_11, %c0_12] : memref<64x64xf32, #tpu.memory_space<vmem>>, vector<64x64xf32>
    %c0_13 = arith.constant 0 : index
    %c0_14 = arith.constant 0 : index
    %7 = vector.load %arg9[%c0_13, %c0_14] : memref<64x64xf32, #tpu.memory_space<vmem>>, vector<64x64xf32>
    %c0_15 = arith.constant 0 : index
    %c0_16 = arith.constant 0 : index
    %8 = vector.load %arg10[%c0_15, %c0_16] : memref<16x16xf32, #tpu.memory_space<vmem>>, vector<16x16xf32>
    %c0_17 = arith.constant 0 : index
    %c0_18 = arith.constant 0 : index
    %9 = vector.load %arg11[%c0_17, %c0_18] : memref<16x16xf32, #tpu.memory_space<vmem>>, vector<16x16xf32>
    %c0_19 = arith.constant 0 : index
    %c0_20 = arith.constant 0 : index
    %10 = vector.load %arg12[%c0_19, %c0_20] : memref<16x16xf32, #tpu.memory_space<vmem>>, vector<16x16xf32>
    %c0_21 = arith.constant 0 : index
    %c0_22 = arith.constant 0 : index
    %11 = vector.load %arg13[%c0_21, %c0_22] : memref<16x16xf32, #tpu.memory_space<vmem>>, vector<16x16xf32>
    %c0_23 = arith.constant 0 : index
    %c0_24 = arith.constant 0 : index
    %12 = vector.load %arg14[%c0_23, %c0_24] : memref<16x16xf32, #tpu.memory_space<vmem>>, vector<16x16xf32>
    %c0_25 = arith.constant 0 : index
    %c0_26 = arith.constant 0 : index
    %13 = vector.load %arg15[%c0_25, %c0_26] : memref<16x16xf32, #tpu.memory_space<vmem>>, vector<16x16xf32>
    %c0_27 = arith.constant 0 : index
    %c0_28 = arith.constant 0 : index
    %14 = vector.load %arg16[%c0_27, %c0_28] : memref<1x64xf32, #tpu.memory_space<vmem>>, vector<1x64xf32>
    %c0_29 = arith.constant 0 : index
    %c0_30 = arith.constant 0 : index
    %15 = vector.load %arg17[%c0_29, %c0_30] : memref<1x64xf32, #tpu.memory_space<vmem>>, vector<1x64xf32>
    %c0_31 = arith.constant 0 : index
    %c0_32 = arith.constant 0 : index
    %16 = vector.load %arg18[%c0_31, %c0_32] : memref<64x64xf32, #tpu.memory_space<vmem>>, vector<64x64xf32>
    %c0_33 = arith.constant 0 : index
    %c0_34 = arith.constant 0 : index
    %17 = vector.load %arg19[%c0_33, %c0_34] : memref<64x64xf32, #tpu.memory_space<vmem>>, vector<64x64xf32>
    %c0_35 = arith.constant 0 : index
    %c0_36 = arith.constant 0 : index
    %18 = vector.load %arg20[%c0_35, %c0_36] : memref<64x64xf32, #tpu.memory_space<vmem>>, vector<64x64xf32>
    %c0_37 = arith.constant 0 : index
    %c0_38 = arith.constant 0 : index
    %19 = vector.load %arg21[%c0_37, %c0_38] : memref<64x64xf32, #tpu.memory_space<vmem>>, vector<64x64xf32>
    %c0_39 = arith.constant 0 : index
    %c0_40 = arith.constant 0 : index
    %20 = vector.load %arg22[%c0_39, %c0_40] : memref<64x64xf32, #tpu.memory_space<vmem>>, vector<64x64xf32>
    %c0_41 = arith.constant 0 : index
    %c0_42 = arith.constant 0 : index
    %21 = vector.load %arg23[%c0_41, %c0_42] : memref<64x64xf32, #tpu.memory_space<vmem>>, vector<64x64xf32>
    %c0_43 = arith.constant 0 : index
    %c0_44 = arith.constant 0 : index
    %22 = vector.load %arg24[%c0_43, %c0_44] : memref<16x16xf32, #tpu.memory_space<vmem>>, vector<16x16xf32>
    %c0_45 = arith.constant 0 : index
    %c0_46 = arith.constant 0 : index
    %23 = vector.load %arg25[%c0_45, %c0_46] : memref<16x16xf32, #tpu.memory_space<vmem>>, vector<16x16xf32>
    %c0_47 = arith.constant 0 : index
    %c0_48 = arith.constant 0 : index
    %24 = vector.load %arg26[%c0_47, %c0_48] : memref<16x16xf32, #tpu.memory_space<vmem>>, vector<16x16xf32>
    %c0_49 = arith.constant 0 : index
    %c0_50 = arith.constant 0 : index
    %25 = vector.load %arg27[%c0_49, %c0_50] : memref<16x16xf32, #tpu.memory_space<vmem>>, vector<16x16xf32>
    %c0_51 = arith.constant 0 : index
    %c0_52 = arith.constant 0 : index
    %26 = vector.load %arg28[%c0_51, %c0_52] : memref<16x16xf32, #tpu.memory_space<vmem>>, vector<16x16xf32>
    %c0_53 = arith.constant 0 : index
    %c0_54 = arith.constant 0 : index
    %27 = vector.load %arg29[%c0_53, %c0_54] : memref<16x16xf32, #tpu.memory_space<vmem>>, vector<16x16xf32>
    %c0_55 = arith.constant 0 : index
    %c0_56 = arith.constant 0 : index
    %28 = vector.load %arg30[%c0_55, %c0_56] : memref<16x16xf32, #tpu.memory_space<vmem>>, vector<16x16xf32>
    %c0_57 = arith.constant 0 : index
    %c0_58 = arith.constant 0 : index
    %29 = vector.load %arg31[%c0_57, %c0_58] : memref<64x64xf32, #tpu.memory_space<vmem>>, vector<64x64xf32>
    %c0_59 = arith.constant 0 : index
    %c0_60 = arith.constant 0 : index
    %30 = vector.load %arg32[%c0_59, %c0_60] : memref<16x64xf32, #tpu.memory_space<vmem>>, vector<16x64xf32>
    %c0_61 = arith.constant 0 : index
    %c0_62 = arith.constant 0 : index
    %31 = vector.load %arg33[%c0_61, %c0_62] : memref<1x64xf32, #tpu.memory_space<vmem>>, vector<1x64xf32>
    %c0_63 = arith.constant 0 : index
    %c0_64 = arith.constant 0 : index
    %32 = vector.load %arg34[%c0_63, %c0_64] : memref<192x64xf32, #tpu.memory_space<vmem>>, vector<192x64xf32>
    %c0_65 = arith.constant 0 : index
    %c0_66 = arith.constant 0 : index
    %33 = vector.load %arg35[%c0_65, %c0_66] : memref<1x64xf32, #tpu.memory_space<vmem>>, vector<1x64xf32>
    %c0_67 = arith.constant 0 : index
    %c0_68 = arith.constant 0 : index
    %34 = vector.load %arg36[%c0_67, %c0_68] : memref<192x64xf32, #tpu.memory_space<vmem>>, vector<192x64xf32>
    %c0_69 = arith.constant 0 : index
    %c0_70 = arith.constant 0 : index
    %35 = vector.load %arg37[%c0_69, %c0_70] : memref<1x128xf32, #tpu.memory_space<vmem>>, vector<1x128xf32>
    %c0_71 = arith.constant 0 : index
    %c0_72 = arith.constant 0 : index
    %36 = vector.load %arg38[%c0_71, %c0_72] : memref<1x128xf32, #tpu.memory_space<vmem>>, vector<1x128xf32>
    %c0_73 = arith.constant 0 : index
    %c0_74 = arith.constant 0 : index
    %37 = vector.load %arg39[%c0_73, %c0_74] : memref<1x128xf32, #tpu.memory_space<vmem>>, vector<1x128xf32>
    %c0_75 = arith.constant 0 : index
    %c0_76 = arith.constant 0 : index
    %38 = vector.load %arg40[%c0_75, %c0_76] : memref<128x128xf32, #tpu.memory_space<vmem>>, vector<128x128xf32>
    %c0_77 = arith.constant 0 : index
    %c0_78 = arith.constant 0 : index
    %39 = vector.load %arg41[%c0_77, %c0_78] : memref<128x128xf32, #tpu.memory_space<vmem>>, vector<128x128xf32>
    %c0_79 = arith.constant 0 : index
    %c0_80 = arith.constant 0 : index
    %40 = vector.load %arg42[%c0_79, %c0_80] : memref<128x128xf32, #tpu.memory_space<vmem>>, vector<128x128xf32>
    %c0_81 = arith.constant 0 : index
    %c0_82 = arith.constant 0 : index
    %41 = vector.load %arg43[%c0_81, %c0_82] : memref<128x64xf32, #tpu.memory_space<vmem>>, vector<128x64xf32>
    %c0_83 = arith.constant 0 : index
    %c0_84 = arith.constant 0 : index
    %42 = vector.load %arg44[%c0_83, %c0_84] : memref<16x1xf32, #tpu.memory_space<vmem>>, vector<16x1xf32>
    %c0_85 = arith.constant 0 : index
    %c0_86 = arith.constant 0 : index
    %43 = vector.load %arg45[%c0_85, %c0_86] : memref<16x1xf32, #tpu.memory_space<vmem>>, vector<16x1xf32>
    %c0_87 = arith.constant 0 : index
    %c0_88 = arith.constant 0 : index
    %44 = vector.load %arg46[%c0_87, %c0_88] : memref<16x1xf32, #tpu.memory_space<vmem>>, vector<16x1xf32>
    %c0_89 = arith.constant 0 : index
    %c0_90 = arith.constant 0 : index
    %45 = vector.load %arg47[%c0_89, %c0_90] : memref<16x16xf32, #tpu.memory_space<vmem>>, vector<16x16xf32>
    %c0_91 = arith.constant 0 : index
    %c0_92 = arith.constant 0 : index
    %46 = vector.load %arg48[%c0_91, %c0_92] : memref<16x16xf32, #tpu.memory_space<vmem>>, vector<16x16xf32>
    %c0_93 = arith.constant 0 : index
    %c0_94 = arith.constant 0 : index
    %47 = vector.load %arg49[%c0_93, %c0_94] : memref<16x16xf32, #tpu.memory_space<vmem>>, vector<16x16xf32>
    %c0_95 = arith.constant 0 : index
    %c0_96 = arith.constant 0 : index
    %48 = vector.load %arg50[%c0_95, %c0_96] : memref<8x16xf32, #tpu.memory_space<vmem>>, vector<8x16xf32>
    %c0_97 = arith.constant 0 : index
    %c0_98 = arith.constant 0 : index
    %49 = vector.load %arg51[%c0_97, %c0_98] : memref<1x64xf32, #tpu.memory_space<vmem>>, vector<1x64xf32>
    %c0_99 = arith.constant 0 : index
    %c0_100 = arith.constant 0 : index
    %50 = vector.load %arg52[%c0_99, %c0_100] : memref<128x64xf32, #tpu.memory_space<vmem>>, vector<128x64xf32>
    %c0_101 = arith.constant 0 : index
    %c0_102 = arith.constant 0 : index
    %51 = vector.load %arg53[%c0_101, %c0_102] : memref<128x64xf32, #tpu.memory_space<vmem>>, vector<128x64xf32>
    %c0_103 = arith.constant 0 : index
    %c0_104 = arith.constant 0 : index
    %52 = vector.load %arg54[%c0_103, %c0_104] : memref<8x16xf32, #tpu.memory_space<vmem>>, vector<8x16xf32>
    %c0_105 = arith.constant 0 : index
    %c0_106 = arith.constant 0 : index
    %53 = vector.load %arg55[%c0_105, %c0_106] : memref<8x16xf32, #tpu.memory_space<vmem>>, vector<8x16xf32>
    %c0_107 = arith.constant 0 : index
    %c0_108 = arith.constant 0 : index
    %54 = vector.load %arg56[%c0_107, %c0_108] : memref<1x64xf32, #tpu.memory_space<vmem>>, vector<1x64xf32>
    %c0_109 = arith.constant 0 : index
    %c0_110 = arith.constant 0 : index
    %55 = vector.load %arg57[%c0_109, %c0_110] : memref<1x64xf32, #tpu.memory_space<vmem>>, vector<1x64xf32>
    %c0_111 = arith.constant 0 : index
    %c0_112 = arith.constant 0 : index
    %56 = vector.load %arg58[%c0_111, %c0_112] : memref<128x64xf32, #tpu.memory_space<vmem>>, vector<128x64xf32>
    %c0_113 = arith.constant 0 : index
    %c0_114 = arith.constant 0 : index
    %57 = vector.load %arg59[%c0_113, %c0_114] : memref<128x64xf32, #tpu.memory_space<vmem>>, vector<128x64xf32>
    %c0_115 = arith.constant 0 : index
    %c0_116 = arith.constant 0 : index
    %58 = vector.load %arg60[%c0_115, %c0_116] : memref<128x64xf32, #tpu.memory_space<vmem>>, vector<128x64xf32>
    %c0_117 = arith.constant 0 : index
    %c0_118 = arith.constant 0 : index
    %59 = vector.load %arg61[%c0_117, %c0_118] : memref<64x64xf32, #tpu.memory_space<vmem>>, vector<64x64xf32>
    %c0_119 = arith.constant 0 : index
    %c0_120 = arith.constant 0 : index
    %60 = vector.load %arg62[%c0_119, %c0_120] : memref<64x64xf32, #tpu.memory_space<vmem>>, vector<64x64xf32>
    %c0_121 = arith.constant 0 : index
    %c0_122 = arith.constant 0 : index
    %61 = vector.load %arg63[%c0_121, %c0_122] : memref<64x64xf32, #tpu.memory_space<vmem>>, vector<64x64xf32>
    %c0_123 = arith.constant 0 : index
    %c0_124 = arith.constant 0 : index
    %62 = vector.load %arg64[%c0_123, %c0_124] : memref<8x16xf32, #tpu.memory_space<vmem>>, vector<8x16xf32>
    %c0_125 = arith.constant 0 : index
    %c0_126 = arith.constant 0 : index
    %63 = vector.load %arg65[%c0_125, %c0_126] : memref<8x16xf32, #tpu.memory_space<vmem>>, vector<8x16xf32>
    %c0_127 = arith.constant 0 : index
    %c0_128 = arith.constant 0 : index
    %64 = vector.load %arg66[%c0_127, %c0_128] : memref<8x16xf32, #tpu.memory_space<vmem>>, vector<8x16xf32>
    %c0_129 = arith.constant 0 : index
    %c0_130 = arith.constant 0 : index
    %65 = vector.load %arg67[%c0_129, %c0_130] : memref<8x8xf32, #tpu.memory_space<vmem>>, vector<8x8xf32>
    %c0_131 = arith.constant 0 : index
    %c0_132 = arith.constant 0 : index
    %66 = vector.load %arg68[%c0_131, %c0_132] : memref<8x8xf32, #tpu.memory_space<vmem>>, vector<8x8xf32>
    %c0_133 = arith.constant 0 : index
    %c0_134 = arith.constant 0 : index
    %67 = vector.load %arg69[%c0_133, %c0_134] : memref<8x8xf32, #tpu.memory_space<vmem>>, vector<8x8xf32>
    %c0_135 = arith.constant 0 : index
    %c0_136 = arith.constant 0 : index
    %68 = vector.load %arg70[%c0_135, %c0_136] : memref<8x8xf32, #tpu.memory_space<vmem>>, vector<8x8xf32>
    %c0_137 = arith.constant 0 : index
    %c0_138 = arith.constant 0 : index
    %69 = vector.load %arg71[%c0_137, %c0_138] : memref<64x64xf32, #tpu.memory_space<vmem>>, vector<64x64xf32>
    %c0_139 = arith.constant 0 : index
    %c0_140 = arith.constant 0 : index
    %70 = vector.load %arg72[%c0_139, %c0_140] : memref<8x64xf32, #tpu.memory_space<vmem>>, vector<8x64xf32>
    %c0_141 = arith.constant 0 : index
    %c0_142 = arith.constant 0 : index
    %71 = vector.load %arg73[%c0_141, %c0_142] : memref<1x128xf32, #tpu.memory_space<vmem>>, vector<1x128xf32>
    %c0_143 = arith.constant 0 : index
    %c0_144 = arith.constant 0 : index
    %72 = vector.load %arg74[%c0_143, %c0_144] : memref<192x128xf32, #tpu.memory_space<vmem>>, vector<192x128xf32>
    %c0_145 = arith.constant 0 : index
    %c0_146 = arith.constant 0 : index
    %73 = vector.load %arg75[%c0_145, %c0_146] : memref<1x128xf32, #tpu.memory_space<vmem>>, vector<1x128xf32>
    %c0_147 = arith.constant 0 : index
    %c0_148 = arith.constant 0 : index
    %74 = vector.load %arg76[%c0_147, %c0_148] : memref<64x128xf32, #tpu.memory_space<vmem>>, vector<64x128xf32>
    %c0_149 = arith.constant 0 : index
    %c0_150 = arith.constant 0 : index
    %75 = vector.load %arg77[%c0_149, %c0_150] : memref<64x128xf32, #tpu.memory_space<vmem>>, vector<64x128xf32>
    %c0_151 = arith.constant 0 : index
    %c0_152 = arith.constant 0 : index
    %76 = vector.load %arg78[%c0_151, %c0_152] : memref<1x128xf32, #tpu.memory_space<vmem>>, vector<1x128xf32>
    %c0_153 = arith.constant 0 : index
    %c0_154 = arith.constant 0 : index
    %77 = vector.load %arg79[%c0_153, %c0_154] : memref<1x128xf32, #tpu.memory_space<vmem>>, vector<1x128xf32>
    %c0_155 = arith.constant 0 : index
    %c0_156 = arith.constant 0 : index
    %78 = vector.load %arg80[%c0_155, %c0_156] : memref<1x128xf32, #tpu.memory_space<vmem>>, vector<1x128xf32>
    %c0_157 = arith.constant 0 : index
    %c0_158 = arith.constant 0 : index
    %79 = vector.load %arg81[%c0_157, %c0_158] : memref<128x128xf32, #tpu.memory_space<vmem>>, vector<128x128xf32>
    %c0_159 = arith.constant 0 : index
    %c0_160 = arith.constant 0 : index
    %80 = vector.load %arg82[%c0_159, %c0_160] : memref<128x128xf32, #tpu.memory_space<vmem>>, vector<128x128xf32>
    %c0_161 = arith.constant 0 : index
    %c0_162 = arith.constant 0 : index
    %81 = vector.load %arg83[%c0_161, %c0_162] : memref<128x128xf32, #tpu.memory_space<vmem>>, vector<128x128xf32>
    %c0_163 = arith.constant 0 : index
    %c0_164 = arith.constant 0 : index
    %82 = vector.load %arg84[%c0_163, %c0_164] : memref<128x64xf32, #tpu.memory_space<vmem>>, vector<128x64xf32>
    %c0_165 = arith.constant 0 : index
    %c0_166 = arith.constant 0 : index
    %83 = vector.load %arg85[%c0_165, %c0_166] : memref<8x1xf32, #tpu.memory_space<vmem>>, vector<8x1xf32>
    %c0_167 = arith.constant 0 : index
    %c0_168 = arith.constant 0 : index
    %84 = vector.load %arg86[%c0_167, %c0_168] : memref<8x1xf32, #tpu.memory_space<vmem>>, vector<8x1xf32>
    %c0_169 = arith.constant 0 : index
    %c0_170 = arith.constant 0 : index
    %85 = vector.load %arg87[%c0_169, %c0_170] : memref<8x1xf32, #tpu.memory_space<vmem>>, vector<8x1xf32>
    %c0_171 = arith.constant 0 : index
    %c0_172 = arith.constant 0 : index
    %86 = vector.load %arg88[%c0_171, %c0_172] : memref<8x8xf32, #tpu.memory_space<vmem>>, vector<8x8xf32>
    %c0_173 = arith.constant 0 : index
    %c0_174 = arith.constant 0 : index
    %87 = vector.load %arg89[%c0_173, %c0_174] : memref<8x8xf32, #tpu.memory_space<vmem>>, vector<8x8xf32>
    %c0_175 = arith.constant 0 : index
    %c0_176 = arith.constant 0 : index
    %88 = vector.load %arg90[%c0_175, %c0_176] : memref<8x8xf32, #tpu.memory_space<vmem>>, vector<8x8xf32>
    %c0_177 = arith.constant 0 : index
    %c0_178 = arith.constant 0 : index
    %89 = vector.load %arg91[%c0_177, %c0_178] : memref<4x8xf32, #tpu.memory_space<vmem>>, vector<4x8xf32>
    %c0_179 = arith.constant 0 : index
    %c0_180 = arith.constant 0 : index
    %90 = vector.load %arg92[%c0_179, %c0_180] : memref<1x64xf32, #tpu.memory_space<vmem>>, vector<1x64xf32>
    %c0_181 = arith.constant 0 : index
    %c0_182 = arith.constant 0 : index
    %91 = vector.load %arg93[%c0_181, %c0_182] : memref<128x64xf32, #tpu.memory_space<vmem>>, vector<128x64xf32>
    %c0_183 = arith.constant 0 : index
    %c0_184 = arith.constant 0 : index
    %92 = vector.load %arg94[%c0_183, %c0_184] : memref<128x64xf32, #tpu.memory_space<vmem>>, vector<128x64xf32>
    %c0_185 = arith.constant 0 : index
    %c0_186 = arith.constant 0 : index
    %93 = vector.load %arg95[%c0_185, %c0_186] : memref<4x8xf32, #tpu.memory_space<vmem>>, vector<4x8xf32>
    %c0_187 = arith.constant 0 : index
    %c0_188 = arith.constant 0 : index
    %94 = vector.load %arg96[%c0_187, %c0_188] : memref<4x8xf32, #tpu.memory_space<vmem>>, vector<4x8xf32>
    %c0_189 = arith.constant 0 : index
    %c0_190 = arith.constant 0 : index
    %95 = vector.load %arg97[%c0_189, %c0_190] : memref<1x64xf32, #tpu.memory_space<vmem>>, vector<1x64xf32>
    %c0_191 = arith.constant 0 : index
    %c0_192 = arith.constant 0 : index
    %96 = vector.load %arg98[%c0_191, %c0_192] : memref<1x64xf32, #tpu.memory_space<vmem>>, vector<1x64xf32>
    %c0_193 = arith.constant 0 : index
    %c0_194 = arith.constant 0 : index
    %97 = vector.load %arg99[%c0_193, %c0_194] : memref<128x64xf32, #tpu.memory_space<vmem>>, vector<128x64xf32>
    %c0_195 = arith.constant 0 : index
    %c0_196 = arith.constant 0 : index
    %98 = vector.load %arg100[%c0_195, %c0_196] : memref<128x64xf32, #tpu.memory_space<vmem>>, vector<128x64xf32>
    %c0_197 = arith.constant 0 : index
    %c0_198 = arith.constant 0 : index
    %99 = vector.load %arg101[%c0_197, %c0_198] : memref<128x64xf32, #tpu.memory_space<vmem>>, vector<128x64xf32>
    %c0_199 = arith.constant 0 : index
    %c0_200 = arith.constant 0 : index
    %100 = vector.load %arg102[%c0_199, %c0_200] : memref<64x64xf32, #tpu.memory_space<vmem>>, vector<64x64xf32>
    %c0_201 = arith.constant 0 : index
    %c0_202 = arith.constant 0 : index
    %101 = vector.load %arg103[%c0_201, %c0_202] : memref<64x64xf32, #tpu.memory_space<vmem>>, vector<64x64xf32>
    %c0_203 = arith.constant 0 : index
    %c0_204 = arith.constant 0 : index
    %102 = vector.load %arg104[%c0_203, %c0_204] : memref<64x64xf32, #tpu.memory_space<vmem>>, vector<64x64xf32>
    %c0_205 = arith.constant 0 : index
    %c0_206 = arith.constant 0 : index
    %103 = vector.load %arg105[%c0_205, %c0_206] : memref<4x8xf32, #tpu.memory_space<vmem>>, vector<4x8xf32>
    %c0_207 = arith.constant 0 : index
    %c0_208 = arith.constant 0 : index
    %104 = vector.load %arg106[%c0_207, %c0_208] : memref<4x8xf32, #tpu.memory_space<vmem>>, vector<4x8xf32>
    %c0_209 = arith.constant 0 : index
    %c0_210 = arith.constant 0 : index
    %105 = vector.load %arg107[%c0_209, %c0_210] : memref<4x8xf32, #tpu.memory_space<vmem>>, vector<4x8xf32>
    %c0_211 = arith.constant 0 : index
    %c0_212 = arith.constant 0 : index
    %106 = vector.load %arg108[%c0_211, %c0_212] : memref<4x4xf32, #tpu.memory_space<vmem>>, vector<4x4xf32>
    %c0_213 = arith.constant 0 : index
    %c0_214 = arith.constant 0 : index
    %107 = vector.load %arg109[%c0_213, %c0_214] : memref<4x4xf32, #tpu.memory_space<vmem>>, vector<4x4xf32>
    %c0_215 = arith.constant 0 : index
    %c0_216 = arith.constant 0 : index
    %108 = vector.load %arg110[%c0_215, %c0_216] : memref<4x4xf32, #tpu.memory_space<vmem>>, vector<4x4xf32>
    %c0_217 = arith.constant 0 : index
    %c0_218 = arith.constant 0 : index
    %109 = vector.load %arg111[%c0_217, %c0_218] : memref<4x4xf32, #tpu.memory_space<vmem>>, vector<4x4xf32>
    %c0_219 = arith.constant 0 : index
    %c0_220 = arith.constant 0 : index
    %110 = vector.load %arg112[%c0_219, %c0_220] : memref<64x64xf32, #tpu.memory_space<vmem>>, vector<64x64xf32>
    %c0_221 = arith.constant 0 : index
    %c0_222 = arith.constant 0 : index
    %111 = vector.load %arg113[%c0_221, %c0_222] : memref<4x64xf32, #tpu.memory_space<vmem>>, vector<4x64xf32>
    %c0_223 = arith.constant 0 : index
    %c0_224 = arith.constant 0 : index
    %112 = vector.load %arg114[%c0_223, %c0_224] : memref<1x128xf32, #tpu.memory_space<vmem>>, vector<1x128xf32>
    %c0_225 = arith.constant 0 : index
    %c0_226 = arith.constant 0 : index
    %113 = vector.load %arg115[%c0_225, %c0_226] : memref<64x128xf32, #tpu.memory_space<vmem>>, vector<64x128xf32>
    %c0_227 = arith.constant 0 : index
    %c0_228 = arith.constant 0 : index
    %114 = vector.load %arg116[%c0_227, %c0_228] : memref<64x128xf32, #tpu.memory_space<vmem>>, vector<64x128xf32>
    %c0_229 = arith.constant 0 : index
    %c0_230 = arith.constant 0 : index
    %115 = vector.load %arg117[%c0_229, %c0_230] : memref<64x128xf32, #tpu.memory_space<vmem>>, vector<64x128xf32>
    %c0_231 = arith.constant 0 : index
    %c0_232 = arith.constant 0 : index
    %116 = vector.load %arg118[%c0_231, %c0_232] : memref<64x128xf32, #tpu.memory_space<vmem>>, vector<64x128xf32>
    %c0_233 = arith.constant 0 : index
    %c0_234 = arith.constant 0 : index
    %117 = vector.load %arg119[%c0_233, %c0_234] : memref<8x16xf32, #tpu.memory_space<vmem>>, vector<8x16xf32>
    %c0_235 = arith.constant 0 : index
    %c0_236 = arith.constant 0 : index
    %118 = vector.load %arg120[%c0_235, %c0_236] : memref<8x16xf32, #tpu.memory_space<vmem>>, vector<8x16xf32>
    %c0_237 = arith.constant 0 : index
    %c0_238 = arith.constant 0 : index
    %119 = vector.load %arg121[%c0_237, %c0_238] : memref<1x128xf32, #tpu.memory_space<vmem>>, vector<1x128xf32>
    %c0_239 = arith.constant 0 : index
    %c0_240 = arith.constant 0 : index
    %120 = vector.load %arg122[%c0_239, %c0_240] : memref<64x128xf32, #tpu.memory_space<vmem>>, vector<64x128xf32>
    %c0_241 = arith.constant 0 : index
    %c0_242 = arith.constant 0 : index
    %121 = vector.load %arg123[%c0_241, %c0_242] : memref<64x128xf32, #tpu.memory_space<vmem>>, vector<64x128xf32>
    %c0_243 = arith.constant 0 : index
    %c0_244 = arith.constant 0 : index
    %122 = vector.load %arg124[%c0_243, %c0_244] : memref<1x10xf32, #tpu.memory_space<vmem>>, vector<1x10xf32>
    %c0_245 = arith.constant 0 : index
    %c0_246 = arith.constant 0 : index
    %123 = vector.load %arg125[%c0_245, %c0_246] : memref<64x10xf32, #tpu.memory_space<vmem>>, vector<64x10xf32>
    %c0_247 = arith.constant 0 : index
    %c0_248 = arith.constant 0 : index
    %124 = vector.load %arg126[%c0_247, %c0_248] : memref<64x10xf32, #tpu.memory_space<vmem>>, vector<64x10xf32>
    %c0_249 = arith.constant 0 : index
    %c0_250 = arith.constant 0 : index
    %125 = vector.load %arg127[%c0_249, %c0_250] : memref<48x192xf32, #tpu.memory_space<vmem>>, vector<48x192xf32>
    %c0_251 = arith.constant 0 : index
    %c0_252 = arith.constant 0 : index
    %126 = vector.load %arg128[%c0_251, %c0_252] : memref<48x192xf32, #tpu.memory_space<vmem>>, vector<48x192xf32>
    %c0_253 = arith.constant 0 : index
    %c0_254 = arith.constant 0 : index
    %127 = vector.load %arg129[%c0_253, %c0_254] : memref<48x192xf32, #tpu.memory_space<vmem>>, vector<48x192xf32>
    %c0_255 = arith.constant 0 : index
    %c0_256 = arith.constant 0 : index
    %128 = vector.load %arg130[%c0_255, %c0_256] : memref<1x192xf32, #tpu.memory_space<vmem>>, vector<1x192xf32>
    %c0_257 = arith.constant 0 : index
    %c0_258 = arith.constant 0 : index
    %129 = vector.load %arg131[%c0_257, %c0_258] : memref<16x16xf32, #tpu.memory_space<vmem>>, vector<16x16xf32>
    %c0_259 = arith.constant 0 : index
    %c0_260 = arith.constant 0 : index
    %130 = vector.load %arg132[%c0_259, %c0_260] : memref<16x16xf32, #tpu.memory_space<vmem>>, vector<16x16xf32>
    %c0_261 = arith.constant 0 : index
    %c0_262 = arith.constant 0 : index
    %131 = vector.load %arg133[%c0_261, %c0_262] : memref<16x16xf32, #tpu.memory_space<vmem>>, vector<16x16xf32>
    %c0_263 = arith.constant 0 : index
    %c0_264 = arith.constant 0 : index
    %c0_265 = arith.constant 0 : index
    %132 = vector.load %arg1[%c0_263, %c0_264, %c0_265] : memref<1x16x48xf32, #tpu.memory_space<vmem>>, vector<1x16x48xf32>
    %133 = vector.shape_cast %132 : vector<1x16x48xf32> to vector<16x48xf32>
    %cst = arith.constant dense<0.000000e+00> : vector<16x48xf32>
    %134 = tpu.matmul %129, %133, %cst {dimension_numbers = #tpu.dot_dimension_numbers<[1], [0], [0], [1], [0, 0, 1, 1], [], []>} : vector<16x16xf32>, vector<16x48xf32>, vector<16x48xf32> -> vector<16x48xf32>
    %cst_266 = arith.constant dense<0.000000e+00> : vector<16x192xf32>
    %135 = tpu.matmul %134, %125, %cst_266 {dimension_numbers = #tpu.dot_dimension_numbers<[1], [0], [0], [1], [0, 0, 1, 1], [], []>} : vector<16x48xf32>, vector<48x192xf32>, vector<16x192xf32> -> vector<16x192xf32>
    %136 = vector.broadcast %128 : vector<1x192xf32> to vector<16x192xf32>
    %137 = arith.addf %136, %135 : vector<16x192xf32>
    %cst_267 = arith.constant dense<0.000000e+00> : vector<16x48xf32>
    %138 = tpu.matmul %130, %133, %cst_267 {dimension_numbers = #tpu.dot_dimension_numbers<[1], [0], [0], [1], [0, 0, 1, 1], [], []>} : vector<16x16xf32>, vector<16x48xf32>, vector<16x48xf32> -> vector<16x48xf32>
    %cst_268 = arith.constant dense<0.000000e+00> : vector<16x192xf32>
    %139 = tpu.matmul %138, %126, %cst_268 {dimension_numbers = #tpu.dot_dimension_numbers<[1], [0], [0], [1], [0, 0, 1, 1], [], []>} : vector<16x48xf32>, vector<48x192xf32>, vector<16x192xf32> -> vector<16x192xf32>
    %140 = arith.addf %137, %139 : vector<16x192xf32>
    %cst_269 = arith.constant dense<0.000000e+00> : vector<16x48xf32>
    %141 = tpu.matmul %131, %133, %cst_269 {dimension_numbers = #tpu.dot_dimension_numbers<[1], [0], [0], [1], [0, 0, 1, 1], [], []>} : vector<16x16xf32>, vector<16x48xf32>, vector<16x48xf32> -> vector<16x48xf32>
    %cst_270 = arith.constant dense<0.000000e+00> : vector<16x192xf32>
    %142 = tpu.matmul %141, %127, %cst_270 {dimension_numbers = #tpu.dot_dimension_numbers<[1], [0], [0], [1], [0, 0, 1, 1], [], []>} : vector<16x48xf32>, vector<48x192xf32>, vector<16x192xf32> -> vector<16x192xf32>
    %143 = arith.addf %140, %142 : vector<16x192xf32>
    %cst_271 = arith.constant 0.000000e+00 : f32
    %144 = vector.broadcast %cst_271 : f32 to vector<16x192xf32>
    %145 = arith.maximumf %143, %144 : vector<16x192xf32>
    %cst_272 = arith.constant dense<0.000000e+00> : vector<16x64xf32>
    %146 = tpu.matmul %145, %32, %cst_272 {dimension_numbers = #tpu.dot_dimension_numbers<[1], [0], [0], [1], [0, 0, 1, 1], [], []>} : vector<16x192xf32>, vector<192x64xf32>, vector<16x64xf32> -> vector<16x64xf32>
    %147 = vector.broadcast %31 : vector<1x64xf32> to vector<16x64xf32>
    %148 = arith.addf %147, %146 : vector<16x64xf32>
    %cst_273 = arith.constant 0.000000e+00 : f32
    %149 = vector.broadcast %cst_273 : f32 to vector<16x192xf32>
    %150 = arith.maximumf %143, %149 : vector<16x192xf32>
    %cst_274 = arith.constant dense<0.000000e+00> : vector<16x64xf32>
    %151 = tpu.matmul %150, %34, %cst_274 {dimension_numbers = #tpu.dot_dimension_numbers<[1], [0], [0], [1], [0, 0, 1, 1], [], []>} : vector<16x192xf32>, vector<192x64xf32>, vector<16x64xf32> -> vector<16x64xf32>
    %152 = vector.broadcast %33 : vector<1x64xf32> to vector<16x64xf32>
    %153 = arith.addf %152, %151 : vector<16x64xf32>
    %cst_275 = arith.constant 0.000000e+00 : f32
    %154 = vector.broadcast %cst_275 : f32 to vector<16x64xf32>
    %155 = arith.maximumf %148, %154 : vector<16x64xf32>
    %cst_276 = arith.constant dense<0.000000e+00> : vector<16x64xf32>
    %156 = tpu.matmul %8, %155, %cst_276 {dimension_numbers = #tpu.dot_dimension_numbers<[1], [0], [0], [1], [0, 0, 1, 1], [], []>} : vector<16x16xf32>, vector<16x64xf32>, vector<16x64xf32> -> vector<16x64xf32>
    %cst_277 = arith.constant dense<0.000000e+00> : vector<16x64xf32>
    %157 = tpu.matmul %156, %2, %cst_277 {dimension_numbers = #tpu.dot_dimension_numbers<[1], [0], [0], [1], [0, 0, 1, 1], [], []>} : vector<16x64xf32>, vector<64x64xf32>, vector<16x64xf32> -> vector<16x64xf32>
    %158 = vector.broadcast %0 : vector<1x64xf32> to vector<16x64xf32>
    %159 = arith.addf %158, %157 : vector<16x64xf32>
    %cst_278 = arith.constant dense<0.000000e+00> : vector<16x64xf32>
    %160 = tpu.matmul %9, %155, %cst_278 {dimension_numbers = #tpu.dot_dimension_numbers<[1], [0], [0], [1], [0, 0, 1, 1], [], []>} : vector<16x16xf32>, vector<16x64xf32>, vector<16x64xf32> -> vector<16x64xf32>
    %cst_279 = arith.constant dense<0.000000e+00> : vector<16x64xf32>
    %161 = tpu.matmul %160, %3, %cst_279 {dimension_numbers = #tpu.dot_dimension_numbers<[1], [0], [0], [1], [0, 0, 1, 1], [], []>} : vector<16x64xf32>, vector<64x64xf32>, vector<16x64xf32> -> vector<16x64xf32>
    %162 = arith.addf %159, %161 : vector<16x64xf32>
    %cst_280 = arith.constant dense<0.000000e+00> : vector<16x64xf32>
    %163 = tpu.matmul %10, %155, %cst_280 {dimension_numbers = #tpu.dot_dimension_numbers<[1], [0], [0], [1], [0, 0, 1, 1], [], []>} : vector<16x16xf32>, vector<16x64xf32>, vector<16x64xf32> -> vector<16x64xf32>
    %cst_281 = arith.constant dense<0.000000e+00> : vector<16x64xf32>
    %164 = tpu.matmul %163, %4, %cst_281 {dimension_numbers = #tpu.dot_dimension_numbers<[1], [0], [0], [1], [0, 0, 1, 1], [], []>} : vector<16x64xf32>, vector<64x64xf32>, vector<16x64xf32> -> vector<16x64xf32>
    %165 = arith.addf %162, %164 : vector<16x64xf32>
    %cst_282 = arith.constant 0.000000e+00 : f32
    %166 = vector.broadcast %cst_282 : f32 to vector<16x64xf32>
    %167 = arith.maximumf %165, %166 : vector<16x64xf32>
    %cst_283 = arith.constant dense<0.000000e+00> : vector<16x64xf32>
    %168 = tpu.matmul %11, %167, %cst_283 {dimension_numbers = #tpu.dot_dimension_numbers<[1], [0], [0], [1], [0, 0, 1, 1], [], []>} : vector<16x16xf32>, vector<16x64xf32>, vector<16x64xf32> -> vector<16x64xf32>
    %cst_284 = arith.constant dense<0.000000e+00> : vector<16x64xf32>
    %169 = tpu.matmul %168, %5, %cst_284 {dimension_numbers = #tpu.dot_dimension_numbers<[1], [0], [0], [1], [0, 0, 1, 1], [], []>} : vector<16x64xf32>, vector<64x64xf32>, vector<16x64xf32> -> vector<16x64xf32>
    %170 = vector.broadcast %1 : vector<1x64xf32> to vector<16x64xf32>
    %171 = arith.addf %170, %169 : vector<16x64xf32>
    %cst_285 = arith.constant dense<0.000000e+00> : vector<16x64xf32>
    %172 = tpu.matmul %12, %167, %cst_285 {dimension_numbers = #tpu.dot_dimension_numbers<[1], [0], [0], [1], [0, 0, 1, 1], [], []>} : vector<16x16xf32>, vector<16x64xf32>, vector<16x64xf32> -> vector<16x64xf32>
    %cst_286 = arith.constant dense<0.000000e+00> : vector<16x64xf32>
    %173 = tpu.matmul %172, %6, %cst_286 {dimension_numbers = #tpu.dot_dimension_numbers<[1], [0], [0], [1], [0, 0, 1, 1], [], []>} : vector<16x64xf32>, vector<64x64xf32>, vector<16x64xf32> -> vector<16x64xf32>
    %174 = arith.addf %171, %173 : vector<16x64xf32>
    %cst_287 = arith.constant dense<0.000000e+00> : vector<16x64xf32>
    %175 = tpu.matmul %13, %167, %cst_287 {dimension_numbers = #tpu.dot_dimension_numbers<[1], [0], [0], [1], [0, 0, 1, 1], [], []>} : vector<16x16xf32>, vector<16x64xf32>, vector<16x64xf32> -> vector<16x64xf32>
    %cst_288 = arith.constant dense<0.000000e+00> : vector<16x64xf32>
    %176 = tpu.matmul %175, %7, %cst_288 {dimension_numbers = #tpu.dot_dimension_numbers<[1], [0], [0], [1], [0, 0, 1, 1], [], []>} : vector<16x64xf32>, vector<64x64xf32>, vector<16x64xf32> -> vector<16x64xf32>
    %177 = arith.addf %174, %176 : vector<16x64xf32>
    %178 = arith.addf %177, %153 : vector<16x64xf32>
    %cst_289 = arith.constant 0.000000e+00 : f32
    %179 = vector.broadcast %cst_289 : f32 to vector<16x64xf32>
    %180 = arith.maximumf %153, %179 : vector<16x64xf32>
    %cst_290 = arith.constant dense<0.000000e+00> : vector<16x64xf32>
    %181 = tpu.matmul %22, %180, %cst_290 {dimension_numbers = #tpu.dot_dimension_numbers<[1], [0], [0], [1], [0, 0, 1, 1], [], []>} : vector<16x16xf32>, vector<16x64xf32>, vector<16x64xf32> -> vector<16x64xf32>
    %cst_291 = arith.constant dense<0.000000e+00> : vector<16x64xf32>
    %182 = tpu.matmul %181, %16, %cst_291 {dimension_numbers = #tpu.dot_dimension_numbers<[1], [0], [0], [1], [0, 0, 1, 1], [], []>} : vector<16x64xf32>, vector<64x64xf32>, vector<16x64xf32> -> vector<16x64xf32>
    %183 = vector.broadcast %14 : vector<1x64xf32> to vector<16x64xf32>
    %184 = arith.addf %183, %182 : vector<16x64xf32>
    %cst_292 = arith.constant dense<0.000000e+00> : vector<16x64xf32>
    %185 = tpu.matmul %23, %180, %cst_292 {dimension_numbers = #tpu.dot_dimension_numbers<[1], [0], [0], [1], [0, 0, 1, 1], [], []>} : vector<16x16xf32>, vector<16x64xf32>, vector<16x64xf32> -> vector<16x64xf32>
    %cst_293 = arith.constant dense<0.000000e+00> : vector<16x64xf32>
    %186 = tpu.matmul %185, %17, %cst_293 {dimension_numbers = #tpu.dot_dimension_numbers<[1], [0], [0], [1], [0, 0, 1, 1], [], []>} : vector<16x64xf32>, vector<64x64xf32>, vector<16x64xf32> -> vector<16x64xf32>
    %187 = arith.addf %184, %186 : vector<16x64xf32>
    %cst_294 = arith.constant dense<0.000000e+00> : vector<16x64xf32>
    %188 = tpu.matmul %24, %180, %cst_294 {dimension_numbers = #tpu.dot_dimension_numbers<[1], [0], [0], [1], [0, 0, 1, 1], [], []>} : vector<16x16xf32>, vector<16x64xf32>, vector<16x64xf32> -> vector<16x64xf32>
    %cst_295 = arith.constant dense<0.000000e+00> : vector<16x64xf32>
    %189 = tpu.matmul %188, %18, %cst_295 {dimension_numbers = #tpu.dot_dimension_numbers<[1], [0], [0], [1], [0, 0, 1, 1], [], []>} : vector<16x64xf32>, vector<64x64xf32>, vector<16x64xf32> -> vector<16x64xf32>
    %190 = arith.addf %187, %189 : vector<16x64xf32>
    %cst_296 = arith.constant 0.000000e+00 : f32
    %191 = vector.broadcast %cst_296 : f32 to vector<16x64xf32>
    %192 = arith.maximumf %190, %191 : vector<16x64xf32>
    %cst_297 = arith.constant dense<0.000000e+00> : vector<16x64xf32>
    %193 = tpu.matmul %25, %192, %cst_297 {dimension_numbers = #tpu.dot_dimension_numbers<[1], [0], [0], [1], [0, 0, 1, 1], [], []>} : vector<16x16xf32>, vector<16x64xf32>, vector<16x64xf32> -> vector<16x64xf32>
    %cst_298 = arith.constant dense<0.000000e+00> : vector<16x64xf32>
    %194 = tpu.matmul %193, %19, %cst_298 {dimension_numbers = #tpu.dot_dimension_numbers<[1], [0], [0], [1], [0, 0, 1, 1], [], []>} : vector<16x64xf32>, vector<64x64xf32>, vector<16x64xf32> -> vector<16x64xf32>
    %195 = vector.broadcast %15 : vector<1x64xf32> to vector<16x64xf32>
    %196 = arith.addf %195, %194 : vector<16x64xf32>
    %cst_299 = arith.constant dense<0.000000e+00> : vector<16x64xf32>
    %197 = tpu.matmul %26, %192, %cst_299 {dimension_numbers = #tpu.dot_dimension_numbers<[1], [0], [0], [1], [0, 0, 1, 1], [], []>} : vector<16x16xf32>, vector<16x64xf32>, vector<16x64xf32> -> vector<16x64xf32>
    %cst_300 = arith.constant dense<0.000000e+00> : vector<16x64xf32>
    %198 = tpu.matmul %197, %20, %cst_300 {dimension_numbers = #tpu.dot_dimension_numbers<[1], [0], [0], [1], [0, 0, 1, 1], [], []>} : vector<16x64xf32>, vector<64x64xf32>, vector<16x64xf32> -> vector<16x64xf32>
    %199 = arith.addf %196, %198 : vector<16x64xf32>
    %cst_301 = arith.constant dense<0.000000e+00> : vector<16x64xf32>
    %200 = tpu.matmul %27, %192, %cst_301 {dimension_numbers = #tpu.dot_dimension_numbers<[1], [0], [0], [1], [0, 0, 1, 1], [], []>} : vector<16x16xf32>, vector<16x64xf32>, vector<16x64xf32> -> vector<16x64xf32>
    %cst_302 = arith.constant dense<0.000000e+00> : vector<16x64xf32>
    %201 = tpu.matmul %200, %21, %cst_302 {dimension_numbers = #tpu.dot_dimension_numbers<[1], [0], [0], [1], [0, 0, 1, 1], [], []>} : vector<16x64xf32>, vector<64x64xf32>, vector<16x64xf32> -> vector<16x64xf32>
    %202 = arith.addf %199, %201 : vector<16x64xf32>
    %cst_303 = arith.constant dense<0.000000e+00> : vector<16x64xf32>
    %203 = tpu.matmul %28, %148, %cst_303 {dimension_numbers = #tpu.dot_dimension_numbers<[1], [0], [0], [1], [0, 0, 1, 1], [], []>} : vector<16x16xf32>, vector<16x64xf32>, vector<16x64xf32> -> vector<16x64xf32>
    %cst_304 = arith.constant dense<0.000000e+00> : vector<16x64xf32>
    %204 = tpu.matmul %203, %29, %cst_304 {dimension_numbers = #tpu.dot_dimension_numbers<[1], [0], [0], [1], [0, 0, 1, 1], [], []>} : vector<16x64xf32>, vector<64x64xf32>, vector<16x64xf32> -> vector<16x64xf32>
    %205 = arith.mulf %204, %30 : vector<16x64xf32>
    %206 = arith.addf %202, %205 : vector<16x64xf32>
    %cst_305 = arith.constant 0.000000e+00 : f32
    %207 = vector.broadcast %cst_305 : f32 to vector<16x192xf32>
    %208 = arith.maximumf %143, %207 : vector<16x192xf32>
    %cst_306 = arith.constant dense<0.000000e+00> : vector<16x128xf32>
    %209 = tpu.matmul %208, %72, %cst_306 {dimension_numbers = #tpu.dot_dimension_numbers<[1], [0], [0], [1], [0, 0, 1, 1], [], []>} : vector<16x192xf32>, vector<192x128xf32>, vector<16x128xf32> -> vector<16x128xf32>
    %210 = vector.broadcast %71 : vector<1x128xf32> to vector<16x128xf32>
    %211 = arith.addf %210, %209 : vector<16x128xf32>
    %cst_307 = arith.constant 0.000000e+00 : f32
    %212 = vector.broadcast %cst_307 : f32 to vector<16x64xf32>
    %213 = arith.maximumf %178, %212 : vector<16x64xf32>
    %cst_308 = arith.constant dense<0.000000e+00> : vector<16x128xf32>
    %214 = tpu.matmul %213, %74, %cst_308 {dimension_numbers = #tpu.dot_dimension_numbers<[1], [0], [0], [1], [0, 0, 1, 1], [], []>} : vector<16x64xf32>, vector<64x128xf32>, vector<16x128xf32> -> vector<16x128xf32>
    %215 = vector.broadcast %73 : vector<1x128xf32> to vector<16x128xf32>
    %216 = arith.addf %215, %214 : vector<16x128xf32>
    %cst_309 = arith.constant 0.000000e+00 : f32
    %217 = vector.broadcast %cst_309 : f32 to vector<16x64xf32>
    %218 = arith.maximumf %206, %217 : vector<16x64xf32>
    %cst_310 = arith.constant dense<0.000000e+00> : vector<16x128xf32>
    %219 = tpu.matmul %218, %75, %cst_310 {dimension_numbers = #tpu.dot_dimension_numbers<[1], [0], [0], [1], [0, 0, 1, 1], [], []>} : vector<16x64xf32>, vector<64x128xf32>, vector<16x128xf32> -> vector<16x128xf32>
    %220 = arith.addf %216, %219 : vector<16x128xf32>
    %cst_311 = arith.constant dense<0.000000e+00> : vector<16x128xf32>
    %221 = tpu.matmul %45, %211, %cst_311 {dimension_numbers = #tpu.dot_dimension_numbers<[1], [0], [0], [1], [0, 0, 1, 1], [], []>} : vector<16x16xf32>, vector<16x128xf32>, vector<16x128xf32> -> vector<16x128xf32>
    %222 = vector.broadcast %42 : vector<16x1xf32> to vector<16x128xf32>
    %223 = arith.addf %221, %222 : vector<16x128xf32>
    %cst_312 = arith.constant dense<0.000000e+00> : vector<16x128xf32>
    %224 = tpu.matmul %46, %211, %cst_312 {dimension_numbers = #tpu.dot_dimension_numbers<[1], [0], [0], [1], [0, 0, 1, 1], [], []>} : vector<16x16xf32>, vector<16x128xf32>, vector<16x128xf32> -> vector<16x128xf32>
    %225 = vector.broadcast %43 : vector<16x1xf32> to vector<16x128xf32>
    %226 = arith.addf %224, %225 : vector<16x128xf32>
    %227 = arith.maximumf %223, %226 : vector<16x128xf32>
    %cst_313 = arith.constant dense<0.000000e+00> : vector<16x128xf32>
    %228 = tpu.matmul %47, %211, %cst_313 {dimension_numbers = #tpu.dot_dimension_numbers<[1], [0], [0], [1], [0, 0, 1, 1], [], []>} : vector<16x16xf32>, vector<16x128xf32>, vector<16x128xf32> -> vector<16x128xf32>
    %229 = vector.broadcast %44 : vector<16x1xf32> to vector<16x128xf32>
    %230 = arith.addf %228, %229 : vector<16x128xf32>
    %231 = arith.maximumf %227, %230 : vector<16x128xf32>
    %cst_314 = arith.constant dense<0.000000e+00> : vector<16x128xf32>
    %232 = tpu.matmul %231, %38, %cst_314 {dimension_numbers = #tpu.dot_dimension_numbers<[1], [0], [0], [1], [0, 0, 1, 1], [], []>} : vector<16x128xf32>, vector<128x128xf32>, vector<16x128xf32> -> vector<16x128xf32>
    %233 = vector.broadcast %35 : vector<1x128xf32> to vector<16x128xf32>
    %234 = arith.addf %232, %233 : vector<16x128xf32>
    %cst_315 = arith.constant dense<0.000000e+00> : vector<16x128xf32>
    %235 = tpu.matmul %231, %39, %cst_315 {dimension_numbers = #tpu.dot_dimension_numbers<[1], [0], [0], [1], [0, 0, 1, 1], [], []>} : vector<16x128xf32>, vector<128x128xf32>, vector<16x128xf32> -> vector<16x128xf32>
    %236 = vector.broadcast %36 : vector<1x128xf32> to vector<16x128xf32>
    %237 = arith.addf %235, %236 : vector<16x128xf32>
    %238 = arith.maximumf %234, %237 : vector<16x128xf32>
    %cst_316 = arith.constant dense<0.000000e+00> : vector<16x128xf32>
    %239 = tpu.matmul %231, %40, %cst_316 {dimension_numbers = #tpu.dot_dimension_numbers<[1], [0], [0], [1], [0, 0, 1, 1], [], []>} : vector<16x128xf32>, vector<128x128xf32>, vector<16x128xf32> -> vector<16x128xf32>
    %240 = vector.broadcast %37 : vector<1x128xf32> to vector<16x128xf32>
    %241 = arith.addf %239, %240 : vector<16x128xf32>
    %242 = arith.maximumf %238, %241 : vector<16x128xf32>
    %cst_317 = arith.constant dense<0.000000e+00> : vector<8x128xf32>
    %243 = tpu.matmul %48, %242, %cst_317 {dimension_numbers = #tpu.dot_dimension_numbers<[1], [0], [0], [1], [0, 0, 1, 1], [], []>} : vector<8x16xf32>, vector<16x128xf32>, vector<8x128xf32> -> vector<8x128xf32>
    %cst_318 = arith.constant dense<0.000000e+00> : vector<8x64xf32>
    %244 = tpu.matmul %243, %41, %cst_318 {dimension_numbers = #tpu.dot_dimension_numbers<[1], [0], [0], [1], [0, 0, 1, 1], [], []>} : vector<8x128xf32>, vector<128x64xf32>, vector<8x64xf32> -> vector<8x64xf32>
    %cst_319 = arith.constant 0.000000e+00 : f32
    %245 = vector.broadcast %cst_319 : f32 to vector<16x128xf32>
    %246 = arith.maximumf %220, %245 : vector<16x128xf32>
    %cst_320 = arith.constant dense<0.000000e+00> : vector<8x128xf32>
    %247 = tpu.matmul %52, %246, %cst_320 {dimension_numbers = #tpu.dot_dimension_numbers<[1], [0], [0], [1], [0, 0, 1, 1], [], []>} : vector<8x16xf32>, vector<16x128xf32>, vector<8x128xf32> -> vector<8x128xf32>
    %cst_321 = arith.constant dense<0.000000e+00> : vector<8x64xf32>
    %248 = tpu.matmul %247, %50, %cst_321 {dimension_numbers = #tpu.dot_dimension_numbers<[1], [0], [0], [1], [0, 0, 1, 1], [], []>} : vector<8x128xf32>, vector<128x64xf32>, vector<8x64xf32> -> vector<8x64xf32>
    %249 = vector.broadcast %49 : vector<1x64xf32> to vector<8x64xf32>
    %250 = arith.addf %249, %248 : vector<8x64xf32>
    %cst_322 = arith.constant dense<0.000000e+00> : vector<8x128xf32>
    %251 = tpu.matmul %53, %246, %cst_322 {dimension_numbers = #tpu.dot_dimension_numbers<[1], [0], [0], [1], [0, 0, 1, 1], [], []>} : vector<8x16xf32>, vector<16x128xf32>, vector<8x128xf32> -> vector<8x128xf32>
    %cst_323 = arith.constant dense<0.000000e+00> : vector<8x64xf32>
    %252 = tpu.matmul %251, %51, %cst_323 {dimension_numbers = #tpu.dot_dimension_numbers<[1], [0], [0], [1], [0, 0, 1, 1], [], []>} : vector<8x128xf32>, vector<128x64xf32>, vector<8x64xf32> -> vector<8x64xf32>
    %253 = arith.addf %250, %252 : vector<8x64xf32>
    %254 = arith.addf %244, %253 : vector<8x64xf32>
    %cst_324 = arith.constant 0.000000e+00 : f32
    %255 = vector.broadcast %cst_324 : f32 to vector<16x128xf32>
    %256 = arith.maximumf %220, %255 : vector<16x128xf32>
    %cst_325 = arith.constant dense<0.000000e+00> : vector<8x128xf32>
    %257 = tpu.matmul %62, %256, %cst_325 {dimension_numbers = #tpu.dot_dimension_numbers<[1], [0], [0], [1], [0, 0, 1, 1], [], []>} : vector<8x16xf32>, vector<16x128xf32>, vector<8x128xf32> -> vector<8x128xf32>
    %cst_326 = arith.constant dense<0.000000e+00> : vector<8x64xf32>
    %258 = tpu.matmul %257, %56, %cst_326 {dimension_numbers = #tpu.dot_dimension_numbers<[1], [0], [0], [1], [0, 0, 1, 1], [], []>} : vector<8x128xf32>, vector<128x64xf32>, vector<8x64xf32> -> vector<8x64xf32>
    %259 = vector.broadcast %54 : vector<1x64xf32> to vector<8x64xf32>
    %260 = arith.addf %259, %258 : vector<8x64xf32>
    %cst_327 = arith.constant dense<0.000000e+00> : vector<8x128xf32>
    %261 = tpu.matmul %63, %256, %cst_327 {dimension_numbers = #tpu.dot_dimension_numbers<[1], [0], [0], [1], [0, 0, 1, 1], [], []>} : vector<8x16xf32>, vector<16x128xf32>, vector<8x128xf32> -> vector<8x128xf32>
    %cst_328 = arith.constant dense<0.000000e+00> : vector<8x64xf32>
    %262 = tpu.matmul %261, %57, %cst_328 {dimension_numbers = #tpu.dot_dimension_numbers<[1], [0], [0], [1], [0, 0, 1, 1], [], []>} : vector<8x128xf32>, vector<128x64xf32>, vector<8x64xf32> -> vector<8x64xf32>
    %263 = arith.addf %260, %262 : vector<8x64xf32>
    %cst_329 = arith.constant dense<0.000000e+00> : vector<8x128xf32>
    %264 = tpu.matmul %64, %256, %cst_329 {dimension_numbers = #tpu.dot_dimension_numbers<[1], [0], [0], [1], [0, 0, 1, 1], [], []>} : vector<8x16xf32>, vector<16x128xf32>, vector<8x128xf32> -> vector<8x128xf32>
    %cst_330 = arith.constant dense<0.000000e+00> : vector<8x64xf32>
    %265 = tpu.matmul %264, %58, %cst_330 {dimension_numbers = #tpu.dot_dimension_numbers<[1], [0], [0], [1], [0, 0, 1, 1], [], []>} : vector<8x128xf32>, vector<128x64xf32>, vector<8x64xf32> -> vector<8x64xf32>
    %266 = arith.addf %263, %265 : vector<8x64xf32>
    %cst_331 = arith.constant 0.000000e+00 : f32
    %267 = vector.broadcast %cst_331 : f32 to vector<8x64xf32>
    %268 = arith.maximumf %266, %267 : vector<8x64xf32>
    %cst_332 = arith.constant dense<0.000000e+00> : vector<8x64xf32>
    %269 = tpu.matmul %65, %268, %cst_332 {dimension_numbers = #tpu.dot_dimension_numbers<[1], [0], [0], [1], [0, 0, 1, 1], [], []>} : vector<8x8xf32>, vector<8x64xf32>, vector<8x64xf32> -> vector<8x64xf32>
    %cst_333 = arith.constant dense<0.000000e+00> : vector<8x64xf32>
    %270 = tpu.matmul %269, %59, %cst_333 {dimension_numbers = #tpu.dot_dimension_numbers<[1], [0], [0], [1], [0, 0, 1, 1], [], []>} : vector<8x64xf32>, vector<64x64xf32>, vector<8x64xf32> -> vector<8x64xf32>
    %271 = vector.broadcast %55 : vector<1x64xf32> to vector<8x64xf32>
    %272 = arith.addf %271, %270 : vector<8x64xf32>
    %cst_334 = arith.constant dense<0.000000e+00> : vector<8x64xf32>
    %273 = tpu.matmul %66, %268, %cst_334 {dimension_numbers = #tpu.dot_dimension_numbers<[1], [0], [0], [1], [0, 0, 1, 1], [], []>} : vector<8x8xf32>, vector<8x64xf32>, vector<8x64xf32> -> vector<8x64xf32>
    %cst_335 = arith.constant dense<0.000000e+00> : vector<8x64xf32>
    %274 = tpu.matmul %273, %60, %cst_335 {dimension_numbers = #tpu.dot_dimension_numbers<[1], [0], [0], [1], [0, 0, 1, 1], [], []>} : vector<8x64xf32>, vector<64x64xf32>, vector<8x64xf32> -> vector<8x64xf32>
    %275 = arith.addf %272, %274 : vector<8x64xf32>
    %cst_336 = arith.constant dense<0.000000e+00> : vector<8x64xf32>
    %276 = tpu.matmul %67, %268, %cst_336 {dimension_numbers = #tpu.dot_dimension_numbers<[1], [0], [0], [1], [0, 0, 1, 1], [], []>} : vector<8x8xf32>, vector<8x64xf32>, vector<8x64xf32> -> vector<8x64xf32>
    %cst_337 = arith.constant dense<0.000000e+00> : vector<8x64xf32>
    %277 = tpu.matmul %276, %61, %cst_337 {dimension_numbers = #tpu.dot_dimension_numbers<[1], [0], [0], [1], [0, 0, 1, 1], [], []>} : vector<8x64xf32>, vector<64x64xf32>, vector<8x64xf32> -> vector<8x64xf32>
    %278 = arith.addf %275, %277 : vector<8x64xf32>
    %cst_338 = arith.constant dense<0.000000e+00> : vector<8x64xf32>
    %279 = tpu.matmul %68, %254, %cst_338 {dimension_numbers = #tpu.dot_dimension_numbers<[1], [0], [0], [1], [0, 0, 1, 1], [], []>} : vector<8x8xf32>, vector<8x64xf32>, vector<8x64xf32> -> vector<8x64xf32>
    %cst_339 = arith.constant dense<0.000000e+00> : vector<8x64xf32>
    %280 = tpu.matmul %279, %69, %cst_339 {dimension_numbers = #tpu.dot_dimension_numbers<[1], [0], [0], [1], [0, 0, 1, 1], [], []>} : vector<8x64xf32>, vector<64x64xf32>, vector<8x64xf32> -> vector<8x64xf32>
    %281 = arith.mulf %280, %70 : vector<8x64xf32>
    %282 = arith.addf %278, %281 : vector<8x64xf32>
    %cst_340 = arith.constant 0.000000e+00 : f32
    %283 = vector.broadcast %cst_340 : f32 to vector<16x64xf32>
    %284 = arith.maximumf %178, %283 : vector<16x64xf32>
    %cst_341 = arith.constant dense<0.000000e+00> : vector<8x64xf32>
    %285 = tpu.matmul %117, %284, %cst_341 {dimension_numbers = #tpu.dot_dimension_numbers<[1], [0], [0], [1], [0, 0, 1, 1], [], []>} : vector<8x16xf32>, vector<16x64xf32>, vector<8x64xf32> -> vector<8x64xf32>
    %cst_342 = arith.constant dense<0.000000e+00> : vector<8x128xf32>
    %286 = tpu.matmul %285, %113, %cst_342 {dimension_numbers = #tpu.dot_dimension_numbers<[1], [0], [0], [1], [0, 0, 1, 1], [], []>} : vector<8x64xf32>, vector<64x128xf32>, vector<8x128xf32> -> vector<8x128xf32>
    %287 = vector.broadcast %112 : vector<1x128xf32> to vector<8x128xf32>
    %288 = arith.addf %287, %286 : vector<8x128xf32>
    %cst_343 = arith.constant dense<0.000000e+00> : vector<8x64xf32>
    %289 = tpu.matmul %118, %284, %cst_343 {dimension_numbers = #tpu.dot_dimension_numbers<[1], [0], [0], [1], [0, 0, 1, 1], [], []>} : vector<8x16xf32>, vector<16x64xf32>, vector<8x64xf32> -> vector<8x64xf32>
    %cst_344 = arith.constant dense<0.000000e+00> : vector<8x128xf32>
    %290 = tpu.matmul %289, %115, %cst_344 {dimension_numbers = #tpu.dot_dimension_numbers<[1], [0], [0], [1], [0, 0, 1, 1], [], []>} : vector<8x64xf32>, vector<64x128xf32>, vector<8x128xf32> -> vector<8x128xf32>
    %291 = arith.addf %288, %290 : vector<8x128xf32>
    %cst_345 = arith.constant 0.000000e+00 : f32
    %292 = vector.broadcast %cst_345 : f32 to vector<16x64xf32>
    %293 = arith.maximumf %206, %292 : vector<16x64xf32>
    %cst_346 = arith.constant dense<0.000000e+00> : vector<8x64xf32>
    %294 = tpu.matmul %117, %293, %cst_346 {dimension_numbers = #tpu.dot_dimension_numbers<[1], [0], [0], [1], [0, 0, 1, 1], [], []>} : vector<8x16xf32>, vector<16x64xf32>, vector<8x64xf32> -> vector<8x64xf32>
    %cst_347 = arith.constant dense<0.000000e+00> : vector<8x128xf32>
    %295 = tpu.matmul %294, %114, %cst_347 {dimension_numbers = #tpu.dot_dimension_numbers<[1], [0], [0], [1], [0, 0, 1, 1], [], []>} : vector<8x64xf32>, vector<64x128xf32>, vector<8x128xf32> -> vector<8x128xf32>
    %296 = arith.addf %291, %295 : vector<8x128xf32>
    %cst_348 = arith.constant dense<0.000000e+00> : vector<8x64xf32>
    %297 = tpu.matmul %118, %293, %cst_348 {dimension_numbers = #tpu.dot_dimension_numbers<[1], [0], [0], [1], [0, 0, 1, 1], [], []>} : vector<8x16xf32>, vector<16x64xf32>, vector<8x64xf32> -> vector<8x64xf32>
    %cst_349 = arith.constant dense<0.000000e+00> : vector<8x128xf32>
    %298 = tpu.matmul %297, %116, %cst_349 {dimension_numbers = #tpu.dot_dimension_numbers<[1], [0], [0], [1], [0, 0, 1, 1], [], []>} : vector<8x64xf32>, vector<64x128xf32>, vector<8x128xf32> -> vector<8x128xf32>
    %299 = arith.addf %296, %298 : vector<8x128xf32>
    %cst_350 = arith.constant 0.000000e+00 : f32
    %300 = vector.broadcast %cst_350 : f32 to vector<8x64xf32>
    %301 = arith.maximumf %254, %300 : vector<8x64xf32>
    %cst_351 = arith.constant dense<0.000000e+00> : vector<8x128xf32>
    %302 = tpu.matmul %301, %120, %cst_351 {dimension_numbers = #tpu.dot_dimension_numbers<[1], [0], [0], [1], [0, 0, 1, 1], [], []>} : vector<8x64xf32>, vector<64x128xf32>, vector<8x128xf32> -> vector<8x128xf32>
    %303 = vector.broadcast %119 : vector<1x128xf32> to vector<8x128xf32>
    %304 = arith.addf %303, %302 : vector<8x128xf32>
    %cst_352 = arith.constant 0.000000e+00 : f32
    %305 = vector.broadcast %cst_352 : f32 to vector<8x64xf32>
    %306 = arith.maximumf %282, %305 : vector<8x64xf32>
    %cst_353 = arith.constant dense<0.000000e+00> : vector<8x128xf32>
    %307 = tpu.matmul %306, %121, %cst_353 {dimension_numbers = #tpu.dot_dimension_numbers<[1], [0], [0], [1], [0, 0, 1, 1], [], []>} : vector<8x64xf32>, vector<64x128xf32>, vector<8x128xf32> -> vector<8x128xf32>
    %308 = arith.addf %304, %307 : vector<8x128xf32>
    %cst_354 = arith.constant dense<0.000000e+00> : vector<8x128xf32>
    %309 = tpu.matmul %86, %299, %cst_354 {dimension_numbers = #tpu.dot_dimension_numbers<[1], [0], [0], [1], [0, 0, 1, 1], [], []>} : vector<8x8xf32>, vector<8x128xf32>, vector<8x128xf32> -> vector<8x128xf32>
    %310 = vector.broadcast %83 : vector<8x1xf32> to vector<8x128xf32>
    %311 = arith.addf %309, %310 : vector<8x128xf32>
    %cst_355 = arith.constant dense<0.000000e+00> : vector<8x128xf32>
    %312 = tpu.matmul %87, %299, %cst_355 {dimension_numbers = #tpu.dot_dimension_numbers<[1], [0], [0], [1], [0, 0, 1, 1], [], []>} : vector<8x8xf32>, vector<8x128xf32>, vector<8x128xf32> -> vector<8x128xf32>
    %313 = vector.broadcast %84 : vector<8x1xf32> to vector<8x128xf32>
    %314 = arith.addf %312, %313 : vector<8x128xf32>
    %315 = arith.maximumf %311, %314 : vector<8x128xf32>
    %cst_356 = arith.constant dense<0.000000e+00> : vector<8x128xf32>
    %316 = tpu.matmul %88, %299, %cst_356 {dimension_numbers = #tpu.dot_dimension_numbers<[1], [0], [0], [1], [0, 0, 1, 1], [], []>} : vector<8x8xf32>, vector<8x128xf32>, vector<8x128xf32> -> vector<8x128xf32>
    %317 = vector.broadcast %85 : vector<8x1xf32> to vector<8x128xf32>
    %318 = arith.addf %316, %317 : vector<8x128xf32>
    %319 = arith.maximumf %315, %318 : vector<8x128xf32>
    %cst_357 = arith.constant dense<0.000000e+00> : vector<8x128xf32>
    %320 = tpu.matmul %319, %79, %cst_357 {dimension_numbers = #tpu.dot_dimension_numbers<[1], [0], [0], [1], [0, 0, 1, 1], [], []>} : vector<8x128xf32>, vector<128x128xf32>, vector<8x128xf32> -> vector<8x128xf32>
    %321 = vector.broadcast %76 : vector<1x128xf32> to vector<8x128xf32>
    %322 = arith.addf %320, %321 : vector<8x128xf32>
    %cst_358 = arith.constant dense<0.000000e+00> : vector<8x128xf32>
    %323 = tpu.matmul %319, %80, %cst_358 {dimension_numbers = #tpu.dot_dimension_numbers<[1], [0], [0], [1], [0, 0, 1, 1], [], []>} : vector<8x128xf32>, vector<128x128xf32>, vector<8x128xf32> -> vector<8x128xf32>
    %324 = vector.broadcast %77 : vector<1x128xf32> to vector<8x128xf32>
    %325 = arith.addf %323, %324 : vector<8x128xf32>
    %326 = arith.maximumf %322, %325 : vector<8x128xf32>
    %cst_359 = arith.constant dense<0.000000e+00> : vector<8x128xf32>
    %327 = tpu.matmul %319, %81, %cst_359 {dimension_numbers = #tpu.dot_dimension_numbers<[1], [0], [0], [1], [0, 0, 1, 1], [], []>} : vector<8x128xf32>, vector<128x128xf32>, vector<8x128xf32> -> vector<8x128xf32>
    %328 = vector.broadcast %78 : vector<1x128xf32> to vector<8x128xf32>
    %329 = arith.addf %327, %328 : vector<8x128xf32>
    %330 = arith.maximumf %326, %329 : vector<8x128xf32>
    %cst_360 = arith.constant dense<0.000000e+00> : vector<4x128xf32>
    %331 = tpu.matmul %89, %330, %cst_360 {dimension_numbers = #tpu.dot_dimension_numbers<[1], [0], [0], [1], [0, 0, 1, 1], [], []>} : vector<4x8xf32>, vector<8x128xf32>, vector<4x128xf32> -> vector<4x128xf32>
    %cst_361 = arith.constant dense<0.000000e+00> : vector<4x64xf32>
    %332 = tpu.matmul %331, %82, %cst_361 {dimension_numbers = #tpu.dot_dimension_numbers<[1], [0], [0], [1], [0, 0, 1, 1], [], []>} : vector<4x128xf32>, vector<128x64xf32>, vector<4x64xf32> -> vector<4x64xf32>
    %cst_362 = arith.constant 0.000000e+00 : f32
    %333 = vector.broadcast %cst_362 : f32 to vector<8x128xf32>
    %334 = arith.maximumf %308, %333 : vector<8x128xf32>
    %cst_363 = arith.constant dense<0.000000e+00> : vector<4x128xf32>
    %335 = tpu.matmul %93, %334, %cst_363 {dimension_numbers = #tpu.dot_dimension_numbers<[1], [0], [0], [1], [0, 0, 1, 1], [], []>} : vector<4x8xf32>, vector<8x128xf32>, vector<4x128xf32> -> vector<4x128xf32>
    %cst_364 = arith.constant dense<0.000000e+00> : vector<4x64xf32>
    %336 = tpu.matmul %335, %91, %cst_364 {dimension_numbers = #tpu.dot_dimension_numbers<[1], [0], [0], [1], [0, 0, 1, 1], [], []>} : vector<4x128xf32>, vector<128x64xf32>, vector<4x64xf32> -> vector<4x64xf32>
    %337 = vector.broadcast %90 : vector<1x64xf32> to vector<4x64xf32>
    %338 = arith.addf %337, %336 : vector<4x64xf32>
    %cst_365 = arith.constant dense<0.000000e+00> : vector<4x128xf32>
    %339 = tpu.matmul %94, %334, %cst_365 {dimension_numbers = #tpu.dot_dimension_numbers<[1], [0], [0], [1], [0, 0, 1, 1], [], []>} : vector<4x8xf32>, vector<8x128xf32>, vector<4x128xf32> -> vector<4x128xf32>
    %cst_366 = arith.constant dense<0.000000e+00> : vector<4x64xf32>
    %340 = tpu.matmul %339, %92, %cst_366 {dimension_numbers = #tpu.dot_dimension_numbers<[1], [0], [0], [1], [0, 0, 1, 1], [], []>} : vector<4x128xf32>, vector<128x64xf32>, vector<4x64xf32> -> vector<4x64xf32>
    %341 = arith.addf %338, %340 : vector<4x64xf32>
    %342 = arith.addf %332, %341 : vector<4x64xf32>
    %cst_367 = arith.constant 0.000000e+00 : f32
    %343 = vector.broadcast %cst_367 : f32 to vector<8x128xf32>
    %344 = arith.maximumf %308, %343 : vector<8x128xf32>
    %cst_368 = arith.constant dense<0.000000e+00> : vector<4x128xf32>
    %345 = tpu.matmul %103, %344, %cst_368 {dimension_numbers = #tpu.dot_dimension_numbers<[1], [0], [0], [1], [0, 0, 1, 1], [], []>} : vector<4x8xf32>, vector<8x128xf32>, vector<4x128xf32> -> vector<4x128xf32>
    %cst_369 = arith.constant dense<0.000000e+00> : vector<4x64xf32>
    %346 = tpu.matmul %345, %97, %cst_369 {dimension_numbers = #tpu.dot_dimension_numbers<[1], [0], [0], [1], [0, 0, 1, 1], [], []>} : vector<4x128xf32>, vector<128x64xf32>, vector<4x64xf32> -> vector<4x64xf32>
    %347 = vector.broadcast %95 : vector<1x64xf32> to vector<4x64xf32>
    %348 = arith.addf %347, %346 : vector<4x64xf32>
    %cst_370 = arith.constant dense<0.000000e+00> : vector<4x128xf32>
    %349 = tpu.matmul %104, %344, %cst_370 {dimension_numbers = #tpu.dot_dimension_numbers<[1], [0], [0], [1], [0, 0, 1, 1], [], []>} : vector<4x8xf32>, vector<8x128xf32>, vector<4x128xf32> -> vector<4x128xf32>
    %cst_371 = arith.constant dense<0.000000e+00> : vector<4x64xf32>
    %350 = tpu.matmul %349, %98, %cst_371 {dimension_numbers = #tpu.dot_dimension_numbers<[1], [0], [0], [1], [0, 0, 1, 1], [], []>} : vector<4x128xf32>, vector<128x64xf32>, vector<4x64xf32> -> vector<4x64xf32>
    %351 = arith.addf %348, %350 : vector<4x64xf32>
    %cst_372 = arith.constant dense<0.000000e+00> : vector<4x128xf32>
    %352 = tpu.matmul %105, %344, %cst_372 {dimension_numbers = #tpu.dot_dimension_numbers<[1], [0], [0], [1], [0, 0, 1, 1], [], []>} : vector<4x8xf32>, vector<8x128xf32>, vector<4x128xf32> -> vector<4x128xf32>
    %cst_373 = arith.constant dense<0.000000e+00> : vector<4x64xf32>
    %353 = tpu.matmul %352, %99, %cst_373 {dimension_numbers = #tpu.dot_dimension_numbers<[1], [0], [0], [1], [0, 0, 1, 1], [], []>} : vector<4x128xf32>, vector<128x64xf32>, vector<4x64xf32> -> vector<4x64xf32>
    %354 = arith.addf %351, %353 : vector<4x64xf32>
    %cst_374 = arith.constant 0.000000e+00 : f32
    %355 = vector.broadcast %cst_374 : f32 to vector<4x64xf32>
    %356 = arith.maximumf %354, %355 : vector<4x64xf32>
    %cst_375 = arith.constant dense<0.000000e+00> : vector<4x64xf32>
    %357 = tpu.matmul %106, %356, %cst_375 {dimension_numbers = #tpu.dot_dimension_numbers<[1], [0], [0], [1], [0, 0, 1, 1], [], []>} : vector<4x4xf32>, vector<4x64xf32>, vector<4x64xf32> -> vector<4x64xf32>
    %cst_376 = arith.constant dense<0.000000e+00> : vector<4x64xf32>
    %358 = tpu.matmul %357, %100, %cst_376 {dimension_numbers = #tpu.dot_dimension_numbers<[1], [0], [0], [1], [0, 0, 1, 1], [], []>} : vector<4x64xf32>, vector<64x64xf32>, vector<4x64xf32> -> vector<4x64xf32>
    %359 = vector.broadcast %96 : vector<1x64xf32> to vector<4x64xf32>
    %360 = arith.addf %359, %358 : vector<4x64xf32>
    %cst_377 = arith.constant dense<0.000000e+00> : vector<4x64xf32>
    %361 = tpu.matmul %107, %356, %cst_377 {dimension_numbers = #tpu.dot_dimension_numbers<[1], [0], [0], [1], [0, 0, 1, 1], [], []>} : vector<4x4xf32>, vector<4x64xf32>, vector<4x64xf32> -> vector<4x64xf32>
    %cst_378 = arith.constant dense<0.000000e+00> : vector<4x64xf32>
    %362 = tpu.matmul %361, %101, %cst_378 {dimension_numbers = #tpu.dot_dimension_numbers<[1], [0], [0], [1], [0, 0, 1, 1], [], []>} : vector<4x64xf32>, vector<64x64xf32>, vector<4x64xf32> -> vector<4x64xf32>
    %363 = arith.addf %360, %362 : vector<4x64xf32>
    %cst_379 = arith.constant dense<0.000000e+00> : vector<4x64xf32>
    %364 = tpu.matmul %108, %356, %cst_379 {dimension_numbers = #tpu.dot_dimension_numbers<[1], [0], [0], [1], [0, 0, 1, 1], [], []>} : vector<4x4xf32>, vector<4x64xf32>, vector<4x64xf32> -> vector<4x64xf32>
    %cst_380 = arith.constant dense<0.000000e+00> : vector<4x64xf32>
    %365 = tpu.matmul %364, %102, %cst_380 {dimension_numbers = #tpu.dot_dimension_numbers<[1], [0], [0], [1], [0, 0, 1, 1], [], []>} : vector<4x64xf32>, vector<64x64xf32>, vector<4x64xf32> -> vector<4x64xf32>
    %366 = arith.addf %363, %365 : vector<4x64xf32>
    %cst_381 = arith.constant dense<0.000000e+00> : vector<4x64xf32>
    %367 = tpu.matmul %109, %342, %cst_381 {dimension_numbers = #tpu.dot_dimension_numbers<[1], [0], [0], [1], [0, 0, 1, 1], [], []>} : vector<4x4xf32>, vector<4x64xf32>, vector<4x64xf32> -> vector<4x64xf32>
    %cst_382 = arith.constant dense<0.000000e+00> : vector<4x64xf32>
    %368 = tpu.matmul %367, %110, %cst_382 {dimension_numbers = #tpu.dot_dimension_numbers<[1], [0], [0], [1], [0, 0, 1, 1], [], []>} : vector<4x64xf32>, vector<64x64xf32>, vector<4x64xf32> -> vector<4x64xf32>
    %369 = arith.mulf %368, %111 : vector<4x64xf32>
    %370 = arith.addf %366, %369 : vector<4x64xf32>
    %cst_383 = arith.constant dense<0.000000e+00> : vector<4x10xf32>
    %371 = tpu.matmul %342, %123, %cst_383 {dimension_numbers = #tpu.dot_dimension_numbers<[1], [0], [0], [1], [0, 0, 1, 1], [], []>} : vector<4x64xf32>, vector<64x10xf32>, vector<4x10xf32> -> vector<4x10xf32>
    %cst_384 = arith.constant dense<0.000000e+00> : vector<10xf32>
    %372 = vector.multi_reduction <add>, %371, %cst_384 [0] : vector<4x10xf32> to vector<10xf32>
    %373 = vector.shape_cast %372 : vector<10xf32> to vector<1x10xf32>
    %374 = arith.addf %122, %373 : vector<1x10xf32>
    %cst_385 = arith.constant dense<0.000000e+00> : vector<4x10xf32>
    %375 = tpu.matmul %370, %124, %cst_385 {dimension_numbers = #tpu.dot_dimension_numbers<[1], [0], [0], [1], [0, 0, 1, 1], [], []>} : vector<4x64xf32>, vector<64x10xf32>, vector<4x10xf32> -> vector<4x10xf32>
    %cst_386 = arith.constant dense<0.000000e+00> : vector<10xf32>
    %376 = vector.multi_reduction <add>, %375, %cst_386 [0] : vector<4x10xf32> to vector<10xf32>
    %377 = vector.shape_cast %376 : vector<10xf32> to vector<1x10xf32>
    %378 = arith.addf %374, %377 : vector<1x10xf32>
    %c0_387 = arith.constant 0 : index
    %c0_388 = arith.constant 0 : index
    %c0_389 = arith.constant 0 : index
    %379 = vector.load %arg134[%c0_387, %c0_388, %c0_389] : memref<1x1x10xf32, #tpu.memory_space<vmem>>, vector<1x1x10xf32>
    %380 = vector.shape_cast %379 : vector<1x1x10xf32> to vector<1x10xf32>
    %381 = vector.shape_cast %378 : vector<1x10xf32> to vector<1x1x10xf32>
    tpu.vector_store %arg134[%c0_387, %c0_388, %c0_389], %381 {strides = array<i32>} : memref<1x1x10xf32, #tpu.memory_space<vmem>>, vector<1x1x10xf32>,
    return
  }
  func.func @transform_0(%arg0: i32) -> (i32, i32, i32) {
    %c0_i32 = arith.constant 0 : i32
    %c0_i32_0 = arith.constant 0 : i32
    %c0_i32_1 = arith.constant 0 : i32
    return %arg0, %c0_i32, %c0_i32_0 : i32, i32, i32
  }
  func.func @transform_1(%arg0: i32) -> (i32, i32) {
    %c0_i32 = arith.constant 0 : i32
    %c0_i32_0 = arith.constant 0 : i32
    %c0_i32_1 = arith.constant 0 : i32
    return %c0_i32, %c0_i32_0 : i32, i32
  }
  func.func @transform_2(%arg0: i32) -> (i32, i32) {
    %c0_i32 = arith.constant 0 : i32
    %c0_i32_0 = arith.constant 0 : i32
    %c0_i32_1 = arith.constant 0 : i32
    return %c0_i32, %c0_i32_0 : i32, i32
  }
  func.func @transform_3(%arg0: i32) -> (i32, i32) {
    %c0_i32 = arith.constant 0 : i32
    %c0_i32_0 = arith.constant 0 : i32
    %c0_i32_1 = arith.constant 0 : i32
    return %c0_i32, %c0_i32_0 : i32, i32
  }
  func.func @transform_4(%arg0: i32) -> (i32, i32) {
    %c0_i32 = arith.constant 0 : i32
    %c0_i32_0 = arith.constant 0 : i32
    %c0_i32_1 = arith.constant 0 : i32
    return %c0_i32, %c0_i32_0 : i32, i32
  }
  func.func @transform_5(%arg0: i32) -> (i32, i32) {
    %c0_i32 = arith.constant 0 : i32
    %c0_i32_0 = arith.constant 0 : i32
    %c0_i32_1 = arith.constant 0 : i32
    return %c0_i32, %c0_i32_0 : i32, i32
  }
  func.func @transform_6(%arg0: i32) -> (i32, i32) {
    %c0_i32 = arith.constant 0 : i32
    %c0_i32_0 = arith.constant 0 : i32
    %c0_i32_1 = arith.constant 0 : i32
    return %c0_i32, %c0_i32_0 : i32, i32
  }
  func.func @transform_7(%arg0: i32) -> (i32, i32) {
    %c0_i32 = arith.constant 0 : i32
    %c0_i32_0 = arith.constant 0 : i32
    %c0_i32_1 = arith.constant 0 : i32
    return %c0_i32, %c0_i32_0 : i32, i32
  }
  func.func @transform_8(%arg0: i32) -> (i32, i32) {
    %c0_i32 = arith.constant 0 : i32
    %c0_i32_0 = arith.constant 0 : i32
    %c0_i32_1 = arith.constant 0 : i32
    return %c0_i32, %c0_i32_0 : i32, i32
  }
  func.func @transform_9(%arg0: i32) -> (i32, i32) {
    %c0_i32 = arith.constant 0 : i32
    %c0_i32_0 = arith.constant 0 : i32
    %c0_i32_1 = arith.constant 0 : i32
    return %c0_i32, %c0_i32_0 : i32, i32
  }
  func.func @transform_10(%arg0: i32) -> (i32, i32) {
    %c0_i32 = arith.constant 0 : i32
    %c0_i32_0 = arith.constant 0 : i32
    %c0_i32_1 = arith.constant 0 : i32
    return %c0_i32, %c0_i32_0 : i32, i32
  }
  func.func @transform_11(%arg0: i32) -> (i32, i32) {
    %c0_i32 = arith.constant 0 : i32
    %c0_i32_0 = arith.constant 0 : i32
    %c0_i32_1 = arith.constant 0 : i32
    return %c0_i32, %c0_i32_0 : i32, i32
  }
  func.func @transform_12(%arg0: i32) -> (i32, i32) {
    %c0_i32 = arith.constant 0 : i32
    %c0_i32_0 = arith.constant 0 : i32
    %c0_i32_1 = arith.constant 0 : i32
    return %c0_i32, %c0_i32_0 : i32, i32
  }
  func.func @transform_13(%arg0: i32) -> (i32, i32) {
    %c0_i32 = arith.constant 0 : i32
    %c0_i32_0 = arith.constant 0 : i32
    %c0_i32_1 = arith.constant 0 : i32
    return %c0_i32, %c0_i32_0 : i32, i32
  }
  func.func @transform_14(%arg0: i32) -> (i32, i32) {
    %c0_i32 = arith.constant 0 : i32
    %c0_i32_0 = arith.constant 0 : i32
    %c0_i32_1 = arith.constant 0 : i32
    return %c0_i32, %c0_i32_0 : i32, i32
  }
  func.func @transform_15(%arg0: i32) -> (i32, i32) {
    %c0_i32 = arith.constant 0 : i32
    %c0_i32_0 = arith.constant 0 : i32
    %c0_i32_1 = arith.constant 0 : i32
    return %c0_i32, %c0_i32_0 : i32, i32
  }
  func.func @transform_16(%arg0: i32) -> (i32, i32) {
    %c0_i32 = arith.constant 0 : i32
    %c0_i32_0 = arith.constant 0 : i32
    %c0_i32_1 = arith.constant 0 : i32
    return %c0_i32, %c0_i32_0 : i32, i32
  }
  func.func @transform_17(%arg0: i32) -> (i32, i32) {
    %c0_i32 = arith.constant 0 : i32
    %c0_i32_0 = arith.constant 0 : i32
    %c0_i32_1 = arith.constant 0 : i32
    return %c0_i32, %c0_i32_0 : i32, i32
  }
  func.func @transform_18(%arg0: i32) -> (i32, i32) {
    %c0_i32 = arith.constant 0 : i32
    %c0_i32_0 = arith.constant 0 : i32
    %c0_i32_1 = arith.constant 0 : i32
    return %c0_i32, %c0_i32_0 : i32, i32
  }
  func.func @transform_19(%arg0: i32) -> (i32, i32) {
    %c0_i32 = arith.constant 0 : i32
    %c0_i32_0 = arith.constant 0 : i32
    %c0_i32_1 = arith.constant 0 : i32
    return %c0_i32, %c0_i32_0 : i32, i32
  }
  func.func @transform_20(%arg0: i32) -> (i32, i32) {
    %c0_i32 = arith.constant 0 : i32
    %c0_i32_0 = arith.constant 0 : i32
    %c0_i32_1 = arith.constant 0 : i32
    return %c0_i32, %c0_i32_0 : i32, i32
  }
  func.func @transform_21(%arg0: i32) -> (i32, i32) {
    %c0_i32 = arith.constant 0 : i32
    %c0_i32_0 = arith.constant 0 : i32
    %c0_i32_1 = arith.constant 0 : i32
    return %c0_i32, %c0_i32_0 : i32, i32
  }
  func.func @transform_22(%arg0: i32) -> (i32, i32) {
    %c0_i32 = arith.constant 0 : i32
    %c0_i32_0 = arith.constant 0 : i32
    %c0_i32_1 = arith.constant 0 : i32
    return %c0_i32, %c0_i32_0 : i32, i32
  }
  func.func @transform_23(%arg0: i32) -> (i32, i32) {
    %c0_i32 = arith.constant 0 : i32
    %c0_i32_0 = arith.constant 0 : i32
    %c0_i32_1 = arith.constant 0 : i32
    return %c0_i32, %c0_i32_0 : i32, i32
  }
  func.func @transform_24(%arg0: i32) -> (i32, i32) {
    %c0_i32 = arith.constant 0 : i32
    %c0_i32_0 = arith.constant 0 : i32
    %c0_i32_1 = arith.constant 0 : i32
    return %c0_i32, %c0_i32_0 : i32, i32
  }
  func.func @transform_25(%arg0: i32) -> (i32, i32) {
    %c0_i32 = arith.constant 0 : i32
    %c0_i32_0 = arith.constant 0 : i32
    %c0_i32_1 = arith.constant 0 : i32
    return %c0_i32, %c0_i32_0 : i32, i32
  }
  func.func @transform_26(%arg0: i32) -> (i32, i32) {
    %c0_i32 = arith.constant 0 : i32
    %c0_i32_0 = arith.constant 0 : i32
    %c0_i32_1 = arith.constant 0 : i32
    return %c0_i32, %c0_i32_0 : i32, i32
  }
  func.func @transform_27(%arg0: i32) -> (i32, i32) {
    %c0_i32 = arith.constant 0 : i32
    %c0_i32_0 = arith.constant 0 : i32
    %c0_i32_1 = arith.constant 0 : i32
    return %c0_i32, %c0_i32_0 : i32, i32
  }
  func.func @transform_28(%arg0: i32) -> (i32, i32) {
    %c0_i32 = arith.constant 0 : i32
    %c0_i32_0 = arith.constant 0 : i32
    %c0_i32_1 = arith.constant 0 : i32
    return %c0_i32, %c0_i32_0 : i32, i32
  }
  func.func @transform_29(%arg0: i32) -> (i32, i32) {
    %c0_i32 = arith.constant 0 : i32
    %c0_i32_0 = arith.constant 0 : i32
    %c0_i32_1 = arith.constant 0 : i32
    return %c0_i32, %c0_i32_0 : i32, i32
  }
  func.func @transform_30(%arg0: i32) -> (i32, i32) {
    %c0_i32 = arith.constant 0 : i32
    %c0_i32_0 = arith.constant 0 : i32
    %c0_i32_1 = arith.constant 0 : i32
    return %c0_i32, %c0_i32_0 : i32, i32
  }
  func.func @transform_31(%arg0: i32) -> (i32, i32) {
    %c0_i32 = arith.constant 0 : i32
    %c0_i32_0 = arith.constant 0 : i32
    %c0_i32_1 = arith.constant 0 : i32
    return %c0_i32, %c0_i32_0 : i32, i32
  }
  func.func @transform_32(%arg0: i32) -> (i32, i32) {
    %c0_i32 = arith.constant 0 : i32
    %c0_i32_0 = arith.constant 0 : i32
    %c0_i32_1 = arith.constant 0 : i32
    return %c0_i32, %c0_i32_0 : i32, i32
  }
  func.func @transform_33(%arg0: i32) -> (i32, i32) {
    %c0_i32 = arith.constant 0 : i32
    %c0_i32_0 = arith.constant 0 : i32
    %c0_i32_1 = arith.constant 0 : i32
    return %c0_i32, %c0_i32_0 : i32, i32
  }
  func.func @transform_34(%arg0: i32) -> (i32, i32) {
    %c0_i32 = arith.constant 0 : i32
    %c0_i32_0 = arith.constant 0 : i32
    %c0_i32_1 = arith.constant 0 : i32
    return %c0_i32, %c0_i32_0 : i32, i32
  }
  func.func @transform_35(%arg0: i32) -> (i32, i32) {
    %c0_i32 = arith.constant 0 : i32
    %c0_i32_0 = arith.constant 0 : i32
    %c0_i32_1 = arith.constant 0 : i32
    return %c0_i32, %c0_i32_0 : i32, i32
  }
  func.func @transform_36(%arg0: i32) -> (i32, i32) {
    %c0_i32 = arith.constant 0 : i32
    %c0_i32_0 = arith.constant 0 : i32
    %c0_i32_1 = arith.constant 0 : i32
    return %c0_i32, %c0_i32_0 : i32, i32
  }
  func.func @transform_37(%arg0: i32) -> (i32, i32) {
    %c0_i32 = arith.constant 0 : i32
    %c0_i32_0 = arith.constant 0 : i32
    %c0_i32_1 = arith.constant 0 : i32
    return %c0_i32, %c0_i32_0 : i32, i32
  }
  func.func @transform_38(%arg0: i32) -> (i32, i32) {
    %c0_i32 = arith.constant 0 : i32
    %c0_i32_0 = arith.constant 0 : i32
    %c0_i32_1 = arith.constant 0 : i32
    return %c0_i32, %c0_i32_0 : i32, i32
  }
  func.func @transform_39(%arg0: i32) -> (i32, i32) {
    %c0_i32 = arith.constant 0 : i32
    %c0_i32_0 = arith.constant 0 : i32
    %c0_i32_1 = arith.constant 0 : i32
    return %c0_i32, %c0_i32_0 : i32, i32
  }
  func.func @transform_40(%arg0: i32) -> (i32, i32) {
    %c0_i32 = arith.constant 0 : i32
    %c0_i32_0 = arith.constant 0 : i32
    %c0_i32_1 = arith.constant 0 : i32
    return %c0_i32, %c0_i32_0 : i32, i32
  }
  func.func @transform_41(%arg0: i32) -> (i32, i32) {
    %c0_i32 = arith.constant 0 : i32
    %c0_i32_0 = arith.constant 0 : i32
    %c0_i32_1 = arith.constant 0 : i32
    return %c0_i32, %c0_i32_0 : i32, i32
  }
  func.func @transform_42(%arg0: i32) -> (i32, i32) {
    %c0_i32 = arith.constant 0 : i32
    %c0_i32_0 = arith.constant 0 : i32
    %c0_i32_1 = arith.constant 0 : i32
    return %c0_i32, %c0_i32_0 : i32, i32
  }
  func.func @transform_43(%arg0: i32) -> (i32, i32) {
    %c0_i32 = arith.constant 0 : i32
    %c0_i32_0 = arith.constant 0 : i32
    %c0_i32_1 = arith.constant 0 : i32
    return %c0_i32, %c0_i32_0 : i32, i32
  }
  func.func @transform_44(%arg0: i32) -> (i32, i32) {
    %c0_i32 = arith.constant 0 : i32
    %c0_i32_0 = arith.constant 0 : i32
    %c0_i32_1 = arith.constant 0 : i32
    return %c0_i32, %c0_i32_0 : i32, i32
  }
  func.func @transform_45(%arg0: i32) -> (i32, i32) {
    %c0_i32 = arith.constant 0 : i32
    %c0_i32_0 = arith.constant 0 : i32
    %c0_i32_1 = arith.constant 0 : i32
    return %c0_i32, %c0_i32_0 : i32, i32
  }
  func.func @transform_46(%arg0: i32) -> (i32, i32) {
    %c0_i32 = arith.constant 0 : i32
    %c0_i32_0 = arith.constant 0 : i32
    %c0_i32_1 = arith.constant 0 : i32
    return %c0_i32, %c0_i32_0 : i32, i32
  }
  func.func @transform_47(%arg0: i32) -> (i32, i32) {
    %c0_i32 = arith.constant 0 : i32
    %c0_i32_0 = arith.constant 0 : i32
    %c0_i32_1 = arith.constant 0 : i32
    return %c0_i32, %c0_i32_0 : i32, i32
  }
  func.func @transform_48(%arg0: i32) -> (i32, i32) {
    %c0_i32 = arith.constant 0 : i32
    %c0_i32_0 = arith.constant 0 : i32
    %c0_i32_1 = arith.constant 0 : i32
    return %c0_i32, %c0_i32_0 : i32, i32
  }
  func.func @transform_49(%arg0: i32) -> (i32, i32) {
    %c0_i32 = arith.constant 0 : i32
    %c0_i32_0 = arith.constant 0 : i32
    %c0_i32_1 = arith.constant 0 : i32
    return %c0_i32, %c0_i32_0 : i32, i32
  }
  func.func @transform_50(%arg0: i32) -> (i32, i32) {
    %c0_i32 = arith.constant 0 : i32
    %c0_i32_0 = arith.constant 0 : i32
    %c0_i32_1 = arith.constant 0 : i32
    return %c0_i32, %c0_i32_0 : i32, i32
  }
  func.func @transform_51(%arg0: i32) -> (i32, i32) {
    %c0_i32 = arith.constant 0 : i32
    %c0_i32_0 = arith.constant 0 : i32
    %c0_i32_1 = arith.constant 0 : i32
    return %c0_i32, %c0_i32_0 : i32, i32
  }
  func.func @transform_52(%arg0: i32) -> (i32, i32) {
    %c0_i32 = arith.constant 0 : i32
    %c0_i32_0 = arith.constant 0 : i32
    %c0_i32_1 = arith.constant 0 : i32
    return %c0_i32, %c0_i32_0 : i32, i32
  }
  func.func @transform_53(%arg0: i32) -> (i32, i32) {
    %c0_i32 = arith.constant 0 : i32
    %c0_i32_0 = arith.constant 0 : i32
    %c0_i32_1 = arith.constant 0 : i32
    return %c0_i32, %c0_i32_0 : i32, i32
  }
  func.func @transform_54(%arg0: i32) -> (i32, i32) {
    %c0_i32 = arith.constant 0 : i32
    %c0_i32_0 = arith.constant 0 : i32
    %c0_i32_1 = arith.constant 0 : i32
    return %c0_i32, %c0_i32_0 : i32, i32
  }
  func.func @transform_55(%arg0: i32) -> (i32, i32) {
    %c0_i32 = arith.constant 0 : i32
    %c0_i32_0 = arith.constant 0 : i32
    %c0_i32_1 = arith.constant 0 : i32
    return %c0_i32, %c0_i32_0 : i32, i32
  }
  func.func @transform_56(%arg0: i32) -> (i32, i32) {
    %c0_i32 = arith.constant 0 : i32
    %c0_i32_0 = arith.constant 0 : i32
    %c0_i32_1 = arith.constant 0 : i32
    return %c0_i32, %c0_i32_0 : i32, i32
  }
  func.func @transform_57(%arg0: i32) -> (i32, i32) {
    %c0_i32 = arith.constant 0 : i32
    %c0_i32_0 = arith.constant 0 : i32
    %c0_i32_1 = arith.constant 0 : i32
    return %c0_i32, %c0_i32_0 : i32, i32
  }
  func.func @transform_58(%arg0: i32) -> (i32, i32) {
    %c0_i32 = arith.constant 0 : i32
    %c0_i32_0 = arith.constant 0 : i32
    %c0_i32_1 = arith.constant 0 : i32
    return %c0_i32, %c0_i32_0 : i32, i32
  }
  func.func @transform_59(%arg0: i32) -> (i32, i32) {
    %c0_i32 = arith.constant 0 : i32
    %c0_i32_0 = arith.constant 0 : i32
    %c0_i32_1 = arith.constant 0 : i32
    return %c0_i32, %c0_i32_0 : i32, i32
  }
  func.func @transform_60(%arg0: i32) -> (i32, i32) {
    %c0_i32 = arith.constant 0 : i32
    %c0_i32_0 = arith.constant 0 : i32
    %c0_i32_1 = arith.constant 0 : i32
    return %c0_i32, %c0_i32_0 : i32, i32
  }
  func.func @transform_61(%arg0: i32) -> (i32, i32) {
    %c0_i32 = arith.constant 0 : i32
    %c0_i32_0 = arith.constant 0 : i32
    %c0_i32_1 = arith.constant 0 : i32
    return %c0_i32, %c0_i32_0 : i32, i32
  }
  func.func @transform_62(%arg0: i32) -> (i32, i32) {
    %c0_i32 = arith.constant 0 : i32
    %c0_i32_0 = arith.constant 0 : i32
    %c0_i32_1 = arith.constant 0 : i32
    return %c0_i32, %c0_i32_0 : i32, i32
  }
  func.func @transform_63(%arg0: i32) -> (i32, i32) {
    %c0_i32 = arith.constant 0 : i32
    %c0_i32_0 = arith.constant 0 : i32
    %c0_i32_1 = arith.constant 0 : i32
    return %c0_i32, %c0_i32_0 : i32, i32
  }
  func.func @transform_64(%arg0: i32) -> (i32, i32) {
    %c0_i32 = arith.constant 0 : i32
    %c0_i32_0 = arith.constant 0 : i32
    %c0_i32_1 = arith.constant 0 : i32
    return %c0_i32, %c0_i32_0 : i32, i32
  }
  func.func @transform_65(%arg0: i32) -> (i32, i32) {
    %c0_i32 = arith.constant 0 : i32
    %c0_i32_0 = arith.constant 0 : i32
    %c0_i32_1 = arith.constant 0 : i32
    return %c0_i32, %c0_i32_0 : i32, i32
  }
  func.func @transform_66(%arg0: i32) -> (i32, i32) {
    %c0_i32 = arith.constant 0 : i32
    %c0_i32_0 = arith.constant 0 : i32
    %c0_i32_1 = arith.constant 0 : i32
    return %c0_i32, %c0_i32_0 : i32, i32
  }
  func.func @transform_67(%arg0: i32) -> (i32, i32) {
    %c0_i32 = arith.constant 0 : i32
    %c0_i32_0 = arith.constant 0 : i32
    %c0_i32_1 = arith.constant 0 : i32
    return %c0_i32, %c0_i32_0 : i32, i32
  }
  func.func @transform_68(%arg0: i32) -> (i32, i32) {
    %c0_i32 = arith.constant 0 : i32
    %c0_i32_0 = arith.constant 0 : i32
    %c0_i32_1 = arith.constant 0 : i32
    return %c0_i32, %c0_i32_0 : i32, i32
  }
  func.func @transform_69(%arg0: i32) -> (i32, i32) {
    %c0_i32 = arith.constant 0 : i32
    %c0_i32_0 = arith.constant 0 : i32
    %c0_i32_1 = arith.constant 0 : i32
    return %c0_i32, %c0_i32_0 : i32, i32
  }
  func.func @transform_70(%arg0: i32) -> (i32, i32) {
    %c0_i32 = arith.constant 0 : i32
    %c0_i32_0 = arith.constant 0 : i32
    %c0_i32_1 = arith.constant 0 : i32
    return %c0_i32, %c0_i32_0 : i32, i32
  }
  func.func @transform_71(%arg0: i32) -> (i32, i32) {
    %c0_i32 = arith.constant 0 : i32
    %c0_i32_0 = arith.constant 0 : i32
    %c0_i32_1 = arith.constant 0 : i32
    return %c0_i32, %c0_i32_0 : i32, i32
  }
  func.func @transform_72(%arg0: i32) -> (i32, i32) {
    %c0_i32 = arith.constant 0 : i32
    %c0_i32_0 = arith.constant 0 : i32
    %c0_i32_1 = arith.constant 0 : i32
    return %c0_i32, %c0_i32_0 : i32, i32
  }
  func.func @transform_73(%arg0: i32) -> (i32, i32) {
    %c0_i32 = arith.constant 0 : i32
    %c0_i32_0 = arith.constant 0 : i32
    %c0_i32_1 = arith.constant 0 : i32
    return %c0_i32, %c0_i32_0 : i32, i32
  }
  func.func @transform_74(%arg0: i32) -> (i32, i32) {
    %c0_i32 = arith.constant 0 : i32
    %c0_i32_0 = arith.constant 0 : i32
    %c0_i32_1 = arith.constant 0 : i32
    return %c0_i32, %c0_i32_0 : i32, i32
  }
  func.func @transform_75(%arg0: i32) -> (i32, i32) {
    %c0_i32 = arith.constant 0 : i32
    %c0_i32_0 = arith.constant 0 : i32
    %c0_i32_1 = arith.constant 0 : i32
    return %c0_i32, %c0_i32_0 : i32, i32
  }
  func.func @transform_76(%arg0: i32) -> (i32, i32) {
    %c0_i32 = arith.constant 0 : i32
    %c0_i32_0 = arith.constant 0 : i32
    %c0_i32_1 = arith.constant 0 : i32
    return %c0_i32, %c0_i32_0 : i32, i32
  }
  func.func @transform_77(%arg0: i32) -> (i32, i32) {
    %c0_i32 = arith.constant 0 : i32
    %c0_i32_0 = arith.constant 0 : i32
    %c0_i32_1 = arith.constant 0 : i32
    return %c0_i32, %c0_i32_0 : i32, i32
  }
  func.func @transform_78(%arg0: i32) -> (i32, i32) {
    %c0_i32 = arith.constant 0 : i32
    %c0_i32_0 = arith.constant 0 : i32
    %c0_i32_1 = arith.constant 0 : i32
    return %c0_i32, %c0_i32_0 : i32, i32
  }
  func.func @transform_79(%arg0: i32) -> (i32, i32) {
    %c0_i32 = arith.constant 0 : i32
    %c0_i32_0 = arith.constant 0 : i32
    %c0_i32_1 = arith.constant 0 : i32
    return %c0_i32, %c0_i32_0 : i32, i32
  }
  func.func @transform_80(%arg0: i32) -> (i32, i32) {
    %c0_i32 = arith.constant 0 : i32
    %c0_i32_0 = arith.constant 0 : i32
    %c0_i32_1 = arith.constant 0 : i32
    return %c0_i32, %c0_i32_0 : i32, i32
  }
  func.func @transform_81(%arg0: i32) -> (i32, i32) {
    %c0_i32 = arith.constant 0 : i32
    %c0_i32_0 = arith.constant 0 : i32
    %c0_i32_1 = arith.constant 0 : i32
    return %c0_i32, %c0_i32_0 : i32, i32
  }
  func.func @transform_82(%arg0: i32) -> (i32, i32) {
    %c0_i32 = arith.constant 0 : i32
    %c0_i32_0 = arith.constant 0 : i32
    %c0_i32_1 = arith.constant 0 : i32
    return %c0_i32, %c0_i32_0 : i32, i32
  }
  func.func @transform_83(%arg0: i32) -> (i32, i32) {
    %c0_i32 = arith.constant 0 : i32
    %c0_i32_0 = arith.constant 0 : i32
    %c0_i32_1 = arith.constant 0 : i32
    return %c0_i32, %c0_i32_0 : i32, i32
  }
  func.func @transform_84(%arg0: i32) -> (i32, i32) {
    %c0_i32 = arith.constant 0 : i32
    %c0_i32_0 = arith.constant 0 : i32
    %c0_i32_1 = arith.constant 0 : i32
    return %c0_i32, %c0_i32_0 : i32, i32
  }
  func.func @transform_85(%arg0: i32) -> (i32, i32) {
    %c0_i32 = arith.constant 0 : i32
    %c0_i32_0 = arith.constant 0 : i32
    %c0_i32_1 = arith.constant 0 : i32
    return %c0_i32, %c0_i32_0 : i32, i32
  }
  func.func @transform_86(%arg0: i32) -> (i32, i32) {
    %c0_i32 = arith.constant 0 : i32
    %c0_i32_0 = arith.constant 0 : i32
    %c0_i32_1 = arith.constant 0 : i32
    return %c0_i32, %c0_i32_0 : i32, i32
  }
  func.func @transform_87(%arg0: i32) -> (i32, i32) {
    %c0_i32 = arith.constant 0 : i32
    %c0_i32_0 = arith.constant 0 : i32
    %c0_i32_1 = arith.constant 0 : i32
    return %c0_i32, %c0_i32_0 : i32, i32
  }
  func.func @transform_88(%arg0: i32) -> (i32, i32) {
    %c0_i32 = arith.constant 0 : i32
    %c0_i32_0 = arith.constant 0 : i32
    %c0_i32_1 = arith.constant 0 : i32
    return %c0_i32, %c0_i32_0 : i32, i32
  }
  func.func @transform_89(%arg0: i32) -> (i32, i32) {
    %c0_i32 = arith.constant 0 : i32
    %c0_i32_0 = arith.constant 0 : i32
    %c0_i32_1 = arith.constant 0 : i32
    return %c0_i32, %c0_i32_0 : i32, i32
  }
  func.func @transform_90(%arg0: i32) -> (i32, i32) {
    %c0_i32 = arith.constant 0 : i32
    %c0_i32_0 = arith.constant 0 : i32
    %c0_i32_1 = arith.constant 0 : i32
    return %c0_i32, %c0_i32_0 : i32, i32
  }
  func.func @transform_91(%arg0: i32) -> (i32, i32) {
    %c0_i32 = arith.constant 0 : i32
    %c0_i32_0 = arith.constant 0 : i32
    %c0_i32_1 = arith.constant 0 : i32
    return %c0_i32, %c0_i32_0 : i32, i32
  }
  func.func @transform_92(%arg0: i32) -> (i32, i32) {
    %c0_i32 = arith.constant 0 : i32
    %c0_i32_0 = arith.constant 0 : i32
    %c0_i32_1 = arith.constant 0 : i32
    return %c0_i32, %c0_i32_0 : i32, i32
  }
  func.func @transform_93(%arg0: i32) -> (i32, i32) {
    %c0_i32 = arith.constant 0 : i32
    %c0_i32_0 = arith.constant 0 : i32
    %c0_i32_1 = arith.constant 0 : i32
    return %c0_i32, %c0_i32_0 : i32, i32
  }
  func.func @transform_94(%arg0: i32) -> (i32, i32) {
    %c0_i32 = arith.constant 0 : i32
    %c0_i32_0 = arith.constant 0 : i32
    %c0_i32_1 = arith.constant 0 : i32
    return %c0_i32, %c0_i32_0 : i32, i32
  }
  func.func @transform_95(%arg0: i32) -> (i32, i32) {
    %c0_i32 = arith.constant 0 : i32
    %c0_i32_0 = arith.constant 0 : i32
    %c0_i32_1 = arith.constant 0 : i32
    return %c0_i32, %c0_i32_0 : i32, i32
  }
  func.func @transform_96(%arg0: i32) -> (i32, i32) {
    %c0_i32 = arith.constant 0 : i32
    %c0_i32_0 = arith.constant 0 : i32
    %c0_i32_1 = arith.constant 0 : i32
    return %c0_i32, %c0_i32_0 : i32, i32
  }
  func.func @transform_97(%arg0: i32) -> (i32, i32) {
    %c0_i32 = arith.constant 0 : i32
    %c0_i32_0 = arith.constant 0 : i32
    %c0_i32_1 = arith.constant 0 : i32
    return %c0_i32, %c0_i32_0 : i32, i32
  }
  func.func @transform_98(%arg0: i32) -> (i32, i32) {
    %c0_i32 = arith.constant 0 : i32
    %c0_i32_0 = arith.constant 0 : i32
    %c0_i32_1 = arith.constant 0 : i32
    return %c0_i32, %c0_i32_0 : i32, i32
  }
  func.func @transform_99(%arg0: i32) -> (i32, i32) {
    %c0_i32 = arith.constant 0 : i32
    %c0_i32_0 = arith.constant 0 : i32
    %c0_i32_1 = arith.constant 0 : i32
    return %c0_i32, %c0_i32_0 : i32, i32
  }
  func.func @transform_100(%arg0: i32) -> (i32, i32) {
    %c0_i32 = arith.constant 0 : i32
    %c0_i32_0 = arith.constant 0 : i32
    %c0_i32_1 = arith.constant 0 : i32
    return %c0_i32, %c0_i32_0 : i32, i32
  }
  func.func @transform_101(%arg0: i32) -> (i32, i32) {
    %c0_i32 = arith.constant 0 : i32
    %c0_i32_0 = arith.constant 0 : i32
    %c0_i32_1 = arith.constant 0 : i32
    return %c0_i32, %c0_i32_0 : i32, i32
  }
  func.func @transform_102(%arg0: i32) -> (i32, i32) {
    %c0_i32 = arith.constant 0 : i32
    %c0_i32_0 = arith.constant 0 : i32
    %c0_i32_1 = arith.constant 0 : i32
    return %c0_i32, %c0_i32_0 : i32, i32
  }
  func.func @transform_103(%arg0: i32) -> (i32, i32) {
    %c0_i32 = arith.constant 0 : i32
    %c0_i32_0 = arith.constant 0 : i32
    %c0_i32_1 = arith.constant 0 : i32
    return %c0_i32, %c0_i32_0 : i32, i32
  }
  func.func @transform_104(%arg0: i32) -> (i32, i32) {
    %c0_i32 = arith.constant 0 : i32
    %c0_i32_0 = arith.constant 0 : i32
    %c0_i32_1 = arith.constant 0 : i32
    return %c0_i32, %c0_i32_0 : i32, i32
  }
  func.func @transform_105(%arg0: i32) -> (i32, i32) {
    %c0_i32 = arith.constant 0 : i32
    %c0_i32_0 = arith.constant 0 : i32
    %c0_i32_1 = arith.constant 0 : i32
    return %c0_i32, %c0_i32_0 : i32, i32
  }
  func.func @transform_106(%arg0: i32) -> (i32, i32) {
    %c0_i32 = arith.constant 0 : i32
    %c0_i32_0 = arith.constant 0 : i32
    %c0_i32_1 = arith.constant 0 : i32
    return %c0_i32, %c0_i32_0 : i32, i32
  }
  func.func @transform_107(%arg0: i32) -> (i32, i32) {
    %c0_i32 = arith.constant 0 : i32
    %c0_i32_0 = arith.constant 0 : i32
    %c0_i32_1 = arith.constant 0 : i32
    return %c0_i32, %c0_i32_0 : i32, i32
  }
  func.func @transform_108(%arg0: i32) -> (i32, i32) {
    %c0_i32 = arith.constant 0 : i32
    %c0_i32_0 = arith.constant 0 : i32
    %c0_i32_1 = arith.constant 0 : i32
    return %c0_i32, %c0_i32_0 : i32, i32
  }
  func.func @transform_109(%arg0: i32) -> (i32, i32) {
    %c0_i32 = arith.constant 0 : i32
    %c0_i32_0 = arith.constant 0 : i32
    %c0_i32_1 = arith.constant 0 : i32
    return %c0_i32, %c0_i32_0 : i32, i32
  }
  func.func @transform_110(%arg0: i32) -> (i32, i32) {
    %c0_i32 = arith.constant 0 : i32
    %c0_i32_0 = arith.constant 0 : i32
    %c0_i32_1 = arith.constant 0 : i32
    return %c0_i32, %c0_i32_0 : i32, i32
  }
  func.func @transform_111(%arg0: i32) -> (i32, i32) {
    %c0_i32 = arith.constant 0 : i32
    %c0_i32_0 = arith.constant 0 : i32
    %c0_i32_1 = arith.constant 0 : i32
    return %c0_i32, %c0_i32_0 : i32, i32
  }
  func.func @transform_112(%arg0: i32) -> (i32, i32) {
    %c0_i32 = arith.constant 0 : i32
    %c0_i32_0 = arith.constant 0 : i32
    %c0_i32_1 = arith.constant 0 : i32
    return %c0_i32, %c0_i32_0 : i32, i32
  }
  func.func @transform_113(%arg0: i32) -> (i32, i32) {
    %c0_i32 = arith.constant 0 : i32
    %c0_i32_0 = arith.constant 0 : i32
    %c0_i32_1 = arith.constant 0 : i32
    return %c0_i32, %c0_i32_0 : i32, i32
  }
  func.func @transform_114(%arg0: i32) -> (i32, i32) {
    %c0_i32 = arith.constant 0 : i32
    %c0_i32_0 = arith.constant 0 : i32
    %c0_i32_1 = arith.constant 0 : i32
    return %c0_i32, %c0_i32_0 : i32, i32
  }
  func.func @transform_115(%arg0: i32) -> (i32, i32) {
    %c0_i32 = arith.constant 0 : i32
    %c0_i32_0 = arith.constant 0 : i32
    %c0_i32_1 = arith.constant 0 : i32
    return %c0_i32, %c0_i32_0 : i32, i32
  }
  func.func @transform_116(%arg0: i32) -> (i32, i32) {
    %c0_i32 = arith.constant 0 : i32
    %c0_i32_0 = arith.constant 0 : i32
    %c0_i32_1 = arith.constant 0 : i32
    return %c0_i32, %c0_i32_0 : i32, i32
  }
  func.func @transform_117(%arg0: i32) -> (i32, i32) {
    %c0_i32 = arith.constant 0 : i32
    %c0_i32_0 = arith.constant 0 : i32
    %c0_i32_1 = arith.constant 0 : i32
    return %c0_i32, %c0_i32_0 : i32, i32
  }
  func.func @transform_118(%arg0: i32) -> (i32, i32) {
    %c0_i32 = arith.constant 0 : i32
    %c0_i32_0 = arith.constant 0 : i32
    %c0_i32_1 = arith.constant 0 : i32
    return %c0_i32, %c0_i32_0 : i32, i32
  }
  func.func @transform_119(%arg0: i32) -> (i32, i32) {
    %c0_i32 = arith.constant 0 : i32
    %c0_i32_0 = arith.constant 0 : i32
    %c0_i32_1 = arith.constant 0 : i32
    return %c0_i32, %c0_i32_0 : i32, i32
  }
  func.func @transform_120(%arg0: i32) -> (i32, i32) {
    %c0_i32 = arith.constant 0 : i32
    %c0_i32_0 = arith.constant 0 : i32
    %c0_i32_1 = arith.constant 0 : i32
    return %c0_i32, %c0_i32_0 : i32, i32
  }
  func.func @transform_121(%arg0: i32) -> (i32, i32) {
    %c0_i32 = arith.constant 0 : i32
    %c0_i32_0 = arith.constant 0 : i32
    %c0_i32_1 = arith.constant 0 : i32
    return %c0_i32, %c0_i32_0 : i32, i32
  }
  func.func @transform_122(%arg0: i32) -> (i32, i32) {
    %c0_i32 = arith.constant 0 : i32
    %c0_i32_0 = arith.constant 0 : i32
    %c0_i32_1 = arith.constant 0 : i32
    return %c0_i32, %c0_i32_0 : i32, i32
  }
  func.func @transform_123(%arg0: i32) -> (i32, i32) {
    %c0_i32 = arith.constant 0 : i32
    %c0_i32_0 = arith.constant 0 : i32
    %c0_i32_1 = arith.constant 0 : i32
    return %c0_i32, %c0_i32_0 : i32, i32
  }
  func.func @transform_124(%arg0: i32) -> (i32, i32) {
    %c0_i32 = arith.constant 0 : i32
    %c0_i32_0 = arith.constant 0 : i32
    %c0_i32_1 = arith.constant 0 : i32
    return %c0_i32, %c0_i32_0 : i32, i32
  }
  func.func @transform_125(%arg0: i32) -> (i32, i32) {
    %c0_i32 = arith.constant 0 : i32
    %c0_i32_0 = arith.constant 0 : i32
    %c0_i32_1 = arith.constant 0 : i32
    return %c0_i32, %c0_i32_0 : i32, i32
  }
  func.func @transform_126(%arg0: i32) -> (i32, i32) {
    %c0_i32 = arith.constant 0 : i32
    %c0_i32_0 = arith.constant 0 : i32
    %c0_i32_1 = arith.constant 0 : i32
    return %c0_i32, %c0_i32_0 : i32, i32
  }
  func.func @transform_127(%arg0: i32) -> (i32, i32) {
    %c0_i32 = arith.constant 0 : i32
    %c0_i32_0 = arith.constant 0 : i32
    %c0_i32_1 = arith.constant 0 : i32
    return %c0_i32, %c0_i32_0 : i32, i32
  }
  func.func @transform_128(%arg0: i32) -> (i32, i32) {
    %c0_i32 = arith.constant 0 : i32
    %c0_i32_0 = arith.constant 0 : i32
    %c0_i32_1 = arith.constant 0 : i32
    return %c0_i32, %c0_i32_0 : i32, i32
  }
  func.func @transform_129(%arg0: i32) -> (i32, i32) {
    %c0_i32 = arith.constant 0 : i32
    %c0_i32_0 = arith.constant 0 : i32
    %c0_i32_1 = arith.constant 0 : i32
    return %c0_i32, %c0_i32_0 : i32, i32
  }
  func.func @transform_130(%arg0: i32) -> (i32, i32) {
    %c0_i32 = arith.constant 0 : i32
    %c0_i32_0 = arith.constant 0 : i32
    %c0_i32_1 = arith.constant 0 : i32
    return %c0_i32, %c0_i32_0 : i32, i32
  }
  func.func @transform_131(%arg0: i32) -> (i32, i32) {
    %c0_i32 = arith.constant 0 : i32
    %c0_i32_0 = arith.constant 0 : i32
    %c0_i32_1 = arith.constant 0 : i32
    return %c0_i32, %c0_i32_0 : i32, i32
  }
  func.func @transform_132(%arg0: i32) -> (i32, i32) {
    %c0_i32 = arith.constant 0 : i32
    %c0_i32_0 = arith.constant 0 : i32
    %c0_i32_1 = arith.constant 0 : i32
    return %c0_i32, %c0_i32_0 : i32, i32
  }
  func.func @transform_133(%arg0: i32) -> (i32, i32, i32) {
    %c0_i32 = arith.constant 0 : i32
    %c0_i32_0 = arith.constant 0 : i32
    %c0_i32_1 = arith.constant 0 : i32
    return %arg0, %c0_i32, %c0_i32_0 : i32, i32, i32
  }
}

</mosaic_0001>

<bundles_post_ra>
// kernel: fwd.1
= control target key start
LH: loop header
LB: loop body
LE: loop exit
PB: predicated region body
PF: predicated region fallthrough
CT: control target
= control target key end

     0   :  { %s20182_s6 = smov 1   ;;  %s20183_s10 = smov 2   ;;  %s23372_s0 = inlined_call_operand.smem [shape: u32[134], index: -1, kind: input, shape index: {}] }
   0x1   :  { %s20412_s5 = sld [smem:[%s23372_s0]]   ;;  %s20184_s14 = smov 3  }
   0x2   :  { %s20417_s9 = sld [smem:[%s23372_s0 + %s20182_s6]]   ;;  %s20185_s18 = smov 4  }
   0x3   :  { %s20422_s13 = sld [smem:[%s23372_s0 + %s20183_s10]]   ;;  %s20186_s22 = smov 5  }
   0x4   :  { %s20427_s17 = sld [smem:[%s23372_s0 + %s20184_s14]]   ;;  %s20187_s26 = smov 6  }
   0x5   :  { %s20432_s21 = sld [smem:[%s23372_s0 + %s20185_s18]]   ;;  %s20188_s30 = smov 7  }
   0x6   :  { %s20437_s25 = sld [smem:[%s23372_s0 + %s20186_s22]]   ;;  %s20189_s4 = smov 8  }
   0x7   :  { %23470 = sst [smem:[#allocation172_spill]] %s20412_s5  ;;  %s20190_s10 = smov 9  }
   0x8   :  { %23471 = sst [smem:[#allocation173_spill]] %s20417_s9  ;;  %s20191_s15 = smov 10  }
   0x9   :  { %23472 = sst [smem:[#allocation174_spill]] %s20422_s13  ;;  %s20192_s20 = smov 11  }
   0xa   :  { %23473 = sst [smem:[#allocation175_spill]] %s20427_s17  ;;  %s20194_s1 = smov 13  }
   0xb   :  { %23474 = sst [smem:[#allocation176_spill]] %s20432_s21  ;;  %s20195_s7 = smov 14  }
   0xc   :  { %23475 = sst [smem:[#allocation177_spill]] %s20437_s25  ;;  %s20197_s22 = smov 16  }
   0xd   :  { %s20442_s29 = sld [smem:[%s23372_s0 + %s20187_s26]]   ;;  %s20193_s26 = smov 12  }
   0xe   :  { %s20447_s3 = sld [smem:[%s23372_s0 + %s20188_s30]]   ;;  %s20198_s28 = smov 17  }
   0xf   :  { %s20452_s8 = sld [smem:[%s23372_s0 + %s20189_s4]]  }
  0x10   :  { %s20457_s14 = sld [smem:[%s23372_s0 + %s20190_s10]]  }
  0x11   :  { %s20462_s19 = sld [smem:[%s23372_s0 + %s20191_s15]]   ;;  %s20196_s15 = smov 15  }
  0x12   :  { %s20467_s24 = sld [smem:[%s23372_s0 + %s20192_s20]]  }
  0x13   :  { %23476 = sst [smem:[#allocation178_spill]] %s20442_s29 }
  0x14   :  { %23477 = sst [smem:[#allocation179_spill]] %s20447_s3 }
  0x15   :  { %23478 = sst [smem:[#allocation180_spill]] %s20452_s8 }
  0x16   :  { %23479 = sst [smem:[#allocation181_spill]] %s20457_s14 }
  0x17   :  { %23480 = sst [smem:[#allocation182_spill]] %s20462_s19 }
  0x18   :  { %23481 = sst [smem:[#allocation183_spill]] %s20467_s24 }
  0x19   :  { %s20472_s30 = sld [smem:[%s23372_s0 + %s20193_s26]]  }
  0x1a   :  { %s20477_s6 = sld [smem:[%s23372_s0 + %s20194_s1]]  }
  0x1b   :  { %s20482_s12 = sld [smem:[%s23372_s0 + %s20195_s7]]   ;;  %s20199_s7 = smov 18  }
  0x1c   :  { %s20487_s20 = sld [smem:[%s23372_s0 + %s20196_s15]]   ;;  %s20200_s15 = smov 19  }
  0x1d   :  { %s20492_s27 = sld [smem:[%s23372_s0 + %s20197_s22]]   ;;  %s20201_s22 = smov 20  }
  0x1e   :  { %s20497_s4 = sld [smem:[%s23372_s0 + %s20198_s28]]   ;;  %s20202_s28 = smov 21  }
  0x1f   :  { %s20502_s8 = sld [smem:[%s23372_s0 + %s20199_s7]]   ;;  %s20203_s7 = smov 22  }
  0x20   :  { %23482 = sst [smem:[#allocation184_spill]] %s20477_s6 }
  0x21   :  { %23483 = sst [smem:[#allocation185_spill]] %s20482_s12 }
  0x22   :  { %23484 = sst [smem:[#allocation186_spill]] %s20487_s20 }
  0x23   :  { %s20507_s3 = sld [smem:[%s23372_s0 + %s20200_s15]]   ;;  %s20204_s15 = smov 23  }
  0x24   :  { %23485 = sst [smem:[#allocation187_spill]] %s20497_s4 }
  0x25   :  { %23486 = sst [smem:[#allocation188_spill]] %s20502_s8 }
  0x26   :  { %s20512_s29 = sld [smem:[%s23372_s0 + %s20201_s22]]   ;;  %s20205_s22 = smov 24  }
  0x27   :  { %s20517_s4 = sld [smem:[%s23372_s0 + %s20202_s28]]   ;;  %s20206_s28 = smov 25  }
  0x28   :  { %s20522_s8 = sld [smem:[%s23372_s0 + %s20203_s7]]   ;;  %s20207_s7 = smov 26  }
  0x29   :  { %23487 = sst [smem:[#allocation189_spill]] %s20507_s3 }
  0x2a   :  { %s20527_s3 = sld [smem:[%s23372_s0 + %s20204_s15]]   ;;  %s20208_s15 = smov 27  }
  0x2b   :  { %s20547_s25 = sld [smem:[%s23372_s0 + %s20208_s15]]   ;;  %s20212_s15 = smov 31  }
  0x2c   :  { %23488 = sst [smem:[#allocation190_spill]] %s20512_s29 }
  0x2d   :  { %23489 = sst [smem:[#allocation191_spill]] %s20517_s4 }
  0x2e   :  { %23490 = sst [smem:[#allocation192_spill]] %s20522_s8 }
  0x2f   :  { %s20532_s29 = sld [smem:[%s23372_s0 + %s20205_s22]]   ;;  %s20209_s22 = smov 28  }
  0x30   :  { %23491 = sst [smem:[#allocation193_spill]] %s20527_s3 }
  0x31   :  { %s20537_s4 = sld [smem:[%s23372_s0 + %s20206_s28]]   ;;  %s20210_s28 = smov 29  }
  0x32   :  { %s20542_s8 = sld [smem:[%s23372_s0 + %s20207_s7]]   ;;  %s20211_s7 = smov 30  }
  0x33   :  { %23494 = sst [smem:[#allocation196_spill]] %s20547_s25 }
  0x34   :  { %s20552_s21 = sld [smem:[%s23372_s0 + %s20209_s22]]   ;;  %s20213_s22 = smov 32  }
  0x35   :  { %s20557_s19 = sld [smem:[%s23372_s0 + %s20210_s28]]   ;;  %s20214_s28 = smov 33  }
  0x36   :  { %s20562_s14 = sld [smem:[%s23372_s0 + %s20211_s7]]   ;;  %s20215_s7 = smov 34  }
  0x37   :  { %23492 = sst [smem:[#allocation194_spill]] %s20537_s4 }
  0x38   :  { %23493 = sst [smem:[#allocation195_spill]] %s20542_s8 }
  0x39   :  { %s20567_s17 = sld [smem:[%s23372_s0 + %s20212_s15]]   ;;  %s20216_s15 = smov 35  }
  0x3a   :  { %s20572_s5 = sld [smem:[%s23372_s0 + %s20213_s22]]   ;;  %s20217_s22 = smov 36  }
  0x3b   :  { %23495 = sst [smem:[#allocation197_spill]] %s20557_s19 }
  0x3c   :  { %23496 = sst [smem:[#allocation198_spill]] %s20562_s14 }
  0x3d   :  { %s20577_s19 = sld [smem:[%s23372_s0 + %s20214_s28]]   ;;  %s20218_s28 = smov 37  }
  0x3e   :  { %s20582_s14 = sld [smem:[%s23372_s0 + %s20215_s7]]   ;;  %s20219_s7 = smov 38  }
  0x3f   :  { %s20587_s25 = sld [smem:[%s23372_s0 + %s20216_s15]]   ;;  %s20220_s15 = smov 39  }
  0x40   :  { %23497 = sst [smem:[#allocation199_spill]] %s20572_s5 }
  0x41   :  { %s20592_s5 = sld [smem:[%s23372_s0 + %s20217_s22]]   ;;  %s20221_s22 = smov 40  }
  0x42   :  { %s20602_s4 = sld [smem:[%s23372_s0 + %s20219_s7]]   ;;  %s20223_s7 = smov 42  }
  0x43   :  { %23498 = sst [smem:[#allocation200_spill]] %s20577_s19 }
  0x44   :  { %s20597_s19 = sld [smem:[%s23372_s0 + %s20218_s28]]   ;;  %s20222_s28 = smov 41  }
  0x45   :  { %23499 = sst [smem:[#allocation201_spill]] %s20587_s25 }
  0x46   :  { %s20607_s25 = sld [smem:[%s23372_s0 + %s20220_s15]]   ;;  %s20224_s15 = smov 43  }
  0x47   :  { %23500 = sst [smem:[#allocation202_spill]] %s20592_s5 }
  0x48   :  { %23501 = sst [smem:[#allocation203_spill]] %s20602_s4 }
  0x49   :  { %s20612_s5 = sld [smem:[%s23372_s0 + %s20221_s22]]   ;;  %s20225_s22 = smov 44  }
  0x4a   :  { %s20617_s3 = sld [smem:[%s23372_s0 + %s20222_s28]]   ;;  %s20226_s28 = smov 45  }
  0x4b   :  { %s20622_s4 = sld [smem:[%s23372_s0 + %s20223_s7]]   ;;  %s20227_s7 = smov 46  }
  0x4c   :  { %23502 = sst [smem:[#allocation204_spill]] %s20607_s25 }
  0x4d   :  { %s20627_s25 = sld [smem:[%s23372_s0 + %s20224_s15]]   ;;  %s20228_s15 = smov 47  }
  0x4f   :  { %23503 = sst [smem:[#allocation205_spill]] %s20612_s5 }
  0x50   :  { %23504 = sst [smem:[#allocation206_spill]] %s20617_s3 }
  0x51   :  { %23505 = sst [smem:[#allocation207_spill]] %s20622_s4 }
  0x52   :  { %s20632_s5 = sld [smem:[%s23372_s0 + %s20225_s22]]   ;;  %s20229_s22 = smov 48  }
  0x53   :  { %23506 = sst [smem:[#allocation208_spill]] %s20627_s25 }
  0x54   :  { %s20637_s3 = sld [smem:[%s23372_s0 + %s20226_s28]]   ;;  %s20230_s28 = smov 49  }
  0x55   :  { %s20642_s4 = sld [smem:[%s23372_s0 + %s20227_s7]]   ;;  %s20231_s7 = smov 50  }
  0x56   :  { %s20647_s25 = sld [smem:[%s23372_s0 + %s20228_s15]]   ;;  %s20232_s15 = smov 51  }
  0x57   :  { %s20662_s20 = sld [smem:[%s23372_s0 + %s20231_s7]]   ;;  %s20235_s7 = smov 54  }
  0x58   :  { %23507 = sst [smem:[#allocation209_spill]] %s20632_s5 }
  0x59   :  { %s20652_s5 = sld [smem:[%s23372_s0 + %s20229_s22]]   ;;  %s20233_s22 = smov 52  }
  0x5a   :  { %23508 = sst [smem:[#allocation210_spill]] %s20637_s3 }
  0x5b   :  { %23509 = sst [smem:[#allocation211_spill]] %s20642_s4 }
  0x5c   :  { %23510 = sst [smem:[#allocation212_spill]] %s20647_s25 }
  0x5d   :  { %s20657_s3 = sld [smem:[%s23372_s0 + %s20230_s28]]   ;;  %s20234_s28 = smov 53  }
  0x5e   :  { %s20667_s25 = sld [smem:[%s23372_s0 + %s20232_s15]]   ;;  %s20236_s15 = smov 55  }
  0x5f   :  { %23511 = sst [smem:[#allocation213_spill]] %s20652_s5 }
  0x60   :  { %s20672_s6 = sld [smem:[%s23372_s0 + %s20233_s22]]   ;;  %s20237_s22 = smov 56  }
  0x61   :  { %s20682_s24 = sld [smem:[%s23372_s0 + %s20235_s7]]   ;;  %s20239_s7 = smov 58  }
  0x62   :  { %s20702_s9 = sld [smem:[%s23372_s0 + %s20239_s7]]   ;;  %s20243_s7 = smov 62  }
  0x63   :  { %23512 = sst [smem:[#allocation214_spill]] %s20657_s3 }
  0x64   :  { %23513 = sst [smem:[#allocation215_spill]] %s20667_s25 }
  0x65   :  { %s20677_s3 = sld [smem:[%s23372_s0 + %s20234_s28]]   ;;  %s20238_s28 = smov 57  }
  0x66   :  { %23514 = sst [smem:[#allocation216_spill]] %s20672_s6 }
  0x67   :  { %s20687_s25 = sld [smem:[%s23372_s0 + %s20236_s15]]   ;;  %s20240_s15 = smov 59  }
  0x68   :  { %s20692_s6 = sld [smem:[%s23372_s0 + %s20237_s22]]   ;;  %s20241_s22 = smov 60  }
  0x69   :  { %23519 = sst [smem:[#allocation221_spill]] %s20702_s9 }
  0x6a   :  { %s20722_s9 = sld [smem:[%s23372_s0 + %s20243_s7]]   ;;  %s20247_s7 = smov 66  }
  0x6b   :  { %23515 = sst [smem:[#allocation217_spill]] %s20677_s3 }
  0x6c   :  { %s20697_s3 = sld [smem:[%s23372_s0 + %s20238_s28]]   ;;  %s20242_s28 = smov 61  }
  0x6d   :  { %23516 = sst [smem:[#allocation218_spill]] %s20687_s25 }
  0x6e   :  { %23517 = sst [smem:[#allocation219_spill]] %s20692_s6 }
  0x6f   :  { %s20707_s25 = sld [smem:[%s23372_s0 + %s20240_s15]]   ;;  %s20244_s15 = smov 63  }
  0x70   :  { %s20712_s6 = sld [smem:[%s23372_s0 + %s20241_s22]]   ;;  %s20245_s22 = smov 64  }
  0x71   :  { %23523 = sst [smem:[#allocation225_spill]] %s20722_s9 }
  0x72   :  { %23518 = sst [smem:[#allocation220_spill]] %s20697_s3 }
  0x73   :  { %s20717_s3 = sld [smem:[%s23372_s0 + %s20242_s28]]   ;;  %s20246_s28 = smov 65  }
  0x74   :  { %s20742_s9 = sld [smem:[%s23372_s0 + %s20247_s7]]   ;;  %s20251_s7 = smov 70  }
  0x75   :  { %23520 = sst [smem:[#allocation222_spill]] %s20707_s25 }
  0x76   :  { %23521 = sst [smem:[#allocation223_spill]] %s20712_s6 }
  0x77   :  { %s20727_s25 = sld [smem:[%s23372_s0 + %s20244_s15]]   ;;  %s20248_s15 = smov 67  }
  0x78   :  { %s20732_s6 = sld [smem:[%s23372_s0 + %s20245_s22]]   ;;  %s20249_s22 = smov 68  }
  0x79   :  { %23522 = sst [smem:[#allocation224_spill]] %s20717_s3 }
  0x7a   :  { %s20737_s3 = sld [smem:[%s23372_s0 + %s20246_s28]]   ;;  %s20250_s28 = smov 69  }
  0x7b   :  { %23527 = sst [smem:[#allocation229_spill]] %s20742_s9 }
  0x7c   :  { %s20762_s9 = sld [smem:[%s23372_s0 + %s20251_s7]]   ;;  %s20255_s7 = smov 74  }
  0x7d   :  { %23524 = sst [smem:[#allocation226_spill]] %s20727_s25 }
  0x7e   :  { %23525 = sst [smem:[#allocation227_spill]] %s20732_s6 }
  0x7f   :  { %s20747_s25 = sld [smem:[%s23372_s0 + %s20248_s15]]   ;;  %s20252_s15 = smov 71  }
  0x80   :  { %23526 = sst [smem:[#allocation228_spill]] %s20737_s3 }
  0x81   :  { %s20752_s6 = sld [smem:[%s23372_s0 + %s20249_s22]]   ;;  %s20253_s22 = smov 72  }
  0x82   :  { %s20757_s3 = sld [smem:[%s23372_s0 + %s20250_s28]]   ;;  %s20254_s28 = smov 73  }
  0x83   :  { %23531 = sst [smem:[#allocation233_spill]] %s20762_s9 }
  0x84   :  { %s20782_s9 = sld [smem:[%s23372_s0 + %s20255_s7]]   ;;  %s20259_s7 = smov 78  }
  0x85   :  { %23528 = sst [smem:[#allocation230_spill]] %s20747_s25 }
  0x86   :  { %s20767_s25 = sld [smem:[%s23372_s0 + %s20252_s15]]   ;;  %s20256_s15 = smov 75  }
  0x87   :  { %23529 = sst [smem:[#allocation231_spill]] %s20752_s6 }
  0x88   :  { %23530 = sst [smem:[#allocation232_spill]] %s20757_s3 }
  0x89   :  { %s20772_s6 = sld [smem:[%s23372_s0 + %s20253_s22]]   ;;  %s20257_s22 = smov 76  }
  0x8a   :  { %s20777_s3 = sld [smem:[%s23372_s0 + %s20254_s28]]   ;;  %s20258_s28 = smov 77  }
  0x8b   :  { %23535 = sst [smem:[#allocation237_spill]] %s20782_s9 }
  0x8c   :  { %23532 = sst [smem:[#allocation234_spill]] %s20767_s25 }
  0x8d   :  { %s20787_s25 = sld [smem:[%s23372_s0 + %s20256_s15]]   ;;  %s20260_s15 = smov 79  }
  0x8e   :  { %s20802_s9 = sld [smem:[%s23372_s0 + %s20259_s7]]   ;;  %s20263_s7 = smov 82  }
  0x8f   :  { %23533 = sst [smem:[#allocation235_spill]] %s20772_s6 }
  0x90   :  { %23534 = sst [smem:[#allocation236_spill]] %s20777_s3 }
  0x91   :  { %s20792_s6 = sld [smem:[%s23372_s0 + %s20257_s22]]   ;;  %s20261_s22 = smov 80  }
  0x92   :  { %s20797_s3 = sld [smem:[%s23372_s0 + %s20258_s28]]   ;;  %s20262_s28 = smov 81  }
  0x93   :  { %23536 = sst [smem:[#allocation238_spill]] %s20787_s25 }
  0x94   :  { %23539 = sst [smem:[#allocation241_spill]] %s20802_s9 }
  0x95   :  { %s20807_s25 = sld [smem:[%s23372_s0 + %s20260_s15]]   ;;  %s20264_s15 = smov 83  }
  0x96   :  { %s20822_s9 = sld [smem:[%s23372_s0 + %s20263_s7]]   ;;  %s20267_s7 = smov 86  }
  0x97   :  { %23537 = sst [smem:[#allocation239_spill]] %s20792_s6 }
  0x98   :  { %23538 = sst [smem:[#allocation240_spill]] %s20797_s3 }
  0x99   :  { %s20812_s6 = sld [smem:[%s23372_s0 + %s20261_s22]]   ;;  %s20265_s22 = smov 84  }
  0x9a   :  { %s20817_s3 = sld [smem:[%s23372_s0 + %s20262_s28]]   ;;  %s20266_s28 = smov 85  }
  0x9b   :  { %23540 = sst [smem:[#allocation242_spill]] %s20807_s25 }
  0x9c   :  { %23543 = sst [smem:[#allocation245_spill]] %s20822_s9 }
  0x9d   :  { %s20827_s25 = sld [smem:[%s23372_s0 + %s20264_s15]]   ;;  %s20268_s15 = smov 87  }
  0x9e   :  { %s20842_s9 = sld [smem:[%s23372_s0 + %s20267_s7]]   ;;  %s20271_s7 = smov 90  }
  0x9f   :  { %23541 = sst [smem:[#allocation243_spill]] %s20812_s6 }
  0xa0   :  { %23542 = sst [smem:[#allocation244_spill]] %s20817_s3 }
  0xa1   :  { %s20832_s6 = sld [smem:[%s23372_s0 + %s20265_s22]]   ;;  %s20269_s22 = smov 88  }
  0xa2   :  { %s20837_s3 = sld [smem:[%s23372_s0 + %s20266_s28]]   ;;  %s20270_s28 = smov 89  }
  0xa3   :  { %23544 = sst [smem:[#allocation246_spill]] %s20827_s25 }
  0xa4   :  { %23547 = sst [smem:[#allocation249_spill]] %s20842_s9 }
  0xa5   :  { %s20847_s25 = sld [smem:[%s23372_s0 + %s20268_s15]]   ;;  %s20272_s15 = smov 91  }
  0xa6   :  { %s20862_s9 = sld [smem:[%s23372_s0 + %s20271_s7]]   ;;  %s20275_s7 = smov 94  }
  0xa7   :  { %23545 = sst [smem:[#allocation247_spill]] %s20832_s6 }
  0xa8   :  { %23546 = sst [smem:[#allocation248_spill]] %s20837_s3 }
  0xa9   :  { %s20852_s6 = sld [smem:[%s23372_s0 + %s20269_s22]]   ;;  %s20273_s22 = smov 92  }
  0xaa   :  { %s20857_s3 = sld [smem:[%s23372_s0 + %s20270_s28]]   ;;  %s20274_s28 = smov 93  }
  0xab   :  { %23548 = sst [smem:[#allocation250_spill]] %s20847_s25 }
  0xac   :  { %23551 = sst [smem:[#allocation253_spill]] %s20862_s9 }
  0xad   :  { %s20867_s25 = sld [smem:[%s23372_s0 + %s20272_s15]]   ;;  %s20276_s15 = smov 95  }
  0xae   :  { %s20882_s9 = sld [smem:[%s23372_s0 + %s20275_s7]]   ;;  %s20279_s7 = smov 98  }
  0xaf   :  { %23549 = sst [smem:[#allocation251_spill]] %s20852_s6 }
  0xb0   :  { %23550 = sst [smem:[#allocation252_spill]] %s20857_s3 }
  0xb1   :  { %s20872_s6 = sld [smem:[%s23372_s0 + %s20273_s22]]   ;;  %s20277_s22 = smov 96  }
  0xb2   :  { %s20877_s3 = sld [smem:[%s23372_s0 + %s20274_s28]]   ;;  %s20278_s28 = smov 97  }
  0xb3   :  { %23552 = sst [smem:[#allocation254_spill]] %s20867_s25 }
  0xb4   :  { %23555 = sst [smem:[#allocation257_spill]] %s20882_s9 }
  0xb5   :  { %s20887_s25 = sld [smem:[%s23372_s0 + %s20276_s15]]   ;;  %s20280_s15 = smov 99  }
  0xb6   :  { %s20902_s9 = sld [smem:[%s23372_s0 + %s20279_s7]]   ;;  %s20283_s7 = smov 102  }
  0xb7   :  { %23553 = sst [smem:[#allocation255_spill]] %s20872_s6 }
  0xb8   :  { %23554 = sst [smem:[#allocation256_spill]] %s20877_s3 }
  0xb9   :  { %s20892_s6 = sld [smem:[%s23372_s0 + %s20277_s22]]   ;;  %s20281_s22 = smov 100  }
  0xba   :  { %s20897_s3 = sld [smem:[%s23372_s0 + %s20278_s28]]   ;;  %s20282_s28 = smov 101  }
  0xbb   :  { %23556 = sst [smem:[#allocation258_spill]] %s20887_s25 }
  0xbc   :  { %23559 = sst [smem:[#allocation261_spill]] %s20902_s9 }
  0xbd   :  { %s20907_s25 = sld [smem:[%s23372_s0 + %s20280_s15]]   ;;  %s20284_s15 = smov 103  }
  0xbe   :  { %s20922_s9 = sld [smem:[%s23372_s0 + %s20283_s7]]   ;;  %s20287_s7 = smov 106  }
  0xbf   :  { %23557 = sst [smem:[#allocation259_spill]] %s20892_s6 }
  0xc0   :  { %23558 = sst [smem:[#allocation260_spill]] %s20897_s3 }
  0xc1   :  { %s20912_s6 = sld [smem:[%s23372_s0 + %s20281_s22]]   ;;  %s20285_s22 = smov 104  }
  0xc2   :  { %s20917_s3 = sld [smem:[%s23372_s0 + %s20282_s28]]   ;;  %s20286_s28 = smov 105  }
  0xc3   :  { %23560 = sst [smem:[#allocation262_spill]] %s20907_s25 }
  0xc4   :  { %23563 = sst [smem:[#allocation265_spill]] %s20922_s9 }
  0xc5   :  { %s20927_s25 = sld [smem:[%s23372_s0 + %s20284_s15]]   ;;  %s20288_s15 = smov 107  }
  0xc6   :  { %s20942_s9 = sld [smem:[%s23372_s0 + %s20287_s7]]   ;;  %s20291_s7 = smov 110  }
  0xc7   :  { %23561 = sst [smem:[#allocation263_spill]] %s20912_s6 }
  0xc8   :  { %23562 = sst [smem:[#allocation264_spill]] %s20917_s3 }
  0xc9   :  { %s20932_s6 = sld [smem:[%s23372_s0 + %s20285_s22]]   ;;  %s20289_s22 = smov 108  }
  0xca   :  { %s20937_s3 = sld [smem:[%s23372_s0 + %s20286_s28]]   ;;  %s20290_s28 = smov 109  }
  0xcb   :  { %23564 = sst [smem:[#allocation266_spill]] %s20927_s25 }
  0xcc   :  { %23567 = sst [smem:[#allocation269_spill]] %s20942_s9 }
  0xcd   :  { %s20947_s25 = sld [smem:[%s23372_s0 + %s20288_s15]]   ;;  %s20292_s15 = smov 111  }
  0xce   :  { %s20962_s9 = sld [smem:[%s23372_s0 + %s20291_s7]]   ;;  %s20295_s7 = smov 114  }
  0xcf   :  { %23565 = sst [smem:[#allocation267_spill]] %s20932_s6 }
  0xd0   :  { %23566 = sst [smem:[#allocation268_spill]] %s20937_s3 }
  0xd1   :  { %s20952_s6 = sld [smem:[%s23372_s0 + %s20289_s22]]   ;;  %s20293_s22 = smov 112  }
  0xd2   :  { %s20957_s3 = sld [smem:[%s23372_s0 + %s20290_s28]]   ;;  %s20294_s28 = smov 113  }
  0xd3   :  { %23568 = sst [smem:[#allocation270_spill]] %s20947_s25 }
  0xd4   :  { %23571 = sst [smem:[#allocation273_spill]] %s20962_s9 }
  0xd5   :  { %s20967_s25 = sld [smem:[%s23372_s0 + %s20292_s15]]   ;;  %s20296_s15 = smov 115  }
  0xd6   :  { %s20982_s9 = sld [smem:[%s23372_s0 + %s20295_s7]]   ;;  %s20299_s7 = smov 118  }
  0xd7   :  { %23569 = sst [smem:[#allocation271_spill]] %s20952_s6 }
  0xd8   :  { %23570 = sst [smem:[#allocation272_spill]] %s20957_s3 }
  0xd9   :  { %s20972_s6 = sld [smem:[%s23372_s0 + %s20293_s22]]   ;;  %s20297_s22 = smov 116  }
  0xda   :  { %s20977_s3 = sld [smem:[%s23372_s0 + %s20294_s28]]   ;;  %s20298_s28 = smov 117  }
  0xdb   :  { %23572 = sst [smem:[#allocation274_spill]] %s20967_s25 }
  0xdc   :  { %23575 = sst [smem:[#allocation277_spill]] %s20982_s9 }
  0xdd   :  { %s20987_s25 = sld [smem:[%s23372_s0 + %s20296_s15]]   ;;  %s20300_s15 = smov 119  }
  0xde   :  { %s21002_s9 = sld [smem:[%s23372_s0 + %s20299_s7]]   ;;  %s20303_s7 = smov 122  }
  0xdf   :  { %23573 = sst [smem:[#allocation275_spill]] %s20972_s6 }
  0xe0   :  { %23574 = sst [smem:[#allocation276_spill]] %s20977_s3 }
  0xe1   :  { %s20992_s6 = sld [smem:[%s23372_s0 + %s20297_s22]]   ;;  %s20301_s22 = smov 120  }
  0xe2   :  { %s20997_s3 = sld [smem:[%s23372_s0 + %s20298_s28]]   ;;  %s20302_s28 = smov 121  }
  0xe3   :  { %23576 = sst [smem:[#allocation278_spill]] %s20987_s25 }
  0xe4   :  { %23579 = sst [smem:[#allocation281_spill]] %s21002_s9 }
  0xe5   :  { %s21007_s25 = sld [smem:[%s23372_s0 + %s20300_s15]]   ;;  %s20304_s15 = smov 123  }
  0xe6   :  { %s21022_s9 = sld [smem:[%s23372_s0 + %s20303_s7]]   ;;  %s20307_s7 = smov 126  }
  0xe7   :  { %23577 = sst [smem:[#allocation279_spill]] %s20992_s6 }
  0xe8   :  { %23578 = sst [smem:[#allocation280_spill]] %s20997_s3 }
  0xe9   :  { %s21012_s6 = sld [smem:[%s23372_s0 + %s20301_s22]]   ;;  %s20305_s22 = smov 124  }
  0xea   :  { %s21017_s3 = sld [smem:[%s23372_s0 + %s20302_s28]]   ;;  %s20306_s28 = smov 125  }
  0xeb   :  { %23580 = sst [smem:[#allocation282_spill]] %s21007_s25 }
  0xec   :  { %23583 = sst [smem:[#allocation285_spill]] %s21022_s9 }
  0xed   :  { %s21027_s25 = sld [smem:[%s23372_s0 + %s20304_s15]]   ;;  %s20308_s15 = smov 127  }
  0xee   :  { %s21042_s9 = sld [smem:[%s23372_s0 + %s20307_s7]]   ;;  %s20311_s7 = smov 130  }
  0xef   :  { %23581 = sst [smem:[#allocation283_spill]] %s21012_s6 }
  0xf0   :  { %23582 = sst [smem:[#allocation284_spill]] %s21017_s3 }
  0xf1   :  { %s21032_s6 = sld [smem:[%s23372_s0 + %s20305_s22]]   ;;  %s20309_s22 = smov 128  }
  0xf2   :  { %s21037_s3 = sld [smem:[%s23372_s0 + %s20306_s28]]   ;;  %s20310_s28 = smov 129  }
  0xf3   :  { %23584 = sst [smem:[#allocation286_spill]] %s21027_s25 }
  0xf4   :  { %23587 = sst [smem:[#allocation289_spill]] %s21042_s9 }
  0xf5   :  { %s21047_s25 = sld [smem:[%s23372_s0 + %s20308_s15]]   ;;  %s20312_s15 = smov 131  }
  0xf6   :  { %s21062_s9 = sld [smem:[%s23372_s0 + %s20311_s7]]  }
  0xf7   :  { %23585 = sst [smem:[#allocation287_spill]] %s21032_s6 }
  0xf8   :  { %23586 = sst [smem:[#allocation288_spill]] %s21037_s3 }
  0xf9   :  { %s21052_s6 = sld [smem:[%s23372_s0 + %s20309_s22]]   ;;  %s20313_s22 = smov 132  }
  0xfa   :  { %s21057_s3 = sld [smem:[%s23372_s0 + %s20310_s28]]   ;;  %s20314_s28 = smov 133  }
  0xfb   :  { %23588 = sst [smem:[#allocation290_spill]] %s21047_s25 }
  0xfc   :  { %23591 = sst [smem:[#allocation293_spill]] %s21062_s9 }
  0xfd   :  { %s21067_s25 = sld [smem:[%s23372_s0 + %s20312_s15]]  }
  0xff   :  { %23589 = sst [smem:[#allocation291_spill]] %s21052_s6 }
 0x100   :  { %23590 = sst [smem:[#allocation292_spill]] %s21057_s3 }
 0x101   :  { %s21072_s6 = sld [smem:[%s23372_s0 + %s20313_s22]]  }
 0x102   :  { %s21077_s3 = sld [smem:[%s23372_s0 + %s20314_s28]]  }
 0x107   :  { %23592 = sst [smem:[#allocation294_spill]] %s21072_s6 }
 0x108   :  { %272 = vsyncpa [#allocation3], 0 }
 0x109   :  { %273 = vsyncpa [#allocation6], 0 }
 0x10a   :  { %274 = vsyncpa [#allocation9], 0 }
 0x10b   :  { %275 = vsyncpa [#allocation12], 0 }
 0x10c   :  { %276 = vsyncpa [#allocation15], 0 }
 0x10d   :  { %277 = vsyncpa [#allocation18], 0 }
 0x10e   :  { %278 = vsyncpa [#allocation21], 0 }
 0x10f   :  { %279 = vsyncpa [#allocation24], 0 }
 0x110   :  { %280 = vsyncpa [#allocation27], 0 }
 0x111   :  { %281 = vsyncpa [#allocation30], 0 }
 0x112   :  { %282 = vsyncpa [#allocation33], 0 }
 0x113   :  { %283 = vsyncpa [#allocation36], 0 }
 0x114   :  { %284 = vsyncpa [#allocation39], 0 }
 0x115   :  { %285 = vsyncpa [#allocation42], 0 }
 0x116   :  { %286 = vsyncpa [#allocation45], 0 }
 0x117   :  { %287 = vsyncpa [#allocation48], 0 }
 0x118   :  { %288 = vsyncpa [#allocation51], 0 }
 0x119   :  { %289 = vsyncpa [#allocation54], 0 }
 0x11a   :  { %290 = vsyncpa [#allocation57], 0 }
 0x11b   :  { %291 = vsyncpa [#allocation60], 0 }
 0x11c   :  { %292 = vsyncpa [#allocation63], 0 }
 0x11d   :  { %293 = vsyncpa [#allocation66], 0 }
 0x11e   :  { %294 = vsyncpa [#allocation69], 0 }
 0x11f   :  { %295 = vsyncpa [#allocation72], 0 }
 0x120   :  { %296 = vsyncpa [#allocation75], 0 }
 0x121   :  { %297 = vsyncpa [#allocation78], 0 }
 0x122   :  { %298 = vsyncpa [#allocation81], 0 }
 0x123   :  { %299 = vsyncpa [#allocation84], 0 }
 0x124   :  { %300 = vsyncpa [#allocation87], 0 }
 0x125   :  { %301 = vsyncpa [#allocation90], 0 }
 0x126   :  { %302 = vsyncpa [#allocation93], 0 }
 0x127   :  { %303 = vsyncpa [#allocation96], 0 }
 0x128   :  { %304 = vsyncpa [#allocation99], 0 }
 0x129   :  { %305 = vsyncpa [#allocation102], 0 }
 0x12a   :  { %306 = vsyncpa [#allocation105], 0 }
 0x12b   :  { %307 = vsyncpa [#allocation108], 0 }
 0x12c   :  { %308 = vsyncpa [#allocation111], 0 }
 0x12d   :  { %309 = vsyncpa [#allocation114], 0 }
 0x12e   :  { %310 = vsyncpa [#allocation117], 0 }
 0x12f   :  { %311 = vsyncpa [#allocation120], 0 }
 0x130   :  { %312 = vsyncpa [#allocation123], 0 }
 0x131   :  { %313 = vsyncpa [#allocation126], 0 }
 0x132   :  { %314 = vsyncpa [#allocation4], 0 }
 0x133   :  { %316 = vsyncpa [#allocation4 + $0x1], 0  ;;  %s21079_s0 = smov 0   ;;  %s21081_s7 = smov 0  }
 0x134   :  { %s21083_s10 = smov 0   ;;  %s21085_s11 = smov 0  }
 0x135 LB: > { %23593 = sst [smem:[#allocation295_spill]] %s20168_s0  ;;  %s21100_s15 = sadd.s32 4294967295, %s20180_s11   ;;  %s20180_s11 = sphi %s21085_s11, %s23764_s11   ;;  %s20176_s10 = sphi %s21083_s10, %s23769_s10   ;;  %s20172_s7 = sphi %s21081_s7, %s23768_s7   ;;  %s20168_s0 = sphi %s21079_s0, %s23767_s0  }
 0x136   : > { %23594 = sst [smem:[#allocation296_spill]] %s20176_s10  ;;  %s14625_s16 = sadd.s32 4294967294, %s20180_s11  }
 0x137   : > { %s21104_s18 = sadd.s32 1, %s20180_s11   ;;  %s3127_s22 = sadd.s32 1, %s20176_s10 }
 0x138   : > { %23595 = sst [smem:[#allocation297_spill]] %s21104_s18  ;;  %s3124_s23 = ssub.s32 %s20180_s11, %s21104_s18 }
 0x139   : > { %p3137_p0 = scmp.ne.s32.totalorder %s20176_s10, %s20172_s7  ;;  %p3125_p1 = scmp.eq.s32.totalorder %s3124_s23, 0 }
 0x13a   : > { %p3138_p2 = scmp.eq.s32.totalorder %s21100_s15, 1  ;;  %p3143_p3 = scmp.ne.s32.totalorder %s20172_s7, %s20168_s0 }
 0x13b   : > { %p3144_p4 = scmp.eq.s32.totalorder %s14625_s16, 1  ;;  %p14626_p7 = scmp.ge.s32.totalorder %s20180_s11, 1 }
 0x13c   : > { %s21115_s26 = scalar_select %p3125_p1, %s20176_s10, %s3127_s22  }
 0x13d   : > { %p21117_p5 = por %p3138_p2, %p3137_p0  ;;  %p21121_p6 = por %p3144_p4, %p3143_p3 }
 0x13e   : > { %23596 = sst [smem:[#allocation298_spill]] %s21115_s26  ;;  %p3151_p8 = scmp.lt.s32.totalorder %s20180_s11, 3 }
 0x13f   : > { %s23597_s28 = scalar_select %p21117_p5, 1, 0 }
 0x140   : > { %s23598_s1 = scalar_select %p21121_p6, 1, 0 }
 0x141   : > { %p21127_p9 = pnand %p14626_p7, %p3151_p8 }
 0x142   : > { %23599 = sst [smem:[#allocation299_spill]] %s23598_s1  ;;  %p17538_p10 = scmp.eq.s32.totalorder (!%p21127_p9), %s21100_s15, 0 }
 0x143   : > { %s23600_s2 = scalar_select %p21127_p9, 1, 0 }
 0x144   : > { %3155 = sbr.rel (%p21127_p9) target bundleno = 1260 (0x4ec), region = 12  ;;  %s20315_s16 = smov (!%p21127_p9), [#allocation5]  }
 0x145   : > { %s3175_s22 = sshll.u32 (!%p21127_p9), %s20315_s16, 4  ;;  %s3176_s22 = int_to_ptr.vmem [resolvable:$true] %s3175_s22 }
 0x146   : > { %s17970_s23 = scalar_lea.vmem (!%p21127_p9), %s3176_s22, 16  ;;  %s17976_s26 = scalar_lea.vmem (!%p21127_p9), %s3176_s22, 32 }
 0x147   : > { %p17971_p11 = scmp.ne.s32.totalorder (!%p21127_p9), %s3176_s22, %s17970_s23  ;;  %p17977_p0 = scmp.lt.s32.totalorder (!%p21127_p9), %s3176_s22, %s3176_s22 }
 0x148   : > { %p17978_p1 = scmp.lt.s32.totalorder (!%p21127_p9), %s17976_s26, %s17970_s23 }
 0x149   : > { %p17972_p12 = pnand %p17971_p11, %p17538_p10 }
 0x14a   : > { %p17979_p2 = por %p17978_p1, %p17977_p0 }
 0x14b   : > { %p17973_p13 = pneg %p17972_p12 }
 0x14d   : > { %p17980_p3 = pnand %p17979_p2, %p17973_p13 }
 0x14f   : > { %17983 = shalt.err (!%p17980_p3)
}
 0x150   : > { %s23601_s13 = sld [smem:[#allocation174_spill]]  ;;  %s20316_s10 = smov [#allocation8]  }
 0x151   : > { %s3222_s18 = sshll.u32 %s20316_s10, 4  ;;  %s20317_s16 = smov [#allocation11]   ;;  %s3223_s18 = int_to_ptr.vmem [resolvable:$true] %s3222_s18 }
 0x152   : > { %s3248_s1 = sshll.u32 %s20317_s16, 4  ;;  %s17994_s0 = scalar_lea.vmem %s3223_s18, 256  ;;  %s3249_s1 = int_to_ptr.vmem [resolvable:$true] %s3248_s1 }
 0x153   : > { %p17995_p4 = scmp.ne.s32.totalorder %s3223_s18, %s17994_s0  ;;  %p18001_p11 = scmp.lt.s32.totalorder %s3223_s18, %s3223_s18 }
 0x154   : > { %p18002_p12 = scmp.lt.s32.totalorder %s17994_s0, %s17994_s0 }
 0x155   : > { %p17996_p7 = pnand %p17995_p4, %p17538_p10 }
 0x156   : > { %17203 = dma.hbm_to_vmem [thread:$0]  (%p17538_p10), %s23601_s13, 16, %s3176_s22, [#allocation6]  }
 0x157   : > { %p17997_p8 = pneg %p17996_p7  ;;  %p18003_p13 = por %p18002_p12, %p18001_p11 }
 0x159   : > { %p18004_p0 = pnand %p18003_p13, %p17997_p8 }
 0x15b   : > { %18007 = shalt.err (!%p18004_p0)
}
 0x15c   : > { %s23425_s26 = smov 128   ;;  %s23427_s22 = smov 8  }
 0x15d   : > { %17207 = dma.hbm_to_vmem [thread:$0]  (%p17538_p10), %s20472_s30, 256, %s3223_s18, [#allocation9], %s23425_s26, %s23425_s26, %s23427_s22  }
 0x15e   : > { %s18018_s10 = scalar_lea.vmem %s3249_s1, 256  ;;  %p18025_p4 = scmp.lt.s32.totalorder %s3249_s1, %s3249_s1 }
 0x15f   : > { %p18019_p1 = scmp.ne.s32.totalorder %s3249_s1, %s18018_s10  ;;  %p18026_p7 = scmp.lt.s32.totalorder %s18018_s10, %s18018_s10 }
 0x161   : > { %p18020_p2 = pnand %p18019_p1, %p17538_p10  ;;  %p18027_p11 = por %p18026_p7, %p18025_p4 }
 0x163   : > { %p18021_p3 = pneg %p18020_p2 }
 0x165   : > { %p18028_p8 = pnand %p18027_p11, %p18021_p3 }
 0x167   : > { %18031 = shalt.err (!%p18028_p8)
}
 0x168   : > { %s23602_s12 = sld [smem:[#allocation185_spill]]  ;;  %s20320_s0 = smov [#allocation14]  }
 0x169   : > { %s3273_s18 = sshll.u32 %s20320_s0, 4  ;;  %s20321_s23 = smov [#allocation17]   ;;  %s3274_s18 = int_to_ptr.vmem [resolvable:$true] %s3273_s18 }
 0x16a   : > { %s3314_s16 = sshll.u32 %s20321_s23, 4  ;;  %s18042_s13 = scalar_lea.vmem %s3274_s18, 16  ;;  %s3315_s16 = int_to_ptr.vmem [resolvable:$true] %s3314_s16 }
 0x16b   : > { %p18043_p12 = scmp.ne.s32.totalorder %s3274_s18, %s18042_s13  ;;  %s18048_s10 = scalar_lea.vmem %s3274_s18, 32 }
 0x16c   : > { %p18049_p1 = scmp.lt.s32.totalorder %s3274_s18, %s3274_s18  ;;  %p18050_p2 = scmp.lt.s32.totalorder %s18048_s10, %s18042_s13 }
 0x16d   : > { %p18044_p13 = pnand %p18043_p12, %p17538_p10 }
 0x16e   : > { %17211 = dma.hbm_to_vmem [thread:$0]  (%p17538_p10), %s23602_s12, 256, %s3249_s1, [#allocation12], %s23425_s26, %s23425_s26, %s23427_s22  }
 0x16f   : > { %p18045_p0 = pneg %p18044_p13  ;;  %p18051_p3 = por %p18050_p2, %p18049_p1 }
 0x171   : > { %p18052_p4 = pnand %p18051_p3, %p18045_p0 }
 0x173   : > { %18055 = shalt.err (!%p18052_p4)
}
 0x174   : > { %17215 = dma.hbm_to_vmem [thread:$0]  (%p17538_p10), %s20492_s27, 16, %s3274_s18, [#allocation15]  }
 0x175   : > { %s18066_s1 = scalar_lea.vmem %s3315_s16, 256  ;;  %p18073_p6 = scmp.lt.s32.totalorder %s3315_s16, %s3315_s16 }
 0x176   : > { %p18067_p7 = scmp.ne.s32.totalorder %s3315_s16, %s18066_s1  ;;  %p18074_p5 = scmp.lt.s32.totalorder %s18066_s1, %s18066_s1 }
 0x178   : > { %p18068_p11 = pnand %p18067_p7, %p17538_p10  ;;  %p18075_p12 = por %p18074_p5, %p18073_p6 }
 0x17a   : > { %p18069_p8 = pneg %p18068_p11 }
 0x17c   : > { %p18076_p13 = pnand %p18075_p12, %p18069_p8 }
 0x17e   : > { %18079 = shalt.err (!%p18076_p13)
}
 0x17f   : > { %17219 = dma.hbm_to_vmem [thread:$0]  (%p17538_p10), %s20532_s29, 256, %s3315_s16, [#allocation18], %s23425_s26, %s23425_s26, %s23427_s22  }
 0x180   : > { %s20322_s13 = smov [#allocation20]   ;;  %s20323_s18 = smov [#allocation23]  }
 0x181   : > { %s3340_s0 = sshll.u32 %s20322_s13, 4  ;;  %s3366_s23 = sshll.u32 %s20323_s18, 4  ;;  %s3341_s0 = int_to_ptr.vmem [resolvable:$true] %s3340_s0  ;;  %s3367_s23 = int_to_ptr.vmem [resolvable:$true] %s3366_s23 }
 0x182   : > { %s18090_s10 = scalar_lea.vmem %s3341_s0, 256  ;;  %p18097_p1 = scmp.lt.s32.totalorder %s3341_s0, %s3341_s0 }
 0x183   : > { %p18091_p0 = scmp.ne.s32.totalorder %s3341_s0, %s18090_s10  ;;  %p18098_p2 = scmp.lt.s32.totalorder %s18090_s10, %s18090_s10 }
 0x185   : > { %p18092_p5 = pnand %p18091_p0, %p17538_p10  ;;  %p18099_p3 = por %p18098_p2, %p18097_p1 }
 0x187   : > { %p18093_p6 = pneg %p18092_p5 }
 0x189   : > { %p18100_p4 = pnand %p18099_p3, %p18093_p6 }
 0x18b   : > { %18103 = shalt.err (!%p18100_p4)
}
 0x18c   : > { %s23603_s8 = sld [smem:[#allocation195_spill]]  ;;  %s18114_s16 = scalar_lea.vmem %s3367_s23, 256 }
 0x18d   : > { %p18115_p7 = scmp.ne.s32.totalorder %s3367_s23, %s18114_s16  ;;  %p18121_p12 = scmp.lt.s32.totalorder %s3367_s23, %s3367_s23 }
 0x18e   : > { %p18122_p13 = scmp.lt.s32.totalorder %s18114_s16, %s18114_s16 }
 0x18f   : > { %p18116_p11 = pnand %p18115_p7, %p17538_p10 }
 0x190   : > { %p18123_p0 = por %p18122_p13, %p18121_p12 }
 0x191   : > { %p18117_p8 = pneg %p18116_p11 }
 0x192   : > { %17223 = dma.hbm_to_vmem [thread:$0]  (%p17538_p10), %s23603_s8, 256, %s3341_s0, [#allocation21], %s23425_s26, %s23425_s26, %s23427_s22  }
 0x193   : > { %p18124_p5 = pnand %p18123_p0, %p18117_p8 }
 0x195   : > { %18127 = shalt.err (!%p18124_p5)
}
 0x196   : > { %17227 = dma.hbm_to_vmem [thread:$0]  (%p17538_p10), %s20552_s21, 256, %s3367_s23, [#allocation24], %s23425_s26, %s23425_s26, %s23427_s22  }
 0x197   : > { %s20324_s1 = smov [#allocation26]   ;;  %s20325_s0 = smov [#allocation29]  }
 0x198   : > { %s3395_s13 = sshll.u32 %s20324_s1, 4  ;;  %s3423_s18 = sshll.u32 %s20325_s0, 4  ;;  %s3396_s13 = int_to_ptr.vmem [resolvable:$true] %s3395_s13  ;;  %s3424_s18 = int_to_ptr.vmem [resolvable:$true] %s3423_s18 }
 0x199   : > { %s18138_s10 = scalar_lea.vmem %s3396_s13, 256  ;;  %p18145_p3 = scmp.lt.s32.totalorder %s3396_s13, %s3396_s13 }
 0x19a   : > { %p18139_p6 = scmp.ne.s32.totalorder %s3396_s13, %s18138_s10  ;;  %p18146_p4 = scmp.lt.s32.totalorder %s18138_s10, %s18138_s10 }
 0x19c   : > { %p18140_p1 = pnand %p18139_p6, %p17538_p10  ;;  %p18147_p7 = por %p18146_p4, %p18145_p3 }
 0x19e   : > { %p18141_p2 = pneg %p18140_p1 }
 0x1a0   : > { %p18148_p11 = pnand %p18147_p7, %p18141_p2 }
 0x1a2   : > { %18151 = shalt.err (!%p18148_p11)
}
 0x1a3   : > { %17231 = dma.hbm_to_vmem [thread:$0]  (%p17538_p10), %s20567_s17, 256, %s3396_s13, [#allocation27], %s23425_s26, %s23425_s26, %s23427_s22  }
 0x1a4   : > { %s18162_s23 = scalar_lea.vmem %s3424_s18, 16  ;;  %s18168_s16 = scalar_lea.vmem %s3424_s18, 32 }
 0x1a5   : > { %p18163_p8 = scmp.ne.s32.totalorder %s3424_s18, %s18162_s23  ;;  %p18169_p0 = scmp.lt.s32.totalorder %s3424_s18, %s3424_s18 }
 0x1a6   : > { %p18170_p5 = scmp.lt.s32.totalorder %s18168_s16, %s18162_s23 }
 0x1a7   : > { %p18164_p12 = pnand %p18163_p8, %p17538_p10 }
 0x1a8   : > { %p18171_p6 = por %p18170_p5, %p18169_p0 }
 0x1a9   : > { %p18165_p13 = pneg %p18164_p12 }
 0x1ab   : > { %p18172_p1 = pnand %p18171_p6, %p18165_p13 }
 0x1ad   : > { %18175 = shalt.err (!%p18172_p1)
}
 0x1ae   : > { %17235 = dma.hbm_to_vmem [thread:$0]  (%p17538_p10), %s20582_s14, 16, %s3424_s18, [#allocation30]  }
 0x1af   : > { %s20326_s1 = smov [#allocation32]   ;;  %s20327_s10 = smov [#allocation35]  }
 0x1b0   : > { %s3448_s0 = sshll.u32 %s20326_s1, 4  ;;  %s3490_s13 = sshll.u32 %s20327_s10, 4  ;;  %s3449_s0 = int_to_ptr.vmem [resolvable:$true] %s3448_s0  ;;  %s3491_s13 = int_to_ptr.vmem [resolvable:$true] %s3490_s13 }
 0x1b1   : > { %s18186_s26 = scalar_lea.vmem %s3449_s0, 16  ;;  %s18192_s23 = scalar_lea.vmem %s3449_s0, 32 }
 0x1b2   : > { %p18187_p2 = scmp.ne.s32.totalorder %s3449_s0, %s18186_s26  ;;  %p18193_p7 = scmp.lt.s32.totalorder %s3449_s0, %s3449_s0 }
 0x1b3   : > { %p18194_p11 = scmp.lt.s32.totalorder %s18192_s23, %s18186_s26 }
 0x1b4   : > { %p18188_p3 = pnand %p18187_p2, %p17538_p10 }
 0x1b5   : > { %p18195_p8 = por %p18194_p11, %p18193_p7 }
 0x1b6   : > { %p18189_p4 = pneg %p18188_p3 }
 0x1b8   : > { %p18196_p12 = pnand %p18195_p8, %p18189_p4 }
 0x1ba   : > { %18199 = shalt.err (!%p18196_p12)
}
 0x1bb   : > { %17239 = dma.hbm_to_vmem [thread:$0]  (%p17538_p10), %s20597_s19, 16, %s3449_s0, [#allocation33]  }
 0x1bc   : > { %s18210_s18 = scalar_lea.vmem %s3491_s13, 256  ;;  %p18217_p6 = scmp.lt.s32.totalorder %s3491_s13, %s3491_s13 }
 0x1bd   : > { %p18211_p13 = scmp.ne.s32.totalorder %s3491_s13, %s18210_s18  ;;  %p18218_p1 = scmp.lt.s32.totalorder %s18210_s18, %s18210_s18 }
 0x1bf   : > { %p18212_p0 = pnand %p18211_p13, %p17538_p10  ;;  %p18219_p2 = por %p18218_p1, %p18217_p6 }
 0x1c1   : > { %p18213_p5 = pneg %p18212_p0 }
 0x1c3   : > { %p18220_p3 = pnand %p18219_p2, %p18213_p5 }
 0x1c5   : > { %18223 = shalt.err (!%p18220_p3)
}
 0x1c6   : > { %s23604_s26 = smov 128   ;;  %s23605_s4 = sld [smem:[#allocation211_spill]] }
 0x1c7   : > { %s20328_s16 = smov [#allocation38]   ;;  %s20329_s0 = smov [#allocation41]  }
 0x1c8   : > { %s3516_s1 = sshll.u32 %s20328_s16, 4  ;;  %s3541_s10 = sshll.u32 %s20329_s0, 4  ;;  %s3517_s1 = int_to_ptr.vmem [resolvable:$true] %s3516_s1  ;;  %s3542_s10 = int_to_ptr.vmem [resolvable:$true] %s3541_s10 }
 0x1c9   : > { %s18234_s23 = scalar_lea.vmem %s3517_s1, 256  ;;  %p18241_p8 = scmp.lt.s32.totalorder %s3517_s1, %s3517_s1 }
 0x1ca   : > { %p18235_p4 = scmp.ne.s32.totalorder %s3517_s1, %s18234_s23  ;;  %p18242_p12 = scmp.lt.s32.totalorder %s18234_s23, %s18234_s23 }
 0x1cc   : > { %17243 = dma.hbm_to_vmem [thread:$0]  (%p17538_p10), %s23605_s4, 256, %s3491_s13, [#allocation36], %s23604_s26, %s23604_s26, %s23427_s22  }
 0x1cd   : > { %p18236_p7 = pnand %p18235_p4, %p17538_p10  ;;  %p18243_p13 = por %p18242_p12, %p18241_p8 }
 0x1cf   : > { %p18237_p11 = pneg %p18236_p7 }
 0x1d1   : > { %p18244_p0 = pnand %p18243_p13, %p18237_p11 }
 0x1d3   : > { %18247 = shalt.err (!%p18244_p0)
}
 0x1d4   : > { %s23606_s5 = sld [smem:[#allocation213_spill]]  ;;  %s18258_s13 = scalar_lea.vmem %s3542_s10, 16 }
 0x1d5   : > { %p18259_p5 = scmp.ne.s32.totalorder %s3542_s10, %s18258_s13  ;;  %s18264_s18 = scalar_lea.vmem %s3542_s10, 32 }
 0x1d6   : > { %p18265_p2 = scmp.lt.s32.totalorder %s3542_s10, %s3542_s10  ;;  %p18266_p3 = scmp.lt.s32.totalorder %s18264_s18, %s18258_s13 }
 0x1d7   : > { %p18260_p6 = pnand %p18259_p5, %p17538_p10 }
 0x1d8   : > { %p18267_p4 = por %p18266_p3, %p18265_p2 }
 0x1d9   : > { %p18261_p1 = pneg %p18260_p6 }
 0x1da   : > { %17247 = dma.hbm_to_vmem [thread:$0]  (%p17538_p10), %s23606_s5, 256, %s3517_s1, [#allocation39], %s23604_s26, %s23604_s26, %s23427_s22  }
 0x1db   : > { %p18268_p7 = pnand %p18267_p4, %p18261_p1 }
 0x1dd   : > { %18271 = shalt.err (!%p18268_p7)
}
 0x1de   : > { %17251 = dma.hbm_to_vmem [thread:$0]  (%p17538_p10), %s20662_s20, 16, %s3542_s10, [#allocation42]  }
 0x1df   : > { %s20330_s16 = smov [#allocation44]   ;;  %s20331_s23 = smov [#allocation47]  }
 0x1e0   : > { %s3569_s0 = sshll.u32 %s20330_s16, 4  ;;  %s3591_s1 = sshll.u32 %s20331_s23, 4  ;;  %s3570_s0 = int_to_ptr.vmem [resolvable:$true] %s3569_s0  ;;  %s3592_s1 = int_to_ptr.vmem [resolvable:$true] %s3591_s1 }
 0x1e1   : > { %s18282_s22 = scalar_lea.vmem %s3570_s0, 128  ;;  %p18289_p13 = scmp.lt.s32.totalorder %s3570_s0, %s3570_s0 }
 0x1e2   : > { %p18283_p11 = scmp.ne.s32.totalorder %s3570_s0, %s18282_s22  ;;  %p18290_p0 = scmp.lt.s32.totalorder %s18282_s22, %s18282_s22 }
 0x1e4   : > { %p18284_p8 = pnand %p18283_p11, %p17538_p10  ;;  %p18291_p5 = por %p18290_p0, %p18289_p13 }
 0x1e6   : > { %p18285_p12 = pneg %p18284_p8 }
 0x1e8   : > { %p18292_p6 = pnand %p18291_p5, %p18285_p12 }
 0x1ea   : > { %18295 = shalt.err (!%p18292_p6)
}
 0x1eb   : > { %17255 = dma.hbm_to_vmem [thread:$0]  (%p17538_p10), %s20682_s24, 128, %s3570_s0, [#allocation45]  }
 0x1ec   : > { %s18306_s10 = scalar_lea.vmem %s3592_s1, 16  ;;  %s18312_s13 = scalar_lea.vmem %s3592_s1, 32 }
 0x1ed   : > { %p18307_p1 = scmp.ne.s32.totalorder %s3592_s1, %s18306_s10  ;;  %p18313_p4 = scmp.lt.s32.totalorder %s3592_s1, %s3592_s1 }
 0x1ee   : > { %p18314_p7 = scmp.lt.s32.totalorder %s18312_s13, %s18306_s10 }
 0x1ef   : > { %p18308_p2 = pnand %p18307_p1, %p17538_p10 }
 0x1f0   : > { %p18315_p11 = por %p18314_p7, %p18313_p4 }
 0x1f1   : > { %p18309_p3 = pneg %p18308_p2 }
 0x1f3   : > { %p18316_p8 = pnand %p18315_p11, %p18309_p3 }
 0x1f5   : > { %18319 = shalt.err (!%p18316_p8)
}
 0x1f6   : > { %s23607_s22 = sld [smem:[#allocation219_spill]]  ;;  %s20332_s18 = smov [#allocation50]  }
 0x1f7   : > { %s3630_s16 = sshll.u32 %s20332_s18, 4  ;;  %s20333_s23 = smov [#allocation53]   ;;  %s3631_s16 = int_to_ptr.vmem [resolvable:$true] %s3630_s16 }
 0x1f8   : > { %s3652_s0 = sshll.u32 %s20333_s23, 4  ;;  %s18330_s4 = scalar_lea.vmem %s3631_s16, 128  ;;  %s3653_s0 = int_to_ptr.vmem [resolvable:$true] %s3652_s0 }
 0x1f9   : > { %p18331_p12 = scmp.ne.s32.totalorder %s3631_s16, %s18330_s4  ;;  %p18337_p5 = scmp.lt.s32.totalorder %s3631_s16, %s3631_s16 }
 0x1fa   : > { %p18338_p6 = scmp.lt.s32.totalorder %s18330_s4, %s18330_s4 }
 0x1fb   : > { %p18332_p13 = pnand %p18331_p12, %p17538_p10 }
 0x1fc   : > { %17259 = dma.hbm_to_vmem [thread:$0]  (%p17538_p10), %s23607_s22, 16, %s3592_s1, [#allocation48]  }
 0x1fd   : > { %p18333_p0 = pneg %p18332_p13  ;;  %p18339_p1 = por %p18338_p6, %p18337_p5 }
 0x1ff   : > { %p18340_p2 = pnand %p18339_p1, %p18333_p0 }
 0x201   : > { %18343 = shalt.err (!%p18340_p2)
}
 0x202   : > { %s23608_s10 = sld [smem:[#allocation226_spill]]  ;;  %s18354_s1 = scalar_lea.vmem %s3653_s0, 128 }
 0x203   : > { %p18355_p3 = scmp.ne.s32.totalorder %s3653_s0, %s18354_s1  ;;  %p18361_p11 = scmp.lt.s32.totalorder %s3653_s0, %s3653_s0 }
 0x204   : > { %p18362_p8 = scmp.lt.s32.totalorder %s18354_s1, %s18354_s1 }
 0x205   : > { %p18356_p4 = pnand %p18355_p3, %p17538_p10 }
 0x206   : > { %p18363_p9 = por %p18362_p8, %p18361_p11 }
 0x207   : > { %p18357_p7 = pneg %p18356_p4 }
 0x208   : > { %17263 = dma.hbm_to_vmem [thread:$0]  (%p17538_p10), %s23608_s10, 128, %s3631_s16, [#allocation51]  }
 0x209   : > { %p18364_p12 = pnand %p18363_p9, %p18357_p7 }
 0x20b   : > { %18367 = shalt.err (!%p18364_p12)
}
 0x20c   : > { %s23609_s4 = sld [smem:[#allocation228_spill]]  ;;  %s20334_s13 = smov [#allocation56]  }
 0x20d   : > { %s3674_s22 = sshll.u32 %s20334_s13, 4  ;;  %s20335_s18 = smov [#allocation59]   ;;  %s3675_s22 = int_to_ptr.vmem [resolvable:$true] %s3674_s22 }
 0x20e   : > { %s3696_s23 = sshll.u32 %s20335_s18, 4  ;;  %s18378_s16 = scalar_lea.vmem %s3675_s22, 128  ;;  %s3697_s23 = int_to_ptr.vmem [resolvable:$true] %s3696_s23 }
 0x20f   : > { %p18379_p13 = scmp.ne.s32.totalorder %s3675_s22, %s18378_s16  ;;  %p18385_p6 = scmp.lt.s32.totalorder %s3675_s22, %s3675_s22 }
 0x210   : > { %p18386_p1 = scmp.lt.s32.totalorder %s18378_s16, %s18378_s16 }
 0x211   : > { %p18380_p0 = pnand %p18379_p13, %p17538_p10 }
 0x212   : > { %17267 = dma.hbm_to_vmem [thread:$0]  (%p17538_p10), %s23609_s4, 128, %s3653_s0, [#allocation54]  }
 0x213   : > { %p18381_p5 = pneg %p18380_p0  ;;  %p18387_p9 = por %p18386_p1, %p18385_p6 }
 0x215   : > { %p18388_p2 = pnand %p18387_p9, %p18381_p5 }
 0x217   : > { %18391 = shalt.err (!%p18388_p2)
}
 0x218   : > { %s23610_s10 = sld [smem:[#allocation230_spill]]  ;;  %s18402_s0 = scalar_lea.vmem %s3697_s23, 128 }
 0x219   : > { %p18403_p3 = scmp.ne.s32.totalorder %s3697_s23, %s18402_s0  ;;  %p18409_p11 = scmp.lt.s32.totalorder %s3697_s23, %s3697_s23 }
 0x21a   : > { %p18410_p8 = scmp.lt.s32.totalorder %s18402_s0, %s18402_s0 }
 0x21b   : > { %p18404_p4 = pnand %p18403_p3, %p17538_p10 }
 0x21c   : > { %p18411_p12 = por %p18410_p8, %p18409_p11 }
 0x21d   : > { %p18405_p7 = pneg %p18404_p4 }
 0x21e   : > { %17271 = dma.hbm_to_vmem [thread:$0]  (%p17538_p10), %s23610_s10, 128, %s3675_s22, [#allocation57]  }
 0x21f   : > { %p18412_p13 = pnand %p18411_p12, %p18405_p7 }
 0x221   : > { %18415 = shalt.err (!%p18412_p13)
}
 0x222   : > { %s23611_s1 = sld [smem:[#allocation232_spill]]  ;;  %s20336_s4 = smov [#allocation62]  }
 0x223   : > { %s3720_s13 = sshll.u32 %s20336_s4, 4  ;;  %s20337_s18 = smov [#allocation65]   ;;  %s3721_s13 = int_to_ptr.vmem [resolvable:$true] %s3720_s13 }
 0x224   : > { %s3745_s16 = sshll.u32 %s20337_s18, 4  ;;  %s18426_s22 = scalar_lea.vmem %s3721_s13, 128  ;;  %s3746_s16 = int_to_ptr.vmem [resolvable:$true] %s3745_s16 }
 0x225   : > { %p18427_p0 = scmp.ne.s32.totalorder %s3721_s13, %s18426_s22  ;;  %p18433_p1 = scmp.lt.s32.totalorder %s3721_s13, %s3721_s13 }
 0x226   : > { %p18434_p9 = scmp.lt.s32.totalorder %s18426_s22, %s18426_s22 }
 0x227   : > { %p18428_p5 = pnand %p18427_p0, %p17538_p10 }
 0x228   : > { %17275 = dma.hbm_to_vmem [thread:$0]  (%p17538_p10), %s23611_s1, 128, %s3697_s23, [#allocation60]  }
 0x229   : > { %p18429_p6 = pneg %p18428_p5  ;;  %p18435_p2 = por %p18434_p9, %p18433_p1 }
 0x22b   : > { %p18436_p3 = pnand %p18435_p2, %p18429_p6 }
 0x22d   : > { %18439 = shalt.err (!%p18436_p3)
}
 0x22e   : > { %s23612_s10 = sld [smem:[#allocation234_spill]]  ;;  %s18450_s23 = scalar_lea.vmem %s3746_s16, 16 }
 0x22f   : > { %p18451_p4 = scmp.ne.s32.totalorder %s3746_s16, %s18450_s23  ;;  %s18456_s0 = scalar_lea.vmem %s3746_s16, 32 }
 0x230   : > { %p18457_p8 = scmp.lt.s32.totalorder %s3746_s16, %s3746_s16  ;;  %p18458_p12 = scmp.lt.s32.totalorder %s18456_s0, %s18450_s23 }
 0x231   : > { %p18452_p7 = pnand %p18451_p4, %p17538_p10 }
 0x232   : > { %p18459_p13 = por %p18458_p12, %p18457_p8 }
 0x233   : > { %p18453_p11 = pneg %p18452_p7 }
 0x234   : > { %17279 = dma.hbm_to_vmem [thread:$0]  (%p17538_p10), %s23612_s10, 128, %s3721_s13, [#allocation63]  }
 0x235   : > { %p18460_p0 = pnand %p18459_p13, %p18453_p11 }
 0x237   : > { %18463 = shalt.err (!%p18460_p0)
}
 0x238   : > { %s23613_s1 = sld [smem:[#allocation237_spill]]  ;;  %s20338_s4 = smov [#allocation68]  }
 0x239   : > { %s3768_s18 = sshll.u32 %s20338_s4, 4  ;;  %s20339_s22 = smov [#allocation71]   ;;  %s3769_s18 = int_to_ptr.vmem [resolvable:$true] %s3768_s18 }
 0x23a   : > { %s3793_s13 = sshll.u32 %s20339_s22, 4  ;;  %s18474_s10 = scalar_lea.vmem %s3769_s18, 1024  ;;  %s3794_s13 = int_to_ptr.vmem [resolvable:$true] %s3793_s13 }
 0x23b   : > { %p18475_p5 = scmp.ne.s32.totalorder %s3769_s18, %s18474_s10  ;;  %p18481_p9 = scmp.lt.s32.totalorder %s3769_s18, %s3769_s18 }
 0x23c   : > { %p18482_p2 = scmp.lt.s32.totalorder %s18474_s10, %s18474_s10 }
 0x23d   : > { %p18476_p6 = pnand %p18475_p5, %p17538_p10 }
 0x23e   : > { %17283 = dma.hbm_to_vmem [thread:$0]  (%p17538_p10), %s23613_s1, 16, %s3746_s16, [#allocation66]  }
 0x23f   : > { %p18477_p1 = pneg %p18476_p6  ;;  %p18483_p3 = por %p18482_p2, %p18481_p9 }
 0x241   : > { %p18484_p4 = pnand %p18483_p3, %p18477_p1 }
 0x243   : > { %18487 = shalt.err (!%p18484_p4)
}
 0x244   : > { %s23614_s23 = smov 8   ;;  %s23615_s16 = sld [smem:[#allocation239_spill]] }
 0x245   : > { %s18498_s0 = scalar_lea.vmem %s3794_s13, 16  ;;  %s18504_s1 = scalar_lea.vmem %s3794_s13, 32 }
 0x246   : > { %p18499_p7 = scmp.ne.s32.totalorder %s3794_s13, %s18498_s0  ;;  %p18505_p12 = scmp.lt.s32.totalorder %s3794_s13, %s3794_s13 }
 0x247   : > { %p18506_p13 = scmp.lt.s32.totalorder %s18504_s1, %s18498_s0 }
 0x248   : > { %p18500_p11 = pnand %p18499_p7, %p17538_p10 }
 0x249   : > { %p18507_p0 = por %p18506_p13, %p18505_p12 }
 0x24a   : > { %17287 = dma.hbm_to_vmem [thread:$0]  (%p17538_p10), %s23615_s16, 1024, %s3769_s18, [#allocation69], %s23604_s26, %s23604_s26, %s23614_s23  }
 0x24b   : > { %p18501_p8 = pneg %p18500_p11 }
 0x24d   : > { %p18508_p5 = pnand %p18507_p0, %p18501_p8 }
 0x24f   : > { %18511 = shalt.err (!%p18508_p5)
}
 0x250   : > { %s23616_s4 = sld [smem:[#allocation241_spill]]  ;;  %s20340_s22 = smov [#allocation74]  }
 0x251   : > { %s3836_s10 = sshll.u32 %s20340_s22, 4  ;;  %s20341_s5 = smov [#allocation77]   ;;  %s3837_s10 = int_to_ptr.vmem [resolvable:$true] %s3836_s10 }
 0x252   : > { %s3858_s18 = sshll.u32 %s20341_s5, 4  ;;  %s18522_s16 = scalar_lea.vmem %s3837_s10, 128  ;;  %s3859_s18 = int_to_ptr.vmem [resolvable:$true] %s3858_s18 }
 0x253   : > { %p18523_p6 = scmp.ne.s32.totalorder %s3837_s10, %s18522_s16  ;;  %p18529_p2 = scmp.lt.s32.totalorder %s3837_s10, %s3837_s10 }
 0x254   : > { %p18530_p3 = scmp.lt.s32.totalorder %s18522_s16, %s18522_s16 }
 0x255   : > { %p18524_p1 = pnand %p18523_p6, %p17538_p10 }
 0x256   : > { %17291 = dma.hbm_to_vmem [thread:$0]  (%p17538_p10), %s23616_s4, 16, %s3794_s13, [#allocation72]  }
 0x257   : > { %p18525_p9 = pneg %p18524_p1  ;;  %p18531_p4 = por %p18530_p3, %p18529_p2 }
 0x259   : > { %p18532_p7 = pnand %p18531_p4, %p18525_p9 }
 0x25b   : > { %18535 = shalt.err (!%p18532_p7)
}
 0x25c   : > { %s23617_s0 = sld [smem:[#allocation250_spill]]  ;;  %s18546_s13 = scalar_lea.vmem %s3859_s18, 128 }
 0x25d   : > { %p18547_p11 = scmp.ne.s32.totalorder %s3859_s18, %s18546_s13  ;;  %p18553_p13 = scmp.lt.s32.totalorder %s3859_s18, %s3859_s18 }
 0x25e   : > { %p18554_p0 = scmp.lt.s32.totalorder %s18546_s13, %s18546_s13 }
 0x25f   : > { %p18548_p8 = pnand %p18547_p11, %p17538_p10 }
 0x260   : > { %p18555_p5 = por %p18554_p0, %p18553_p13 }
 0x261   : > { %p18549_p12 = pneg %p18548_p8 }
 0x262   : > { %17295 = dma.hbm_to_vmem [thread:$0]  (%p17538_p10), %s23617_s0, 128, %s3837_s10, [#allocation75]  }
 0x263   : > { %p18556_p6 = pnand %p18555_p5, %p18549_p12 }
 0x265   : > { %18559 = shalt.err (!%p18556_p6)
}
 0x266   : > { %s23618_s5 = sld [smem:[#allocation252_spill]]  ;;  %s20342_s1 = smov [#allocation80]  }
 0x267   : > { %s3880_s4 = sshll.u32 %s20342_s1, 4  ;;  %s20343_s22 = smov [#allocation83]   ;;  %s3881_s4 = int_to_ptr.vmem [resolvable:$true] %s3880_s4 }
 0x268   : > { %s3908_s16 = sshll.u32 %s20343_s22, 4  ;;  %s18570_s10 = scalar_lea.vmem %s3881_s4, 16  ;;  %s3909_s16 = int_to_ptr.vmem [resolvable:$true] %s3908_s16 }
 0x269   : > { %p18571_p1 = scmp.ne.s32.totalorder %s3881_s4, %s18570_s10  ;;  %s18576_s0 = scalar_lea.vmem %s3881_s4, 32 }
 0x26a   : > { %p18577_p3 = scmp.lt.s32.totalorder %s3881_s4, %s3881_s4  ;;  %p18578_p4 = scmp.lt.s32.totalorder %s18576_s0, %s18570_s10 }
 0x26b   : > { %p18572_p9 = pnand %p18571_p1, %p17538_p10 }
 0x26c   : > { %17299 = dma.hbm_to_vmem [thread:$0]  (%p17538_p10), %s23618_s5, 128, %s3859_s18, [#allocation78]  }
 0x26d   : > { %p18573_p2 = pneg %p18572_p9  ;;  %p18579_p7 = por %p18578_p4, %p18577_p3 }
 0x26f   : > { %p18580_p11 = pnand %p18579_p7, %p18573_p2 }
 0x271   : > { %18583 = shalt.err (!%p18580_p11)
}
 0x272   : > { %s23619_s18 = sld [smem:[#allocation254_spill]]  ;;  %s18594_s13 = scalar_lea.vmem %s3909_s16, 64 }
 0x273   : > { %p18595_p8 = scmp.ne.s32.totalorder %s3909_s16, %s18594_s13  ;;  %p18601_p0 = scmp.lt.s32.totalorder %s3909_s16, %s3909_s16 }
 0x274   : > { %p18602_p5 = scmp.lt.s32.totalorder %s18594_s13, %s18594_s13 }
 0x275   : > { %p18596_p12 = pnand %p18595_p8, %p17538_p10 }
 0x276   : > { %p18603_p6 = por %p18602_p5, %p18601_p0 }
 0x277   : > { %p18597_p13 = pneg %p18596_p12 }
 0x278   : > { %17303 = dma.hbm_to_vmem [thread:$0]  (%p17538_p10), %s23619_s18, 16, %s3881_s4, [#allocation81]  }
 0x279   : > { %p18604_p1 = pnand %p18603_p6, %p18597_p13 }
 0x27b   : > { %18607 = shalt.err (!%p18604_p1)
}
 0x27c   : > { %s23620_s5 = sld [smem:[#allocation258_spill]]  ;;  %s20344_s1 = smov [#allocation86]  }
 0x27d   : > { %s3930_s22 = sshll.u32 %s20344_s1, 4  ;;  %s20345_s10 = smov [#allocation89]   ;;  %s3931_s22 = int_to_ptr.vmem [resolvable:$true] %s3930_s22 }
 0x27e   : > { %s3962_s0 = sshll.u32 %s20345_s10, 4  ;;  %s18618_s4 = scalar_lea.vmem %s3931_s22, 16  ;;  %s3963_s0 = int_to_ptr.vmem [resolvable:$true] %s3962_s0 }
 0x27f   : > { %p18619_p9 = scmp.ne.s32.totalorder %s3931_s22, %s18618_s4  ;;  %s18624_s18 = scalar_lea.vmem %s3931_s22, 32 }
 0x280   : > { %p18625_p4 = scmp.lt.s32.totalorder %s3931_s22, %s3931_s22  ;;  %p18626_p7 = scmp.lt.s32.totalorder %s18624_s18, %s18618_s4 }
 0x281   : > { %p18620_p2 = pnand %p18619_p9, %p17538_p10 }
 0x282   : > { %17307 = dma.hbm_to_vmem [thread:$0]  (%p17538_p10), %s23620_s5, 64, %s3909_s16, [#allocation84]  }
 0x283   : > { %p18621_p3 = pneg %p18620_p2  ;;  %p18627_p11 = por %p18626_p7, %p18625_p4 }
 0x285   : > { %p18628_p8 = pnand %p18627_p11, %p18621_p3 }
 0x287   : > { %18631 = shalt.err (!%p18628_p8)
}
 0x288   : > { %s23621_s16 = sld [smem:[#allocation260_spill]]  ;;  %s18642_s13 = scalar_lea.vmem %s3963_s0, 1024 }
 0x289   : > { %p18643_p12 = scmp.ne.s32.totalorder %s3963_s0, %s18642_s13  ;;  %p18649_p5 = scmp.lt.s32.totalorder %s3963_s0, %s3963_s0 }
 0x28a   : > { %p18650_p6 = scmp.lt.s32.totalorder %s18642_s13, %s18642_s13 }
 0x28b   : > { %p18644_p13 = pnand %p18643_p12, %p17538_p10 }
 0x28c   : > { %p18651_p1 = por %p18650_p6, %p18649_p5 }
 0x28d   : > { %p18645_p0 = pneg %p18644_p13 }
 0x28e   : > { %17311 = dma.hbm_to_vmem [thread:$0]  (%p17538_p10), %s23621_s16, 16, %s3931_s22, [#allocation87]  }
 0x28f   : > { %p18652_p9 = pnand %p18651_p1, %p18645_p0 }
 0x291   : > { %18655 = shalt.err (!%p18652_p9)
}
 0x292   : > { %s23622_s5 = sld [smem:[#allocation265_spill]]  ;;  %s20346_s1 = smov [#allocation92]  }
 0x293   : > { %s3989_s22 = sshll.u32 %s20346_s1, 4  ;;  %s20347_s10 = smov [#allocation95]   ;;  %s3990_s22 = int_to_ptr.vmem [resolvable:$true] %s3989_s22 }
 0x294   : > { %s4011_s4 = sshll.u32 %s20347_s10, 4  ;;  %s18666_s18 = scalar_lea.vmem %s3990_s22, 64  ;;  %s4012_s4 = int_to_ptr.vmem [resolvable:$true] %s4011_s4 }
 0x295   : > { %p18667_p2 = scmp.ne.s32.totalorder %s3990_s22, %s18666_s18  ;;  %p18673_p7 = scmp.lt.s32.totalorder %s3990_s22, %s3990_s22 }
 0x296   : > { %p18674_p11 = scmp.lt.s32.totalorder %s18666_s18, %s18666_s18 }
 0x297   : > { %p18668_p3 = pnand %p18667_p2, %p17538_p10 }
 0x298   : > { %17315 = dma.hbm_to_vmem [thread:$0]  (%p17538_p10), %s23622_s5, 1024, %s3963_s0, [#allocation90], %s23604_s26, %s23604_s26, %s23614_s23  }
 0x299   : > { %p18669_p4 = pneg %p18668_p3  ;;  %p18675_p8 = por %p18674_p11, %p18673_p7 }
 0x29b   : > { %p18676_p12 = pnand %p18675_p8, %p18669_p4 }
 0x29d   : > { %18679 = shalt.err (!%p18676_p12)
}
 0x29e   : > { %s23623_s16 = sld [smem:[#allocation267_spill]]  ;;  %s18690_s0 = scalar_lea.vmem %s4012_s4, 64 }
 0x29f   : > { %p18691_p13 = scmp.ne.s32.totalorder %s4012_s4, %s18690_s0  ;;  %p18697_p6 = scmp.lt.s32.totalorder %s4012_s4, %s4012_s4 }
 0x2a0   : > { %p18698_p1 = scmp.lt.s32.totalorder %s18690_s0, %s18690_s0 }
 0x2a1   : > { %p18692_p0 = pnand %p18691_p13, %p17538_p10 }
 0x2a2   : > { %p18699_p9 = por %p18698_p1, %p18697_p6 }
 0x2a3   : > { %p18693_p5 = pneg %p18692_p0 }
 0x2a4   : > { %17319 = dma.hbm_to_vmem [thread:$0]  (%p17538_p10), %s23623_s16, 64, %s3990_s22, [#allocation93]  }
 0x2a5   : > { %p18700_p2 = pnand %p18699_p9, %p18693_p5 }
 0x2a7   : > { %18703 = shalt.err (!%p18700_p2)
}
 0x2a8   : > { %s23624_s13 = sld [smem:[#allocation269_spill]]  ;;  %s20348_s5 = smov [#allocation98]  }
 0x2a9   : > { %s4033_s1 = sshll.u32 %s20348_s5, 4  ;;  %s20349_s10 = smov [#allocation101]   ;;  %s4034_s1 = int_to_ptr.vmem [resolvable:$true] %s4033_s1 }
 0x2aa   : > { %s4055_s18 = sshll.u32 %s20349_s10, 4  ;;  %s18714_s22 = scalar_lea.vmem %s4034_s1, 64  ;;  %s4056_s18 = int_to_ptr.vmem [resolvable:$true] %s4055_s18 }
 0x2ab   : > { %p18715_p3 = scmp.ne.s32.totalorder %s4034_s1, %s18714_s22  ;;  %p18721_p11 = scmp.lt.s32.totalorder %s4034_s1, %s4034_s1 }
 0x2ac   : > { %p18722_p8 = scmp.lt.s32.totalorder %s18714_s22, %s18714_s22 }
 0x2ad   : > { %p18716_p4 = pnand %p18715_p3, %p17538_p10 }
 0x2ae   : > { %17323 = dma.hbm_to_vmem [thread:$0]  (%p17538_p10), %s23624_s13, 64, %s4012_s4, [#allocation96]  }
 0x2af   : > { %p18717_p7 = pneg %p18716_p4  ;;  %p18723_p12 = por %p18722_p8, %p18721_p11 }
 0x2b1   : > { %p18724_p13 = pnand %p18723_p12, %p18717_p7 }
 0x2b3   : > { %18727 = shalt.err (!%p18724_p13)
}
 0x2b4   : > { %s23625_s16 = sld [smem:[#allocation271_spill]]  ;;  %s18738_s4 = scalar_lea.vmem %s4056_s18, 64 }
 0x2b5   : > { %p18739_p0 = scmp.ne.s32.totalorder %s4056_s18, %s18738_s4  ;;  %p18745_p1 = scmp.lt.s32.totalorder %s4056_s18, %s4056_s18 }
 0x2b6   : > { %p18746_p9 = scmp.lt.s32.totalorder %s18738_s4, %s18738_s4 }
 0x2b7   : > { %p18740_p5 = pnand %p18739_p0, %p17538_p10 }
 0x2b8   : > { %p18747_p2 = por %p18746_p9, %p18745_p1 }
 0x2b9   : > { %p18741_p6 = pneg %p18740_p5 }
 0x2ba   : > { %17327 = dma.hbm_to_vmem [thread:$0]  (%p17538_p10), %s23625_s16, 64, %s4034_s1, [#allocation99]  }
 0x2bb   : > { %p18748_p3 = pnand %p18747_p2, %p18741_p6 }
 0x2bd   : > { %18751 = shalt.err (!%p18748_p3)
}
 0x2be   : > { %s23626_s0 = sld [smem:[#allocation273_spill]]  ;;  %s20350_s13 = smov [#allocation104]  }
 0x2bf   : > { %s4079_s5 = sshll.u32 %s20350_s13, 4  ;;  %s20351_s10 = smov [#allocation107]   ;;  %s4080_s5 = int_to_ptr.vmem [resolvable:$true] %s4079_s5 }
 0x2c0   : > { %s4100_s22 = sshll.u32 %s20351_s10, 4  ;;  %s18762_s1 = scalar_lea.vmem %s4080_s5, 64  ;;  %s4101_s22 = int_to_ptr.vmem [resolvable:$true] %s4100_s22 }
 0x2c1   : > { %p18763_p4 = scmp.ne.s32.totalorder %s4080_s5, %s18762_s1  ;;  %p18769_p8 = scmp.lt.s32.totalorder %s4080_s5, %s4080_s5 }
 0x2c2   : > { %p18770_p12 = scmp.lt.s32.totalorder %s18762_s1, %s18762_s1 }
 0x2c3   : > { %p18764_p7 = pnand %p18763_p4, %p17538_p10 }
 0x2c4   : > { %17331 = dma.hbm_to_vmem [thread:$0]  (%p17538_p10), %s23626_s0, 64, %s4056_s18, [#allocation102]  }
 0x2c5   : > { %p18765_p11 = pneg %p18764_p7  ;;  %p18771_p13 = por %p18770_p12, %p18769_p8 }
 0x2c7   : > { %p18772_p0 = pnand %p18771_p13, %p18765_p11 }
 0x2c9   : > { %18775 = shalt.err (!%p18772_p0)
}
 0x2ca   : > { %s23627_s16 = sld [smem:[#allocation275_spill]]  ;;  %s18786_s18 = scalar_lea.vmem %s4101_s22, 1024 }
 0x2cb   : > { %p18787_p5 = scmp.ne.s32.totalorder %s4101_s22, %s18786_s18  ;;  %p18793_p9 = scmp.lt.s32.totalorder %s4101_s22, %s4101_s22 }
 0x2cc   : > { %p18794_p2 = scmp.lt.s32.totalorder %s18786_s18, %s18786_s18 }
 0x2cd   : > { %p18788_p6 = pnand %p18787_p5, %p17538_p10 }
 0x2ce   : > { %p18795_p3 = por %p18794_p2, %p18793_p9 }
 0x2cf   : > { %p18789_p1 = pneg %p18788_p6 }
 0x2d0   : > { %17335 = dma.hbm_to_vmem [thread:$0]  (%p17538_p10), %s23627_s16, 64, %s4080_s5, [#allocation105]  }
 0x2d1   : > { %p18796_p4 = pnand %p18795_p3, %p18789_p1 }
 0x2d3   : > { %18799 = shalt.err (!%p18796_p4)
}
 0x2d4   : > { %s23628_s4 = sld [smem:[#allocation277_spill]]  ;;  %s20352_s0 = smov [#allocation110]  }
 0x2d5   : > { %s4126_s13 = sshll.u32 %s20352_s0, 4  ;;  %s20353_s5 = smov [#allocation113]   ;;  %s4127_s13 = int_to_ptr.vmem [resolvable:$true] %s4126_s13 }
 0x2d6   : > { %s4153_s10 = sshll.u32 %s20353_s5, 4  ;;  %s18810_s1 = scalar_lea.vmem %s4127_s13, 1024  ;;  %s4154_s10 = int_to_ptr.vmem [resolvable:$true] %s4153_s10 }
 0x2d7   : > { %p18811_p7 = scmp.ne.s32.totalorder %s4127_s13, %s18810_s1  ;;  %p18817_p12 = scmp.lt.s32.totalorder %s4127_s13, %s4127_s13 }
 0x2d8   : > { %p18818_p13 = scmp.lt.s32.totalorder %s18810_s1, %s18810_s1 }
 0x2d9   : > { %p18812_p11 = pnand %p18811_p7, %p17538_p10 }
 0x2da   : > { %17339 = dma.hbm_to_vmem [thread:$0]  (%p17538_p10), %s23628_s4, 1024, %s4101_s22, [#allocation108], %s23604_s26, %s23604_s26, %s23614_s23  }
 0x2db   : > { %p18813_p8 = pneg %p18812_p11  ;;  %p18819_p0 = por %p18818_p13, %p18817_p12 }
 0x2dd   : > { %p18820_p5 = pnand %p18819_p0, %p18813_p8 }
 0x2df   : > { %18823 = shalt.err (!%p18820_p5)
}
 0x2e0   : > { %s23629_s22 = sld [smem:[#allocation279_spill]]  ;;  %s18834_s16 = scalar_lea.vmem %s4154_s10, 128 }
 0x2e1   : > { %p18835_p6 = scmp.ne.s32.totalorder %s4154_s10, %s18834_s16  ;;  %p18841_p2 = scmp.lt.s32.totalorder %s4154_s10, %s4154_s10 }
 0x2e2   : > { %p18842_p3 = scmp.lt.s32.totalorder %s18834_s16, %s18834_s16 }
 0x2e3   : > { %p18836_p1 = pnand %p18835_p6, %p17538_p10 }
 0x2e4   : > { %p18843_p4 = por %p18842_p3, %p18841_p2 }
 0x2e5   : > { %p18837_p9 = pneg %p18836_p1 }
 0x2e6   : > { %17343 = dma.hbm_to_vmem [thread:$0]  (%p17538_p10), %s23629_s22, 1024, %s4127_s13, [#allocation111], %s23604_s26, %s23604_s26, %s23614_s23  }
 0x2e7   : > { %p18844_p7 = pnand %p18843_p4, %p18837_p9 }
 0x2e9   : > { %18847 = shalt.err (!%p18844_p7)
}
 0x2ea   : > { %s23630_s18 = sld [smem:[#allocation281_spill]]  ;;  %s20354_s4 = smov [#allocation116]  }
 0x2eb   : > { %s4175_s0 = sshll.u32 %s20354_s4, 4  ;;  %s20355_s5 = smov [#allocation119]   ;;  %s4176_s0 = int_to_ptr.vmem [resolvable:$true] %s4175_s0 }
 0x2ec   : > { %s4198_s1 = sshll.u32 %s20355_s5, 4  ;;  %s18858_s13 = scalar_lea.vmem %s4176_s0, 16  ;;  %s4199_s1 = int_to_ptr.vmem [resolvable:$true] %s4198_s1 }
 0x2ed   : > { %p18859_p11 = scmp.ne.s32.totalorder %s4176_s0, %s18858_s13  ;;  %s18864_s22 = scalar_lea.vmem %s4176_s0, 32 }
 0x2ee   : > { %p18865_p13 = scmp.lt.s32.totalorder %s4176_s0, %s4176_s0  ;;  %p18866_p0 = scmp.lt.s32.totalorder %s18864_s22, %s18858_s13 }
 0x2ef   : > { %p18860_p8 = pnand %p18859_p11, %p17538_p10 }
 0x2f0   : > { %17347 = dma.hbm_to_vmem [thread:$0]  (%p17538_p10), %s23630_s18, 128, %s4154_s10, [#allocation114]  }
 0x2f1   : > { %p18861_p12 = pneg %p18860_p8  ;;  %p18867_p5 = por %p18866_p0, %p18865_p13 }
 0x2f3   : > { %p18868_p6 = pnand %p18867_p5, %p18861_p12 }
 0x2f5   : > { %18871 = shalt.err (!%p18868_p6)
}
 0x2f6   : > { %s23631_s10 = sld [smem:[#allocation283_spill]]  ;;  %s18882_s16 = scalar_lea.vmem %s4199_s1, 1024 }
 0x2f7   : > { %p18883_p1 = scmp.ne.s32.totalorder %s4199_s1, %s18882_s16  ;;  %p18889_p3 = scmp.lt.s32.totalorder %s4199_s1, %s4199_s1 }
 0x2f8   : > { %p18890_p4 = scmp.lt.s32.totalorder %s18882_s16, %s18882_s16 }
 0x2f9   : > { %p18884_p9 = pnand %p18883_p1, %p17538_p10 }
 0x2fa   : > { %p18891_p7 = por %p18890_p4, %p18889_p3 }
 0x2fb   : > { %p18885_p2 = pneg %p18884_p9 }
 0x2fc   : > { %17351 = dma.hbm_to_vmem [thread:$0]  (%p17538_p10), %s23631_s10, 16, %s4176_s0, [#allocation117]  }
 0x2fd   : > { %p18892_p11 = pnand %p18891_p7, %p18885_p2 }
 0x2ff   : > { %18895 = shalt.err (!%p18892_p11)
}
 0x300   : > { %s23632_s18 = sld [smem:[#allocation285_spill]]  ;;  %s20356_s4 = smov [#allocation122]  }
 0x301   : > { %s4238_s0 = sshll.u32 %s20356_s4, 4  ;;  %s20357_s5 = smov [#allocation125]   ;;  %s4239_s0 = int_to_ptr.vmem [resolvable:$true] %s4238_s0 }
 0x302   : > { %s4261_s13 = sshll.u32 %s20357_s5, 4  ;;  %s18906_s22 = scalar_lea.vmem %s4239_s0, 32  ;;  %s4262_s13 = int_to_ptr.vmem [resolvable:$true] %s4261_s13 }
 0x303   : > { %p18907_p8 = scmp.ne.s32.totalorder %s4239_s0, %s18906_s22  ;;  %p18913_p0 = scmp.lt.s32.totalorder %s4239_s0, %s4239_s0 }
 0x304   : > { %p18914_p5 = scmp.lt.s32.totalorder %s18906_s22, %s18906_s22 }
 0x305   : > { %p18908_p12 = pnand %p18907_p8, %p17538_p10 }
 0x306   : > { %17355 = dma.hbm_to_vmem [thread:$0]  (%p17538_p10), %s23632_s18, 1024, %s4199_s1, [#allocation120], %s23604_s26, %s23604_s26, %s23614_s23  }
 0x307   : > { %p18909_p13 = pneg %p18908_p12  ;;  %p18915_p6 = por %p18914_p5, %p18913_p0 }
 0x309   : > { %p18916_p1 = pnand %p18915_p6, %p18909_p13 }
 0x30b   : > { %18919 = shalt.err (!%p18916_p1)
}
 0x30c   : > { %s23633_s10 = sld [smem:[#allocation292_spill]]  ;;  %s18930_s1 = scalar_lea.vmem %s4262_s13, 256 }
 0x30d   : > { %p18931_p9 = scmp.ne.s32.totalorder %s4262_s13, %s18930_s1  ;;  %p18937_p4 = scmp.lt.s32.totalorder %s4262_s13, %s4262_s13 }
 0x30e   : > { %p18938_p7 = scmp.lt.s32.totalorder %s18930_s1, %s18930_s1 }
 0x30f   : > { %p18932_p2 = pnand %p18931_p9, %p17538_p10 }
 0x310   : > { %p18939_p11 = por %p18938_p7, %p18937_p4 }
 0x311   : > { %p18933_p3 = pneg %p18932_p2 }
 0x312   : > { %17359 = dma.hbm_to_vmem [thread:$0]  (%p17538_p10), %s23633_s10, 32, %s4239_s0, [#allocation123]  }
 0x313   : > { %p18940_p8 = pnand %p18939_p11, %p18933_p3 }
 0x315   : > { %18943 = shalt.err (!%p18940_p8)
}
 0x316   : > { %17363 = dma.hbm_to_vmem [thread:$0]  (%p17538_p10), %s21067_s25, 256, %s4262_s13, [#allocation126], %s23604_s26, %s23604_s26, %s23614_s23  }
 0x317   : > { %s20358_s16 = smov [#allocation2]   ;;  %s20359_s4 = smov [#allocation7]  }
 0x318   : > { %s3164_s18 = sshll.u32 %s20358_s16, 4  ;;  %s3209_s0 = sshll.u32 %s20359_s4, 4  ;;  %s3165_s18 = int_to_ptr.vmem [resolvable:$true] %s3164_s18  ;;  %s3210_s0 = int_to_ptr.vmem [resolvable:$true] %s3209_s0 }
 0x319   : > { %s18954_s5 = scalar_lea.vmem %s3165_s18, 16  ;;  %s18960_s22 = scalar_lea.vmem %s3165_s18, 32 }
 0x31a   : > { %p18955_p12 = scmp.ne.s32.totalorder %s3165_s18, %s18954_s5  ;;  %p18961_p5 = scmp.lt.s32.totalorder %s3165_s18, %s3165_s18 }
 0x31b   : > { %p18962_p6 = scmp.lt.s32.totalorder %s18960_s22, %s18954_s5 }
 0x31c   : > { %p18956_p13 = pnand %p18955_p12, %p17538_p10 }
 0x31d   : > { %p18963_p1 = por %p18962_p6, %p18961_p5 }
 0x31e   : > { %p18957_p0 = pneg %p18956_p13 }
 0x320   : > { %p18964_p9 = pnand %p18963_p1, %p18957_p0 }
 0x322   : > { %18967 = shalt.err (!%p18964_p9)
}
 0x323   : > { %s23634_s10 = sld [smem:[#allocation173_spill]]  ;;  %s18978_s13 = scalar_lea.vmem %s3210_s0, 256 }
 0x324   : > { %p18979_p2 = scmp.ne.s32.totalorder %s3210_s0, %s18978_s13  ;;  %p18985_p7 = scmp.lt.s32.totalorder %s3210_s0, %s3210_s0 }
 0x325   : > { %p18986_p11 = scmp.lt.s32.totalorder %s18978_s13, %s18978_s13 }
 0x326   : > { %p18980_p3 = pnand %p18979_p2, %p17538_p10 }
 0x327   : > { %p18987_p8 = por %p18986_p11, %p18985_p7 }
 0x328   : > { %p18981_p4 = pneg %p18980_p3 }
 0x329   : > { %17201 = dma.hbm_to_vmem [thread:$0]  (%p17538_p10), %s23634_s10, 16, %s3165_s18, [#allocation3]  }
 0x32a   : > { %p18988_p12 = pnand %p18987_p8, %p18981_p4 }
 0x32c   : > { %18991 = shalt.err (!%p18988_p12)
}
 0x32d   : > { %s23635_s1 = sld [smem:[#allocation183_spill]]  ;;  %s20360_s16 = smov [#allocation10]  }
 0x32e   : > { %s3235_s18 = sshll.u32 %s20360_s16, 4  ;;  %s20361_s4 = smov [#allocation13]   ;;  %s3236_s18 = int_to_ptr.vmem [resolvable:$true] %s3235_s18 }
 0x32f   : > { %s3262_s5 = sshll.u32 %s20361_s4, 4  ;;  %s19002_s22 = scalar_lea.vmem %s3236_s18, 256  ;;  %s3263_s5 = int_to_ptr.vmem [resolvable:$true] %s3262_s5 }
 0x330   : > { %p19003_p13 = scmp.ne.s32.totalorder %s3236_s18, %s19002_s22  ;;  %p19009_p6 = scmp.lt.s32.totalorder %s3236_s18, %s3236_s18 }
 0x331   : > { %p19010_p1 = scmp.lt.s32.totalorder %s19002_s22, %s19002_s22 }
 0x332   : > { %p19004_p0 = pnand %p19003_p13, %p17538_p10 }
 0x333   : > { %17205 = dma.hbm_to_vmem [thread:$0]  (%p17538_p10), %s23635_s1, 256, %s3210_s0, [#allocation6], %s23604_s26, %s23604_s26, %s23614_s23  }
 0x334   : > { %p19005_p5 = pneg %p19004_p0  ;;  %p19011_p9 = por %p19010_p1, %p19009_p6 }
 0x336   : > { %p19012_p2 = pnand %p19011_p9, %p19005_p5 }
 0x338   : > { %19015 = shalt.err (!%p19012_p2)
}
 0x339   : > { %s23636_s0 = sld [smem:[#allocation184_spill]]  ;;  %s19026_s10 = scalar_lea.vmem %s3263_s5, 16 }
 0x33a   : > { %p19027_p3 = scmp.ne.s32.totalorder %s3263_s5, %s19026_s10  ;;  %s19032_s13 = scalar_lea.vmem %s3263_s5, 32 }
 0x33b   : > { %p19033_p11 = scmp.lt.s32.totalorder %s3263_s5, %s3263_s5  ;;  %p19034_p8 = scmp.lt.s32.totalorder %s19032_s13, %s19026_s10 }
 0x33c   : > { %p19028_p4 = pnand %p19027_p3, %p17538_p10 }
 0x33d   : > { %p19035_p12 = por %p19034_p8, %p19033_p11 }
 0x33e   : > { %p19029_p7 = pneg %p19028_p4 }
 0x33f   : > { %17209 = dma.hbm_to_vmem [thread:$0]  (%p17538_p10), %s23636_s0, 256, %s3236_s18, [#allocation9], %s23604_s26, %s23604_s26, %s23614_s23  }
 0x340   : > { %p19036_p13 = pnand %p19035_p12, %p19029_p7 }
 0x342   : > { %19039 = shalt.err (!%p19036_p13)
}
 0x343   : > { %s23637_s1 = sld [smem:[#allocation186_spill]]  ;;  %s20362_s16 = smov [#allocation16]  }
 0x344   : > { %s3301_s4 = sshll.u32 %s20362_s16, 4  ;;  %s20363_s18 = smov [#allocation19]   ;;  %s3302_s4 = int_to_ptr.vmem [resolvable:$true] %s3301_s4 }
 0x345   : > { %s3327_s22 = sshll.u32 %s20363_s18, 4  ;;  %s19050_s0 = scalar_lea.vmem %s3302_s4, 256  ;;  %s3328_s22 = int_to_ptr.vmem [resolvable:$true] %s3327_s22 }
 0x346   : > { %p19051_p0 = scmp.ne.s32.totalorder %s3302_s4, %s19050_s0  ;;  %p19057_p1 = scmp.lt.s32.totalorder %s3302_s4, %s3302_s4 }
 0x347   : > { %p19058_p9 = scmp.lt.s32.totalorder %s19050_s0, %s19050_s0 }
 0x348   : > { %p19052_p5 = pnand %p19051_p0, %p17538_p10 }
 0x349   : > { %17213 = dma.hbm_to_vmem [thread:$0]  (%p17538_p10), %s23637_s1, 16, %s3263_s5, [#allocation12]  }
 0x34a   : > { %p19053_p6 = pneg %p19052_p5  ;;  %p19059_p2 = por %p19058_p9, %p19057_p1 }
 0x34c   : > { %p19060_p3 = pnand %p19059_p2, %p19053_p6 }
 0x34e   : > { %19063 = shalt.err (!%p19060_p3)
}
 0x34f   : > { %s23638_s5 = sld [smem:[#allocation193_spill]]  ;;  %s19074_s10 = scalar_lea.vmem %s3328_s22, 256 }
 0x350   : > { %p19075_p4 = scmp.ne.s32.totalorder %s3328_s22, %s19074_s10  ;;  %p19081_p8 = scmp.lt.s32.totalorder %s3328_s22, %s3328_s22 }
 0x351   : > { %p19082_p12 = scmp.lt.s32.totalorder %s19074_s10, %s19074_s10 }
 0x352   : > { %p19076_p7 = pnand %p19075_p4, %p17538_p10 }
 0x353   : > { %p19083_p13 = por %p19082_p12, %p19081_p8 }
 0x354   : > { %p19077_p11 = pneg %p19076_p7 }
 0x355   : > { %17217 = dma.hbm_to_vmem [thread:$0]  (%p17538_p10), %s23638_s5, 256, %s3302_s4, [#allocation15], %s23604_s26, %s23604_s26, %s23614_s23  }
 0x356   : > { %p19084_p0 = pnand %p19083_p13, %p19077_p11 }
 0x358   : > { %19087 = shalt.err (!%p19084_p0)
}
 0x359   : > { %s23639_s13 = sld [smem:[#allocation194_spill]]  ;;  %s20364_s1 = smov [#allocation22]  }
 0x35a   : > { %s3353_s16 = sshll.u32 %s20364_s1, 4  ;;  %s20365_s4 = smov [#allocation25]   ;;  %s3354_s16 = int_to_ptr.vmem [resolvable:$true] %s3353_s16 }
 0x35b   : > { %s3379_s18 = sshll.u32 %s20365_s4, 4  ;;  %s19098_s0 = scalar_lea.vmem %s3354_s16, 256  ;;  %s3380_s18 = int_to_ptr.vmem [resolvable:$true] %s3379_s18 }
 0x35c   : > { %p19099_p5 = scmp.ne.s32.totalorder %s3354_s16, %s19098_s0  ;;  %p19105_p9 = scmp.lt.s32.totalorder %s3354_s16, %s3354_s16 }
 0x35d   : > { %p19106_p2 = scmp.lt.s32.totalorder %s19098_s0, %s19098_s0 }
 0x35e   : > { %p19100_p6 = pnand %p19099_p5, %p17538_p10 }
 0x35f   : > { %17221 = dma.hbm_to_vmem [thread:$0]  (%p17538_p10), %s23639_s13, 256, %s3328_s22, [#allocation18], %s23604_s26, %s23604_s26, %s23614_s23  }
 0x360   : > { %p19101_p1 = pneg %p19100_p6  ;;  %p19107_p3 = por %p19106_p2, %p19105_p9 }
 0x362   : > { %p19108_p4 = pnand %p19107_p3, %p19101_p1 }
 0x364   : > { %19111 = shalt.err (!%p19108_p4)
}
 0x365   : > { %s23640_s22 = sld [smem:[#allocation196_spill]]  ;;  %s19122_s5 = scalar_lea.vmem %s3380_s18, 256 }
 0x366   : > { %p19123_p7 = scmp.ne.s32.totalorder %s3380_s18, %s19122_s5  ;;  %p19129_p12 = scmp.lt.s32.totalorder %s3380_s18, %s3380_s18 }
 0x367   : > { %p19130_p13 = scmp.lt.s32.totalorder %s19122_s5, %s19122_s5 }
 0x368   : > { %p19124_p11 = pnand %p19123_p7, %p17538_p10 }
 0x369   : > { %p19131_p0 = por %p19130_p13, %p19129_p12 }
 0x36a   : > { %p19125_p8 = pneg %p19124_p11 }
 0x36b   : > { %17225 = dma.hbm_to_vmem [thread:$0]  (%p17538_p10), %s23640_s22, 256, %s3354_s16, [#allocation21], %s23604_s26, %s23604_s26, %s23614_s23  }
 0x36c   : > { %p19132_p5 = pnand %p19131_p0, %p19125_p8 }
 0x36e   : > { %19135 = shalt.err (!%p19132_p5)
}
 0x36f   : > { %s23641_s10 = sld [smem:[#allocation197_spill]]  ;;  %s20366_s13 = smov [#allocation28]  }
 0x370   : > { %s3409_s1 = sshll.u32 %s20366_s13, 4  ;;  %s20367_s16 = smov [#allocation31]   ;;  %s3410_s1 = int_to_ptr.vmem [resolvable:$true] %s3409_s1 }
 0x371   : > { %s3437_s4 = sshll.u32 %s20367_s16, 4  ;;  %s19146_s0 = scalar_lea.vmem %s3410_s1, 16  ;;  %s3438_s4 = int_to_ptr.vmem [resolvable:$true] %s3437_s4 }
 0x372   : > { %p19147_p6 = scmp.ne.s32.totalorder %s3410_s1, %s19146_s0  ;;  %s19152_s22 = scalar_lea.vmem %s3410_s1, 32 }
 0x373   : > { %p19153_p2 = scmp.lt.s32.totalorder %s3410_s1, %s3410_s1  ;;  %p19154_p3 = scmp.lt.s32.totalorder %s19152_s22, %s19146_s0 }
 0x374   : > { %p19148_p1 = pnand %p19147_p6, %p17538_p10 }
 0x375   : > { %17229 = dma.hbm_to_vmem [thread:$0]  (%p17538_p10), %s23641_s10, 256, %s3380_s18, [#allocation24], %s23604_s26, %s23604_s26, %s23614_s23  }
 0x376   : > { %p19149_p9 = pneg %p19148_p1  ;;  %p19155_p4 = por %p19154_p3, %p19153_p2 }
 0x378   : > { %p19156_p7 = pnand %p19155_p4, %p19149_p9 }
 0x37a   : > { %19159 = shalt.err (!%p19156_p7)
}
 0x37b   : > { %s23642_s5 = sld [smem:[#allocation199_spill]]  ;;  %s19170_s18 = scalar_lea.vmem %s3438_s4, 16 }
 0x37c   : > { %p19171_p11 = scmp.ne.s32.totalorder %s3438_s4, %s19170_s18  ;;  %s19176_s10 = scalar_lea.vmem %s3438_s4, 32 }
 0x37d   : > { %p19177_p13 = scmp.lt.s32.totalorder %s3438_s4, %s3438_s4  ;;  %p19178_p0 = scmp.lt.s32.totalorder %s19176_s10, %s19170_s18 }
 0x37e   : > { %p19172_p8 = pnand %p19171_p11, %p17538_p10 }
 0x37f   : > { %p19179_p5 = por %p19178_p0, %p19177_p13 }
 0x380   : > { %p19173_p12 = pneg %p19172_p8 }
 0x381   : > { %17233 = dma.hbm_to_vmem [thread:$0]  (%p17538_p10), %s23642_s5, 16, %s3410_s1, [#allocation27]  }
 0x382   : > { %p19180_p6 = pnand %p19179_p5, %p19173_p12 }
 0x384   : > { %19183 = shalt.err (!%p19180_p6)
}
 0x385   : > { %s23643_s13 = sld [smem:[#allocation202_spill]]  ;;  %s20368_s16 = smov [#allocation34]  }
 0x386   : > { %s3459_s0 = sshll.u32 %s20368_s16, 4  ;;  %s20369_s1 = smov [#allocation37]   ;;  %s3460_s0 = int_to_ptr.vmem [resolvable:$true] %s3459_s0 }
 0x387   : > { %s3503_s22 = sshll.u32 %s20369_s1, 4  ;;  %s19194_s5 = scalar_lea.vmem %s3460_s0, 16  ;;  %s3504_s22 = int_to_ptr.vmem [resolvable:$true] %s3503_s22 }
 0x388   : > { %p19195_p1 = scmp.ne.s32.totalorder %s3460_s0, %s19194_s5  ;;  %s19200_s8 = scalar_lea.vmem %s3460_s0, 32 }
 0x389   : > { %p19201_p3 = scmp.lt.s32.totalorder %s3460_s0, %s3460_s0  ;;  %p19202_p4 = scmp.lt.s32.totalorder %s19200_s8, %s19194_s5 }
 0x38a   : > { %p19196_p9 = pnand %p19195_p1, %p17538_p10 }
 0x38b   : > { %17237 = dma.hbm_to_vmem [thread:$0]  (%p17538_p10), %s23643_s13, 16, %s3438_s4, [#allocation30]  }
 0x38c   : > { %p19197_p2 = pneg %p19196_p9  ;;  %p19203_p7 = por %p19202_p4, %p19201_p3 }
 0x38e   : > { %p19204_p11 = pnand %p19203_p7, %p19197_p2 }
 0x390   : > { %19207 = shalt.err (!%p19204_p11)
}
 0x391   : > { %s23644_s18 = sld [smem:[#allocation203_spill]]  ;;  %s19218_s4 = scalar_lea.vmem %s3504_s22, 256 }
 0x392   : > { %p19219_p8 = scmp.ne.s32.totalorder %s3504_s22, %s19218_s4  ;;  %p19225_p0 = scmp.lt.s32.totalorder %s3504_s22, %s3504_s22 }
 0x393   : > { %p19226_p5 = scmp.lt.s32.totalorder %s19218_s4, %s19218_s4 }
 0x394   : > { %p19220_p12 = pnand %p19219_p8, %p17538_p10 }
 0x395   : > { %p19227_p6 = por %p19226_p5, %p19225_p0 }
 0x396   : > { %p19221_p13 = pneg %p19220_p12 }
 0x397   : > { %17241 = dma.hbm_to_vmem [thread:$0]  (%p17538_p10), %s23644_s18, 16, %s3460_s0, [#allocation33]  }
 0x398   : > { %p19228_p1 = pnand %p19227_p6, %p19221_p13 }
 0x39a   : > { %19231 = shalt.err (!%p19228_p1)
}
 0x39b   : > { %s23645_s8 = sld [smem:[#allocation212_spill]]  ;;  %s20370_s10 = smov [#allocation40]  }
 0x39c   : > { %s3530_s13 = sshll.u32 %s20370_s10, 4  ;;  %s20371_s16 = smov [#allocation43]   ;;  %s3531_s13 = int_to_ptr.vmem [resolvable:$true] %s3530_s13 }
 0x39d   : > { %s3558_s0 = sshll.u32 %s20371_s16, 4  ;;  %s19242_s1 = scalar_lea.vmem %s3531_s13, 128  ;;  %s3559_s0 = int_to_ptr.vmem [resolvable:$true] %s3558_s0 }
 0x39e   : > { %p19243_p9 = scmp.ne.s32.totalorder %s3531_s13, %s19242_s1  ;;  %p19249_p4 = scmp.lt.s32.totalorder %s3531_s13, %s3531_s13 }
 0x39f   : > { %p19250_p7 = scmp.lt.s32.totalorder %s19242_s1, %s19242_s1 }
 0x3a0   : > { %p19244_p2 = pnand %p19243_p9, %p17538_p10 }
 0x3a1   : > { %17245 = dma.hbm_to_vmem [thread:$0]  (%p17538_p10), %s23645_s8, 256, %s3504_s22, [#allocation36], %s23604_s26, %s23604_s26, %s23614_s23  }
 0x3a2   : > { %p19245_p3 = pneg %p19244_p2  ;;  %p19251_p11 = por %p19250_p7, %p19249_p4 }
 0x3a4   : > { %p19252_p8 = pnand %p19251_p11, %p19245_p3 }
 0x3a6   : > { %19255 = shalt.err (!%p19252_p8)
}
 0x3a7   : > { %s23646_s5 = sld [smem:[#allocation214_spill]]  ;;  %s19266_s22 = scalar_lea.vmem %s3559_s0, 128 }
 0x3a8   : > { %p19267_p12 = scmp.ne.s32.totalorder %s3559_s0, %s19266_s22  ;;  %p19273_p5 = scmp.lt.s32.totalorder %s3559_s0, %s3559_s0 }
 0x3a9   : > { %p19274_p6 = scmp.lt.s32.totalorder %s19266_s22, %s19266_s22 }
 0x3aa   : > { %p19268_p13 = pnand %p19267_p12, %p17538_p10 }
 0x3ab   : > { %p19275_p1 = por %p19274_p6, %p19273_p5 }
 0x3ac   : > { %p19269_p0 = pneg %p19268_p13 }
 0x3ad   : > { %17249 = dma.hbm_to_vmem [thread:$0]  (%p17538_p10), %s23646_s5, 128, %s3531_s13, [#allocation39]  }
 0x3ae   : > { %p19276_p9 = pnand %p19275_p1, %p19269_p0 }
 0x3b0   : > { %19279 = shalt.err (!%p19276_p9)
}
 0x3b1   : > { %s23647_s18 = sld [smem:[#allocation217_spill]]  ;;  %s20372_s4 = smov [#allocation46]  }
 0x3b2   : > { %s3580_s8 = sshll.u32 %s20372_s4, 4  ;;  %s20373_s10 = smov [#allocation49]   ;;  %s3581_s8 = int_to_ptr.vmem [resolvable:$true] %s3580_s8 }
 0x3b3   : > { %s3616_s13 = sshll.u32 %s20373_s10, 4  ;;  %s19290_s16 = scalar_lea.vmem %s3581_s8, 16  ;;  %s3617_s13 = int_to_ptr.vmem [resolvable:$true] %s3616_s13 }
 0x3b4   : > { %p19291_p2 = scmp.ne.s32.totalorder %s3581_s8, %s19290_s16  ;;  %s19296_s1 = scalar_lea.vmem %s3581_s8, 32 }
 0x3b5   : > { %p19297_p7 = scmp.lt.s32.totalorder %s3581_s8, %s3581_s8  ;;  %p19298_p11 = scmp.lt.s32.totalorder %s19296_s1, %s19290_s16 }
 0x3b6   : > { %p19292_p3 = pnand %p19291_p2, %p17538_p10 }
 0x3b7   : > { %17253 = dma.hbm_to_vmem [thread:$0]  (%p17538_p10), %s23647_s18, 128, %s3559_s0, [#allocation42]  }
 0x3b8   : > { %p19293_p4 = pneg %p19292_p3  ;;  %p19299_p8 = por %p19298_p11, %p19297_p7 }
 0x3ba   : > { %p19300_p12 = pnand %p19299_p8, %p19293_p4 }
 0x3bc   : > { %19303 = shalt.err (!%p19300_p12)
}
 0x3bd   : > { %s23648_s5 = sld [smem:[#allocation218_spill]]  ;;  %s19314_s0 = scalar_lea.vmem %s3617_s13, 1024 }
 0x3be   : > { %p19315_p13 = scmp.ne.s32.totalorder %s3617_s13, %s19314_s0  ;;  %p19321_p6 = scmp.lt.s32.totalorder %s3617_s13, %s3617_s13 }
 0x3bf   : > { %p19322_p1 = scmp.lt.s32.totalorder %s19314_s0, %s19314_s0 }
 0x3c0   : > { %p19316_p0 = pnand %p19315_p13, %p17538_p10 }
 0x3c1   : > { %p19323_p9 = por %p19322_p1, %p19321_p6 }
 0x3c2   : > { %p19317_p5 = pneg %p19316_p0 }
 0x3c3   : > { %17257 = dma.hbm_to_vmem [thread:$0]  (%p17538_p10), %s23648_s5, 16, %s3581_s8, [#allocation45]  }
 0x3c4   : > { %p19324_p2 = pnand %p19323_p9, %p19317_p5 }
 0x3c6   : > { %19327 = shalt.err (!%p19324_p2)
}
 0x3c7   : > { %s23649_s22 = sld [smem:[#allocation225_spill]]  ;;  %s20374_s18 = smov [#allocation52]  }
 0x3c8   : > { %s3641_s4 = sshll.u32 %s20374_s18, 4  ;;  %s20375_s8 = smov [#allocation55]   ;;  %s3642_s4 = int_to_ptr.vmem [resolvable:$true] %s3641_s4 }
 0x3c9   : > { %s3663_s10 = sshll.u32 %s20375_s8, 4  ;;  %s19338_s16 = scalar_lea.vmem %s3642_s4, 128  ;;  %s3664_s10 = int_to_ptr.vmem [resolvable:$true] %s3663_s10 }
 0x3ca   : > { %p19339_p3 = scmp.ne.s32.totalorder %s3642_s4, %s19338_s16  ;;  %p19345_p11 = scmp.lt.s32.totalorder %s3642_s4, %s3642_s4 }
 0x3cb   : > { %p19346_p8 = scmp.lt.s32.totalorder %s19338_s16, %s19338_s16 }
 0x3cc   : > { %p19340_p4 = pnand %p19339_p3, %p17538_p10 }
 0x3cd   : > { %17261 = dma.hbm_to_vmem [thread:$0]  (%p17538_p10), %s23649_s22, 1024, %s3617_s13, [#allocation48], %s23604_s26, %s23604_s26, %s23614_s23  }
 0x3ce   : > { %p19341_p7 = pneg %p19340_p4  ;;  %p19347_p12 = por %p19346_p8, %p19345_p11 }
 0x3d0   : > { %p19348_p13 = pnand %p19347_p12, %p19341_p7 }
 0x3d2   : > { %19351 = shalt.err (!%p19348_p13)
}
 0x3d3   : > { %s23650_s1 = sld [smem:[#allocation227_spill]]  ;;  %s19362_s13 = scalar_lea.vmem %s3664_s10, 128 }
 0x3d4   : > { %p19363_p0 = scmp.ne.s32.totalorder %s3664_s10, %s19362_s13  ;;  %p19369_p1 = scmp.lt.s32.totalorder %s3664_s10, %s3664_s10 }
 0x3d5   : > { %p19370_p9 = scmp.lt.s32.totalorder %s19362_s13, %s19362_s13 }
 0x3d6   : > { %p19364_p5 = pnand %p19363_p0, %p17538_p10 }
 0x3d7   : > { %p19371_p2 = por %p19370_p9, %p19369_p1 }
 0x3d8   : > { %p19365_p6 = pneg %p19364_p5 }
 0x3d9   : > { %17265 = dma.hbm_to_vmem [thread:$0]  (%p17538_p10), %s23650_s1, 128, %s3642_s4, [#allocation51]  }
 0x3da   : > { %p19372_p3 = pnand %p19371_p2, %p19365_p6 }
 0x3dc   : > { %19375 = shalt.err (!%p19372_p3)
}
 0x3dd   : > { %s23651_s5 = sld [smem:[#allocation229_spill]]  ;;  %s20376_s0 = smov [#allocation58]  }
 0x3de   : > { %s3685_s22 = sshll.u32 %s20376_s0, 4  ;;  %s20377_s18 = smov [#allocation61]   ;;  %s3686_s22 = int_to_ptr.vmem [resolvable:$true] %s3685_s22 }
 0x3df   : > { %s3706_s4 = sshll.u32 %s20377_s18, 4  ;;  %s19386_s8 = scalar_lea.vmem %s3686_s22, 128  ;;  %s3707_s4 = int_to_ptr.vmem [resolvable:$true] %s3706_s4 }
 0x3e0   : > { %p19387_p4 = scmp.ne.s32.totalorder %s3686_s22, %s19386_s8  ;;  %p19393_p8 = scmp.lt.s32.totalorder %s3686_s22, %s3686_s22 }
 0x3e1   : > { %p19394_p12 = scmp.lt.s32.totalorder %s19386_s8, %s19386_s8 }
 0x3e2   : > { %p19388_p7 = pnand %p19387_p4, %p17538_p10 }
 0x3e3   : > { %17269 = dma.hbm_to_vmem [thread:$0]  (%p17538_p10), %s23651_s5, 128, %s3664_s10, [#allocation54]  }
 0x3e4   : > { %p19389_p11 = pneg %p19388_p7  ;;  %p19395_p13 = por %p19394_p12, %p19393_p8 }
 0x3e6   : > { %p19396_p0 = pnand %p19395_p13, %p19389_p11 }
 0x3e8   : > { %19399 = shalt.err (!%p19396_p0)
}
 0x3e9   : > { %s23652_s16 = sld [smem:[#allocation231_spill]]  ;;  %s19410_s10 = scalar_lea.vmem %s3707_s4, 1024 }
 0x3ea   : > { %p19411_p5 = scmp.ne.s32.totalorder %s3707_s4, %s19410_s10  ;;  %p19417_p9 = scmp.lt.s32.totalorder %s3707_s4, %s3707_s4 }
 0x3eb   : > { %p19418_p2 = scmp.lt.s32.totalorder %s19410_s10, %s19410_s10 }
 0x3ec   : > { %p19412_p6 = pnand %p19411_p5, %p17538_p10 }
 0x3ed   : > { %p19419_p3 = por %p19418_p2, %p19417_p9 }
 0x3ee   : > { %p19413_p1 = pneg %p19412_p6 }
 0x3ef   : > { %17273 = dma.hbm_to_vmem [thread:$0]  (%p17538_p10), %s23652_s16, 128, %s3686_s22, [#allocation57]  }
 0x3f0   : > { %p19420_p4 = pnand %p19419_p3, %p19413_p1 }
 0x3f2   : > { %19423 = shalt.err (!%p19420_p4)
}
 0x3f3   : > { %s23653_s1 = sld [smem:[#allocation233_spill]]  ;;  %s20378_s13 = smov [#allocation64]  }
 0x3f4   : > { %s3731_s5 = sshll.u32 %s20378_s13, 4  ;;  %s20379_s0 = smov [#allocation67]   ;;  %s3732_s5 = int_to_ptr.vmem [resolvable:$true] %s3731_s5 }
 0x3f5   : > { %s3755_s22 = sshll.u32 %s20379_s0, 4  ;;  %s19434_s18 = scalar_lea.vmem %s3732_s5, 16  ;;  %s3756_s22 = int_to_ptr.vmem [resolvable:$true] %s3755_s22 }
 0x3f6   : > { %p19435_p7 = scmp.ne.s32.totalorder %s3732_s5, %s19434_s18  ;;  %s19440_s8 = scalar_lea.vmem %s3732_s5, 32 }
 0x3f7   : > { %p19441_p12 = scmp.lt.s32.totalorder %s3732_s5, %s3732_s5  ;;  %p19442_p13 = scmp.lt.s32.totalorder %s19440_s8, %s19434_s18 }
 0x3f8   : > { %p19436_p11 = pnand %p19435_p7, %p17538_p10 }
 0x3f9   : > { %17277 = dma.hbm_to_vmem [thread:$0]  (%p17538_p10), %s23653_s1, 1024, %s3707_s4, [#allocation60], %s23604_s26, %s23604_s26, %s23614_s23  }
 0x3fa   : > { %p19437_p8 = pneg %p19436_p11  ;;  %p19443_p0 = por %p19442_p13, %p19441_p12 }
 0x3fc   : > { %p19444_p5 = pnand %p19443_p0, %p19437_p8 }
 0x3fe   : > { %19447 = shalt.err (!%p19444_p5)
}
 0x3ff   : > { %s23654_s16 = sld [smem:[#allocation235_spill]]  ;;  %s19458_s4 = scalar_lea.vmem %s3756_s22, 1024 }
 0x400   : > { %p19459_p6 = scmp.ne.s32.totalorder %s3756_s22, %s19458_s4  ;;  %p19465_p2 = scmp.lt.s32.totalorder %s3756_s22, %s3756_s22 }
 0x401   : > { %p19466_p3 = scmp.lt.s32.totalorder %s19458_s4, %s19458_s4 }
 0x402   : > { %p19460_p1 = pnand %p19459_p6, %p17538_p10 }
 0x403   : > { %p19467_p4 = por %p19466_p3, %p19465_p2 }
 0x404   : > { %p19461_p9 = pneg %p19460_p1 }
 0x405   : > { %17281 = dma.hbm_to_vmem [thread:$0]  (%p17538_p10), %s23654_s16, 16, %s3732_s5, [#allocation63]  }
 0x406   : > { %p19468_p7 = pnand %p19467_p4, %p19461_p9 }
 0x408   : > { %19471 = shalt.err (!%p19468_p7)
}
 0x409   : > { %s23655_s10 = sld [smem:[#allocation238_spill]]  ;;  %s20380_s1 = smov [#allocation70]  }
 0x40a   : > { %s3782_s13 = sshll.u32 %s20380_s1, 4  ;;  %s20381_s5 = smov [#allocation73]   ;;  %s3783_s13 = int_to_ptr.vmem [resolvable:$true] %s3782_s13 }
 0x40b   : > { %s3804_s0 = sshll.u32 %s20381_s5, 4  ;;  %s19482_s18 = scalar_lea.vmem %s3783_s13, 16  ;;  %s3805_s0 = int_to_ptr.vmem [resolvable:$true] %s3804_s0 }
 0x40c   : > { %p19483_p11 = scmp.ne.s32.totalorder %s3783_s13, %s19482_s18  ;;  %s19488_s8 = scalar_lea.vmem %s3783_s13, 32 }
 0x40d   : > { %p19489_p13 = scmp.lt.s32.totalorder %s3783_s13, %s3783_s13  ;;  %p19490_p0 = scmp.lt.s32.totalorder %s19488_s8, %s19482_s18 }
 0x40e   : > { %p19484_p8 = pnand %p19483_p11, %p17538_p10 }
 0x40f   : > { %17285 = dma.hbm_to_vmem [thread:$0]  (%p17538_p10), %s23655_s10, 1024, %s3756_s22, [#allocation66], %s23604_s26, %s23604_s26, %s23614_s23  }
 0x410   : > { %p19485_p12 = pneg %p19484_p8  ;;  %p19491_p5 = por %p19490_p0, %p19489_p13 }
 0x412   : > { %p19492_p6 = pnand %p19491_p5, %p19485_p12 }
 0x414   : > { %19495 = shalt.err (!%p19492_p6)
}
 0x415   : > { %s23656_s16 = sld [smem:[#allocation240_spill]]  ;;  %s19506_s22 = scalar_lea.vmem %s3805_s0, 16 }
 0x416   : > { %p19507_p1 = scmp.ne.s32.totalorder %s3805_s0, %s19506_s22  ;;  %s19512_s4 = scalar_lea.vmem %s3805_s0, 32 }
 0x417   : > { %p19513_p3 = scmp.lt.s32.totalorder %s3805_s0, %s3805_s0  ;;  %p19514_p4 = scmp.lt.s32.totalorder %s19512_s4, %s19506_s22 }
 0x418   : > { %p19508_p9 = pnand %p19507_p1, %p17538_p10 }
 0x419   : > { %p19515_p7 = por %p19514_p4, %p19513_p3 }
 0x41a   : > { %p19509_p2 = pneg %p19508_p9 }
 0x41b   : > { %17289 = dma.hbm_to_vmem [thread:$0]  (%p17538_p10), %s23656_s16, 16, %s3783_s13, [#allocation69]  }
 0x41c   : > { %p19516_p11 = pnand %p19515_p7, %p19509_p2 }
 0x41e   : > { %19519 = shalt.err (!%p19516_p11)
}
 0x41f   : > { %s23657_s10 = sld [smem:[#allocation242_spill]]  ;;  %s20382_s1 = smov [#allocation76]  }
 0x420   : > { %s3847_s5 = sshll.u32 %s20382_s1, 4  ;;  %s20383_s13 = smov [#allocation79]   ;;  %s3848_s5 = int_to_ptr.vmem [resolvable:$true] %s3847_s5 }
 0x421   : > { %s3869_s18 = sshll.u32 %s20383_s13, 4  ;;  %s19530_s8 = scalar_lea.vmem %s3848_s5, 128  ;;  %s3870_s18 = int_to_ptr.vmem [resolvable:$true] %s3869_s18 }
 0x422   : > { %p19531_p8 = scmp.ne.s32.totalorder %s3848_s5, %s19530_s8  ;;  %p19537_p0 = scmp.lt.s32.totalorder %s3848_s5, %s3848_s5 }
 0x423   : > { %p19538_p5 = scmp.lt.s32.totalorder %s19530_s8, %s19530_s8 }
 0x424   : > { %p19532_p12 = pnand %p19531_p8, %p17538_p10 }
 0x425   : > { %17293 = dma.hbm_to_vmem [thread:$0]  (%p17538_p10), %s23657_s10, 16, %s3805_s0, [#allocation72]  }
 0x426   : > { %p19533_p13 = pneg %p19532_p12  ;;  %p19539_p6 = por %p19538_p5, %p19537_p0 }
 0x428   : > { %p19540_p1 = pnand %p19539_p6, %p19533_p13 }
 0x42a   : > { %19543 = shalt.err (!%p19540_p1)
}
 0x42b   : > { %s23658_s16 = sld [smem:[#allocation251_spill]]  ;;  %s19554_s0 = scalar_lea.vmem %s3870_s18, 64 }
 0x42c   : > { %p19555_p9 = scmp.ne.s32.totalorder %s3870_s18, %s19554_s0  ;;  %p19561_p4 = scmp.lt.s32.totalorder %s3870_s18, %s3870_s18 }
 0x42d   : > { %p19562_p7 = scmp.lt.s32.totalorder %s19554_s0, %s19554_s0 }
 0x42e   : > { %p19556_p2 = pnand %p19555_p9, %p17538_p10 }
 0x42f   : > { %p19563_p11 = por %p19562_p7, %p19561_p4 }
 0x430   : > { %p19557_p3 = pneg %p19556_p2 }
 0x431   : > { %17297 = dma.hbm_to_vmem [thread:$0]  (%p17538_p10), %s23658_s16, 128, %s3848_s5, [#allocation75]  }
 0x432   : > { %p19564_p8 = pnand %p19563_p11, %p19557_p3 }
 0x434   : > { %19567 = shalt.err (!%p19564_p8)
}
 0x435   : > { %s23659_s22 = sld [smem:[#allocation253_spill]]  ;;  %s20384_s4 = smov [#allocation82]  }
 0x436   : > { %s3897_s10 = sshll.u32 %s20384_s4, 4  ;;  %s20385_s1 = smov [#allocation85]   ;;  %s3898_s10 = int_to_ptr.vmem [resolvable:$true] %s3897_s10 }
 0x437   : > { %s3919_s5 = sshll.u32 %s20385_s1, 4  ;;  %s19578_s13 = scalar_lea.vmem %s3898_s10, 64  ;;  %s3920_s5 = int_to_ptr.vmem [resolvable:$true] %s3919_s5 }
 0x438   : > { %p19579_p12 = scmp.ne.s32.totalorder %s3898_s10, %s19578_s13  ;;  %p19585_p5 = scmp.lt.s32.totalorder %s3898_s10, %s3898_s10 }
 0x439   : > { %p19586_p6 = scmp.lt.s32.totalorder %s19578_s13, %s19578_s13 }
 0x43a   : > { %p19580_p13 = pnand %p19579_p12, %p17538_p10 }
 0x43b   : > { %17301 = dma.hbm_to_vmem [thread:$0]  (%p17538_p10), %s23659_s22, 64, %s3870_s18, [#allocation78]  }
 0x43c   : > { %p19581_p0 = pneg %p19580_p13  ;;  %p19587_p1 = por %p19586_p6, %p19585_p5 }
 0x43e   : > { %p19588_p9 = pnand %p19587_p1, %p19581_p0 }
 0x440   : > { %19591 = shalt.err (!%p19588_p9)
}
 0x441   : > { %s23660_s8 = sld [smem:[#allocation257_spill]]  ;;  %s19602_s18 = scalar_lea.vmem %s3920_s5, 16 }
 0x442   : > { %p19603_p2 = scmp.ne.s32.totalorder %s3920_s5, %s19602_s18  ;;  %s19608_s16 = scalar_lea.vmem %s3920_s5, 32 }
 0x443   : > { %p19609_p7 = scmp.lt.s32.totalorder %s3920_s5, %s3920_s5  ;;  %p19610_p11 = scmp.lt.s32.totalorder %s19608_s16, %s19602_s18 }
 0x444   : > { %p19604_p3 = pnand %p19603_p2, %p17538_p10 }
 0x445   : > { %p19611_p8 = por %p19610_p11, %p19609_p7 }
 0x446   : > { %p19605_p4 = pneg %p19604_p3 }
 0x447   : > { %17305 = dma.hbm_to_vmem [thread:$0]  (%p17538_p10), %s23660_s8, 64, %s3898_s10, [#allocation81]  }
 0x448   : > { %p19612_p12 = pnand %p19611_p8, %p19605_p4 }
 0x44a   : > { %19615 = shalt.err (!%p19612_p12)
}
 0x44b   : > { %s23661_s0 = sld [smem:[#allocation259_spill]]  ;;  %s20386_s22 = smov [#allocation88]  }
 0x44c   : > { %s3949_s4 = sshll.u32 %s20386_s22, 4  ;;  %s20387_s10 = smov [#allocation91]   ;;  %s3950_s4 = int_to_ptr.vmem [resolvable:$true] %s3949_s4 }
 0x44d   : > { %s3975_s1 = sshll.u32 %s20387_s10, 4  ;;  %s19626_s13 = scalar_lea.vmem %s3950_s4, 1024  ;;  %s3976_s1 = int_to_ptr.vmem [resolvable:$true] %s3975_s1 }
 0x44e   : > { %p19627_p13 = scmp.ne.s32.totalorder %s3950_s4, %s19626_s13  ;;  %p19633_p6 = scmp.lt.s32.totalorder %s3950_s4, %s3950_s4 }
 0x44f   : > { %p19634_p1 = scmp.lt.s32.totalorder %s19626_s13, %s19626_s13 }
 0x450   : > { %p19628_p0 = pnand %p19627_p13, %p17538_p10 }
 0x451   : > { %17309 = dma.hbm_to_vmem [thread:$0]  (%p17538_p10), %s23661_s0, 16, %s3920_s5, [#allocation84]  }
 0x452   : > { %p19629_p5 = pneg %p19628_p0  ;;  %p19635_p9 = por %p19634_p1, %p19633_p6 }
 0x454   : > { %p19636_p2 = pnand %p19635_p9, %p19629_p5 }
 0x456   : > { %19639 = shalt.err (!%p19636_p2)
}
 0x457   : > { %s23662_s5 = sld [smem:[#allocation264_spill]]  ;;  %s19650_s8 = scalar_lea.vmem %s3976_s1, 1024 }
 0x458   : > { %p19651_p3 = scmp.ne.s32.totalorder %s3976_s1, %s19650_s8  ;;  %p19657_p11 = scmp.lt.s32.totalorder %s3976_s1, %s3976_s1 }
 0x459   : > { %p19658_p8 = scmp.lt.s32.totalorder %s19650_s8, %s19650_s8 }
 0x45a   : > { %p19652_p4 = pnand %p19651_p3, %p17538_p10 }
 0x45b   : > { %p19659_p12 = por %p19658_p8, %p19657_p11 }
 0x45c   : > { %p19653_p7 = pneg %p19652_p4 }
 0x45d   : > { %17313 = dma.hbm_to_vmem [thread:$0]  (%p17538_p10), %s23662_s5, 1024, %s3950_s4, [#allocation87], %s23604_s26, %s23604_s26, %s23614_s23  }
 0x45e   : > { %p19660_p13 = pnand %p19659_p12, %p19653_p7 }
 0x460   : > { %19663 = shalt.err (!%p19660_p13)
}
 0x461   : > { %s23663_s18 = sld [smem:[#allocation266_spill]]  ;;  %s20388_s16 = smov [#allocation94]  }
 0x462   : > { %s4000_s0 = sshll.u32 %s20388_s16, 4  ;;  %s20389_s22 = smov [#allocation97]   ;;  %s4001_s0 = int_to_ptr.vmem [resolvable:$true] %s4000_s0 }
 0x463   : > { %s4022_s4 = sshll.u32 %s20389_s22, 4  ;;  %s19674_s10 = scalar_lea.vmem %s4001_s0, 64  ;;  %s4023_s4 = int_to_ptr.vmem [resolvable:$true] %s4022_s4 }
 0x464   : > { %p19675_p0 = scmp.ne.s32.totalorder %s4001_s0, %s19674_s10  ;;  %p19681_p1 = scmp.lt.s32.totalorder %s4001_s0, %s4001_s0 }
 0x465   : > { %p19682_p9 = scmp.lt.s32.totalorder %s19674_s10, %s19674_s10 }
 0x466   : > { %p19676_p5 = pnand %p19675_p0, %p17538_p10 }
 0x467   : > { %17317 = dma.hbm_to_vmem [thread:$0]  (%p17538_p10), %s23663_s18, 1024, %s3976_s1, [#allocation90], %s23604_s26, %s23604_s26, %s23614_s23  }
 0x468   : > { %p19677_p6 = pneg %p19676_p5  ;;  %p19683_p2 = por %p19682_p9, %p19681_p1 }
 0x46a   : > { %p19684_p3 = pnand %p19683_p2, %p19677_p6 }
 0x46c   : > { %19687 = shalt.err (!%p19684_p3)
}
 0x46d   : > { %s23664_s13 = sld [smem:[#allocation268_spill]]  ;;  %s19698_s1 = scalar_lea.vmem %s4023_s4, 64 }
 0x46e   : > { %p19699_p4 = scmp.ne.s32.totalorder %s4023_s4, %s19698_s1  ;;  %p19705_p8 = scmp.lt.s32.totalorder %s4023_s4, %s4023_s4 }
 0x46f   : > { %p19706_p12 = scmp.lt.s32.totalorder %s19698_s1, %s19698_s1 }
 0x470   : > { %p19700_p7 = pnand %p19699_p4, %p17538_p10 }
 0x471   : > { %p19707_p13 = por %p19706_p12, %p19705_p8 }
 0x472   : > { %p19701_p11 = pneg %p19700_p7 }
 0x473   : > { %17321 = dma.hbm_to_vmem [thread:$0]  (%p17538_p10), %s23664_s13, 64, %s4001_s0, [#allocation93]  }
 0x474   : > { %p19708_p0 = pnand %p19707_p13, %p19701_p11 }
 0x476   : > { %19711 = shalt.err (!%p19708_p0)
}
 0x477   : > { %s23665_s5 = sld [smem:[#allocation270_spill]]  ;;  %s20390_s8 = smov [#allocation100]  }
 0x478   : > { %s4044_s18 = sshll.u32 %s20390_s8, 4  ;;  %s20391_s16 = smov [#allocation103]   ;;  %s4045_s18 = int_to_ptr.vmem [resolvable:$true] %s4044_s18 }
 0x479   : > { %s4065_s0 = sshll.u32 %s20391_s16, 4  ;;  %s19722_s22 = scalar_lea.vmem %s4045_s18, 64  ;;  %s4066_s0 = int_to_ptr.vmem [resolvable:$true] %s4065_s0 }
 0x47a   : > { %p19723_p5 = scmp.ne.s32.totalorder %s4045_s18, %s19722_s22  ;;  %p19729_p9 = scmp.lt.s32.totalorder %s4045_s18, %s4045_s18 }
 0x47b   : > { %p19730_p2 = scmp.lt.s32.totalorder %s19722_s22, %s19722_s22 }
 0x47c   : > { %p19724_p6 = pnand %p19723_p5, %p17538_p10 }
 0x47d   : > { %17325 = dma.hbm_to_vmem [thread:$0]  (%p17538_p10), %s23665_s5, 64, %s4023_s4, [#allocation96]  }
 0x47e   : > { %p19725_p1 = pneg %p19724_p6  ;;  %p19731_p3 = por %p19730_p2, %p19729_p9 }
 0x480   : > { %p19732_p4 = pnand %p19731_p3, %p19725_p1 }
 0x482   : > { %19735 = shalt.err (!%p19732_p4)
}
 0x483   : > { %s23666_s10 = sld [smem:[#allocation272_spill]]  ;;  %s19746_s4 = scalar_lea.vmem %s4066_s0, 1024 }
 0x484   : > { %p19747_p7 = scmp.ne.s32.totalorder %s4066_s0, %s19746_s4  ;;  %p19753_p12 = scmp.lt.s32.totalorder %s4066_s0, %s4066_s0 }
 0x485   : > { %p19754_p13 = scmp.lt.s32.totalorder %s19746_s4, %s19746_s4 }
 0x486   : > { %p19748_p11 = pnand %p19747_p7, %p17538_p10 }
 0x487   : > { %p19755_p0 = por %p19754_p13, %p19753_p12 }
 0x488   : > { %p19749_p8 = pneg %p19748_p11 }
 0x489   : > { %17329 = dma.hbm_to_vmem [thread:$0]  (%p17538_p10), %s23666_s10, 64, %s4045_s18, [#allocation99]  }
 0x48a   : > { %p19756_p5 = pnand %p19755_p0, %p19749_p8 }
 0x48c   : > { %19759 = shalt.err (!%p19756_p5)
}
 0x48d   : > { %s23667_s13 = sld [smem:[#allocation274_spill]]  ;;  %s20392_s1 = smov [#allocation106]  }
 0x48e   : > { %s4090_s5 = sshll.u32 %s20392_s1, 4  ;;  %s20393_s8 = smov [#allocation109]   ;;  %s4091_s5 = int_to_ptr.vmem [resolvable:$true] %s4090_s5 }
 0x48f   : > { %s4113_s18 = sshll.u32 %s20393_s8, 4  ;;  %s19770_s16 = scalar_lea.vmem %s4091_s5, 16  ;;  %s4114_s18 = int_to_ptr.vmem [resolvable:$true] %s4113_s18 }
 0x490   : > { %p19771_p6 = scmp.ne.s32.totalorder %s4091_s5, %s19770_s16  ;;  %s19776_s22 = scalar_lea.vmem %s4091_s5, 32 }
 0x491   : > { %p19777_p2 = scmp.lt.s32.totalorder %s4091_s5, %s4091_s5  ;;  %p19778_p3 = scmp.lt.s32.totalorder %s19776_s22, %s19770_s16 }
 0x492   : > { %p19772_p1 = pnand %p19771_p6, %p17538_p10 }
 0x493   : > { %17333 = dma.hbm_to_vmem [thread:$0]  (%p17538_p10), %s23667_s13, 1024, %s4066_s0, [#allocation102], %s23604_s26, %s23604_s26, %s23614_s23  }
 0x494   : > { %p19773_p9 = pneg %p19772_p1  ;;  %p19779_p4 = por %p19778_p3, %p19777_p2 }
 0x496   : > { %p19780_p7 = pnand %p19779_p4, %p19773_p9 }
 0x498   : > { %19783 = shalt.err (!%p19780_p7)
}
 0x499   : > { %s23668_s10 = sld [smem:[#allocation276_spill]]  ;;  %s19794_s0 = scalar_lea.vmem %s4114_s18, 1024 }
 0x49a   : > { %p19795_p11 = scmp.ne.s32.totalorder %s4114_s18, %s19794_s0  ;;  %p19801_p13 = scmp.lt.s32.totalorder %s4114_s18, %s4114_s18 }
 0x49b   : > { %p19802_p0 = scmp.lt.s32.totalorder %s19794_s0, %s19794_s0 }
 0x49c   : > { %p19796_p8 = pnand %p19795_p11, %p17538_p10 }
 0x49d   : > { %p19803_p5 = por %p19802_p0, %p19801_p13 }
 0x49e   : > { %p19797_p12 = pneg %p19796_p8 }
 0x49f   : > { %17337 = dma.hbm_to_vmem [thread:$0]  (%p17538_p10), %s23668_s10, 16, %s4091_s5, [#allocation105]  }
 0x4a0   : > { %p19804_p6 = pnand %p19803_p5, %p19797_p12 }
 0x4a2   : > { %19807 = shalt.err (!%p19804_p6)
}
 0x4a3   : > { %s23669_s4 = sld [smem:[#allocation278_spill]]  ;;  %s20394_s13 = smov [#allocation112]  }
 0x4a4   : > { %s4139_s1 = sshll.u32 %s20394_s13, 4  ;;  %s20395_s5 = smov [#allocation115]   ;;  %s4140_s1 = int_to_ptr.vmem [resolvable:$true] %s4139_s1 }
 0x4a5   : > { %s4164_s8 = sshll.u32 %s20395_s5, 4  ;;  %s19818_s16 = scalar_lea.vmem %s4140_s1, 1024  ;;  %s4165_s8 = int_to_ptr.vmem [resolvable:$true] %s4164_s8 }
 0x4a6   : > { %p19819_p1 = scmp.ne.s32.totalorder %s4140_s1, %s19818_s16  ;;  %p19825_p3 = scmp.lt.s32.totalorder %s4140_s1, %s4140_s1 }
 0x4a7   : > { %p19826_p4 = scmp.lt.s32.totalorder %s19818_s16, %s19818_s16 }
 0x4a8   : > { %p19820_p9 = pnand %p19819_p1, %p17538_p10 }
 0x4a9   : > { %17341 = dma.hbm_to_vmem [thread:$0]  (%p17538_p10), %s23669_s4, 1024, %s4114_s18, [#allocation108], %s23604_s26, %s23604_s26, %s23614_s23  }
 0x4aa   : > { %p19821_p2 = pneg %p19820_p9  ;;  %p19827_p7 = por %p19826_p4, %p19825_p3 }
 0x4ac   : > { %p19828_p11 = pnand %p19827_p7, %p19821_p2 }
 0x4ae   : > { %19831 = shalt.err (!%p19828_p11)
}
 0x4af   : > { %s23670_s18 = sld [smem:[#allocation280_spill]]  ;;  %s19842_s22 = scalar_lea.vmem %s4165_s8, 128 }
 0x4b0   : > { %p19843_p8 = scmp.ne.s32.totalorder %s4165_s8, %s19842_s22  ;;  %p19849_p0 = scmp.lt.s32.totalorder %s4165_s8, %s4165_s8 }
 0x4b1   : > { %p19850_p5 = scmp.lt.s32.totalorder %s19842_s22, %s19842_s22 }
 0x4b2   : > { %p19844_p12 = pnand %p19843_p8, %p17538_p10 }
 0x4b3   : > { %p19851_p6 = por %p19850_p5, %p19849_p0 }
 0x4b4   : > { %p19845_p13 = pneg %p19844_p12 }
 0x4b5   : > { %17345 = dma.hbm_to_vmem [thread:$0]  (%p17538_p10), %s23670_s18, 1024, %s4140_s1, [#allocation111], %s23604_s26, %s23604_s26, %s23614_s23  }
 0x4b6   : > { %p19852_p1 = pnand %p19851_p6, %p19845_p13 }
 0x4b8   : > { %19855 = shalt.err (!%p19852_p1)
}
 0x4b9   : > { %s23671_s10 = sld [smem:[#allocation282_spill]]  ;;  %s20396_s0 = smov [#allocation118]  }
 0x4ba   : > { %s4185_s4 = sshll.u32 %s20396_s0, 4  ;;  %s20397_s13 = smov [#allocation121]   ;;  %s4186_s4 = int_to_ptr.vmem [resolvable:$true] %s4185_s4 }
 0x4bb   : > { %s4212_s1 = sshll.u32 %s20397_s13, 4  ;;  %s19866_s5 = scalar_lea.vmem %s4186_s4, 1024  ;;  %s4213_s1 = int_to_ptr.vmem [resolvable:$true] %s4212_s1 }
 0x4bc   : > { %p19867_p9 = scmp.ne.s32.totalorder %s4186_s4, %s19866_s5  ;;  %p19873_p4 = scmp.lt.s32.totalorder %s4186_s4, %s4186_s4 }
 0x4bd   : > { %p19874_p7 = scmp.lt.s32.totalorder %s19866_s5, %s19866_s5 }
 0x4be   : > { %p19868_p2 = pnand %p19867_p9, %p17538_p10 }
 0x4bf   : > { %17349 = dma.hbm_to_vmem [thread:$0]  (%p17538_p10), %s23671_s10, 128, %s4165_s8, [#allocation114]  }
 0x4c0   : > { %p19869_p3 = pneg %p19868_p2  ;;  %p19875_p11 = por %p19874_p7, %p19873_p4 }
 0x4c2   : > { %p19876_p8 = pnand %p19875_p11, %p19869_p3 }
 0x4c4   : > { %19879 = shalt.err (!%p19876_p8)
}
 0x4c5   : > { %s23672_s8 = sld [smem:[#allocation284_spill]]  ;;  %s19890_s16 = scalar_lea.vmem %s4213_s1, 16 }
 0x4c6   : > { %p19891_p12 = scmp.ne.s32.totalorder %s4213_s1, %s19890_s16  ;;  %s19896_s18 = scalar_lea.vmem %s4213_s1, 32 }
 0x4c7   : > { %p19897_p5 = scmp.lt.s32.totalorder %s4213_s1, %s4213_s1  ;;  %p19898_p6 = scmp.lt.s32.totalorder %s19896_s18, %s19890_s16 }
 0x4c8   : > { %p19892_p13 = pnand %p19891_p12, %p17538_p10 }
 0x4c9   : > { %p19899_p1 = por %p19898_p6, %p19897_p5 }
 0x4ca   : > { %p19893_p0 = pneg %p19892_p13 }
 0x4cb   : > { %17353 = dma.hbm_to_vmem [thread:$0]  (%p17538_p10), %s23672_s8, 1024, %s4186_s4, [#allocation117], %s23604_s26, %s23604_s26, %s23614_s23  }
 0x4cc   : > { %p19900_p9 = pnand %p19899_p1, %p19893_p0 }
 0x4ce   : > { %19903 = shalt.err (!%p19900_p9)
}
 0x4cf   : > { %s23673_s22 = sld [smem:[#allocation286_spill]]  ;;  %s20398_s10 = smov [#allocation124]  }
 0x4d0   : > { %s4248_s0 = sshll.u32 %s20398_s10, 4  ;;  %s20399_s4 = smov [#allocation127]   ;;  %s4249_s0 = int_to_ptr.vmem [resolvable:$true] %s4248_s0 }
 0x4d1   : > { %s4274_s13 = sshll.u32 %s20399_s4, 4  ;;  %s19914_s5 = scalar_lea.vmem %s4249_s0, 256  ;;  %s4275_s13 = int_to_ptr.vmem [resolvable:$true] %s4274_s13 }
 0x4d2   : > { %p19915_p2 = scmp.ne.s32.totalorder %s4249_s0, %s19914_s5  ;;  %p19921_p7 = scmp.lt.s32.totalorder %s4249_s0, %s4249_s0 }
 0x4d3   : > { %p19922_p11 = scmp.lt.s32.totalorder %s19914_s5, %s19914_s5 }
 0x4d4   : > { %p19916_p3 = pnand %p19915_p2, %p17538_p10 }
 0x4d5   : > { %17357 = dma.hbm_to_vmem [thread:$0]  (%p17538_p10), %s23673_s22, 16, %s4213_s1, [#allocation120]  }
 0x4d6   : > { %p19917_p4 = pneg %p19916_p3  ;;  %p19923_p8 = por %p19922_p11, %p19921_p7 }
 0x4d8   : > { %p19924_p12 = pnand %p19923_p8, %p19917_p4 }
 0x4da   : > { %19927 = shalt.err (!%p19924_p12)
}
 0x4db   : > { %s23674_s9 = sld [smem:[#allocation293_spill]]  ;;  %s19938_s1 = scalar_lea.vmem %s4275_s13, 256 }
 0x4dc   : > { %p19939_p13 = scmp.ne.s32.totalorder %s4275_s13, %s19938_s1  ;;  %p19945_p6 = scmp.lt.s32.totalorder %s4275_s13, %s4275_s13 }
 0x4dd   : > { %p19946_p1 = scmp.lt.s32.totalorder %s19938_s1, %s19938_s1 }
 0x4de   : > { %p19940_p0 = pnand %p19939_p13, %p17538_p10 }
 0x4df   : > { %p19947_p9 = por %p19946_p1, %p19945_p6 }
 0x4e0   : > { %p19941_p5 = pneg %p19940_p0 }
 0x4e1   : > { %17361 = dma.hbm_to_vmem [thread:$0]  (%p17538_p10), %s23674_s9, 256, %s4249_s0, [#allocation123], %s23604_s26, %s23604_s26, %s23614_s23  }
 0x4e2   : > { %p19948_p2 = pnand %p19947_p9, %p19941_p5 }
 0x4e4   : > { %19951 = shalt.err (!%p19948_p2)
}
 0x4e5   : > { %s23675_s6 = sld [smem:[#allocation294_spill]] }
 0x4eb   : > { %17365 = dma.hbm_to_vmem [thread:$0]  (%p17538_p10), %s23675_s6, 256, %s4275_s13, [#allocation126], %s23604_s26, %s23604_s26, %s23614_s23  }
 0x4ec PF: > { %p23676_p3 = scmp.ne.s32.totalorder %s23600_s2, 0 }
 0x4ed   : > { %p17621_p4 = scmp.eq.s32.totalorder (!%p23676_p3), %s21100_s15, 0 }
 0x4ee   : > { %4298 = sbr.rel (%p23676_p3) target bundleno = 8524 (0x214c), region = 552 }
 0x4f3   : > { %19995 = dma.done.wait (%p17621_p4), [#allocation3], 16  }
 0x4f4   : > { %19997 = vsyncadd (%p17621_p4), [#allocation3], 4294967280 }
 0x4f5   : > { %19999 = dma.done.wait (%p17621_p4), [#allocation6], 272  }
 0x4f6   : > { %20001 = vsyncadd (%p17621_p4), [#allocation6], 4294967024 }
 0x4f7   : > { %20003 = dma.done.wait (%p17621_p4), [#allocation9], 512  }
 0x4f8   : > { %20005 = vsyncadd (%p17621_p4), [#allocation9], 4294966784 }
 0x4f9   : > { %20007 = dma.done.wait (%p17621_p4), [#allocation12], 272  }
 0x4fa   : > { %20009 = vsyncadd (%p17621_p4), [#allocation12], 4294967024 }
 0x4fb   : > { %20011 = dma.done.wait (%p17621_p4), [#allocation15], 272  }
 0x4fc   : > { %20013 = vsyncadd (%p17621_p4), [#allocation15], 4294967024 }
 0x4fd   : > { %20015 = dma.done.wait (%p17621_p4), [#allocation18], 512  }
 0x4fe   : > { %20017 = vsyncadd (%p17621_p4), [#allocation18], 4294966784 }
 0x4ff   : > { %20019 = dma.done.wait (%p17621_p4), [#allocation21], 512  }
 0x500   : > { %20021 = vsyncadd (%p17621_p4), [#allocation21], 4294966784 }
 0x501   : > { %20023 = dma.done.wait (%p17621_p4), [#allocation24], 512  }
 0x502   : > { %20025 = vsyncadd (%p17621_p4), [#allocation24], 4294966784 }
 0x503   : > { %20027 = dma.done.wait (%p17621_p4), [#allocation27], 272  }
 0x504   : > { %20029 = vsyncadd (%p17621_p4), [#allocation27], 4294967024 }
 0x505   : > { %20031 = dma.done.wait (%p17621_p4), [#allocation30], 32  }
 0x506   : > { %20033 = vsyncadd (%p17621_p4), [#allocation30], 4294967264 }
 0x507   : > { %20035 = dma.done.wait (%p17621_p4), [#allocation33], 32  }
 0x508   : > { %20037 = vsyncadd (%p17621_p4), [#allocation33], 4294967264 }
 0x509   : > { %20039 = dma.done.wait (%p17621_p4), [#allocation36], 512  }
 0x50a   : > { %20041 = vsyncadd (%p17621_p4), [#allocation36], 4294966784 }
 0x50b   : > { %20043 = dma.done.wait (%p17621_p4), [#allocation39], 384  }
 0x50c   : > { %20045 = vsyncadd (%p17621_p4), [#allocation39], 4294966912 }
 0x50d   : > { %20047 = dma.done.wait (%p17621_p4), [#allocation42], 144  }
 0x50e   : > { %20049 = vsyncadd (%p17621_p4), [#allocation42], 4294967152 }
 0x50f   : > { %20051 = dma.done.wait (%p17621_p4), [#allocation45], 144  }
 0x510   : > { %20053 = vsyncadd (%p17621_p4), [#allocation45], 4294967152 }
 0x511   : > { %20055 = dma.done.wait (%p17621_p4), [#allocation48], 1040  }
 0x512   : > { %20057 = vsyncadd (%p17621_p4), [#allocation48], 4294966256 }
 0x513   : > { %20059 = dma.done.wait (%p17621_p4), [#allocation51], 256  }
 0x514   : > { %20061 = vsyncadd (%p17621_p4), [#allocation51], 4294967040 }
 0x515   : > { %20063 = dma.done.wait (%p17621_p4), [#allocation54], 256  }
 0x516   : > { %20065 = vsyncadd (%p17621_p4), [#allocation54], 4294967040 }
 0x517   : > { %20067 = dma.done.wait (%p17621_p4), [#allocation57], 256  }
 0x518   : > { %20069 = vsyncadd (%p17621_p4), [#allocation57], 4294967040 }
 0x519   : > { %20071 = dma.done.wait (%p17621_p4), [#allocation60], 1152  }
 0x51a   : > { %20073 = vsyncadd (%p17621_p4), [#allocation60], 4294966144 }
 0x51b   : > { %20075 = dma.done.wait (%p17621_p4), [#allocation63], 144  }
 0x51c   : > { %20077 = vsyncadd (%p17621_p4), [#allocation63], 4294967152 }
 0x51d   : > { %20079 = dma.done.wait (%p17621_p4), [#allocation66], 1040  }
 0x51e   : > { %20081 = vsyncadd (%p17621_p4), [#allocation66], 4294966256 }
 0x51f   : > { %20083 = dma.done.wait (%p17621_p4), [#allocation69], 1040  }
 0x520   : > { %20085 = vsyncadd (%p17621_p4), [#allocation69], 4294966256 }
 0x521   : > { %20087 = dma.done.wait (%p17621_p4), [#allocation72], 32  }
 0x522   : > { %20089 = vsyncadd (%p17621_p4), [#allocation72], 4294967264 }
 0x523   : > { %20091 = dma.done.wait (%p17621_p4), [#allocation75], 256  }
 0x524   : > { %20093 = vsyncadd (%p17621_p4), [#allocation75], 4294967040 }
 0x525   : > { %20095 = dma.done.wait (%p17621_p4), [#allocation78], 192  }
 0x526   : > { %20097 = vsyncadd (%p17621_p4), [#allocation78], 4294967104 }
 0x527   : > { %20099 = dma.done.wait (%p17621_p4), [#allocation81], 80  }
 0x528   : > { %20101 = vsyncadd (%p17621_p4), [#allocation81], 4294967216 }
 0x529   : > { %20103 = dma.done.wait (%p17621_p4), [#allocation84], 80  }
 0x52a   : > { %20105 = vsyncadd (%p17621_p4), [#allocation84], 4294967216 }
 0x52b   : > { %20107 = dma.done.wait (%p17621_p4), [#allocation87], 1040  }
 0x52c   : > { %20109 = vsyncadd (%p17621_p4), [#allocation87], 4294966256 }
 0x52d   : > { %20111 = dma.done.wait (%p17621_p4), [#allocation90], 2048  }
 0x52e   : > { %20113 = vsyncadd (%p17621_p4), [#allocation90], 4294965248 }
 0x52f   : > { %20115 = dma.done.wait (%p17621_p4), [#allocation93], 128  }
 0x530   : > { %20117 = vsyncadd (%p17621_p4), [#allocation93], 4294967168 }
 0x531   : > { %20119 = dma.done.wait (%p17621_p4), [#allocation96], 128  }
 0x532   : > { %20121 = vsyncadd (%p17621_p4), [#allocation96], 4294967168 }
 0x533   : > { %20123 = dma.done.wait (%p17621_p4), [#allocation99], 128  }
 0x534   : > { %20125 = vsyncadd (%p17621_p4), [#allocation99], 4294967168 }
 0x535   : > { %20127 = dma.done.wait (%p17621_p4), [#allocation102], 1088  }
 0x536   : > { %20129 = vsyncadd (%p17621_p4), [#allocation102], 4294966208 }
 0x537   : > { %20131 = dma.done.wait (%p17621_p4), [#allocation105], 80  }
 0x538   : > { %20133 = vsyncadd (%p17621_p4), [#allocation105], 4294967216 }
 0x539   : > { %20135 = dma.done.wait (%p17621_p4), [#allocation108], 2048  }
 0x53a   : > { %20137 = vsyncadd (%p17621_p4), [#allocation108], 4294965248 }
 0x53b   : > { %20139 = dma.done.wait (%p17621_p4), [#allocation111], 2048  }
 0x53c   : > { %20141 = vsyncadd (%p17621_p4), [#allocation111], 4294965248 }
 0x53d   : > { %20143 = dma.done.wait (%p17621_p4), [#allocation114], 256  }
 0x53e   : > { %20145 = vsyncadd (%p17621_p4), [#allocation114], 4294967040 }
 0x53f   : > { %20147 = dma.done.wait (%p17621_p4), [#allocation117], 1040  }
 0x540   : > { %20149 = vsyncadd (%p17621_p4), [#allocation117], 4294966256 }
 0x541   : > { %20151 = dma.done.wait (%p17621_p4), [#allocation120], 1040  }
 0x542   : > { %20153 = vsyncadd (%p17621_p4), [#allocation120], 4294966256 }
 0x543   : > { %20155 = dma.done.wait (%p17621_p4), [#allocation123], 288  }
 0x544   : > { %20157 = vsyncadd (%p17621_p4), [#allocation123], 4294967008 }
 0x545   : > { %20159 = dma.done.wait (%p17621_p4), [#allocation126], 512  }
 0x546   : > { %20161 = vsyncadd (%p17621_p4), [#allocation126], 4294966784  ;;  %s23677_s2 = sld [smem:[#allocation172_spill]]  ;;  %p4909_p10 = scmp.lt.s32.totalorder %s21100_s15, 1  ;;  %vm5660_vm0 = vcmask 130048   ;;  %v5652_v2 = vld [vmem:[#allocation124] sm:$0xff] }
 0x547   : > { %s23678_s26 = sld [smem:[#allocation289_spill]]  ;;  %15697 = vmatprep.mubr.msk.f32.mxu0 %vm5660_vm0, %v5652_v2  ;;  %v5653_v3 = vld [vmem:[#allocation124 + $0x8] sm:$0xff]  ;;  %v5654_v6 = vld [vmem:[#allocation125] sm:$0xff]  ;;  %v5655_v9 = vld [vmem:[#allocation125 + $0x8] sm:$0xff]  ;;  %v20400_v26 = vmov 0.0   ;;  %vm5742_vm1 = vcmask 392192  }
 0x548   : > { %s4910_s23 = scalar_select %p4909_p10, %s21100_s15, 1  ;;  %5813 = vmatprep.mubr.f32.mxu1 %v20400_v26  ;;  %v5656_v35 = vld [vmem:[#allocation127] sm:$0xff]  ;;  %v5657_v37 = vld [vmem:[#allocation127 + $0x8] sm:$0xff]  ;;  %vm6181_vm2 = vcmask 523264   ;;  %vm20402_vm3 = vmmov 0   ;;  %vm10183_vm4 = vcmask 64512  }
 0x549   : > { %s23679_s18 = sld [smem:[#allocation290_spill]]  ;;  %vm12870_vm5 = vcmask 1043456   ;;  %vm12866_vm6 = vcmask 31744   ;;  %vm13541_vm7 = vcmask 76800   ;;  %vm13631_vm8 = vcmask 73728   ;;  %p23760_p11 = scmp.ne.s32.totalorder %s23597_s28, 0 }
 0x54a   : > { %s14949_s8 = sshll.u32 %s4910_s23, 4  ;;  %s23680_s22 = sld [smem:[#allocation291_spill]] }
 0x54b   : > { %s23681_s10 = sld [smem:[#allocation200_spill]] }
 0x54c   : > { %s4913_s16 = scalar_lea.vmem %s23677_s2, %s14949_s8  ;;  %s23683_s0 = sld [smem:[#allocation201_spill]] }
 0x54d   : > { %v21819_v0 = vld [vmem:[%s4913_s16 + $0x8] sm:$0xff]  ;;  %v21821_v1 = vld [vmem:[%s4913_s16] sm:$0xff]  ;;  %v5626_v4 = vld [vmem:[%s23678_s26 + $0x58] sm:$0xff]  ;;  %s23685_s5 = sld [smem:[#allocation175_spill]] }
 0x54e   : > { %15693 = vmatprep.subr.mxu0 %v21819_v0  ;;  %v5625_v5 = vld [vmem:[%s23678_s26 + $0x50] sm:$0xff]  ;;  %5769 = vmatprep.subr.mxu1 %v5626_v4  ;;  %v5624_v7 = vld [vmem:[%s23678_s26 + $0x48] sm:$0xff]  ;;  %v5623_v8 = vld [vmem:[%s23678_s26 + $0x40] sm:$0xff]  ;;  %s23686_s1 = sld [smem:[#allocation181_spill]] }
 0x54f   : > { %15694 = vmatpush3.msra.mxu0 %v21819_v0  ;;  %5770 = vmatpush1.msra.mxu1 %v5625_v5  ;;  %v5622_v10 = vld [vmem:[%s23678_s26 + $0x38] sm:$0xff]  ;;  %v5621_v12 = vld [vmem:[%s23678_s26 + $0x30] sm:$0xff]  ;;  %v5620_v14 = vld [vmem:[%s23678_s26 + $0x28] sm:$0xff]  ;;  %s23687_s2 = sld [smem:[#allocation182_spill]] }
 0x550   : > { %15695 = vmatprep.subr.mxu0 %v21821_v1  ;;  %5771 = vmatprep.subr.mxu1 %v5624_v7  ;;  %v5638_v11 = vld [vmem:[%s23679_s18 + $0x58] sm:$0xff]  ;;  %v5637_v13 = vld [vmem:[%s23679_s18 + $0x50] sm:$0xff]  ;;  %v5636_v15 = vld [vmem:[%s23679_s18 + $0x48] sm:$0xff]  ;;  %s23688_s23 = sld [smem:[#allocation176_spill]] }
 0x551   : > { %15696 = vmatpush3.msra.mxu0 %v21821_v1  ;;  %5772 = vmatpush1.msra.mxu1 %v5623_v8  ;;  %v5619_v16 = vld [vmem:[%s23678_s26 + $0x20] sm:$0xff]  ;;  %v5618_v18 = vld [vmem:[%s23678_s26 + $0x18] sm:$0xff]  ;;  %v5617_v20 = vld [vmem:[%s23678_s26 + $0x10] sm:$0xff]  ;;  %s23682_s4 = smov %s23681_s10  ;;  %s23689_s8 = sld [smem:[#allocation177_spill]] }
 0x552   : > { %15698 = vmatmul.mubr.msk.f32.vlgmr.msra.gmra.mxu0 %vm5660_vm0, %v5653_v3  ;;  %15700 = vmatprep.subr.mxu0 %v21819_v0  ;;  %v5635_v17 = vld [vmem:[%s23679_s18 + $0x40] sm:$0xff]  ;;  %v5634_v19 = vld [vmem:[%s23679_s18 + $0x38] sm:$0xff]  ;;  %v5633_v21 = vld [vmem:[%s23679_s18 + $0x30] sm:$0xff]  ;;  %s23684_s13 = smov %s23683_s0  ;;  %s23690_s16 = sld [smem:[#allocation178_spill]] }
 0x553   : > { %15701 = vmatpush3.msra.mxu0 %v21819_v0  ;;  %15704 = vmatprep.mubr.msk.f32.mxu0 %vm5660_vm0, %v5654_v6  ;;  %v5616_v22 = vld [vmem:[%s23678_s26 + $0x8] sm:$0xff]  ;;  %v5615_v24 = vld [vmem:[%s23678_s26] sm:$0xff]  ;;  %v5630_v27 = vld [vmem:[%s23679_s18 + $0x18] sm:$0xff]  ;;  %s23717_s6 = sld [smem:[#allocation248_spill]] }
 0x554   : > { %15702 = vmatprep.subr.mxu0 %v21821_v1  ;;  %5773 = vmatprep.subr.mxu1 %v5622_v10  ;;  %v5632_v23 = vld [vmem:[%s23679_s18 + $0x28] sm:$0xff]  ;;  %v5631_v25 = vld [vmem:[%s23679_s18 + $0x20] sm:$0xff]  ;;  %v5629_v28 = vld [vmem:[%s23679_s18 + $0x10] sm:$0xff] }
 0x555   : > { %15703 = vmatpush3.msra.mxu0 %v21821_v1  ;;  %5774 = vmatpush1.msra.mxu1 %v5621_v12  ;;  %v5628_v29 = vld [vmem:[%s23679_s18 + $0x8] sm:$0xff]  ;;  %v5627_v30 = vld [vmem:[%s23679_s18] sm:$0xff]  ;;  %v5650_v31 = vld [vmem:[%s23680_s22 + $0x58] sm:$0xff] }
 0x556   : > { %15705 = vmatmul.mubr.msk.f32.vlgmr.msra.gmra.mxu0 %vm5660_vm0, %v5655_v9  ;;  %5948 = vmatprep.subr.mxu0 %v5638_v11  ;;  %v5649_v38 = vld [vmem:[%s23680_s22 + $0x50] sm:$0xff]  ;;  %v5648_v39 = vld [vmem:[%s23680_s22 + $0x48] sm:$0xff]  ;;  %v5647_v40 = vld [vmem:[%s23680_s22 + $0x40] sm:$0xff] }
 0x557   : > { %5949 = vmatpush1.msra.mxu0 %v5637_v13  ;;  %5775 = vmatprep.subr.mxu1 %v5620_v14  ;;  %v5646_v41 = vld [vmem:[%s23680_s22 + $0x38] sm:$0xff]  ;;  %v5645_v42 = vld [vmem:[%s23680_s22 + $0x30] sm:$0xff]  ;;  %v5644_v43 = vld [vmem:[%s23680_s22 + $0x28] sm:$0xff] }
 0x558   : > { %5950 = vmatprep.subr.mxu0 %v5636_v15  ;;  %5776 = vmatpush1.msra.mxu1 %v5619_v16  ;;  %v5643_v44 = vld [vmem:[%s23680_s22 + $0x20] sm:$0xff]  ;;  %v5642_v45 = vld [vmem:[%s23680_s22 + $0x18] sm:$0xff]  ;;  %v5641_v46 = vld [vmem:[%s23680_s22 + $0x10] sm:$0xff] }
 0x559   : > { %5951 = vmatpush1.msra.mxu0 %v5635_v17  ;;  %5777 = vmatprep.subr.mxu1 %v5618_v18  ;;  %v5640_v47 = vld [vmem:[%s23680_s22 + $0x8] sm:$0xff]  ;;  %v5639_v48 = vld [vmem:[%s23680_s22] sm:$0xff]  ;;  %v5066_v49 = vld [vmem:[%s23681_s10 + $0x78] sm:$0xff]  ;;  %s23691_s10 = sld [smem:[#allocation179_spill]] }
 0x55a   : > { %5952 = vmatprep.subr.mxu0 %v5634_v19  ;;  %5778 = vmatpush1.msra.mxu1 %v5617_v20  ;;  %v5065_v50 = vld [vmem:[%s23682_s4 + $0x70] sm:$0xff]  ;;  %v5064_v51 = vld [vmem:[%s23682_s4 + $0x68] sm:$0xff]  ;;  %v5063_v52 = vld [vmem:[%s23682_s4 + $0x60] sm:$0xff] }
 0x55b   : > { %5953 = vmatpush1.msra.mxu0 %v5633_v21  ;;  %5779 = vmatprep.subr.mxu1 %v5616_v22  ;;  %v5062_v53 = vld [vmem:[%s23682_s4 + $0x58] sm:$0xff]  ;;  %v5061_v54 = vld [vmem:[%s23682_s4 + $0x50] sm:$0xff]  ;;  %v5060_v55 = vld [vmem:[%s23682_s4 + $0x48] sm:$0xff] }
 0x55c   : > { %5954 = vmatprep.subr.mxu0 %v5632_v23  ;;  %5780 = vmatpush1.msra.mxu1 %v5615_v24  ;;  %v5059_v56 = vld [vmem:[%s23682_s4 + $0x40] sm:$0xff]  ;;  %v5058_v57 = vld [vmem:[%s23682_s4 + $0x38] sm:$0xff]  ;;  %v5057_v58 = vld [vmem:[%s23682_s4 + $0x30] sm:$0xff] }
 0x55d   : > { %5955 = vmatpush1.msra.mxu0 %v5631_v25  ;;  %5992 = vmatprep.mubr.f32.mxu0 %v20400_v26  ;;  %v5056_v59 = vld [vmem:[%s23682_s4 + $0x28] sm:$0xff]  ;;  %v5055_v60 = vld [vmem:[%s23682_s4 + $0x20] sm:$0xff]  ;;  %v5054_v61 = vld [vmem:[%s23682_s4 + $0x18] sm:$0xff] }
 0x55e   : > { %5956 = vmatprep.subr.mxu0 %v5630_v27  ;;  %15707 = vmatprep.subr.mxu1 %v21819_v0  ;;  %v5053_v62 = vld [vmem:[%s23682_s4 + $0x10] sm:$0xff]  ;;  %v5052_v63 = vld [vmem:[%s23682_s4 + $0x8] sm:$0xff]  ;;  %v5071_v4 = vld [vmem:[%s23682_s4 + $0xa0] sm:$0xff] }
 0x55f   : > { %5957 = vmatpush1.msra.mxu0 %v5629_v28  ;;  %v5073_v2 = vld [vmem:[%s23682_s4 + $0xb0] sm:$0xff]  ;;  %v5072_v3 = vld [vmem:[%s23682_s4 + $0xa8] sm:$0xff]  ;;  %v5091_v10 = vld [vmem:[%s23683_s0 + $0x78] sm:$0xff]  ;;  %s23693_s0 = sld [smem:[#allocation180_spill]] }
 0x560   : > { %5958 = vmatprep.subr.mxu0 %v5628_v29  ;;  %v5090_v12 = vld [vmem:[%s23684_s13 + $0x70] sm:$0xff]  ;;  %v5089_v13 = vld [vmem:[%s23684_s13 + $0x68] sm:$0xff]  ;;  %v5088_v14 = vld [vmem:[%s23684_s13 + $0x60] sm:$0xff] }
 0x561   : > { %5959 = vmatpush1.msra.mxu0 %v5627_v30  ;;  %v5087_v15 = vld [vmem:[%s23684_s13 + $0x58] sm:$0xff]  ;;  %v5086_v16 = vld [vmem:[%s23684_s13 + $0x50] sm:$0xff]  ;;  %v5085_v17 = vld [vmem:[%s23684_s13 + $0x48] sm:$0xff] }
 0x562   : > { %6116 = vmatprep.subr.mxu0 %v5650_v31  ;;  %v5084_v18 = vld [vmem:[%s23684_s13 + $0x40] sm:$0xff]  ;;  %v5083_v19 = vld [vmem:[%s23684_s13 + $0x38] sm:$0xff]  ;;  %v5082_v20 = vld [vmem:[%s23684_s13 + $0x30] sm:$0xff] }
 0x563   : > { %v5081_v21 = vld [vmem:[%s23684_s13 + $0x28] sm:$0xff]  ;;  %v5080_v22 = vld [vmem:[%s23684_s13 + $0x20] sm:$0xff]  ;;  %v5079_v23 = vld [vmem:[%s23684_s13 + $0x18] sm:$0xff] }
 0x564   : > { %v5078_v24 = vld [vmem:[%s23684_s13 + $0x10] sm:$0xff]  ;;  %v5077_v25 = vld [vmem:[%s23684_s13 + $0x8] sm:$0xff]  ;;  %v5076_v27 = vld [vmem:[%s23684_s13] sm:$0xff] }
 0x565   : > { %v5099_v28 = vld [vmem:[%s23684_s13 + $0xb8] sm:$0xff]  ;;  %v5098_v29 = vld [vmem:[%s23684_s13 + $0xb0] sm:$0xff]  ;;  %v5097_v30 = vld [vmem:[%s23684_s13 + $0xa8] sm:$0xff] }
 0x566   : > { %v5096_v31 = vld [vmem:[%s23684_s13 + $0xa0] sm:$0xff] }
 0x612   : > { %v15699_v32 = vpop.f32.mrf.mxu0 }
 0x614   : > { %v5733_v33 = vpop.f32.mrf.mxu0 }
 0x615   : > { %14799 = vmatmul.mubr.msk.f32.vlgmr.msra.gmra.mxu1 %vm5742_vm1, %v5733_v33  ;;  %v5095_v33 = vld [vmem:[%s23684_s13 + $0x98] sm:$0xff] }
 0x616   : > { %v15706_v34 = vpop.f32.mrf.mxu0  ;;  %5819 = vmatprep.mubr.f32.mxu1 %v20400_v26  ;;  %15708 = vmatpush3.msra.mxu1 %v21819_v0  ;;  %v5051_v0 = vld [vmem:[%s23682_s4] sm:$0xff] }
 0x617   : > { %15709 = vmatprep.subr.mxu1 %v21821_v1 }
 0x618   : > { %v5913_v36 = vpop.f32.mrf.mxu0  ;;  %15710 = vmatpush3.msra.mxu1 %v21821_v1  ;;  %v5074_v1 = vld [vmem:[%s23682_s4 + $0xb8] sm:$0xff] }
 0x619   : > { %14800 = vmatmul.mubr.msk.f32.gmra.mxu1 %vm5742_vm1, %v15699_v32  ;;  %14803 = vmatmul.mubr.msk.f32.vlgmr.msra.gmra.mxu0 %vm5742_vm1, %v5913_v36  ;;  %v5070_v32 = vld [vmem:[%s23682_s4 + $0x98] sm:$0xff]  ;;  %v5068_v36 = vld [vmem:[%s23682_s4 + $0x88] sm:$0xff] }
 0x61a   : > { %5998 = vmatprep.mubr.f32.mxu0 %v20400_v26  ;;  %15711 = vmatprep.mubr.msk.f32.mxu1 %vm5660_vm0, %v5656_v35  ;;  %v5094_v35 = vld [vmem:[%s23684_s13 + $0x90] sm:$0xff] }
 0x61b   : > { %6188 = vmatprep.subr.mxu1 %v20400_v26  ;;  %6117 = vmatpush1.msra.mxu0 %v5649_v38  ;;  %v5067_v38 = vld [vmem:[%s23682_s4 + $0x80] sm:$0xff] }
 0x61c   : > { %6118 = vmatprep.subr.mxu0 %v5648_v39  ;;  %v5092_v39 = vld [vmem:[%s23684_s13 + $0x80] sm:$0xff] }
 0x61d   : > { %14804 = vmatmul.mubr.msk.f32.gmra.mxu0 %vm5742_vm1, %v15706_v34  ;;  %15712 = vmatmul.mubr.msk.f32.vlgmr.msra.gmra.mxu1 %vm5660_vm0, %v5657_v37  ;;  %v5069_v34 = vld [vmem:[%s23682_s4 + $0x90] sm:$0xff]  ;;  %v5093_v37 = vld [vmem:[%s23684_s13 + $0x88] sm:$0xff] }
 0x61e   : > { %6160 = vmatprep.mubr.f32.mxu0 %v20400_v26  ;;  %6119 = vmatpush1.msra.mxu0 %v5647_v40  ;;  %v4923_v40 = vld [vmem:[%s23685_s5 + $0x38] sm:$0xff] }
 0x61f   : > { %6120 = vmatprep.subr.mxu0 %v5646_v41  ;;  %6189 = vmatpush1.msra.mxu1 %v5066_v49  ;;  %v5827_v41 = vlaneseq }
 0x620   : > { %6121 = vmatpush1.msra.mxu0 %v5645_v42  ;;  %6190 = vmatprep.subr.mxu1 %v20400_v26 }
 0x621   : > { %6122 = vmatprep.subr.mxu0 %v5644_v43  ;;  %6191 = vmatpush1.msra.mxu1 %v5065_v50  ;;  %v5828_v42 = vshrl.u32 %v5827_v41, 7  ;;  %v4925_v41 = vld [vmem:[%s23688_s23 + $0x8] sm:$0xff] }
 0x622   : > { %6123 = vmatpush1.msra.mxu0 %v5643_v44  ;;  %6192 = vmatprep.subr.mxu1 %v20400_v26 }
 0x623   : > { %6124 = vmatprep.subr.mxu0 %v5642_v45  ;;  %6193 = vmatpush1.msra.mxu1 %v5064_v51  ;;  %v5829_v44 = vsub.s32 0, %v5828_v42 }
 0x624   : > { %6125 = vmatpush1.msra.mxu0 %v5641_v46  ;;  %6194 = vmatprep.subr.mxu1 %v20400_v26  ;;  %v5651_v46 = vld [vmem:[#allocation122] sm:$0x3] }
 0x625   : > { %6126 = vmatprep.subr.mxu0 %v5640_v47  ;;  %6195 = vmatpush1.msra.mxu1 %v5063_v52  ;;  %v5833_v47 = vsub.s32 1, %v5828_v42  ;;  %v4924_v42 = vld [vmem:[%s23688_s23] sm:$0xff] }
 0x626   : > { %6127 = vmatpush1.msra.mxu0 %v5639_v48  ;;  %6196 = vmatprep.subr.mxu1 %v20400_v26  ;;  %v5830_v48 = vrot.slane %v5651_v46, %v5829_v44 }
 0x627   : > { %6271 = vmatprep.subr.mxu0 %v20400_v26  ;;  %6197 = vmatpush1.msra.mxu1 %v5062_v53  ;;  %v5834_v50 = vrot.slane %v5651_v46, %v5833_v47  ;;  %v4969_v47 = vld [vmem:[#allocation7 + $0x8] sm:$0xff] }
 0x628   : > { %6198 = vmatprep.subr.mxu1 %v20400_v26 }
 0x629   : > { %6199 = vmatpush1.msra.mxu1 %v5061_v54 }
 0x62a   : > { %6200 = vmatprep.subr.mxu1 %v20400_v26 }
 0x62b   : > { %6201 = vmatpush1.msra.mxu1 %v5060_v55 }
 0x62c   : > { %6202 = vmatprep.subr.mxu1 %v20400_v26 }
 0x62d   : > { %6203 = vmatpush1.msra.mxu1 %v5059_v56 }
 0x62e   : > { %6204 = vmatprep.subr.mxu1 %v20400_v26 }
 0x62f   : > { %6205 = vmatpush1.msra.mxu1 %v5058_v57 }
 0x630   : > { %6206 = vmatprep.subr.mxu1 %v20400_v26 }
 0x631   : > { %6207 = vmatpush1.msra.mxu1 %v5057_v58 }
 0x632   : > { %6208 = vmatprep.subr.mxu1 %v20400_v26 }
 0x633   : > { %6209 = vmatpush1.msra.mxu1 %v5056_v59 }
 0x634   : > { %6210 = vmatprep.subr.mxu1 %v20400_v26 }
 0x635   : > { %6211 = vmatpush1.msra.mxu1 %v5055_v60 }
 0x636   : > { %6212 = vmatprep.subr.mxu1 %v20400_v26 }
 0x637   : > { %6213 = vmatpush1.msra.mxu1 %v5054_v61 }
 0x638   : > { %6214 = vmatprep.subr.mxu1 %v20400_v26 }
 0x639   : > { %6215 = vmatpush1.msra.mxu1 %v5053_v62 }
 0x63a   : > { %6216 = vmatprep.subr.mxu1 %v20400_v26 }
 0x63b   : > { %6217 = vmatpush1.msra.mxu1 %v5052_v63 }
 0x63c   : > { %6218 = vmatprep.subr.mxu1 %v20400_v26 }
 0x63d   : > { %6219 = vmatpush1.msra.mxu1 %v5051_v0 }
 0x63e   : > { %6236 = vmatprep.subr.mxu1 %v20400_v26 }
 0x63f   : > { %6237 = vmatpush2.msra.mxu1 %v5074_v1 }
 0x640   : > { %6238 = vmatprep.subr.mxu1 %v20400_v26 }
 0x641   : > { %6239 = vmatpush2.msra.mxu1 %v5073_v2 }
 0x642   : > { %6240 = vmatprep.subr.mxu1 %v20400_v26 }
 0x643   : > { %6241 = vmatpush2.msra.mxu1 %v5072_v3 }
 0x644   : > { %6242 = vmatprep.subr.mxu1 %v20400_v26 }
 0x645   : > { %6243 = vmatpush2.msra.mxu1 %v5071_v4 }
 0x646   : > { %6244 = vmatprep.subr.mxu1 %v20400_v26 }
 0x647   : > { %6245 = vmatpush2.msra.mxu1 %v5070_v32  ;;  %v4965_v32 = vld [vmem:[%s23686_s1 + $0x8] sm:$0xff] }
 0x648   : > { %6246 = vmatprep.subr.mxu1 %v20400_v26 }
 0x649   : > { %6247 = vmatpush2.msra.mxu1 %v5069_v34  ;;  %v4967_v34 = vld [vmem:[%s23687_s2 + $0x8] sm:$0xff] }
 0x64a   : > { %6248 = vmatprep.subr.mxu1 %v20400_v26 }
 0x64b   : > { %6249 = vmatpush2.msra.mxu1 %v5068_v36  ;;  %v4930_v36 = vld [vmem:[%s23688_s23 + $0x30] sm:$0xff] }
 0x64c   : > { %6250 = vmatprep.subr.mxu1 %v20400_v26 }
 0x64d   : > { %6251 = vmatpush2.msra.mxu1 %v5067_v38  ;;  %v4928_v38 = vld [vmem:[%s23688_s23 + $0x20] sm:$0xff] }
 0x64e   : > { %15721 = vmatprep.subr.mxu1 %v4923_v40 }
 0x6d5   : > { %v21928_v5 = vpop.f32.mrf.mxu1 }
 0x6d6   : > { %v5837_v51 = vadd.f32 %v5830_v48, %v21928_v5 }
 0x6d7   : > { %v21930_v6 = vpop.f32.mrf.mxu1 }
 0x6d8   : > { %v5838_v53 = vadd.f32 %v5834_v50, %v21930_v6  ;;  %v4922_v6 = vld [vmem:[%s23685_s5 + $0x30] sm:$0xff] }
 0x6d9   : > { %v21932_v7 = vpop.f32.mrf.mxu1  ;;  %v5994_v43 = vpop.f32.mrf.mxu0 }
 0x6da   : > { %v6005_v54 = vadd.f32 %v5994_v43, %v5837_v51  ;;  %v5839_v57 = vadd.f32 %v5830_v48, %v21932_v7  ;;  %v4937_v51 = vld [vmem:[%s23689_s8 + $0x28] sm:$0xff] }
 0x6db   : > { %v21934_v8 = vpop.f32.mrf.mxu1  ;;  %v5996_v45 = vpop.f32.mrf.mxu0 }
 0x6dc   : > { %v6006_v56 = vadd.f32 %v5996_v45, %v5838_v53  ;;  %v5840_v60 = vadd.f32 %v5834_v50, %v21934_v8  ;;  %v4968_v45 = vld [vmem:[#allocation7] sm:$0xff]  ;;  %v4938_v50 = vld [vmem:[%s23689_s8 + $0x30] sm:$0xff]  ;;  %v4935_v53 = vld [vmem:[%s23689_s8 + $0x18] sm:$0xff] }
 0x6dd   : > { %v15713_v9 = vpop.f32.mrf.mxu1  ;;  %v6000_v49 = vpop.f32.mrf.mxu0 }
 0x6de   : > { %v6007_v62 = vadd.f32 %v6000_v49, %v5839_v57  ;;  %v4939_v49 = vld [vmem:[%s23689_s8 + $0x38] sm:$0xff] }
 0x6df   : > { %v6081_v11 = vpop.f32.mrf.mxu1  ;;  %v6002_v52 = vpop.f32.mrf.mxu0 }
 0x6e0   : > { %14807 = vmatmul.mubr.msk.f32.vlgmr.msra.gmra.mxu0 %vm5742_vm1, %v6081_v11  ;;  %v6008_v0 = vadd.f32 %v6002_v52, %v5840_v60  ;;  %v4919_v11 = vld [vmem:[%s23685_s5 + $0x18] sm:$0xff]  ;;  %v4936_v52 = vld [vmem:[%s23689_s8 + $0x20] sm:$0xff] }
 0x6e1   : > { %6166 = vmatprep.mubr.f32.mxu0 %v20400_v26  ;;  %6272 = vmatpush1.msra.mxu0 %v5091_v10  ;;  %v4920_v10 = vld [vmem:[%s23685_s5 + $0x20] sm:$0xff] }
 0x6e2   : > { %6273 = vmatprep.subr.mxu0 %v20400_v26 }
 0x6e3   : > { %6274 = vmatpush1.msra.mxu0 %v5090_v12  ;;  %v4918_v12 = vld [vmem:[%s23685_s5 + $0x10] sm:$0xff] }
 0x6e4   : > { %14808 = vmatmul.mubr.msk.f32.gmra.mxu0 %vm5742_vm1, %v15713_v9  ;;  %6275 = vmatprep.subr.mxu0 %v20400_v26  ;;  %v4921_v9 = vld [vmem:[%s23685_s5 + $0x28] sm:$0xff] }
 0x6e5   : > { %6276 = vmatpush1.msra.mxu0 %v5089_v13  ;;  %v4917_v13 = vld [vmem:[%s23685_s5 + $0x8] sm:$0xff] }
 0x6e6   : > { %6277 = vmatprep.subr.mxu0 %v20400_v26 }
 0x6e7   : > { %6278 = vmatpush1.msra.mxu0 %v5088_v14  ;;  %v4916_v14 = vld [vmem:[%s23685_s5] sm:$0xff]  ;;  %s23716_s5 = sld [smem:[#allocation247_spill]] }
 0x6e8   : > { %6279 = vmatprep.subr.mxu0 %v20400_v26 }
 0x6e9   : > { %6280 = vmatpush1.msra.mxu0 %v5087_v15  ;;  %v4964_v15 = vld [vmem:[%s23686_s1] sm:$0xff]  ;;  %s23692_s1 = smov %s23691_s10 }
 0x6ea   : > { %6281 = vmatprep.subr.mxu0 %v20400_v26 }
 0x6eb   : > { %6282 = vmatpush1.msra.mxu0 %v5086_v16  ;;  %v22027_v16 = vld [vmem:[#allocation29] ss:$0 sm:$0xff] }
 0x6ec   : > { %6283 = vmatprep.subr.mxu0 %v20400_v26 }
 0x6ed   : > { %6284 = vmatpush1.msra.mxu0 %v5085_v17 }
 0x6ee   : > { %6285 = vmatprep.subr.mxu0 %v20400_v26 }
 0x6ef   : > { %6286 = vmatpush1.msra.mxu0 %v5084_v18 }
 0x6f0   : > { %6287 = vmatprep.subr.mxu0 %v20400_v26 }
 0x6f1   : > { %6288 = vmatpush1.msra.mxu0 %v5083_v19 }
 0x6f2   : > { %6289 = vmatprep.subr.mxu0 %v20400_v26 }
 0x6f3   : > { %6290 = vmatpush1.msra.mxu0 %v5082_v20  ;;  %v14811_v20 = vld [vmem:[#allocation28] ss:$0 sm:$0xff] }
 0x6f4   : > { %6291 = vmatprep.subr.mxu0 %v20400_v26 }
 0x6f5   : > { %6292 = vmatpush1.msra.mxu0 %v5081_v21 }
 0x6f6   : > { %6293 = vmatprep.subr.mxu0 %v20400_v26 }
 0x6f7   : > { %6294 = vmatpush1.msra.mxu0 %v5080_v22 }
 0x6f8   : > { %6295 = vmatprep.subr.mxu0 %v20400_v26 }
 0x6f9   : > { %6296 = vmatpush1.msra.mxu0 %v5079_v23 }
 0x6fa   : > { %6297 = vmatprep.subr.mxu0 %v20400_v26 }
 0x6fb   : > { %6298 = vmatpush1.msra.mxu0 %v5078_v24 }
 0x6fc   : > { %6299 = vmatprep.subr.mxu0 %v20400_v26 }
 0x6fd   : > { %6300 = vmatpush1.msra.mxu0 %v5077_v25 }
 0x6fe   : > { %6301 = vmatprep.subr.mxu0 %v20400_v26 }
 0x6ff   : > { %6302 = vmatpush1.msra.mxu0 %v5076_v27 }
 0x700   : > { %6319 = vmatprep.subr.mxu0 %v20400_v26 }
 0x701   : > { %6320 = vmatpush2.msra.mxu0 %v5099_v28 }
 0x702   : > { %6321 = vmatprep.subr.mxu0 %v20400_v26 }
 0x703   : > { %6322 = vmatpush2.msra.mxu0 %v5098_v29 }
 0x704   : > { %6323 = vmatprep.subr.mxu0 %v20400_v26 }
 0x705   : > { %6324 = vmatpush2.msra.mxu0 %v5097_v30 }
 0x706   : > { %6325 = vmatprep.subr.mxu0 %v20400_v26 }
 0x707   : > { %6326 = vmatpush2.msra.mxu0 %v5096_v31 }
 0x708   : > { %6327 = vmatprep.subr.mxu0 %v20400_v26 }
 0x709   : > { %6328 = vmatpush2.msra.mxu0 %v5095_v33  ;;  %v4966_v33 = vld [vmem:[%s23687_s2] sm:$0xff]  ;;  %s23694_s2 = smov %s23693_s0 }
 0x70a   : > { %6329 = vmatprep.subr.mxu0 %v20400_v26 }
 0x70b   : > { %6330 = vmatpush2.msra.mxu0 %v5094_v35  ;;  %v4931_v35 = vld [vmem:[%s23688_s23 + $0x38] sm:$0xff] }
 0x70c   : > { %6331 = vmatprep.subr.mxu0 %v20400_v26 }
 0x70d   : > { %6332 = vmatpush2.msra.mxu0 %v5093_v37  ;;  %v4929_v37 = vld [vmem:[%s23688_s23 + $0x28] sm:$0xff] }
 0x70e   : > { %6333 = vmatprep.subr.mxu0 %v20400_v26 }
 0x70f   : > { %6334 = vmatpush2.msra.mxu0 %v5092_v39  ;;  %v4927_v39 = vld [vmem:[%s23688_s23 + $0x18] sm:$0xff] }
 0x7a0   : > { %v6162_v55 = vpop.f32.mrf.mxu0 }
 0x7a1   : > { %v6173_v58 = vadd.f32 %v6162_v55, %v6005_v54  ;;  %v4934_v54 = vld [vmem:[%s23689_s8 + $0x10] sm:$0xff]  ;;  %v4933_v55 = vld [vmem:[%s23689_s8 + $0x8] sm:$0xff] }
 0x7a2   : > { %v6164_v59 = vpop.f32.mrf.mxu0 }
 0x7a3   : > { %v6174_v61 = vadd.f32 %v6164_v59, %v6006_v56  ;;  %v22000_v2 = vmax.f32 %v6173_v58, 0.0  ;;  %v4932_v56 = vld [vmem:[%s23689_s8] sm:$0xff]  ;;  %s23718_s8 = sld [smem:[#allocation249_spill]] }
 0x7a4   : > { %v6168_v63 = vpop.f32.mrf.mxu0 }
 0x7a5   : > { %v21998_v1 = vmax.f32 %v6174_v61, 0.0  ;;  %v6175_v3 = vadd.f32 %v6168_v63, %v6007_v62  ;;  %v4970_v61 = vld [vmem:[#allocation8] sm:$0xff]  ;;  %v4972_v62 = vld [vmem:[#allocation10] sm:$0xff]  ;;  %v14819_v63 = vld [vmem:[#allocation2] ss:$0 sm:$0xff] }
 0x7a6   : > { %v6170_v4 = vpop.f32.mrf.mxu0 }
 0x7a7   : > { %v6176_v5 = vadd.f32 %v6170_v4, %v6008_v0  ;;  %14809 = vmatprep.mubr.msk.f32.mxu1 %vm6181_vm2, %v21998_v1  ;;  %14812 = vmatprep.mubr.msk.f32.mxu0 %vm6181_vm2, %v21998_v1  ;;  %v22011_v8 = vmax.f32 %v6175_v3, 0.0 }
 0x7a8   : > { %6253 = vmatmul.mubr.f32.vlgmr.msra.gmra.mxu1 %v22000_v2  ;;  %6336 = vmatmul.mubr.f32.vlgmr.msra.gmra.mxu0 %v22000_v2 }
 0x7a9   : > { %v22009_v7 = vmax.f32 %v6176_v5, 0.0  ;;  %15722 = vmatpush3.msra.mxu1 %v4923_v40  ;;  %v4926_v40 = vld [vmem:[%s23688_s23 + $0x10] sm:$0xff] }
 0x7aa   : > { %15723 = vmatprep.subr.mxu1 %v4922_v6 }
 0x7ab   : > { %14810 = vmatprep.mubr.msk.f32.mxu1 %vm6181_vm2, %v22009_v7  ;;  %14813 = vmatprep.mubr.msk.f32.mxu0 %vm6181_vm2, %v22009_v7 }
 0x7ac   : > { %6258 = vmatmul.mubr.f32.gmra.mxu1 %v22011_v8  ;;  %6341 = vmatmul.mubr.f32.gmra.mxu0 %v22011_v8 }
 0x7ad   : > { %15724 = vmatpush3.msra.mxu1 %v4922_v6  ;;  %15718 = vmatprep.mubr.msk.f32.mxu0 %vm5660_vm0, %v4964_v15 }
 0x7ae   : > { %15725 = vmatprep.subr.mxu1 %v4921_v9 }
 0x7af   : > { %15726 = vmatpush3.msra.mxu1 %v4921_v9 }
 0x7b0   : > { %15727 = vmatprep.subr.mxu1 %v4920_v10 }
 0x7b1   : > { %15728 = vmatpush3.msra.mxu1 %v4920_v10 }
 0x7b2   : > { %15729 = vmatprep.subr.mxu1 %v4919_v11 }
 0x7b3   : > { %15730 = vmatpush3.msra.mxu1 %v4919_v11 }
 0x7b4   : > { %15731 = vmatprep.subr.mxu1 %v4918_v12 }
 0x7b5   : > { %15732 = vmatpush3.msra.mxu1 %v4918_v12 }
 0x7b6   : > { %15733 = vmatprep.subr.mxu1 %v4917_v13 }
 0x7b7   : > { %15734 = vmatpush3.msra.mxu1 %v4917_v13 }
 0x7b8   : > { %15735 = vmatprep.subr.mxu1 %v4916_v14 }
 0x7b9   : > { %15736 = vmatpush3.msra.mxu1 %v4916_v14 }
 0x868   : > { %v6254_v17 = vpop.f32.mrf.mxu1  ;;  %v6337_v18 = vpop.f32.mrf.mxu0 }
 0x869   : > { %v22030_v19 = vadd.f32 %v22027_v16, %v6337_v18  ;;  %v22034_v25 = vadd.f32 %v14811_v20, %v6254_v17  ;;  %v4971_v17 = vld [vmem:[#allocation8 + $0x8] sm:$0xff] }
 0x86a   : > { %v6256_v21 = vpop.f32.mrf.mxu1  ;;  %v6339_v22 = vpop.f32.mrf.mxu0  ;;  %v4947_v18 = vld [vmem:[%s23690_s16 + $0x38] sm:$0xff] }
 0x86b   : > { %v6354_v31 = vmax.f32 %v22034_v25, 0.0  ;;  %v4955_v21 = vld [vmem:[%s23691_s10 + $0x38] sm:$0xff]  ;;  %v4946_v22 = vld [vmem:[%s23690_s16 + $0x30] sm:$0xff]  ;;  %s23695_s10 = sld [smem:[#allocation187_spill]] }
 0x86c   : > { %v6259_v23 = vpop.f32.mrf.mxu1  ;;  %v22032_v24 = vpop.f32.mrf.mxu0 }
 0x86d   : > { %v22036_v27 = vadd.f32 %v14811_v20, %v6259_v23  ;;  %v4973_v20 = vld [vmem:[#allocation10 + $0x8] sm:$0xff] }
 0x86e   : > { %v6261_v28 = vpop.f32.mrf.mxu1  ;;  %v6344_v29 = vpop.f32.mrf.mxu0  ;;  %v4954_v23 = vld [vmem:[%s23692_s1 + $0x30] sm:$0xff] }
 0x86f   : > { %v6355_v30 = vmax.f32 %v22036_v27, 0.0  ;;  %v4945_v28 = vld [vmem:[%s23690_s16 + $0x28] sm:$0xff] }
 0x870   : > { %v4953_v29 = vld [vmem:[%s23692_s1 + $0x28] sm:$0xff] }
 0x871   : > { %15714 = vmatprep.subr.mxu0 %v6355_v30  ;;  %15766 = vmatprep.subr.mxu1 %v6355_v30  ;;  %s23696_s4 = smov %s23695_s10 }
 0x872   : > { %15715 = vmatpush3.msra.mxu0 %v6355_v30 }
 0x873   : > { %15716 = vmatprep.subr.mxu0 %v6354_v31 }
 0x874   : > { %15717 = vmatpush3.msra.mxu0 %v6354_v31 }
 0x875   : > { %15719 = vmatmul.mubr.msk.f32.vlgmr.msra.gmra.mxu0 %vm5660_vm0, %v4965_v32  ;;  %15740 = vmatprep.subr.mxu0 %v6355_v30  ;;  %v4943_v32 = vld [vmem:[%s23690_s16 + $0x18] sm:$0xff] }
 0x876   : > { %15741 = vmatpush3.msra.mxu0 %v6355_v30  ;;  %15744 = vmatprep.mubr.msk.f32.mxu0 %vm5660_vm0, %v4966_v33  ;;  %v4951_v33 = vld [vmem:[%s23692_s1 + $0x18] sm:$0xff] }
 0x877   : > { %15742 = vmatprep.subr.mxu0 %v6354_v31 }
 0x878   : > { %15743 = vmatpush3.msra.mxu0 %v6354_v31 }
 0x879   : > { %15745 = vmatmul.mubr.msk.f32.vlgmr.msra.gmra.mxu0 %vm5660_vm0, %v4967_v34  ;;  %15747 = vmatprep.subr.mxu0 %v4931_v35  ;;  %v4942_v34 = vld [vmem:[%s23690_s16 + $0x10] sm:$0xff] }
 0x87a   : > { %15748 = vmatpush3.msra.mxu0 %v4931_v35  ;;  %v4950_v35 = vld [vmem:[%s23692_s1 + $0x10] sm:$0xff] }
 0x87b   : > { %15749 = vmatprep.subr.mxu0 %v4930_v36 }
 0x87c   : > { %15750 = vmatpush3.msra.mxu0 %v4930_v36  ;;  %v4941_v36 = vld [vmem:[%s23690_s16 + $0x8] sm:$0xff] }
 0x87d   : > { %15751 = vmatprep.subr.mxu0 %v4929_v37 }
 0x87e   : > { %15752 = vmatpush3.msra.mxu0 %v4929_v37  ;;  %v4949_v37 = vld [vmem:[%s23692_s1 + $0x8] sm:$0xff] }
 0x87f   : > { %15753 = vmatprep.subr.mxu0 %v4928_v38 }
 0x880   : > { %15754 = vmatpush3.msra.mxu0 %v4928_v38  ;;  %v22102_v38 = vadd.f32 %v22027_v16, %v22032_v24 }
 0x881   : > { %15755 = vmatprep.subr.mxu0 %v4927_v39 }
 0x882   : > { %15756 = vmatpush3.msra.mxu0 %v4927_v39  ;;  %v4940_v39 = vld [vmem:[%s23690_s16] sm:$0xff] }
 0x883   : > { %15757 = vmatprep.subr.mxu0 %v4926_v40 }
 0x884   : > { %15758 = vmatpush3.msra.mxu0 %v4926_v40  ;;  %v4948_v40 = vld [vmem:[%s23692_s1] sm:$0xff] }
 0x885   : > { %15759 = vmatprep.subr.mxu0 %v4925_v41 }
 0x886   : > { %15760 = vmatpush3.msra.mxu0 %v4925_v41  ;;  %v22107_v41 = vmax.f32 %v22102_v38, 0.0 }
 0x887   : > { %15761 = vmatprep.subr.mxu0 %v4924_v42 }
 0x888   : > { %15762 = vmatpush3.msra.mxu0 %v4924_v42 }
 0x935   : > { %v15720_v43 = vpop.f32.mrf.mxu0 }
 0x937   : > { %v6428_v44 = vpop.f32.mrf.mxu0 }
 0x938   : > { %15737 = vmatprep.mubr.msk.f32.mxu1 %vm6181_vm2, %v6428_v44  ;;  %v22115_v44 = vmax.f32 %v22030_v19, 0.0 }
 0x939   : > { %15738 = vmatmul.mubr.msk.f32.vlgmr.msra.gmra.mxu1 %vm6181_vm2, %v15720_v43  ;;  %v15746_v46 = vpop.f32.mrf.mxu0 }
 0x93a   : > { %15767 = vmatpush3.msra.mxu1 %v6355_v30  ;;  %15770 = vmatprep.mubr.msk.f32.mxu1 %vm5660_vm0, %v4968_v45  ;;  %v4944_v30 = vld [vmem:[%s23690_s16 + $0x20] sm:$0xff]  ;;  %v4974_v45 = vld [vmem:[#allocation11] sm:$0xff] }
 0x93b   : > { %15768 = vmatprep.subr.mxu1 %v6354_v31  ;;  %v6598_v48 = vpop.f32.mrf.mxu0 }
 0x93c   : > { %15769 = vmatpush3.msra.mxu1 %v6354_v31  ;;  %15763 = vmatprep.mubr.msk.f32.mxu0 %vm6181_vm2, %v6598_v48  ;;  %v4952_v31 = vld [vmem:[%s23692_s1 + $0x20] sm:$0xff]  ;;  %v4985_v48 = vld [vmem:[%s23695_s10 + $0x38] sm:$0xff]  ;;  %s23699_s10 = sld [smem:[#allocation189_spill]] }
 0x93d   : > { %15764 = vmatmul.mubr.msk.f32.vlgmr.msra.gmra.mxu0 %vm6181_vm2, %v15746_v46  ;;  %15771 = vmatmul.mubr.msk.f32.vlgmr.msra.gmra.mxu1 %vm5660_vm0, %v4969_v47  ;;  %v4963_v46 = vld [vmem:[%s23693_s0 + $0x38] sm:$0xff]  ;;  %v5026_v47 = vld [vmem:[#allocation16] sm:$0xff]  ;;  %s23697_s0 = sld [smem:[#allocation188_spill]] }
 0x93e   : > { %15773 = vmatprep.subr.mxu1 %v4939_v49  ;;  %15796 = vmatprep.mubr.msk.f32.mxu0 %vm5660_vm0, %v4970_v61  ;;  %v4957_v61 = vld [vmem:[%s23694_s2 + $0x8] sm:$0xff] }
 0x93f   : > { %15774 = vmatpush3.msra.mxu1 %v4939_v49  ;;  %v4975_v49 = vld [vmem:[#allocation11 + $0x8] sm:$0xff] }
 0x940   : > { %15775 = vmatprep.subr.mxu1 %v4938_v50 }
 0x941   : > { %15776 = vmatpush3.msra.mxu1 %v4938_v50  ;;  %v5027_v50 = vld [vmem:[#allocation16 + $0x8] sm:$0xff] }
 0x942   : > { %15777 = vmatprep.subr.mxu1 %v4937_v51 }
 0x943   : > { %15778 = vmatpush3.msra.mxu1 %v4937_v51  ;;  %v4962_v51 = vld [vmem:[%s23694_s2 + $0x30] sm:$0xff]  ;;  %s23698_s1 = smov %s23697_s0 }
 0x944   : > { %15779 = vmatprep.subr.mxu1 %v4936_v52 }
 0x945   : > { %15780 = vmatpush3.msra.mxu1 %v4936_v52  ;;  %v4984_v52 = vld [vmem:[%s23696_s4 + $0x30] sm:$0xff] }
 0x946   : > { %15781 = vmatprep.subr.mxu1 %v4935_v53 }
 0x947   : > { %15782 = vmatpush3.msra.mxu1 %v4935_v53  ;;  %v4961_v53 = vld [vmem:[%s23694_s2 + $0x28] sm:$0xff] }
 0x948   : > { %15783 = vmatprep.subr.mxu1 %v4934_v54 }
 0x949   : > { %15784 = vmatpush3.msra.mxu1 %v4934_v54  ;;  %v4983_v54 = vld [vmem:[%s23696_s4 + $0x28] sm:$0xff] }
 0x94a   : > { %15785 = vmatprep.subr.mxu1 %v4933_v55 }
 0x94b   : > { %15786 = vmatpush3.msra.mxu1 %v4933_v55  ;;  %v4960_v55 = vld [vmem:[%s23694_s2 + $0x20] sm:$0xff] }
 0x94c   : > { %15787 = vmatprep.subr.mxu1 %v4932_v56 }
 0x94d   : > { %15788 = vmatpush3.msra.mxu1 %v4932_v56  ;;  %v4982_v56 = vld [vmem:[%s23696_s4 + $0x20] sm:$0xff] }
 0x9f9   : > { %v15739_v57 = vpop.f32.mrf.mxu1 }
 0x9fa   : > { %v6525_v3 = vadd.f32 %v15739_v57, %v14819_v63  ;;  %v4959_v57 = vld [vmem:[%s23694_s2 + $0x18] sm:$0xff] }
 0x9fb   : > { %v6509_v58 = vpop.f32.mrf.mxu1 }
 0x9fc   : > { %v6524_v5 = vadd.f32 %v14819_v63, %v6509_v58  ;;  %v4981_v58 = vld [vmem:[%s23696_s4 + $0x18] sm:$0xff]  ;;  %v4956_v63 = vld [vmem:[%s23694_s2] sm:$0xff] }
 0x9fd   : > { %v15772_v59 = vpop.f32.mrf.mxu1  ;;  %v15765_v0 = vpop.f32.mrf.mxu0 }
 0x9fe   : > { %v6689_v6 = vadd.f32 %v15765_v0, %v6525_v3  ;;  %v4978_v0 = vld [vmem:[%s23696_s4] sm:$0xff] }
 0x9ff   : > { %v6762_v60 = vpop.f32.mrf.mxu1  ;;  %v6679_v4 = vpop.f32.mrf.mxu0  ;;  %v14832_v3 = vld [vmem:[#allocation5] ss:$0 sm:$0xff] }
 0xa00   : > { %15789 = vmatprep.mubr.msk.f32.mxu1 %vm6181_vm2, %v6762_v60  ;;  %v6688_v10 = vadd.f32 %v6679_v4, %v6524_v5  ;;  %v4980_v60 = vld [vmem:[%s23696_s4 + $0x10] sm:$0xff] }
 0xa01   : > { %15790 = vmatmul.mubr.msk.f32.vlgmr.msra.gmra.mxu1 %vm6181_vm2, %v15772_v59  ;;  %v4958_v59 = vld [vmem:[%s23694_s2 + $0x10] sm:$0xff]  ;;  %s23700_s2 = smov %s23699_s10 }
 0xa02   : > { %15822 = vmatprep.mubr.msk.f32.mxu1 %vm5660_vm0, %v4972_v62  ;;  %v4979_v62 = vld [vmem:[%s23696_s4 + $0x8] sm:$0xff] }
 0xac1   : > { %v15791_v9 = vpop.f32.mrf.mxu1 }
 0xac2   : > { %v6853_v11 = vadd.f32 %v15791_v9, %v6689_v6 }
 0xac3   : > { %v6843_v12 = vpop.f32.mrf.mxu1 }
 0xac4   : > { %v22072_v13 = vmax.f32 %v6853_v11, 0.0  ;;  %v6852_v14 = vadd.f32 %v6843_v12, %v6688_v10 }
 0xac6   : > { %v22074_v15 = vmax.f32 %v6852_v14, 0.0  ;;  %15792 = vmatprep.subr.mxu0 %v22072_v13  ;;  %15818 = vmatprep.subr.mxu1 %v22072_v13 }
 0xac7   : > { %15793 = vmatpush3.msra.mxu0 %v22072_v13  ;;  %15819 = vmatpush3.msra.mxu1 %v22072_v13 }
 0xac8   : > { %15794 = vmatprep.subr.mxu0 %v22074_v15  ;;  %15820 = vmatprep.subr.mxu1 %v22074_v15 }
 0xac9   : > { %15795 = vmatpush3.msra.mxu0 %v22074_v15  ;;  %15821 = vmatpush3.msra.mxu1 %v22074_v15 }
 0xaca   : > { %15797 = vmatmul.mubr.msk.f32.vlgmr.msra.gmra.mxu0 %vm5660_vm0, %v4971_v17  ;;  %15799 = vmatprep.subr.mxu0 %v4947_v18 }
 0xacb   : > { %15823 = vmatmul.mubr.msk.f32.vlgmr.msra.gmra.mxu1 %vm5660_vm0, %v4973_v20  ;;  %15825 = vmatprep.subr.mxu1 %v4955_v21  ;;  %v5028_v20 = vld [vmem:[#allocation17] sm:$0xff] }
 0xacc   : > { %15800 = vmatpush3.msra.mxu0 %v4947_v18  ;;  %15826 = vmatpush3.msra.mxu1 %v4955_v21  ;;  %v5030_v21 = vld [vmem:[#allocation19] sm:$0xff] }
 0xacd   : > { %15801 = vmatprep.subr.mxu0 %v4946_v22  ;;  %15827 = vmatprep.subr.mxu1 %v4954_v23 }
 0xace   : > { %15802 = vmatpush3.msra.mxu0 %v4946_v22  ;;  %15828 = vmatpush3.msra.mxu1 %v4954_v23  ;;  %v5029_v22 = vld [vmem:[#allocation17 + $0x8] sm:$0xff]  ;;  %v5031_v23 = vld [vmem:[#allocation19 + $0x8] sm:$0xff] }
 0xacf   : > { %15803 = vmatprep.subr.mxu0 %v4945_v28  ;;  %15829 = vmatprep.subr.mxu1 %v4953_v29 }
 0xad0   : > { %15804 = vmatpush3.msra.mxu0 %v4945_v28  ;;  %15830 = vmatpush3.msra.mxu1 %v4953_v29  ;;  %v4993_v28 = vld [vmem:[%s23697_s0 + $0x38] sm:$0xff]  ;;  %s23701_s0 = sld [smem:[#allocation190_spill]] }
 0xad1   : > { %15805 = vmatprep.subr.mxu0 %v4944_v30  ;;  %15831 = vmatprep.subr.mxu1 %v4952_v31  ;;  %v5001_v29 = vld [vmem:[%s23699_s10 + $0x38] sm:$0xff]  ;;  %s23703_s10 = sld [smem:[#allocation191_spill]] }
 0xad2   : > { %15806 = vmatpush3.msra.mxu0 %v4944_v30  ;;  %15832 = vmatpush3.msra.mxu1 %v4952_v31  ;;  %v4992_v30 = vld [vmem:[%s23698_s1 + $0x30] sm:$0xff] }
 0xad3   : > { %15807 = vmatprep.subr.mxu0 %v4943_v32  ;;  %15833 = vmatprep.subr.mxu1 %v4951_v33  ;;  %v5000_v31 = vld [vmem:[%s23700_s2 + $0x30] sm:$0xff] }
 0xad4   : > { %15808 = vmatpush3.msra.mxu0 %v4943_v32  ;;  %15834 = vmatpush3.msra.mxu1 %v4951_v33  ;;  %v4991_v32 = vld [vmem:[%s23698_s1 + $0x28] sm:$0xff] }
 0xad5   : > { %15809 = vmatprep.subr.mxu0 %v4942_v34  ;;  %15835 = vmatprep.subr.mxu1 %v4950_v35  ;;  %v4999_v33 = vld [vmem:[%s23700_s2 + $0x28] sm:$0xff] }
 0xad6   : > { %15810 = vmatpush3.msra.mxu0 %v4942_v34  ;;  %15836 = vmatpush3.msra.mxu1 %v4950_v35  ;;  %v4990_v34 = vld [vmem:[%s23698_s1 + $0x20] sm:$0xff] }
 0xad7   : > { %15811 = vmatprep.subr.mxu0 %v4941_v36  ;;  %15837 = vmatprep.subr.mxu1 %v4949_v37  ;;  %v4998_v35 = vld [vmem:[%s23700_s2 + $0x20] sm:$0xff] }
 0xad8   : > { %15812 = vmatpush3.msra.mxu0 %v4941_v36  ;;  %15838 = vmatpush3.msra.mxu1 %v4949_v37  ;;  %v4989_v36 = vld [vmem:[%s23698_s1 + $0x18] sm:$0xff] }
 0xad9   : > { %15813 = vmatprep.subr.mxu0 %v4940_v39  ;;  %15839 = vmatprep.subr.mxu1 %v4948_v40  ;;  %v4997_v37 = vld [vmem:[%s23700_s2 + $0x18] sm:$0xff] }
 0xada   : > { %15814 = vmatpush3.msra.mxu0 %v4940_v39  ;;  %15840 = vmatpush3.msra.mxu1 %v4948_v40  ;;  %v4988_v39 = vld [vmem:[%s23698_s1 + $0x10] sm:$0xff] }
 0xadb   : > { %15844 = vmatprep.subr.mxu0 %v22072_v13  ;;  %15870 = vmatprep.subr.mxu1 %v22107_v41  ;;  %v4996_v40 = vld [vmem:[%s23700_s2 + $0x10] sm:$0xff] }
 0xb8a   : > { %v15798_v16 = vpop.f32.mrf.mxu0 }
 0xb8b   : > { %v15824_v24 = vpop.f32.mrf.mxu1 }
 0xb8c   : > { %v6928_v42 = vpop.f32.mrf.mxu0 }
 0xb8d   : > { %v7098_v43 = vpop.f32.mrf.mxu1  ;;  %15815 = vmatprep.mubr.msk.f32.mxu0 %vm6181_vm2, %v6928_v42  ;;  %v4994_v42 = vld [vmem:[%s23700_s2] sm:$0xff] }
 0xb8e   : > { %15841 = vmatprep.mubr.msk.f32.mxu1 %vm6181_vm2, %v7098_v43  ;;  %15816 = vmatmul.mubr.msk.f32.vlgmr.msra.gmra.mxu0 %vm6181_vm2, %v15798_v16  ;;  %v4995_v16 = vld [vmem:[%s23700_s2 + $0x8] sm:$0xff]  ;;  %s23704_s2 = smov %s23703_s10 }
 0xb8f   : > { %15842 = vmatmul.mubr.msk.f32.vlgmr.msra.gmra.mxu1 %vm6181_vm2, %v15824_v24  ;;  %15845 = vmatpush3.msra.mxu0 %v22072_v13  ;;  %v4986_v24 = vld [vmem:[%s23698_s1] sm:$0xff] }
 0xb90   : > { %15871 = vmatpush3.msra.mxu1 %v22107_v41  ;;  %15846 = vmatprep.subr.mxu0 %v22074_v15 }
 0xb91   : > { %15872 = vmatprep.subr.mxu1 %v22115_v44  ;;  %15847 = vmatpush3.msra.mxu0 %v22074_v15 }
 0xb92   : > { %15873 = vmatpush3.msra.mxu1 %v22115_v44  ;;  %15848 = vmatprep.mubr.msk.f32.mxu0 %vm5660_vm0, %v4974_v45 }
 0xb93   : > { %15851 = vmatprep.subr.mxu0 %v4963_v46  ;;  %15874 = vmatprep.mubr.msk.f32.mxu1 %vm5660_vm0, %v5026_v47 }
 0xb94   : > { %15877 = vmatprep.subr.mxu1 %v4985_v48  ;;  %15849 = vmatmul.mubr.msk.f32.vlgmr.msra.gmra.mxu0 %vm5660_vm0, %v4975_v49 }
 0xb95   : > { %15852 = vmatpush3.msra.mxu0 %v4963_v46  ;;  %15875 = vmatmul.mubr.msk.f32.vlgmr.msra.gmra.mxu1 %vm5660_vm0, %v5027_v50 }
 0xb96   : > { %15878 = vmatpush3.msra.mxu1 %v4985_v48  ;;  %15853 = vmatprep.subr.mxu0 %v4962_v51 }
 0xb97   : > { %15879 = vmatprep.subr.mxu1 %v4984_v52  ;;  %15854 = vmatpush3.msra.mxu0 %v4962_v51 }
 0xb98   : > { %15880 = vmatpush3.msra.mxu1 %v4984_v52  ;;  %15855 = vmatprep.subr.mxu0 %v4961_v53 }
 0xb99   : > { %15881 = vmatprep.subr.mxu1 %v4983_v54  ;;  %15856 = vmatpush3.msra.mxu0 %v4961_v53  ;;  %v5032_v53 = vld [vmem:[#allocation20] sm:$0xff] }
 0xb9a   : > { %15882 = vmatpush3.msra.mxu1 %v4983_v54  ;;  %15857 = vmatprep.subr.mxu0 %v4960_v55  ;;  %v5034_v54 = vld [vmem:[#allocation22] sm:$0xff] }
 0xb9b   : > { %15883 = vmatprep.subr.mxu1 %v4982_v56  ;;  %15858 = vmatpush3.msra.mxu0 %v4960_v55  ;;  %v14845_v55 = vld [vmem:[#allocation13] ss:$0 sm:$0xff] }
 0xb9c   : > { %15884 = vmatpush3.msra.mxu1 %v4982_v56  ;;  %15859 = vmatprep.subr.mxu0 %v4959_v57 }
 0xb9d   : > { %15885 = vmatprep.subr.mxu1 %v4981_v58  ;;  %15860 = vmatpush3.msra.mxu0 %v4959_v57 }
 0xb9e   : > { %15886 = vmatpush3.msra.mxu1 %v4981_v58  ;;  %15861 = vmatprep.subr.mxu0 %v4958_v59 }
 0xb9f   : > { %15887 = vmatprep.subr.mxu1 %v4980_v60  ;;  %15862 = vmatpush3.msra.mxu0 %v4958_v59 }
 0xba0   : > { %15888 = vmatpush3.msra.mxu1 %v4980_v60  ;;  %15863 = vmatprep.subr.mxu0 %v4957_v61 }
 0xba1   : > { %15889 = vmatprep.subr.mxu1 %v4979_v62  ;;  %15864 = vmatpush3.msra.mxu0 %v4957_v61 }
 0xba2   : > { %15890 = vmatpush3.msra.mxu1 %v4979_v62  ;;  %15865 = vmatprep.subr.mxu0 %v4956_v63 }
 0xba3   : > { %15891 = vmatprep.subr.mxu1 %v4978_v0  ;;  %15866 = vmatpush3.msra.mxu0 %v4956_v63 }
 0xba4   : > { %15892 = vmatpush3.msra.mxu1 %v4978_v0  ;;  %15896 = vmatprep.subr.mxu0 %v22107_v41 }
 0xba5   : > { %15922 = vmatprep.subr.mxu1 %v22107_v41 }
 0xc4e   : > { %v15817_v4 = vpop.f32.mrf.mxu0 }
 0xc4f   : > { %v7025_v5 = vadd.f32 %v15817_v4, %v14832_v3  ;;  %v15843_v6 = vpop.f32.mrf.mxu1 }
 0xc50   : > { %v7009_v9 = vpop.f32.mrf.mxu0 }
 0xc51   : > { %v22146_v10 = vadd.f32 %v15843_v6, %v7025_v5  ;;  %v7024_v11 = vadd.f32 %v14832_v3, %v7009_v9  ;;  %v7179_v12 = vpop.f32.mrf.mxu1  ;;  %v5033_v6 = vld [vmem:[#allocation20 + $0x8] sm:$0xff]  ;;  %v5009_v9 = vld [vmem:[%s23701_s0 + $0x38] sm:$0xff] }
 0xc53   : > { %v22148_v13 = vadd.f32 %v7179_v12, %v7024_v11  ;;  %v5017_v11 = vld [vmem:[%s23703_s10 + $0x38] sm:$0xff]  ;;  %s23707_s10 = sld [smem:[#allocation198_spill]] }
 0xc54   : > { %v15850_v14 = vpop.f32.mrf.mxu0 }
 0xc55   : > { %v15876_v15 = vpop.f32.mrf.mxu1 }
 0xc56   : > { %v7262_v17 = vpop.f32.mrf.mxu0 }
 0xc57   : > { %v7430_v18 = vpop.f32.mrf.mxu1  ;;  %15867 = vmatprep.mubr.msk.f32.mxu0 %vm6181_vm2, %v7262_v17 }
 0xc58   : > { %15893 = vmatprep.mubr.msk.f32.mxu1 %vm6181_vm2, %v7430_v18  ;;  %15868 = vmatmul.mubr.msk.f32.vlgmr.msra.gmra.mxu0 %vm6181_vm2, %v15850_v14  ;;  %v5014_v18 = vld [vmem:[%s23704_s2 + $0x20] sm:$0xff] }
 0xc59   : > { %15894 = vmatmul.mubr.msk.f32.vlgmr.msra.gmra.mxu1 %vm6181_vm2, %v15876_v15  ;;  %15897 = vmatpush3.msra.mxu0 %v22107_v41  ;;  %v5015_v15 = vld [vmem:[%s23704_s2 + $0x28] sm:$0xff] }
 0xc5a   : > { %15923 = vmatpush3.msra.mxu1 %v22107_v41  ;;  %15898 = vmatprep.subr.mxu0 %v22115_v44  ;;  %v4987_v41 = vld [vmem:[%s23698_s1 + $0x8] sm:$0xff]  ;;  %s23702_s1 = smov %s23701_s0  ;;  %s23705_s0 = sld [smem:[#allocation192_spill]] }
 0xc5b   : > { %15924 = vmatprep.subr.mxu1 %v22115_v44  ;;  %15899 = vmatpush3.msra.mxu0 %v22115_v44  ;;  %v5008_v12 = vld [vmem:[%s23702_s1 + $0x30] sm:$0xff]  ;;  %v5007_v14 = vld [vmem:[%s23702_s1 + $0x28] sm:$0xff]  ;;  %v5006_v17 = vld [vmem:[%s23702_s1 + $0x20] sm:$0xff] }
 0xc5c   : > { %15925 = vmatpush3.msra.mxu1 %v22115_v44  ;;  %15900 = vmatprep.mubr.msk.f32.mxu0 %vm5660_vm0, %v5028_v20  ;;  %v5005_v20 = vld [vmem:[%s23702_s1 + $0x18] sm:$0xff] }
 0xc5d   : > { %15926 = vmatprep.mubr.msk.f32.mxu1 %vm5660_vm0, %v5030_v21  ;;  %15901 = vmatmul.mubr.msk.f32.vlgmr.msra.gmra.mxu0 %vm5660_vm0, %v5029_v22  ;;  %v5013_v21 = vld [vmem:[%s23704_s2 + $0x18] sm:$0xff]  ;;  %v5004_v22 = vld [vmem:[%s23702_s1 + $0x10] sm:$0xff] }
 0xc5e   : > { %15927 = vmatmul.mubr.msk.f32.vlgmr.msra.gmra.mxu1 %vm5660_vm0, %v5031_v23  ;;  %15903 = vmatprep.subr.mxu0 %v4993_v28  ;;  %v5012_v23 = vld [vmem:[%s23704_s2 + $0x10] sm:$0xff] }
 0xc5f   : > { %15929 = vmatprep.subr.mxu1 %v5001_v29  ;;  %15904 = vmatpush3.msra.mxu0 %v4993_v28  ;;  %v5003_v28 = vld [vmem:[%s23702_s1 + $0x8] sm:$0xff] }
 0xc60   : > { %15930 = vmatpush3.msra.mxu1 %v5001_v29  ;;  %15905 = vmatprep.subr.mxu0 %v4992_v30  ;;  %v5011_v29 = vld [vmem:[%s23704_s2 + $0x8] sm:$0xff]  ;;  %s23706_s4 = smov %s23705_s0 }
 0xc61   : > { %15931 = vmatprep.subr.mxu1 %v5000_v31  ;;  %15906 = vmatpush3.msra.mxu0 %v4992_v30  ;;  %v5002_v30 = vld [vmem:[%s23702_s1] sm:$0xff]  ;;  %s23708_s1 = smov %s23707_s10 }
 0xc62   : > { %15932 = vmatpush3.msra.mxu1 %v5000_v31  ;;  %15907 = vmatprep.subr.mxu0 %v4991_v32  ;;  %v5010_v31 = vld [vmem:[%s23704_s2] sm:$0xff] }
 0xc63   : > { %15933 = vmatprep.subr.mxu1 %v4999_v33  ;;  %15908 = vmatpush3.msra.mxu0 %v4991_v32 }
 0xc64   : > { %15934 = vmatpush3.msra.mxu1 %v4999_v33  ;;  %15909 = vmatprep.subr.mxu0 %v4990_v34 }
 0xc65   : > { %15935 = vmatprep.subr.mxu1 %v4998_v35  ;;  %15910 = vmatpush3.msra.mxu0 %v4990_v34 }
 0xc66   : > { %15936 = vmatpush3.msra.mxu1 %v4998_v35  ;;  %15911 = vmatprep.subr.mxu0 %v4989_v36 }
 0xc67   : > { %15937 = vmatprep.subr.mxu1 %v4997_v37  ;;  %15912 = vmatpush3.msra.mxu0 %v4989_v36  ;;  %v5036_v36 = vld [vmem:[#allocation23] sm:$0xff] }
 0xc68   : > { %15938 = vmatpush3.msra.mxu1 %v4997_v37  ;;  %15913 = vmatprep.subr.mxu0 %v4988_v39  ;;  %v5038_v37 = vld [vmem:[#allocation25] sm:$0xff] }
 0xc69   : > { %15939 = vmatprep.subr.mxu1 %v4996_v40  ;;  %15914 = vmatpush3.msra.mxu0 %v4988_v39  ;;  %v5037_v39 = vld [vmem:[#allocation23 + $0x8] sm:$0xff] }
 0xc6a   : > { %15940 = vmatpush3.msra.mxu1 %v4996_v40  ;;  %15915 = vmatprep.subr.mxu0 %v4987_v41  ;;  %v5039_v40 = vld [vmem:[#allocation25 + $0x8] sm:$0xff] }
 0xc6b   : > { %15941 = vmatprep.subr.mxu1 %v4995_v16  ;;  %15916 = vmatpush3.msra.mxu0 %v4987_v41  ;;  %v5025_v41 = vld [vmem:[%s23705_s0 + $0x38] sm:$0xff]  ;;  %s23709_s0 = sld [smem:[#allocation236_spill]] }
 0xc6c   : > { %15942 = vmatpush3.msra.mxu1 %v4995_v16  ;;  %15917 = vmatprep.subr.mxu0 %v4986_v24  ;;  %v5047_v16 = vld [vmem:[%s23707_s10 + $0x38] sm:$0xff]  ;;  %s23711_s10 = sld [smem:[#allocation208_spill]] }
 0xc6d   : > { %15943 = vmatprep.subr.mxu1 %v4994_v42  ;;  %15918 = vmatpush3.msra.mxu0 %v4986_v24  ;;  %v5046_v24 = vld [vmem:[%s23708_s1 + $0x30] sm:$0xff] }
 0xc6e   : > { %15944 = vmatpush3.msra.mxu1 %v4994_v42  ;;  %v5023_v42 = vld [vmem:[%s23706_s4 + $0x28] sm:$0xff] }
 0xd18   : > { %v15869_v43 = vpop.f32.mrf.mxu0 }
 0xd19   : > { %v22181_v44 = vadd.f32 %v15869_v43, %v22146_v10  ;;  %v15895_v45 = vpop.f32.mrf.mxu1  ;;  %v5035_v10 = vld [vmem:[#allocation22 + $0x8] sm:$0xff]  ;;  %v5022_v43 = vld [vmem:[%s23706_s4 + $0x20] sm:$0xff] }
 0xd1a   : > { %v7343_v46 = vpop.f32.mrf.mxu0  ;;  %v7527_v56 = vadd.f32 %v15895_v45, %v14845_v55  ;;  %v5044_v45 = vld [vmem:[%s23708_s1 + $0x20] sm:$0xff] }
 0xd1b   : > { %v22184_v47 = vadd.f32 %v7343_v46, %v22148_v13  ;;  %v7511_v48 = vpop.f32.mrf.mxu1  ;;  %v5016_v13 = vld [vmem:[%s23704_s2 + $0x30] sm:$0xff]  ;;  %v5021_v46 = vld [vmem:[%s23706_s4 + $0x18] sm:$0xff]  ;;  %s23710_s2 = smov %s23709_s0 }
 0xd1c   : > { %v7526_v58 = vadd.f32 %v14845_v55, %v7511_v48  ;;  %v5043_v48 = vld [vmem:[%s23708_s1 + $0x18] sm:$0xff] }
 0xd1d   : > { %v15902_v49 = vpop.f32.mrf.mxu0  ;;  %v5338_v55 = vld [vmem:[#allocation67 + $0x38] sm:$0xff] }
 0xd1e   : > { %v15928_v50 = vpop.f32.mrf.mxu1 }
 0xd1f   : > { %v7600_v51 = vpop.f32.mrf.mxu0 }
 0xd20   : > { %v7764_v52 = vpop.f32.mrf.mxu1  ;;  %15919 = vmatprep.mubr.msk.f32.mxu0 %vm6181_vm2, %v7600_v51  ;;  %v5019_v51 = vld [vmem:[%s23706_s4 + $0x8] sm:$0xff] }
 0xd21   : > { %15945 = vmatprep.mubr.msk.f32.mxu1 %vm6181_vm2, %v7764_v52  ;;  %15920 = vmatmul.mubr.msk.f32.vlgmr.msra.gmra.mxu0 %vm6181_vm2, %v15902_v49  ;;  %v5020_v49 = vld [vmem:[%s23706_s4 + $0x10] sm:$0xff]  ;;  %v5041_v52 = vld [vmem:[%s23708_s1 + $0x8] sm:$0xff] }
 0xd22   : > { %15946 = vmatmul.mubr.msk.f32.vlgmr.msra.gmra.mxu1 %vm6181_vm2, %v15928_v50  ;;  %15952 = vmatprep.mubr.msk.f32.mxu0 %vm5660_vm0, %v5032_v53  ;;  %v5042_v50 = vld [vmem:[%s23708_s1 + $0x10] sm:$0xff]  ;;  %v5018_v53 = vld [vmem:[%s23706_s4] sm:$0xff] }
 0xd23   : > { %15978 = vmatprep.mubr.msk.f32.mxu1 %vm5660_vm0, %v5034_v54  ;;  %v5040_v54 = vld [vmem:[%s23708_s1] sm:$0xff] }
 0xde1   : > { %v15921_v57 = vpop.f32.mrf.mxu0 }
 0xde2   : > { %v7691_v59 = vadd.f32 %v15921_v57, %v7527_v56  ;;  %v15947_v60 = vpop.f32.mrf.mxu1  ;;  %v14858_v56 = vld [vmem:[#allocation14] ss:$0 sm:$0xff] }
 0xde3   : > { %v7681_v61 = vpop.f32.mrf.mxu0 }
 0xde4   : > { %v7855_v62 = vadd.f32 %v15947_v60, %v7691_v59  ;;  %v7690_v63 = vadd.f32 %v7681_v61, %v7526_v58  ;;  %v7845_v0 = vpop.f32.mrf.mxu1 }
 0xde6   : > { %v22192_v3 = vmax.f32 %v7855_v62, 0.0  ;;  %v7854_v4 = vadd.f32 %v7845_v0, %v7690_v63 }
 0xde8   : > { %v22194_v5 = vmax.f32 %v7854_v4, 0.0  ;;  %15948 = vmatprep.subr.mxu0 %v22192_v3  ;;  %15974 = vmatprep.subr.mxu1 %v22192_v3 }
 0xde9   : > { %15949 = vmatpush3.msra.mxu0 %v22192_v3  ;;  %15975 = vmatpush3.msra.mxu1 %v22192_v3 }
 0xdea   : > { %15950 = vmatprep.subr.mxu0 %v22194_v5  ;;  %15976 = vmatprep.subr.mxu1 %v22194_v5 }
 0xdeb   : > { %15951 = vmatpush3.msra.mxu0 %v22194_v5  ;;  %15977 = vmatpush3.msra.mxu1 %v22194_v5 }
 0xdec   : > { %15953 = vmatmul.mubr.msk.f32.vlgmr.msra.gmra.mxu0 %vm5660_vm0, %v5033_v6  ;;  %15955 = vmatprep.subr.mxu0 %v5009_v9 }
 0xded   : > { %15979 = vmatmul.mubr.msk.f32.vlgmr.msra.gmra.mxu1 %vm5660_vm0, %v5035_v10  ;;  %15981 = vmatprep.subr.mxu1 %v5017_v11 }
 0xdee   : > { %15956 = vmatpush3.msra.mxu0 %v5009_v9  ;;  %15982 = vmatpush3.msra.mxu1 %v5017_v11  ;;  %v5321_v9 = vld [vmem:[%s23709_s0 + $0x78] sm:$0xff]  ;;  %s23713_s0 = sld [smem:[#allocation209_spill]] }
 0xdef   : > { %15957 = vmatprep.subr.mxu0 %v5008_v12  ;;  %15983 = vmatprep.subr.mxu1 %v5016_v13  ;;  %v5337_v11 = vld [vmem:[#allocation67 + $0x30] sm:$0xff] }
 0xdf0   : > { %15958 = vmatpush3.msra.mxu0 %v5008_v12  ;;  %15984 = vmatpush3.msra.mxu1 %v5016_v13  ;;  %v5320_v12 = vld [vmem:[%s23710_s2 + $0x70] sm:$0xff] }
 0xdf1   : > { %15959 = vmatprep.subr.mxu0 %v5007_v14  ;;  %15985 = vmatprep.subr.mxu1 %v5015_v15 }
 0xdf2   : > { %15960 = vmatpush3.msra.mxu0 %v5007_v14  ;;  %15986 = vmatpush3.msra.mxu1 %v5015_v15  ;;  %v5335_v14 = vld [vmem:[#allocation67 + $0x20] sm:$0xff] }
 0xdf3   : > { %15961 = vmatprep.subr.mxu0 %v5006_v17  ;;  %15987 = vmatprep.subr.mxu1 %v5014_v18  ;;  %v5318_v15 = vld [vmem:[%s23710_s2 + $0x60] sm:$0xff] }
 0xdf4   : > { %15962 = vmatpush3.msra.mxu0 %v5006_v17  ;;  %15988 = vmatpush3.msra.mxu1 %v5014_v18  ;;  %v5317_v17 = vld [vmem:[%s23710_s2 + $0x58] sm:$0xff] }
 0xdf5   : > { %15963 = vmatprep.subr.mxu0 %v5005_v20  ;;  %15989 = vmatprep.subr.mxu1 %v5013_v21  ;;  %v5333_v18 = vld [vmem:[#allocation67 + $0x10] sm:$0xff] }
 0xdf6   : > { %15964 = vmatpush3.msra.mxu0 %v5005_v20  ;;  %15990 = vmatpush3.msra.mxu1 %v5013_v21  ;;  %v5316_v20 = vld [vmem:[%s23710_s2 + $0x50] sm:$0xff] }
 0xdf7   : > { %15965 = vmatprep.subr.mxu0 %v5004_v22  ;;  %15991 = vmatprep.subr.mxu1 %v5012_v23  ;;  %v5332_v21 = vld [vmem:[#allocation67 + $0x8] sm:$0xff] }
 0xdf8   : > { %15966 = vmatpush3.msra.mxu0 %v5004_v22  ;;  %15992 = vmatpush3.msra.mxu1 %v5012_v23  ;;  %v5315_v22 = vld [vmem:[%s23710_s2 + $0x48] sm:$0xff]  ;;  %v7355_v23 = vadd.f32 %v22181_v44, %v22102_v38  ;;  %v5346_v38 = vld [vmem:[#allocation68 + $0x38] sm:$0xff]  ;;  %v5312_v44 = vld [vmem:[%s23710_s2 + $0x30] sm:$0xff] }
 0xdf9   : > { %15967 = vmatprep.subr.mxu0 %v5003_v28  ;;  %15993 = vmatprep.subr.mxu1 %v5011_v29 }
 0xdfa   : > { %15968 = vmatpush3.msra.mxu0 %v5003_v28  ;;  %15994 = vmatpush3.msra.mxu1 %v5011_v29  ;;  %v5331_v28 = vld [vmem:[#allocation67] sm:$0xff] }
 0xdfb   : > { %15969 = vmatprep.subr.mxu0 %v5002_v30  ;;  %15995 = vmatprep.subr.mxu1 %v5010_v31  ;;  %v5314_v29 = vld [vmem:[%s23710_s2 + $0x40] sm:$0xff] }
 0xdfc   : > { %15970 = vmatpush3.msra.mxu0 %v5002_v30  ;;  %15996 = vmatpush3.msra.mxu1 %v5010_v31  ;;  %v5313_v30 = vld [vmem:[%s23710_s2 + $0x38] sm:$0xff]  ;;  %v22289_v31 = vmax.f32 %v7355_v23, 0.0  ;;  %v5176_v23 = vld [vmem:[#allocation37 + $0x8] sm:$0xff] }
 0xdfd   : > { %16000 = vmatprep.subr.mxu0 %v22192_v3  ;;  %16026 = vmatprep.subr.mxu1 %v22036_v27 }
 0xeac   : > { %v15954_v32 = vpop.f32.mrf.mxu0 }
 0xead   : > { %v15980_v33 = vpop.f32.mrf.mxu1 }
 0xeae   : > { %v7930_v34 = vpop.f32.mrf.mxu0 }
 0xeaf   : > { %v8100_v35 = vpop.f32.mrf.mxu1  ;;  %15971 = vmatprep.mubr.msk.f32.mxu0 %vm6181_vm2, %v7930_v34  ;;  %v5344_v34 = vld [vmem:[#allocation68 + $0x28] sm:$0xff] }
 0xeb0   : > { %15997 = vmatprep.mubr.msk.f32.mxu1 %vm6181_vm2, %v8100_v35  ;;  %15972 = vmatmul.mubr.msk.f32.vlgmr.msra.gmra.mxu0 %vm6181_vm2, %v15954_v32  ;;  %v5345_v32 = vld [vmem:[#allocation68 + $0x30] sm:$0xff]  ;;  %v5310_v35 = vld [vmem:[%s23710_s2 + $0x20] sm:$0xff] }
 0xeb1   : > { %15998 = vmatmul.mubr.msk.f32.vlgmr.msra.gmra.mxu1 %vm6181_vm2, %v15980_v33  ;;  %16001 = vmatpush3.msra.mxu0 %v22192_v3  ;;  %v5311_v33 = vld [vmem:[%s23710_s2 + $0x28] sm:$0xff] }
 0xeb2   : > { %16027 = vmatpush3.msra.mxu1 %v22036_v27  ;;  %16002 = vmatprep.subr.mxu0 %v22194_v5  ;;  %v5024_v27 = vld [vmem:[%s23706_s4 + $0x30] sm:$0xff]  ;;  %s23715_s4 = sld [smem:[#allocation210_spill]] }
 0xeb3   : > { %16028 = vmatprep.subr.mxu1 %v22034_v25  ;;  %16003 = vmatpush3.msra.mxu0 %v22194_v5  ;;  %v7354_v5 = vadd.f32 %v22184_v47, %v22030_v19  ;;  %v5336_v19 = vld [vmem:[#allocation67 + $0x28] sm:$0xff] }
 0xeb4   : > { %16029 = vmatpush3.msra.mxu1 %v22034_v25  ;;  %16004 = vmatprep.mubr.msk.f32.mxu0 %vm5660_vm0, %v5036_v36  ;;  %v5045_v25 = vld [vmem:[%s23708_s1 + $0x28] sm:$0xff]  ;;  %v5309_v36 = vld [vmem:[%s23710_s2 + $0x18] sm:$0xff]  ;;  %s23712_s1 = smov %s23711_s10 }
 0xeb5   : > { %16030 = vmatprep.mubr.msk.f32.mxu1 %vm5660_vm0, %v5038_v37  ;;  %16005 = vmatmul.mubr.msk.f32.vlgmr.msra.gmra.mxu0 %vm5660_vm0, %v5037_v39  ;;  %v22267_v13 = vmax.f32 %v7354_v5, 0.0  ;;  %v5319_v47 = vld [vmem:[%s23710_s2 + $0x68] sm:$0xff]  ;;  %v5308_v37 = vld [vmem:[%s23710_s2 + $0x10] sm:$0xff] }
 0xeb6   : > { %16031 = vmatmul.mubr.msk.f32.vlgmr.msra.gmra.mxu1 %vm5660_vm0, %v5039_v40  ;;  %16007 = vmatprep.subr.mxu0 %v5025_v41  ;;  %v5307_v39 = vld [vmem:[%s23710_s2 + $0x8] sm:$0xff]  ;;  %v5306_v40 = vld [vmem:[%s23710_s2] sm:$0xff] }
 0xeb7   : > { %16033 = vmatprep.subr.mxu1 %v5047_v16  ;;  %16008 = vmatpush3.msra.mxu0 %v5025_v41  ;;  %v5329_v41 = vld [vmem:[%s23710_s2 + $0xb8] sm:$0xff] }
 0xeb8   : > { %16034 = vmatpush3.msra.mxu1 %v5047_v16  ;;  %16009 = vmatprep.subr.mxu0 %v5024_v27  ;;  %v5328_v16 = vld [vmem:[%s23710_s2 + $0xb0] sm:$0xff] }
 0xeb9   : > { %16035 = vmatprep.subr.mxu1 %v5046_v24  ;;  %16010 = vmatpush3.msra.mxu0 %v5024_v27  ;;  %v5327_v27 = vld [vmem:[%s23710_s2 + $0xa8] sm:$0xff] }
 0xeba   : > { %16036 = vmatpush3.msra.mxu1 %v5046_v24  ;;  %16011 = vmatprep.subr.mxu0 %v5023_v42  ;;  %v5326_v24 = vld [vmem:[%s23710_s2 + $0xa0] sm:$0xff] }
 0xebb   : > { %16037 = vmatprep.subr.mxu1 %v5045_v25  ;;  %16012 = vmatpush3.msra.mxu0 %v5023_v42  ;;  %v5325_v42 = vld [vmem:[%s23710_s2 + $0x98] sm:$0xff] }
 0xebc   : > { %16038 = vmatpush3.msra.mxu1 %v5045_v25  ;;  %16013 = vmatprep.subr.mxu0 %v5022_v43  ;;  %v5324_v25 = vld [vmem:[%s23710_s2 + $0x90] sm:$0xff] }
 0xebd   : > { %16039 = vmatprep.subr.mxu1 %v5044_v45  ;;  %16014 = vmatpush3.msra.mxu0 %v5022_v43  ;;  %v5323_v43 = vld [vmem:[%s23710_s2 + $0x88] sm:$0xff] }
 0xebe   : > { %16040 = vmatpush3.msra.mxu1 %v5044_v45  ;;  %16015 = vmatprep.subr.mxu0 %v5021_v46  ;;  %v5322_v45 = vld [vmem:[%s23710_s2 + $0x80] sm:$0xff]  ;;  %s23714_s2 = smov %s23713_s0 }
 0xebf   : > { %16041 = vmatprep.subr.mxu1 %v5043_v48  ;;  %16016 = vmatpush3.msra.mxu0 %v5021_v46  ;;  %v5343_v46 = vld [vmem:[#allocation68 + $0x20] sm:$0xff] }
 0xec0   : > { %16042 = vmatpush3.msra.mxu1 %v5043_v48  ;;  %16017 = vmatprep.subr.mxu0 %v5020_v49  ;;  %v5342_v48 = vld [vmem:[#allocation68 + $0x18] sm:$0xff] }
 0xec1   : > { %16043 = vmatprep.subr.mxu1 %v5042_v50  ;;  %16018 = vmatpush3.msra.mxu0 %v5020_v49  ;;  %v5341_v49 = vld [vmem:[#allocation68 + $0x10] sm:$0xff] }
 0xec2   : > { %16044 = vmatpush3.msra.mxu1 %v5042_v50  ;;  %16019 = vmatprep.subr.mxu0 %v5019_v51  ;;  %v5340_v50 = vld [vmem:[#allocation68 + $0x8] sm:$0xff] }
 0xec3   : > { %16045 = vmatprep.subr.mxu1 %v5041_v52  ;;  %16020 = vmatpush3.msra.mxu0 %v5019_v51  ;;  %v20401_v51 = vmov 0  }
 0xec4   : > { %16046 = vmatpush3.msra.mxu1 %v5041_v52  ;;  %16021 = vmatprep.subr.mxu0 %v5018_v53  ;;  %v5169_v52 = vld [vmem:[%s23713_s0] sm:$0xff]  ;;  %s23724_s0 = sld [smem:[#allocation220_spill]] }
 0xec5   : > { %16047 = vmatprep.subr.mxu1 %v5040_v54  ;;  %16022 = vmatpush3.msra.mxu0 %v5018_v53  ;;  %v5170_v53 = vld [vmem:[%s23714_s2 + $0x8] sm:$0xff] }
 0xec6   : > { %16048 = vmatpush3.msra.mxu1 %v5040_v54  ;;  %8522 = vmatprep.subr.mxu0 %v20400_v26  ;;  %v5171_v54 = vld [vmem:[%s23715_s4] sm:$0xff] }
 0xec7   : > { %16052 = vmatprep.subr.mxu1 %v5338_v55  ;;  %17958 = vset.pattern.permute.xlu0 %v20401_v51 }
 0xec8   : > { %17959 = vset.pattern.permute.xlu1 %v20401_v51 }
 0xf70   : > { %v15973_v57 = vpop.f32.mrf.mxu0 }
 0xf71   : > { %v8027_v58 = vadd.f32 %v15973_v57, %v14858_v56  ;;  %v15999_v59 = vpop.f32.mrf.mxu1  ;;  %v5415_v57 = vld [vmem:[%s23717_s6] sm:$0xff]  ;;  %s23719_s6 = sld [smem:[#allocation204_spill]] }
 0xf72   : > { %v8011_v60 = vpop.f32.mrf.mxu0 }
 0xf73   : > { %v22255_v61 = vadd.f32 %v15999_v59, %v8027_v58  ;;  %v8026_v62 = vadd.f32 %v14858_v56, %v8011_v60  ;;  %v8181_v63 = vpop.f32.mrf.mxu1  ;;  %v5414_v56 = vld [vmem:[%s23716_s5] sm:$0xff]  ;;  %s23720_s5 = sld [smem:[#allocation205_spill]] }
 0xf74   : > { %v5416_v58 = vld [vmem:[%s23718_s8] sm:$0xff]  ;;  %s23721_s8 = sld [smem:[#allocation206_spill]] }
 0xf75   : > { %v22257_v0 = vadd.f32 %v8181_v63, %v8026_v62  ;;  %v16006_v3 = vpop.f32.mrf.mxu0  ;;  %v5049_v59 = vld [vmem:[#allocation26 + $0x8] sm:$0xff] }
 0xf76   : > { %v16032_v4 = vpop.f32.mrf.mxu1 }
 0xf77   : > { %v8264_v6 = vpop.f32.mrf.mxu0  ;;  %v5105_v51 = vld [vmem:[%s23719_s6 + $0x10] sm:$0xff] }
 0xf78   : > { %v8428_v10 = vpop.f32.mrf.mxu1  ;;  %16023 = vmatprep.mubr.msk.f32.mxu0 %vm6181_vm2, %v8264_v6 }
 0xf79   : > { %16049 = vmatprep.mubr.msk.f32.mxu1 %vm6181_vm2, %v8428_v10  ;;  %16024 = vmatmul.mubr.msk.f32.vlgmr.msra.gmra.mxu0 %vm6181_vm2, %v16006_v3  ;;  %v5048_v3 = vld [vmem:[#allocation26] sm:$0xff] }
 0xf7a   : > { %16050 = vmatmul.mubr.msk.f32.vlgmr.msra.gmra.mxu1 %vm6181_vm2, %v16032_v4  ;;  %8523 = vmatpush1.msra.mxu0 %v5321_v9 }
 0xf7b   : > { %16053 = vmatpush3.msra.mxu1 %v5338_v55  ;;  %8524 = vmatprep.subr.mxu0 %v20400_v26  ;;  %v5172_v55 = vld [vmem:[%s23715_s4 + $0x8] sm:$0xff] }
 0xf7c   : > { %14871 = vmatprep.mubr.msk.f32.mxu0 %vm6181_vm2, %v21998_v1  ;;  %16054 = vmatprep.subr.mxu1 %v5337_v11  ;;  %v5334_v1 = vld [vmem:[#allocation67 + $0x18] sm:$0xff] }
 0xf7d   : > { %16068 = vmatprep.mubr.msk.f32.mxu1 %vm6181_vm2, %v22267_v13  ;;  %8525 = vmatpush1.msra.mxu0 %v5320_v12 }
 0xf7e   : > { %16055 = vmatpush3.msra.mxu1 %v5337_v11  ;;  %8526 = vmatprep.subr.mxu0 %v20400_v26 }
 0xf7f   : > { %16056 = vmatprep.subr.mxu1 %v5336_v19  ;;  %8527 = vmatpush1.msra.mxu0 %v5319_v47 }
 0xf80   : > { %16057 = vmatpush3.msra.mxu1 %v5336_v19  ;;  %8528 = vmatprep.subr.mxu0 %v20400_v26 }
 0xf81   : > { %16058 = vmatprep.subr.mxu1 %v5335_v14  ;;  %8529 = vmatpush1.msra.mxu0 %v5318_v15 }
 0xf82   : > { %16059 = vmatpush3.msra.mxu1 %v5335_v14  ;;  %8530 = vmatprep.subr.mxu0 %v20400_v26  ;;  %v5173_v14 = vld [vmem:[#allocation35] sm:$0xff] }
 0xf83   : > { %16060 = vmatprep.subr.mxu1 %v5334_v1  ;;  %8531 = vmatpush1.msra.mxu0 %v5317_v17 }
 0xf84   : > { %16061 = vmatpush3.msra.mxu1 %v5334_v1  ;;  %8532 = vmatprep.subr.mxu0 %v20400_v26 }
 0xf85   : > { %16062 = vmatprep.subr.mxu1 %v5333_v18  ;;  %8533 = vmatpush1.msra.mxu0 %v5316_v20 }
 0xf86   : > { %16063 = vmatpush3.msra.mxu1 %v5333_v18  ;;  %8534 = vmatprep.subr.mxu0 %v20400_v26 }
 0xf87   : > { %16064 = vmatprep.subr.mxu1 %v5332_v21  ;;  %8535 = vmatpush1.msra.mxu0 %v5315_v22  ;;  %v5175_v22 = vld [vmem:[#allocation37] sm:$0xff] }
 0xf88   : > { %16065 = vmatpush3.msra.mxu1 %v5332_v21  ;;  %8536 = vmatprep.subr.mxu0 %v20400_v26  ;;  %v5174_v21 = vld [vmem:[#allocation35 + $0x8] sm:$0xff] }
 0xf89   : > { %16066 = vmatprep.subr.mxu1 %v5331_v28  ;;  %8537 = vmatpush1.msra.mxu0 %v5314_v29  ;;  %v5178_v29 = vld [vmem:[#allocation38 + $0x8] sm:$0xff] }
 0xf8a   : > { %16067 = vmatpush3.msra.mxu1 %v5331_v28  ;;  %8538 = vmatprep.subr.mxu0 %v20400_v26  ;;  %v5177_v28 = vld [vmem:[#allocation38] sm:$0xff] }
 0xf8b   : > { %16069 = vmatmul.mubr.msk.f32.vlgmr.msra.gmra.mxu1 %vm6181_vm2, %v22289_v31  ;;  %8539 = vmatpush1.msra.mxu0 %v5313_v30  ;;  %v5118_v30 = vld [vmem:[%s23719_s6 + $0x78] sm:$0xff] }
 0xf8c   : > { %8540 = vmatprep.subr.mxu0 %v20400_v26  ;;  %16071 = vmatprep.subr.mxu1 %v5346_v38 }
 0xf8d   : > { %8541 = vmatpush1.msra.mxu0 %v5312_v44  ;;  %16072 = vmatpush3.msra.mxu1 %v5346_v38  ;;  %v5134_v38 = vld [vmem:[%s23720_s5 + $0x78] sm:$0xff]  ;;  %v5117_v44 = vld [vmem:[%s23719_s6 + $0x70] sm:$0xff] }
 0xf8e   : > { %8542 = vmatprep.subr.mxu0 %v20400_v26  ;;  %16073 = vmatprep.subr.mxu1 %v5345_v32 }
 0xf8f   : > { %8543 = vmatpush1.msra.mxu0 %v5311_v33  ;;  %16074 = vmatpush3.msra.mxu1 %v5345_v32  ;;  %v5133_v32 = vld [vmem:[%s23720_s5 + $0x70] sm:$0xff]  ;;  %v5116_v33 = vld [vmem:[%s23719_s6 + $0x68] sm:$0xff] }
 0xf90   : > { %8544 = vmatprep.subr.mxu0 %v20400_v26  ;;  %16075 = vmatprep.subr.mxu1 %v5344_v34 }
 0xf91   : > { %8545 = vmatpush1.msra.mxu0 %v5310_v35  ;;  %16076 = vmatpush3.msra.mxu1 %v5344_v34  ;;  %v5132_v34 = vld [vmem:[%s23720_s5 + $0x68] sm:$0xff]  ;;  %v5115_v35 = vld [vmem:[%s23719_s6 + $0x60] sm:$0xff] }
 0xf92   : > { %8546 = vmatprep.subr.mxu0 %v20400_v26  ;;  %16077 = vmatprep.subr.mxu1 %v5343_v46 }
 0xf93   : > { %8547 = vmatpush1.msra.mxu0 %v5309_v36  ;;  %16078 = vmatpush3.msra.mxu1 %v5343_v46  ;;  %v5131_v36 = vld [vmem:[%s23720_s5 + $0x60] sm:$0xff]  ;;  %v5125_v46 = vld [vmem:[%s23720_s5 + $0x30] sm:$0xff] }
 0xf94   : > { %8548 = vmatprep.subr.mxu0 %v20400_v26  ;;  %16079 = vmatprep.subr.mxu1 %v5342_v48 }
 0xf95   : > { %8549 = vmatpush1.msra.mxu0 %v5308_v37  ;;  %16080 = vmatpush3.msra.mxu1 %v5342_v48  ;;  %v5114_v37 = vld [vmem:[%s23719_s6 + $0x58] sm:$0xff]  ;;  %v5108_v48 = vld [vmem:[%s23719_s6 + $0x28] sm:$0xff] }
 0xf96   : > { %8550 = vmatprep.subr.mxu0 %v20400_v26  ;;  %16081 = vmatprep.subr.mxu1 %v5341_v49 }
 0xf97   : > { %8551 = vmatpush1.msra.mxu0 %v5307_v39  ;;  %16082 = vmatpush3.msra.mxu1 %v5341_v49  ;;  %v5130_v39 = vld [vmem:[%s23720_s5 + $0x58] sm:$0xff]  ;;  %v5124_v49 = vld [vmem:[%s23720_s5 + $0x28] sm:$0xff] }
 0xf98   : > { %8552 = vmatprep.subr.mxu0 %v20400_v26  ;;  %16083 = vmatprep.subr.mxu1 %v5340_v50 }
 0xf99   : > { %8553 = vmatpush1.msra.mxu0 %v5306_v40  ;;  %16084 = vmatpush3.msra.mxu1 %v5340_v50  ;;  %v5113_v40 = vld [vmem:[%s23719_s6 + $0x50] sm:$0xff]  ;;  %v5107_v50 = vld [vmem:[%s23719_s6 + $0x20] sm:$0xff] }
 0xf9a   : > { %8570 = vmatprep.subr.mxu0 %v20400_v26 }
 0xf9b   : > { %8571 = vmatpush2.msra.mxu0 %v5329_v41  ;;  %v5129_v41 = vld [vmem:[%s23720_s5 + $0x50] sm:$0xff] }
 0xf9c   : > { %8572 = vmatprep.subr.mxu0 %v20400_v26 }
 0xf9d   : > { %8573 = vmatpush2.msra.mxu0 %v5328_v16  ;;  %v5112_v16 = vld [vmem:[%s23719_s6 + $0x48] sm:$0xff] }
 0xf9e   : > { %8574 = vmatprep.subr.mxu0 %v20400_v26 }
 0xf9f   : > { %8575 = vmatpush2.msra.mxu0 %v5327_v27  ;;  %v5128_v27 = vld [vmem:[%s23720_s5 + $0x48] sm:$0xff] }
 0xfa0   : > { %8576 = vmatprep.subr.mxu0 %v20400_v26 }
 0xfa1   : > { %8577 = vmatpush2.msra.mxu0 %v5326_v24  ;;  %v5111_v24 = vld [vmem:[%s23719_s6 + $0x40] sm:$0xff] }
 0xfa2   : > { %8578 = vmatprep.subr.mxu0 %v20400_v26 }
 0xfa3   : > { %8579 = vmatpush2.msra.mxu0 %v5325_v42  ;;  %v5127_v42 = vld [vmem:[%s23720_s5 + $0x40] sm:$0xff] }
 0xfa4   : > { %8580 = vmatprep.subr.mxu0 %v20400_v26 }
 0xfa5   : > { %8581 = vmatpush2.msra.mxu0 %v5324_v25  ;;  %v5110_v25 = vld [vmem:[%s23719_s6 + $0x38] sm:$0xff] }
 0xfa6   : > { %8582 = vmatprep.subr.mxu0 %v20400_v26 }
 0xfa7   : > { %8583 = vmatpush2.msra.mxu0 %v5323_v43  ;;  %v5126_v43 = vld [vmem:[%s23720_s5 + $0x38] sm:$0xff] }
 0xfa8   : > { %8584 = vmatprep.subr.mxu0 %v20400_v26 }
 0xfa9   : > { %8585 = vmatpush2.msra.mxu0 %v5322_v45  ;;  %v5109_v45 = vld [vmem:[%s23719_s6 + $0x30] sm:$0xff] }
 0xfaa   : > { %8587 = vmatmul.mubr.f32.vlgmr.msra.gmra.mxu0 %v22000_v2  ;;  %v5339_v2 = vld [vmem:[#allocation68] sm:$0xff]  ;;  %16111 = vmatprep.subr.mxu0 %v5118_v30 }
 0xfab   : > { %14872 = vmatprep.mubr.msk.f32.mxu0 %vm6181_vm2, %v22009_v7  ;;  %16085 = vmatprep.subr.mxu1 %v5339_v2  ;;  %v5167_v7 = vld [vmem:[%s23711_s10] sm:$0xff]  ;;  %s23722_s10 = sld [smem:[#allocation216_spill]] }
 0xfac   : > { %16086 = vmatpush3.msra.mxu1 %v5339_v2  ;;  %8783 = vperm.xlu0 %17958, %v5167_v7   ;;  %v5123_v2 = vld [vmem:[%s23720_s5 + $0x20] sm:$0xff]  ;;  %v5106_v7 = vld [vmem:[%s23719_s6 + $0x18] sm:$0xff] }
 0xfad   : > { %16112 = vmatpush3.msra.mxu0 %v5118_v30  ;;  %v5149_v30 = vld [vmem:[%s23721_s8 + $0x70] sm:$0xff] }
 0xfae   : > { %8592 = vmatmul.mubr.f32.gmra.mxu0 %v22011_v8  ;;  %v5168_v8 = vld [vmem:[%s23712_s1 + $0x8] sm:$0xff]  ;;  %16113 = vmatprep.subr.mxu0 %v5117_v44 }
 0xfaf   : > { %8788 = vperm.xlu1 %17959, %v5168_v8   ;;  %16114 = vmatpush3.msra.mxu0 %v5117_v44  ;;  %v5122_v8 = vld [vmem:[%s23720_s5 + $0x18] sm:$0xff]  ;;  %v5147_v44 = vld [vmem:[%s23721_s8 + $0x60] sm:$0xff] }
 0xfb0   : > { %8874 = vperm.xlu0 %17958, %v5169_v52   ;;  %16115 = vmatprep.subr.mxu0 %v5116_v33  ;;  %v5121_v52 = vld [vmem:[%s23720_s5 + $0x10] sm:$0xff] }
 0xfb1   : > { %16116 = vmatpush3.msra.mxu0 %v5116_v33  ;;  %v5145_v33 = vld [vmem:[%s23721_s8 + $0x50] sm:$0xff]  ;;  %s23723_s1 = smov %s23722_s10 }
 0xfb2   : > { %16117 = vmatprep.subr.mxu0 %v5115_v35 }
 0xfb3   : > { %8879 = vperm.xlu1 %17959, %v5170_v53   ;;  %16118 = vmatpush3.msra.mxu0 %v5115_v35  ;;  %v5104_v53 = vld [vmem:[%s23719_s6 + $0x8] sm:$0xff]  ;;  %v5143_v35 = vld [vmem:[%s23721_s8 + $0x40] sm:$0xff] }
 0xfb4   : > { %8967 = vperm.xlu0 %17958, %v5171_v54   ;;  %16119 = vmatprep.subr.mxu0 %v5114_v37  ;;  %v5120_v54 = vld [vmem:[%s23720_s5 + $0x8] sm:$0xff] }
 0xfb5   : > { %16120 = vmatpush3.msra.mxu0 %v5114_v37  ;;  %v5141_v37 = vld [vmem:[%s23721_s8 + $0x30] sm:$0xff] }
 0xfb6   : > { %16121 = vmatprep.subr.mxu0 %v5113_v40 }
 0xfb7   : > { %8972 = vperm.xlu1 %17959, %v5172_v55   ;;  %16122 = vmatpush3.msra.mxu0 %v5113_v40  ;;  %v5103_v55 = vld [vmem:[%s23719_s6] sm:$0xff] }
 0xfb8   : > { %11525 = vperm.xlu0 %17958, %v5414_v56   ;;  %16123 = vmatprep.subr.mxu0 %v5112_v16  ;;  %v5119_v56 = vld [vmem:[%s23720_s5] sm:$0xff] }
 0xfb9   : > { %16124 = vmatpush3.msra.mxu0 %v5112_v16  ;;  %v5139_v40 = vld [vmem:[%s23721_s8 + $0x20] sm:$0xff] }
 0xfba   : > { %16125 = vmatprep.subr.mxu0 %v5111_v24  ;;  %v14876_v16 = vld [vmem:[#allocation65] ss:$0 sm:$0xff] }
 0xfbb   : > { %11603 = vperm.xlu1 %17959, %v5415_v57   ;;  %16126 = vmatpush3.msra.mxu0 %v5111_v24  ;;  %v5150_v57 = vld [vmem:[%s23721_s8 + $0x78] sm:$0xff] }
 0xfbc   : > { %11682 = vperm.xlu0 %17958, %v5416_v58   ;;  %16127 = vmatprep.subr.mxu0 %v5110_v25 }
 0xfbd   : > { %16128 = vmatpush3.msra.mxu0 %v5110_v25 }
 0xfbe   : > { %16129 = vmatprep.subr.mxu0 %v5109_v45 }
 0xfbf   : > { %16130 = vmatpush3.msra.mxu0 %v5109_v45  ;;  %v5135_v45 = vld [vmem:[%s23721_s8] sm:$0xff] }
 0xfc0   : > { %16131 = vmatprep.subr.mxu0 %v5108_v48 }
 0xfc1   : > { %16132 = vmatpush3.msra.mxu0 %v5108_v48 }
 0xfc2   : > { %16133 = vmatprep.subr.mxu0 %v5107_v50 }
 0xfc3   : > { %16134 = vmatpush3.msra.mxu0 %v5107_v50  ;;  %v5214_v50 = vld [vmem:[#allocation44] sm:$0xff] }
 0xfc4   : > { %16135 = vmatprep.subr.mxu0 %v5106_v7 }
 0xfc5   : > { %16136 = vmatpush3.msra.mxu0 %v5106_v7  ;;  %v5211_v7 = vld [vmem:[%s23723_s1 + $0x70] sm:$0xff] }
 0xfc6   : > { %16137 = vmatprep.subr.mxu0 %v5105_v51 }
 0xfc7   : > { %16138 = vmatpush3.msra.mxu0 %v5105_v51  ;;  %v5209_v51 = vld [vmem:[%s23723_s1 + $0x60] sm:$0xff] }
 0xfc8   : > { %16139 = vmatprep.subr.mxu0 %v5104_v53 }
 0xfc9   : > { %16140 = vmatpush3.msra.mxu0 %v5104_v53  ;;  %v5207_v53 = vld [vmem:[%s23723_s1 + $0x50] sm:$0xff] }
 0xfca   : > { %16141 = vmatprep.subr.mxu0 %v5103_v55 }
 0xfcb   : > { %16142 = vmatpush3.msra.mxu0 %v5103_v55  ;;  %v5205_v55 = vld [vmem:[%s23723_s1 + $0x40] sm:$0xff] }
 0xfcc   : > { %16181 = vmatprep.subr.mxu0 %v5150_v57 }
0x1039   : > { %v16025_v60 = vpop.f32.mrf.mxu0 }
0x103a   : > { %v8355_v62 = vadd.f32 %v16025_v60, %v22255_v61  ;;  %v16051_v63 = vpop.f32.mrf.mxu1 }
0x103b   : > { %v8519_v4 = vmul.f32 %v16051_v63, %v5049_v59  ;;  %v8345_v5 = vpop.f32.mrf.mxu0 }
0x103c   : > { %v8354_v6 = vadd.f32 %v8345_v5, %v22257_v0  ;;  %v8509_v9 = vpop.f32.mrf.mxu1  ;;  %v14873_v0 = vld [vmem:[#allocation64] ss:$0 sm:$0xff] }
0x103d   : > { %v8518_v10 = vmul.f32 %v8509_v9, %v5048_v3  ;;  %v8521_v11 = vadd.f32 %v8519_v4, %v8355_v62  ;;  %v8789_v62 = vpop.permute.xlu1 %8788  ;;  %v8784_v3 = vpop.permute.xlu0 %8783 }
0x103f   : > { %v8520_v12 = vadd.f32 %v8518_v10, %v8354_v6  ;;  %v22341_v47 = vmax.f32 %v8521_v11, 0.0 }
0x1041   : > { %v22339_v19 = vmax.f32 %v8520_v12, 0.0  ;;  %v8880_v6 = vpop.permute.xlu1 %8879  ;;  %v8875_v9 = vpop.permute.xlu0 %8874 }
0x1043   : > { %16087 = vmatprep.mubr.msk.f32.mxu1 %vm6181_vm2, %v22339_v19 }
0x1044   : > { %16088 = vmatmul.mubr.msk.f32.vlgmr.msra.gmra.mxu1 %vm6181_vm2, %v22341_v47 }
0x1045   : > { %16094 = vmatprep.mubr.msk.f32.mxu1 %vm5660_vm0, %v5173_v14 }
0x104b   : > { %v22387_v58 = vpop.f32.mrf.mxu1 }
0x104c   : > { %v8695_v24 = vadd.f32 %v22387_v58, %v14876_v16  ;;  %v5202_v58 = vld [vmem:[%s23723_s1 + $0x28] sm:$0xff] }
0x104d   : > { %v22389_v59 = vpop.f32.mrf.mxu1 }
0x104e   : > { %v8694_v25 = vadd.f32 %v14876_v16, %v22389_v59  ;;  %v5201_v59 = vld [vmem:[%s23723_s1 + $0x20] sm:$0xff] }
0x106a   : > { %v8588_v61 = vpop.f32.mrf.mxu0 }
0x106b   : > { %v8603_v20 = vadd.f32 %v14873_v0, %v8588_v61 }
0x106c   : > { %v8590_v15 = vpop.f32.mrf.mxu0 }
0x106d   : > { %v8973_v15 = vpop.permute.xlu1 %8972 }
0x106e   : > { %v8593_v1 = vpop.f32.mrf.mxu0 }
0x106f   : > { %v8604_v17 = vadd.f32 %v14873_v0, %v8593_v1  ;;  %v8968_v1 = vpop.permute.xlu0 %8967 }
0x1070   : > { %v8595_v18 = vpop.f32.mrf.mxu0 }
0x1071   : > { %16090 = vmatprep.subr.mxu1 %v8604_v17 }
0x1072   : > { %16091 = vmatpush3.msra.mxu1 %v8604_v17 }
0x1073   : > { %16092 = vmatprep.subr.mxu1 %v8603_v20 }
0x1074   : > { %16093 = vmatpush3.msra.mxu1 %v8603_v20 }
0x1075   : > { %16095 = vmatmul.mubr.msk.f32.vlgmr.msra.gmra.mxu1 %vm5660_vm0, %v5174_v21  ;;  %16097 = vmatprep.subr.mxu1 %v8604_v17 }
0x1076   : > { %16098 = vmatpush3.msra.mxu1 %v8604_v17  ;;  %16101 = vmatprep.mubr.msk.f32.mxu1 %vm5660_vm0, %v5175_v22 }
0x1077   : > { %16099 = vmatprep.subr.mxu1 %v8603_v20 }
0x1078   : > { %16100 = vmatpush3.msra.mxu1 %v8603_v20 }
0x1079   : > { %16102 = vmatmul.mubr.msk.f32.vlgmr.msra.gmra.mxu1 %vm5660_vm0, %v5176_v23  ;;  %16104 = vmatprep.subr.mxu1 %v8604_v17 }
0x107a   : > { %16105 = vmatpush3.msra.mxu1 %v8604_v17  ;;  %16108 = vmatprep.mubr.msk.f32.mxu1 %vm5660_vm0, %v5177_v28 }
0x107b   : > { %16106 = vmatprep.subr.mxu1 %v8603_v20 }
0x107c   : > { %16107 = vmatpush3.msra.mxu1 %v8603_v20 }
0x107d   : > { %16109 = vmatmul.mubr.msk.f32.vlgmr.msra.gmra.mxu1 %vm5660_vm0, %v5178_v29  ;;  %16146 = vmatprep.subr.mxu1 %v5134_v38 }
0x107e   : > { %16147 = vmatpush3.msra.mxu1 %v5134_v38  ;;  %v5148_v38 = vld [vmem:[%s23721_s8 + $0x68] sm:$0xff] }
0x107f   : > { %16148 = vmatprep.subr.mxu1 %v5133_v32 }
0x1080   : > { %16149 = vmatpush3.msra.mxu1 %v5133_v32  ;;  %v5146_v32 = vld [vmem:[%s23721_s8 + $0x58] sm:$0xff] }
0x1081   : > { %16150 = vmatprep.subr.mxu1 %v5132_v34 }
0x1082   : > { %16151 = vmatpush3.msra.mxu1 %v5132_v34  ;;  %v5144_v34 = vld [vmem:[%s23721_s8 + $0x48] sm:$0xff] }
0x1083   : > { %16152 = vmatprep.subr.mxu1 %v5131_v36 }
0x1084   : > { %16153 = vmatpush3.msra.mxu1 %v5131_v36  ;;  %v5142_v36 = vld [vmem:[%s23721_s8 + $0x38] sm:$0xff] }
0x1085   : > { %16154 = vmatprep.subr.mxu1 %v5130_v39 }
0x1086   : > { %16155 = vmatpush3.msra.mxu1 %v5130_v39  ;;  %v5140_v39 = vld [vmem:[%s23721_s8 + $0x28] sm:$0xff] }
0x1087   : > { %16156 = vmatprep.subr.mxu1 %v5129_v41 }
0x1088   : > { %16157 = vmatpush3.msra.mxu1 %v5129_v41  ;;  %v5138_v41 = vld [vmem:[%s23721_s8 + $0x18] sm:$0xff] }
0x1089   : > { %16158 = vmatprep.subr.mxu1 %v5128_v27 }
0x108a   : > { %16159 = vmatpush3.msra.mxu1 %v5128_v27  ;;  %v5137_v27 = vld [vmem:[%s23721_s8 + $0x10] sm:$0xff] }
0x108b   : > { %16160 = vmatprep.subr.mxu1 %v5127_v42 }
0x108c   : > { %16161 = vmatpush3.msra.mxu1 %v5127_v42  ;;  %v5136_v42 = vld [vmem:[%s23721_s8 + $0x8] sm:$0xff]  ;;  %s20403_s8 = smov [#allocation128]  }
0x108d   : > { %16162 = vmatprep.subr.mxu1 %v5126_v43  ;;  %s19956_s9 = sshll.u32 %s20403_s8, 4  ;;  %s19957_s9 = int_to_ptr.vmem [resolvable:$false] %s19956_s9 }
0x108e   : > { %16163 = vmatpush3.msra.mxu1 %v5126_v43  ;;  %s19958_s12 = scalar_lea.vmem %s19957_s9, 32 }
0x108f   : > { %16164 = vmatprep.subr.mxu1 %v5125_v46 }
0x1090   : > { %16165 = vmatpush3.msra.mxu1 %v5125_v46 }
0x1091   : > { %16166 = vmatprep.subr.mxu1 %v5124_v49 }
0x1092   : > { %16167 = vmatpush3.msra.mxu1 %v5124_v49 }
0x1093   : > { %16168 = vmatprep.subr.mxu1 %v5123_v2 }
0x1094   : > { %16169 = vmatpush3.msra.mxu1 %v5123_v2  ;;  %v5212_v2 = vld [vmem:[%s23722_s10 + $0x78] sm:$0xff]  ;;  %s23726_s10 = sld [smem:[#allocation215_spill]] }
0x1095   : > { %16170 = vmatprep.subr.mxu1 %v5122_v8 }
0x1096   : > { %16171 = vmatpush3.msra.mxu1 %v5122_v8  ;;  %v5210_v8 = vld [vmem:[%s23723_s1 + $0x68] sm:$0xff] }
0x1097   : > { %16172 = vmatprep.subr.mxu1 %v5121_v52 }
0x1098   : > { %16173 = vmatpush3.msra.mxu1 %v5121_v52  ;;  %v5208_v52 = vld [vmem:[%s23723_s1 + $0x58] sm:$0xff] }
0x1099   : > { %16174 = vmatprep.subr.mxu1 %v5120_v54 }
0x109a   : > { %16175 = vmatpush3.msra.mxu1 %v5120_v54  ;;  %v5206_v54 = vld [vmem:[%s23723_s1 + $0x48] sm:$0xff]  ;;  %s23727_s2 = smov %s23726_s10 }
0x109b   : > { %16176 = vmatprep.subr.mxu1 %v5119_v56  ;;  %v5193_v16 = vld [vmem:[%s23727_s2 + $0x60] sm:$0xff] }
0x109c   : > { %16177 = vmatpush3.msra.mxu1 %v5119_v56  ;;  %v5204_v56 = vld [vmem:[%s23723_s1 + $0x38] sm:$0xff] }
0x109d   : > { %16216 = vmatprep.subr.mxu1 %v20400_v26 }
0x1104   : > { %v22391_v60 = vpop.f32.mrf.mxu1 }
0x1105   : > { %v8780_v43 = vadd.f32 %v22391_v60, %v8695_v24  ;;  %v5200_v60 = vld [vmem:[%s23723_s1 + $0x18] sm:$0xff] }
0x1106   : > { %v22393_v63 = vpop.f32.mrf.mxu1  ;;  %v5192_v24 = vld [vmem:[%s23727_s2 + $0x58] sm:$0xff] }
0x1107   : > { %v8779_v46 = vadd.f32 %v22393_v63, %v8694_v25  ;;  %v22416_v48 = vmax.f32 %v8780_v43, 0.0  ;;  %v5198_v63 = vld [vmem:[%s23723_s1 + $0x8] sm:$0xff]  ;;  %v5191_v25 = vld [vmem:[%s23727_s2 + $0x50] sm:$0xff] }
0x1109   : > { %v22419_v49 = vmax.f32 %v8779_v46, 0.0 }
0x1135   : > { %v16096_v4 = vpop.f32.mrf.mxu1 }
0x1136   : > { %v8869_v17 = vadd.f32 %v16096_v4, %v8789_v62  ;;  %v5199_v62 = vld [vmem:[%s23723_s1 + $0x10] sm:$0xff] }
0x1137   : > { %v8863_v5 = vpop.f32.mrf.mxu1 }
0x1138   : > { %v8864_v0 = vadd.f32 %v8863_v5, %v8784_v3  ;;  %v5197_v3 = vld [vmem:[%s23723_s1] sm:$0xff] }
0x1139   : > { %v16103_v10 = vpop.f32.mrf.mxu1 }
0x113a   : > { %v8960_v14 = vadd.f32 %v16103_v10, %v8880_v6  ;;  %v14885_v6 = vld [vmem:[#allocation31] ss:$0 sm:$0xff] }
0x113b   : > { %v8954_v11 = vpop.f32.mrf.mxu1 }
0x113c   : > { %v8955_v12 = vadd.f32 %v8954_v11, %v8875_v9  ;;  %v8964_v23 = vmax.f32 %v8869_v17, %v8960_v14  ;;  %v14886_v9 = vld [vmem:[#allocation32] ss:$0 sm:$0xff] }
0x113d   : > { %v16110_v61 = vpop.f32.mrf.mxu1 }
0x113e   : > { %v9053_v18 = vadd.f32 %v16110_v61, %v8973_v15  ;;  %v8963_v21 = vmax.f32 %v8864_v0, %v8955_v12  ;;  %v14887_v61 = vld [vmem:[#allocation34] ss:$0 sm:$0xff] }
0x113f   : > { %v9047_v20 = vpop.f32.mrf.mxu1 }
0x1140   : > { %v9048_v22 = vadd.f32 %v9047_v20, %v8968_v1  ;;  %v9057_v29 = vmax.f32 %v8964_v23, %v9053_v18 }
0x1142   : > { %v9056_v28 = vmax.f32 %v8963_v21, %v9048_v22 }
0x1144   : > { %16143 = vmatprep.mubr.f32.mxu0 %v9056_v28  ;;  %16178 = vmatprep.mubr.f32.mxu1 %v9056_v28 }
0x1145   : > { %16144 = vmatmul.mubr.f32.vlgmr.msra.gmra.mxu0 %v9057_v29  ;;  %16179 = vmatmul.mubr.f32.vlgmr.msra.gmra.mxu1 %v9057_v29 }
0x1146   : > { %16182 = vmatpush3.msra.mxu0 %v5150_v57  ;;  %16213 = vmatprep.mubr.f32.mxu0 %v9056_v28  ;;  %v5203_v57 = vld [vmem:[%s23723_s1 + $0x30] sm:$0xff]  ;;  %s23725_s1 = smov %s23724_s0 }
0x1147   : > { %16183 = vmatprep.subr.mxu0 %v5149_v30  ;;  %16220 = vmatprep.mubr.msk.f32.mxu1 %vm20402_vm3, %v20400_v26  ;;  %v5225_v43 = vld [vmem:[%s23725_s1 + $0x40] sm:$0xff]  ;;  %v5224_v46 = vld [vmem:[%s23725_s1 + $0x38] sm:$0xff] }
0x1148   : > { %16184 = vmatpush3.msra.mxu0 %v5149_v30  ;;  %v5179_v30 = vld [vmem:[#allocation40] sm:$0xff] }
0x1149   : > { %16185 = vmatprep.subr.mxu0 %v5148_v38 }
0x114a   : > { %16186 = vmatpush3.msra.mxu0 %v5148_v38 }
0x114b   : > { %16187 = vmatprep.subr.mxu0 %v5147_v44 }
0x114c   : > { %16188 = vmatpush3.msra.mxu0 %v5147_v44  ;;  %v5289_v44 = vld [vmem:[#allocation50] sm:$0xff] }
0x114d   : > { %16189 = vmatprep.subr.mxu0 %v5146_v32 }
0x114e   : > { %16190 = vmatpush3.msra.mxu0 %v5146_v32  ;;  %v5213_v32 = vld [vmem:[#allocation43] sm:$0xff] }
0x114f   : > { %16191 = vmatprep.subr.mxu0 %v5145_v33 }
0x1150   : > { %16192 = vmatpush3.msra.mxu0 %v5145_v33  ;;  %v5232_v33 = vld [vmem:[%s23724_s0 + $0x78] sm:$0xff]  ;;  %s23728_s0 = sld [smem:[#allocation207_spill]] }
0x1151   : > { %16193 = vmatprep.subr.mxu0 %v5144_v34 }
0x1152   : > { %16194 = vmatpush3.msra.mxu0 %v5144_v34  ;;  %v5231_v34 = vld [vmem:[%s23725_s1 + $0x70] sm:$0xff] }
0x1153   : > { %16195 = vmatprep.subr.mxu0 %v5143_v35 }
0x1154   : > { %16196 = vmatpush3.msra.mxu0 %v5143_v35  ;;  %v5196_v35 = vld [vmem:[%s23726_s10 + $0x78] sm:$0xff]  ;;  %s23730_s10 = sld [smem:[#allocation221_spill]] }
0x1155   : > { %16197 = vmatprep.subr.mxu0 %v5142_v36 }
0x1156   : > { %16198 = vmatpush3.msra.mxu0 %v5142_v36  ;;  %v5230_v36 = vld [vmem:[%s23725_s1 + $0x68] sm:$0xff]  ;;  %s23729_s4 = smov %s23728_s0 }
0x1157   : > { %16199 = vmatprep.subr.mxu0 %v5141_v37 }
0x1158   : > { %16200 = vmatpush3.msra.mxu0 %v5141_v37  ;;  %v5195_v37 = vld [vmem:[%s23727_s2 + $0x70] sm:$0xff] }
0x1159   : > { %16201 = vmatprep.subr.mxu0 %v5140_v39 }
0x115a   : > { %16202 = vmatpush3.msra.mxu0 %v5140_v39  ;;  %v5229_v39 = vld [vmem:[%s23725_s1 + $0x60] sm:$0xff] }
0x115b   : > { %16203 = vmatprep.subr.mxu0 %v5139_v40 }
0x115c   : > { %16204 = vmatpush3.msra.mxu0 %v5139_v40  ;;  %v5194_v40 = vld [vmem:[%s23727_s2 + $0x68] sm:$0xff] }
0x115d   : > { %16205 = vmatprep.subr.mxu0 %v5138_v41 }
0x115e   : > { %16206 = vmatpush3.msra.mxu0 %v5138_v41  ;;  %v5228_v41 = vld [vmem:[%s23725_s1 + $0x58] sm:$0xff] }
0x115f   : > { %16207 = vmatprep.subr.mxu0 %v5137_v27 }
0x1160   : > { %16208 = vmatpush3.msra.mxu0 %v5137_v27  ;;  %v5227_v27 = vld [vmem:[%s23725_s1 + $0x50] sm:$0xff] }
0x1161   : > { %16209 = vmatprep.subr.mxu0 %v5136_v42 }
0x1162   : > { %16210 = vmatpush3.msra.mxu0 %v5136_v42  ;;  %v5226_v42 = vld [vmem:[%s23725_s1 + $0x48] sm:$0xff] }
0x1163   : > { %16211 = vmatprep.subr.mxu0 %v5135_v45 }
0x1164   : > { %16212 = vmatpush3.msra.mxu0 %v5135_v45  ;;  %v5190_v45 = vld [vmem:[%s23727_s2 + $0x48] sm:$0xff] }
0x1165   : > { %16214 = vmatmul.mubr.f32.vlgmr.msra.gmra.mxu0 %v9057_v29  ;;  %16265 = vmatprep.subr.mxu0 %v20400_v26 }
0x1166   : > { %16266 = vmatpush3.msra.mxu0 %v22416_v48  ;;  %16269 = vmatprep.mubr.msk.f32.mxu0 %vm20402_vm3, %v20400_v26 }
0x1167   : > { %16267 = vmatprep.subr.mxu0 %v20400_v26 }
0x1168   : > { %16268 = vmatpush3.msra.mxu0 %v22419_v49 }
0x1169   : > { %16270 = vmatmul.mubr.msk.f32.vlgmr.msra.gmra.mxu0 %vm5660_vm0, %v5214_v50  ;;  %16272 = vmatprep.subr.mxu0 %v20400_v26  ;;  %v5189_v50 = vld [vmem:[%s23727_s2 + $0x40] sm:$0xff] }
0x116a   : > { %16304 = vmatprep.mubr.msk.f32.mxu0 %vm20402_vm3, %v20400_v26  ;;  %16273 = vmatpush3.msra.mxu0 %v5212_v2  ;;  %v5223_v2 = vld [vmem:[%s23725_s1 + $0x30] sm:$0xff] }
0x116b   : > { %16274 = vmatprep.subr.mxu0 %v20400_v26 }
0x116c   : > { %16275 = vmatpush3.msra.mxu0 %v5211_v7  ;;  %v5188_v7 = vld [vmem:[%s23727_s2 + $0x38] sm:$0xff] }
0x116d   : > { %16276 = vmatprep.subr.mxu0 %v20400_v26 }
0x116e   : > { %16277 = vmatpush3.msra.mxu0 %v5210_v8  ;;  %v5222_v8 = vld [vmem:[%s23725_s1 + $0x28] sm:$0xff] }
0x116f   : > { %16278 = vmatprep.subr.mxu0 %v20400_v26 }
0x1170   : > { %16279 = vmatpush3.msra.mxu0 %v5209_v51  ;;  %v5187_v51 = vld [vmem:[%s23727_s2 + $0x30] sm:$0xff] }
0x1171   : > { %16280 = vmatprep.subr.mxu0 %v20400_v26 }
0x1172   : > { %16281 = vmatpush3.msra.mxu0 %v5208_v52  ;;  %v5221_v52 = vld [vmem:[%s23725_s1 + $0x20] sm:$0xff] }
0x1173   : > { %16282 = vmatprep.subr.mxu0 %v20400_v26 }
0x1174   : > { %16283 = vmatpush3.msra.mxu0 %v5207_v53  ;;  %v5186_v53 = vld [vmem:[%s23727_s2 + $0x28] sm:$0xff] }
0x1175   : > { %16284 = vmatprep.subr.mxu0 %v20400_v26 }
0x1176   : > { %16285 = vmatpush3.msra.mxu0 %v5206_v54  ;;  %v5220_v54 = vld [vmem:[%s23725_s1 + $0x18] sm:$0xff] }
0x1177   : > { %16286 = vmatprep.subr.mxu0 %v20400_v26 }
0x1178   : > { %16287 = vmatpush3.msra.mxu0 %v5205_v55  ;;  %v5185_v55 = vld [vmem:[%s23727_s2 + $0x20] sm:$0xff] }
0x1179   : > { %16288 = vmatprep.subr.mxu0 %v20400_v26 }
0x117a   : > { %16289 = vmatpush3.msra.mxu0 %v5204_v56  ;;  %v5219_v56 = vld [vmem:[%s23725_s1 + $0x10] sm:$0xff] }
0x117b   : > { %16290 = vmatprep.subr.mxu0 %v20400_v26 }
0x117c   : > { %16291 = vmatpush3.msra.mxu0 %v5203_v57  ;;  %v5184_v57 = vld [vmem:[%s23727_s2 + $0x18] sm:$0xff] }
0x117d   : > { %16292 = vmatprep.subr.mxu0 %v20400_v26 }
0x117e   : > { %16293 = vmatpush3.msra.mxu0 %v5202_v58  ;;  %v5218_v58 = vld [vmem:[%s23725_s1 + $0x8] sm:$0xff] }
0x117f   : > { %16294 = vmatprep.subr.mxu0 %v20400_v26 }
0x1180   : > { %16295 = vmatpush3.msra.mxu0 %v5201_v59  ;;  %v5183_v59 = vld [vmem:[%s23727_s2 + $0x10] sm:$0xff] }
0x1181   : > { %16296 = vmatprep.subr.mxu0 %v20400_v26 }
0x1182   : > { %16297 = vmatpush3.msra.mxu0 %v5200_v60  ;;  %v5217_v60 = vld [vmem:[%s23725_s1] sm:$0xff]  ;;  %s23731_s1 = smov %s23730_s10 }
0x1183   : > { %16298 = vmatprep.subr.mxu0 %v20400_v26 }
0x1184   : > { %16299 = vmatpush3.msra.mxu0 %v5199_v62  ;;  %v5182_v62 = vld [vmem:[%s23727_s2 + $0x8] sm:$0xff] }
0x1185   : > { %16300 = vmatprep.subr.mxu0 %v20400_v26 }
0x1186   : > { %16301 = vmatpush3.msra.mxu0 %v5198_v63  ;;  %v5181_v63 = vld [vmem:[%s23727_s2] sm:$0xff] }
0x1187   : > { %16302 = vmatprep.subr.mxu0 %v20400_v26 }
0x1188   : > { %16303 = vmatpush3.msra.mxu0 %v5197_v3 }
0x1189   : > { %16342 = vmatprep.subr.mxu0 %v20400_v26 }
0x1205   : > { %v16145_v4 = vpop.f32.mrf.mxu0  ;;  %v16180_v5 = vpop.f32.mrf.mxu1 }
0x1206   : > { %v9136_v12 = vadd.f32 %v16145_v4, %v14885_v6  ;;  %v9217_v14 = vadd.f32 %v16180_v5, %v14886_v9 }
0x1207   : > { %v9130_v10 = vpop.f32.mrf.mxu0  ;;  %v9211_v11 = vpop.f32.mrf.mxu1 }
0x1208   : > { %v9131_v15 = vadd.f32 %v14885_v6, %v9130_v10  ;;  %v9212_v0 = vadd.f32 %v14886_v9, %v9211_v11  ;;  %v9221_v17 = vmax.f32 %v9136_v12, %v9217_v14  ;;  %v5166_v10 = vld [vmem:[%s23728_s0 + $0x78] sm:$0xff]  ;;  %v5291_v14 = vld [vmem:[#allocation53] sm:$0xff]  ;;  %s23732_s0 = sld [smem:[#allocation222_spill]] }
0x120a   : > { %v9220_v21 = vmax.f32 %v9131_v15, %v9212_v0  ;;  %v5164_v0 = vld [vmem:[%s23729_s4 + $0x68] sm:$0xff] }
0x120e   : > { %s23733_s2 = smov %s23732_s0 }
0x1225   : > { %v16215_v1 = vpop.f32.mrf.mxu0 }
0x1226   : > { %v9300_v18 = vadd.f32 %v16215_v1, %v14887_v61  ;;  %v5163_v1 = vld [vmem:[%s23729_s4 + $0x60] sm:$0xff] }
0x1227   : > { %v9294_v20 = vpop.f32.mrf.mxu0 }
0x1228   : > { %v9304_v22 = vmax.f32 %v9221_v17, %v9300_v18  ;;  %v9295_v23 = vadd.f32 %v14887_v61, %v9294_v20  ;;  %v5165_v61 = vld [vmem:[%s23729_s4 + $0x70] sm:$0xff]  ;;  %v5162_v17 = vld [vmem:[%s23729_s4 + $0x58] sm:$0xff]  ;;  %v5160_v20 = vld [vmem:[%s23729_s4 + $0x48] sm:$0xff] }
0x1229   : > { %v9599_v28 = vpop.f32.mrf.mxu0  ;;  %v5161_v18 = vld [vmem:[%s23729_s4 + $0x50] sm:$0xff] }
0x122a   : > { %v9303_v29 = vmax.f32 %v9220_v21, %v9295_v23  ;;  %16217 = vmatpush3.msra.mxu1 %v9304_v22  ;;  %16305 = vmatmul.mubr.f32.vlgmr.msra.gmra.mxu0 %v9599_v28  ;;  %v5159_v21 = vld [vmem:[%s23729_s4 + $0x40] sm:$0xff]  ;;  %v5158_v22 = vld [vmem:[%s23729_s4 + $0x38] sm:$0xff]  ;;  %v5157_v23 = vld [vmem:[%s23729_s4 + $0x30] sm:$0xff] }
0x122b   : > { %16343 = vmatpush3.msra.mxu0 %v22416_v48  ;;  %16218 = vmatprep.subr.mxu1 %v20400_v26  ;;  %v16271_v38 = vpop.f32.mrf.mxu0  ;;  %v5156_v28 = vld [vmem:[%s23729_s4 + $0x28] sm:$0xff] }
0x122c   : > { %16344 = vmatprep.subr.mxu0 %v20400_v26  ;;  %16219 = vmatpush3.msra.mxu1 %v9303_v29  ;;  %v5155_v29 = vld [vmem:[%s23729_s4 + $0x20] sm:$0xff]  ;;  %v5153_v38 = vld [vmem:[%s23729_s4 + $0x10] sm:$0xff] }
0x122d   : > { %16345 = vmatpush3.msra.mxu0 %v22419_v49  ;;  %16221 = vmatmul.mubr.msk.f32.vlgmr.msra.gmra.mxu1 %vm5660_vm0, %v5179_v30  ;;  %v5154_v30 = vld [vmem:[%s23729_s4 + $0x18] sm:$0xff] }
0x122e   : > { %16223 = vmatprep.subr.mxu1 %v20400_v26  ;;  %16346 = vmatprep.mubr.msk.f32.mxu0 %vm20402_vm3, %v20400_v26 }
0x122f   : > { %16224 = vmatpush3.msra.mxu1 %v22416_v48  ;;  %16347 = vmatmul.mubr.msk.f32.vlgmr.msra.gmra.mxu0 %vm5660_vm0, %v5289_v44  ;;  %v5152_v44 = vld [vmem:[%s23729_s4 + $0x8] sm:$0xff] }
0x1230   : > { %16225 = vmatprep.subr.mxu1 %v20400_v26  ;;  %16227 = vmatprep.mubr.msk.f32.mxu1 %vm20402_vm3, %v20400_v26 }
0x1231   : > { %16226 = vmatpush3.msra.mxu1 %v22419_v49  ;;  %16349 = vmatprep.subr.mxu0 %v20400_v26 }
0x1232   : > { %16228 = vmatmul.mubr.msk.f32.vlgmr.msra.gmra.mxu1 %vm5660_vm0, %v5213_v32  ;;  %16350 = vmatpush3.msra.mxu0 %v5232_v33  ;;  %v5151_v32 = vld [vmem:[%s23729_s4] sm:$0xff]  ;;  %v5290_v33 = vld [vmem:[#allocation52] sm:$0xff] }
0x1233   : > { %16351 = vmatprep.subr.mxu0 %v20400_v26  ;;  %16230 = vmatprep.subr.mxu1 %v20400_v26 }
0x1234   : > { %16352 = vmatpush3.msra.mxu0 %v5231_v34  ;;  %16231 = vmatpush3.msra.mxu1 %v5196_v35  ;;  %v5247_v34 = vld [vmem:[%s23731_s1 + $0x70] sm:$0xff]  ;;  %v5264_v35 = vld [vmem:[%s23732_s0 + $0x78] sm:$0xff]  ;;  %s23736_s0 = sld [smem:[#allocation224_spill]] }
0x1235   : > { %16353 = vmatprep.subr.mxu0 %v20400_v26  ;;  %16232 = vmatprep.subr.mxu1 %v20400_v26 }
0x1236   : > { %16354 = vmatpush3.msra.mxu0 %v5230_v36  ;;  %16233 = vmatpush3.msra.mxu1 %v5195_v37  ;;  %v5263_v36 = vld [vmem:[%s23733_s2 + $0x70] sm:$0xff]  ;;  %v5262_v37 = vld [vmem:[%s23733_s2 + $0x68] sm:$0xff] }
0x1237   : > { %16355 = vmatprep.subr.mxu0 %v20400_v26  ;;  %16234 = vmatprep.subr.mxu1 %v20400_v26 }
0x1238   : > { %16356 = vmatpush3.msra.mxu0 %v5229_v39  ;;  %16235 = vmatpush3.msra.mxu1 %v5194_v40  ;;  %v5245_v39 = vld [vmem:[%s23731_s1 + $0x60] sm:$0xff] }
0x1239   : > { %16357 = vmatprep.subr.mxu0 %v20400_v26  ;;  %16236 = vmatprep.subr.mxu1 %v20400_v26  ;;  %v5261_v40 = vld [vmem:[%s23733_s2 + $0x60] sm:$0xff] }
0x123a   : > { %16358 = vmatpush3.msra.mxu0 %v5228_v41  ;;  %16237 = vmatpush3.msra.mxu1 %v5193_v16  ;;  %v5244_v41 = vld [vmem:[%s23731_s1 + $0x58] sm:$0xff] }
0x123b   : > { %16359 = vmatprep.subr.mxu0 %v20400_v26  ;;  %16238 = vmatprep.subr.mxu1 %v20400_v26  ;;  %v5260_v16 = vld [vmem:[%s23733_s2 + $0x58] sm:$0xff] }
0x123c   : > { %16360 = vmatpush3.msra.mxu0 %v5227_v27  ;;  %16239 = vmatpush3.msra.mxu1 %v5192_v24  ;;  %v5243_v27 = vld [vmem:[%s23731_s1 + $0x50] sm:$0xff] }
0x123d   : > { %16361 = vmatprep.subr.mxu0 %v20400_v26  ;;  %16240 = vmatprep.subr.mxu1 %v20400_v26  ;;  %v5259_v24 = vld [vmem:[%s23733_s2 + $0x50] sm:$0xff] }
0x123e   : > { %16362 = vmatpush3.msra.mxu0 %v5226_v42  ;;  %16241 = vmatpush3.msra.mxu1 %v5191_v25  ;;  %v5242_v42 = vld [vmem:[%s23731_s1 + $0x48] sm:$0xff] }
0x123f   : > { %16363 = vmatprep.subr.mxu0 %v20400_v26  ;;  %16242 = vmatprep.subr.mxu1 %v20400_v26  ;;  %v5258_v25 = vld [vmem:[%s23733_s2 + $0x48] sm:$0xff] }
0x1240   : > { %16364 = vmatpush3.msra.mxu0 %v5225_v43  ;;  %16243 = vmatpush3.msra.mxu1 %v5190_v45  ;;  %v5241_v43 = vld [vmem:[%s23731_s1 + $0x40] sm:$0xff] }
0x1241   : > { %16365 = vmatprep.subr.mxu0 %v20400_v26  ;;  %16244 = vmatprep.subr.mxu1 %v20400_v26  ;;  %v5257_v45 = vld [vmem:[%s23733_s2 + $0x40] sm:$0xff] }
0x1242   : > { %16366 = vmatpush3.msra.mxu0 %v5224_v46  ;;  %16245 = vmatpush3.msra.mxu1 %v5189_v50  ;;  %v5240_v46 = vld [vmem:[%s23731_s1 + $0x38] sm:$0xff] }
0x1243   : > { %16367 = vmatprep.subr.mxu0 %v20400_v26  ;;  %16246 = vmatprep.subr.mxu1 %v20400_v26  ;;  %v5256_v50 = vld [vmem:[%s23733_s2 + $0x38] sm:$0xff] }
0x1244   : > { %16368 = vmatpush3.msra.mxu0 %v5223_v2  ;;  %16247 = vmatpush3.msra.mxu1 %v5188_v7  ;;  %v5239_v2 = vld [vmem:[%s23731_s1 + $0x30] sm:$0xff] }
0x1245   : > { %16369 = vmatprep.subr.mxu0 %v20400_v26  ;;  %16248 = vmatprep.subr.mxu1 %v20400_v26  ;;  %v5255_v7 = vld [vmem:[%s23733_s2 + $0x30] sm:$0xff] }
0x1246   : > { %16370 = vmatpush3.msra.mxu0 %v5222_v8  ;;  %16249 = vmatpush3.msra.mxu1 %v5187_v51  ;;  %v5238_v8 = vld [vmem:[%s23731_s1 + $0x28] sm:$0xff] }
0x1247   : > { %16371 = vmatprep.subr.mxu0 %v20400_v26  ;;  %16250 = vmatprep.subr.mxu1 %v20400_v26  ;;  %v5254_v51 = vld [vmem:[%s23733_s2 + $0x28] sm:$0xff] }
0x1248   : > { %16372 = vmatpush3.msra.mxu0 %v5221_v52  ;;  %16251 = vmatpush3.msra.mxu1 %v5186_v53  ;;  %v5237_v52 = vld [vmem:[%s23731_s1 + $0x20] sm:$0xff] }
0x1249   : > { %16373 = vmatprep.subr.mxu0 %v20400_v26  ;;  %16252 = vmatprep.subr.mxu1 %v20400_v26  ;;  %v5253_v53 = vld [vmem:[%s23733_s2 + $0x20] sm:$0xff] }
0x124a   : > { %16374 = vmatpush3.msra.mxu0 %v5220_v54  ;;  %16253 = vmatpush3.msra.mxu1 %v5185_v55  ;;  %v5236_v54 = vld [vmem:[%s23731_s1 + $0x18] sm:$0xff] }
0x124b   : > { %16375 = vmatprep.subr.mxu0 %v20400_v26  ;;  %16254 = vmatprep.subr.mxu1 %v20400_v26  ;;  %v5252_v55 = vld [vmem:[%s23733_s2 + $0x18] sm:$0xff] }
0x124c   : > { %16376 = vmatpush3.msra.mxu0 %v5219_v56  ;;  %16255 = vmatpush3.msra.mxu1 %v5184_v57  ;;  %v5235_v56 = vld [vmem:[%s23731_s1 + $0x10] sm:$0xff] }
0x124d   : > { %16377 = vmatprep.subr.mxu0 %v20400_v26  ;;  %16256 = vmatprep.subr.mxu1 %v20400_v26  ;;  %v5251_v57 = vld [vmem:[%s23733_s2 + $0x10] sm:$0xff] }
0x124e   : > { %16381 = vmatprep.mubr.msk.f32.mxu0 %vm20402_vm3, %v20400_v26  ;;  %16262 = vmatprep.mubr.msk.f32.mxu1 %vm20402_vm3, %v20400_v26 }
0x124f   : > { %16378 = vmatpush3.msra.mxu0 %v5218_v58  ;;  %16257 = vmatpush3.msra.mxu1 %v5183_v59  ;;  %v5234_v58 = vld [vmem:[%s23731_s1 + $0x8] sm:$0xff] }
0x1250   : > { %16379 = vmatprep.subr.mxu0 %v20400_v26  ;;  %16258 = vmatprep.subr.mxu1 %v20400_v26  ;;  %v5250_v59 = vld [vmem:[%s23733_s2 + $0x8] sm:$0xff] }
0x1251   : > { %16380 = vmatpush3.msra.mxu0 %v5217_v60  ;;  %16259 = vmatpush3.msra.mxu1 %v5182_v62  ;;  %v5233_v60 = vld [vmem:[%s23731_s1] sm:$0xff] }
0x1252   : > { %16426 = vmatprep.subr.mxu0 %v20400_v26  ;;  %16260 = vmatprep.subr.mxu1 %v20400_v26  ;;  %v5249_v62 = vld [vmem:[%s23733_s2] sm:$0xff]  ;;  %s23737_s2 = smov %s23736_s0 }
0x1253   : > { %16261 = vmatpush3.msra.mxu1 %v5181_v63 }
0x1254   : > { %16307 = vmatprep.subr.mxu1 %v20400_v26 }
0x12ea   : > { %v22547_v3 = vpop.f32.mrf.mxu0 }
0x12ec   : > { %v16306_v4 = vpop.f32.mrf.mxu0 }
0x12ed   : > { %v22549_v5 = vpop.f32.mrf.mxu1 }
0x12ef   : > { %v9813_v6 = vpop.f32.mrf.mxu0  ;;  %v16222_v9 = vpop.f32.mrf.mxu1 }
0x12f0   : > { %16382 = vmatmul.mubr.f32.vlgmr.msra.gmra.mxu0 %v9813_v6 }
0x12f1   : > { %16427 = vmatpush3.msra.mxu0 %v22416_v48  ;;  %v16348_v11 = vpop.f32.mrf.mxu0  ;;  %16430 = vmatprep.mubr.msk.f32.mxu0 %vm20402_vm3, %v20400_v26 }
0x12f2   : > { %16428 = vmatprep.subr.mxu0 %v20400_v26  ;;  %v9449_v12 = vpop.f32.mrf.mxu1  ;;  %v14890_v11 = vld [vmem:[#allocation41] ss:$0 sm:$0xff] }
0x12f3   : > { %16429 = vmatpush3.msra.mxu0 %v22419_v49  ;;  %16263 = vmatmul.mubr.f32.vlgmr.msra.gmra.mxu1 %v9449_v12 }
0x12f4   : > { %16308 = vmatpush3.msra.mxu1 %v5166_v10  ;;  %v16229_v15 = vpop.f32.mrf.mxu1  ;;  %16339 = vmatprep.mubr.msk.f32.mxu1 %vm20402_vm3, %v20400_v26 }
0x12f5   : > { %16309 = vmatprep.subr.mxu1 %v20400_v26  ;;  %16431 = vmatmul.mubr.msk.f32.vlgmr.msra.gmra.mxu0 %vm5660_vm0, %v5291_v14 }
0x12f6   : > { %16310 = vmatpush3.msra.mxu1 %v5165_v61  ;;  %16433 = vmatprep.subr.mxu0 %v20400_v26 }
0x12f7   : > { %16311 = vmatprep.subr.mxu1 %v20400_v26  ;;  %16465 = vmatprep.mubr.msk.f32.mxu0 %vm20402_vm3, %v20400_v26 }
0x12f8   : > { %16312 = vmatpush3.msra.mxu1 %v5164_v0  ;;  %16434 = vmatpush3.msra.mxu0 %v5264_v35 }
0x12f9   : > { %16313 = vmatprep.subr.mxu1 %v20400_v26  ;;  %16435 = vmatprep.subr.mxu0 %v20400_v26 }
0x12fa   : > { %16314 = vmatpush3.msra.mxu1 %v5163_v1  ;;  %16436 = vmatpush3.msra.mxu0 %v5263_v36  ;;  %v5286_v36 = vld [vmem:[#allocation49 + $0x28] sm:$0xff] }
0x12fb   : > { %16315 = vmatprep.subr.mxu1 %v20400_v26  ;;  %16437 = vmatprep.subr.mxu0 %v20400_v26 }
0x12fc   : > { %16316 = vmatpush3.msra.mxu1 %v5162_v17  ;;  %16438 = vmatpush3.msra.mxu0 %v5262_v37  ;;  %v5285_v37 = vld [vmem:[#allocation49 + $0x20] sm:$0xff] }
0x12fd   : > { %16317 = vmatprep.subr.mxu1 %v20400_v26  ;;  %16439 = vmatprep.subr.mxu0 %v20400_v26 }
0x12fe   : > { %16318 = vmatpush3.msra.mxu1 %v5161_v18  ;;  %16440 = vmatpush3.msra.mxu0 %v5261_v40  ;;  %v5284_v40 = vld [vmem:[#allocation49 + $0x18] sm:$0xff] }
0x12ff   : > { %16319 = vmatprep.subr.mxu1 %v20400_v26  ;;  %16441 = vmatprep.subr.mxu0 %v20400_v26 }
0x1300   : > { %16320 = vmatpush3.msra.mxu1 %v5160_v20  ;;  %16442 = vmatpush3.msra.mxu0 %v5260_v16  ;;  %v5283_v16 = vld [vmem:[#allocation49 + $0x10] sm:$0xff] }
0x1301   : > { %16321 = vmatprep.subr.mxu1 %v20400_v26  ;;  %16443 = vmatprep.subr.mxu0 %v20400_v26 }
0x1302   : > { %16322 = vmatpush3.msra.mxu1 %v5159_v21  ;;  %16444 = vmatpush3.msra.mxu0 %v5259_v24  ;;  %v14893_v21 = vld [vmem:[#allocation46] ss:$0 sm:$0xff]  ;;  %v5282_v24 = vld [vmem:[#allocation49 + $0x8] sm:$0xff] }
0x1303   : > { %16323 = vmatprep.subr.mxu1 %v20400_v26  ;;  %16445 = vmatprep.subr.mxu0 %v20400_v26 }
0x1304   : > { %16324 = vmatpush3.msra.mxu1 %v5158_v22  ;;  %16446 = vmatpush3.msra.mxu0 %v5258_v25  ;;  %v5281_v25 = vld [vmem:[#allocation49] sm:$0xff] }
0x1305   : > { %16325 = vmatprep.subr.mxu1 %v20400_v26  ;;  %16447 = vmatprep.subr.mxu0 %v20400_v26 }
0x1306   : > { %16326 = vmatpush3.msra.mxu1 %v5157_v23  ;;  %16448 = vmatpush3.msra.mxu0 %v5257_v45 }
0x1307   : > { %16327 = vmatprep.subr.mxu1 %v20400_v26  ;;  %16449 = vmatprep.subr.mxu0 %v20400_v26 }
0x1308   : > { %16328 = vmatpush3.msra.mxu1 %v5156_v28  ;;  %16450 = vmatpush3.msra.mxu0 %v5256_v50  ;;  %v5293_v50 = vld [vmem:[#allocation56] sm:$0xff] }
0x1309   : > { %16329 = vmatprep.subr.mxu1 %v20400_v26  ;;  %16451 = vmatprep.subr.mxu0 %v20400_v26 }
0x130a   : > { %16330 = vmatpush3.msra.mxu1 %v5155_v29  ;;  %16452 = vmatpush3.msra.mxu0 %v5255_v7 }
0x130b   : > { %16331 = vmatprep.subr.mxu1 %v20400_v26  ;;  %16453 = vmatprep.subr.mxu0 %v20400_v26 }
0x130c   : > { %16332 = vmatpush3.msra.mxu1 %v5154_v30  ;;  %16454 = vmatpush3.msra.mxu0 %v5254_v51  ;;  %v5554_v51 = vld [vmem:[#allocation107 + $0x38] sm:$0xff] }
0x130d   : > { %16333 = vmatprep.subr.mxu1 %v20400_v26  ;;  %16455 = vmatprep.subr.mxu0 %v20400_v26 }
0x130e   : > { %16334 = vmatpush3.msra.mxu1 %v5153_v38  ;;  %16456 = vmatpush3.msra.mxu0 %v5253_v53  ;;  %v5292_v38 = vld [vmem:[#allocation55] sm:$0xff]  ;;  %v5553_v53 = vld [vmem:[#allocation107 + $0x30] sm:$0xff] }
0x130f   : > { %16335 = vmatprep.subr.mxu1 %v20400_v26  ;;  %16457 = vmatprep.subr.mxu0 %v20400_v26 }
0x1310   : > { %16336 = vmatpush3.msra.mxu1 %v5152_v44  ;;  %16458 = vmatpush3.msra.mxu0 %v5252_v55  ;;  %v5294_v44 = vld [vmem:[#allocation58] sm:$0xff]  ;;  %v5552_v55 = vld [vmem:[#allocation107 + $0x28] sm:$0xff] }
0x1311   : > { %16337 = vmatprep.subr.mxu1 %v20400_v26  ;;  %16459 = vmatprep.subr.mxu0 %v20400_v26 }
0x1312   : > { %16338 = vmatpush3.msra.mxu1 %v5151_v32  ;;  %16460 = vmatpush3.msra.mxu0 %v5251_v57  ;;  %v5551_v57 = vld [vmem:[#allocation107 + $0x20] sm:$0xff] }
0x1313   : > { %16340 = vmatmul.mubr.f32.vlgmr.msra.gmra.mxu1 %v22549_v5  ;;  %16384 = vmatprep.subr.mxu1 %v20400_v26 }
0x1314   : > { %16385 = vmatpush3.msra.mxu1 %v22416_v48  ;;  %16388 = vmatprep.mubr.msk.f32.mxu1 %vm20402_vm3, %v20400_v26  ;;  %v5248_v48 = vld [vmem:[%s23730_s10 + $0x78] sm:$0xff]  ;;  %s23734_s10 = sld [smem:[#allocation223_spill]] }
0x1315   : > { %16386 = vmatprep.subr.mxu1 %v20400_v26  ;;  %16461 = vmatprep.subr.mxu0 %v20400_v26 }
0x1316   : > { %16387 = vmatpush3.msra.mxu1 %v22419_v49  ;;  %v5246_v49 = vld [vmem:[%s23731_s1 + $0x68] sm:$0xff]  ;;  %16462 = vmatpush3.msra.mxu0 %v5250_v59 }
0x1317   : > { %16389 = vmatmul.mubr.msk.f32.vlgmr.msra.gmra.mxu1 %vm5660_vm0, %v5290_v33  ;;  %16391 = vmatprep.subr.mxu1 %v20400_v26  ;;  %v5288_v33 = vld [vmem:[#allocation49 + $0x38] sm:$0xff]  ;;  %v5550_v59 = vld [vmem:[#allocation107 + $0x18] sm:$0xff] }
0x1318   : > { %16423 = vmatprep.mubr.msk.f32.mxu1 %vm20402_vm3, %v20400_v26  ;;  %16392 = vmatpush3.msra.mxu1 %v5248_v48 }
0x1319   : > { %16393 = vmatprep.subr.mxu1 %v20400_v26  ;;  %16463 = vmatprep.subr.mxu0 %v20400_v26 }
0x131a   : > { %16394 = vmatpush3.msra.mxu1 %v5247_v34  ;;  %16464 = vmatpush3.msra.mxu0 %v5249_v62  ;;  %s23735_s1 = smov %s23734_s10  ;;  %v5272_v32 = vld [vmem:[%s23734_s10 + $0x38] sm:$0xff]  ;;  %v5287_v34 = vld [vmem:[#allocation49 + $0x30] sm:$0xff]  ;;  %v5549_v62 = vld [vmem:[#allocation107 + $0x10] sm:$0xff]  ;;  %s23738_s10 = sld [smem:[#allocation244_spill]] }
0x131b   : > { %16395 = vmatprep.subr.mxu1 %v20400_v26  ;;  %16516 = vmatprep.subr.mxu0 %v20400_v26  ;;  %v5271_v48 = vld [vmem:[%s23735_s1 + $0x30] sm:$0xff]  ;;  %v5270_v35 = vld [vmem:[%s23735_s1 + $0x28] sm:$0xff] }
0x131c   : > { %16396 = vmatpush3.msra.mxu1 %v5246_v49  ;;  %v5269_v49 = vld [vmem:[%s23735_s1 + $0x20] sm:$0xff] }
0x131d   : > { %16397 = vmatprep.subr.mxu1 %v20400_v26 }
0x131e   : > { %16398 = vmatpush3.msra.mxu1 %v5245_v39  ;;  %v5268_v39 = vld [vmem:[%s23735_s1 + $0x18] sm:$0xff] }
0x131f   : > { %16399 = vmatprep.subr.mxu1 %v20400_v26 }
0x1320   : > { %16400 = vmatpush3.msra.mxu1 %v5244_v41  ;;  %v5267_v41 = vld [vmem:[%s23735_s1 + $0x10] sm:$0xff] }
0x1321   : > { %16401 = vmatprep.subr.mxu1 %v20400_v26 }
0x1322   : > { %16402 = vmatpush3.msra.mxu1 %v5243_v27  ;;  %v5266_v27 = vld [vmem:[%s23735_s1 + $0x8] sm:$0xff] }
0x1323   : > { %16403 = vmatprep.subr.mxu1 %v20400_v26 }
0x1324   : > { %16404 = vmatpush3.msra.mxu1 %v5242_v42  ;;  %v5265_v42 = vld [vmem:[%s23735_s1] sm:$0xff]  ;;  %s23739_s1 = smov %s23738_s10 }
0x1325   : > { %16405 = vmatprep.subr.mxu1 %v20400_v26 }
0x1326   : > { %16406 = vmatpush3.msra.mxu1 %v5241_v43 }
0x1327   : > { %16407 = vmatprep.subr.mxu1 %v20400_v26 }
0x1328   : > { %16408 = vmatpush3.msra.mxu1 %v5240_v46 }
0x1329   : > { %16409 = vmatprep.subr.mxu1 %v20400_v26 }
0x132a   : > { %16410 = vmatpush3.msra.mxu1 %v5239_v2  ;;  %v22715_v2 = vld [vmem:[#allocation113] sm:$0xff] }
0x132b   : > { %16411 = vmatprep.subr.mxu1 %v20400_v26 }
0x132c   : > { %16412 = vmatpush3.msra.mxu1 %v5238_v8  ;;  %v5280_v8 = vld [vmem:[%s23736_s0 + $0x38] sm:$0xff]  ;;  %s23740_s0 = sld [smem:[#allocation243_spill]] }
0x132d   : > { %16413 = vmatprep.subr.mxu1 %v20400_v26 }
0x132e   : > { %16414 = vmatpush3.msra.mxu1 %v5237_v52  ;;  %v5279_v52 = vld [vmem:[%s23737_s2 + $0x30] sm:$0xff] }
0x132f   : > { %16415 = vmatprep.subr.mxu1 %v20400_v26 }
0x1330   : > { %16416 = vmatpush3.msra.mxu1 %v5236_v54  ;;  %v5278_v54 = vld [vmem:[%s23737_s2 + $0x28] sm:$0xff] }
0x1331   : > { %16417 = vmatprep.subr.mxu1 %v20400_v26 }
0x1332   : > { %16418 = vmatpush3.msra.mxu1 %v5235_v56  ;;  %v5277_v56 = vld [vmem:[%s23737_s2 + $0x20] sm:$0xff] }
0x1333   : > { %16419 = vmatprep.subr.mxu1 %v20400_v26 }
0x1334   : > { %16420 = vmatpush3.msra.mxu1 %v5234_v58  ;;  %v5276_v58 = vld [vmem:[%s23737_s2 + $0x18] sm:$0xff] }
0x1335   : > { %16421 = vmatprep.subr.mxu1 %v20400_v26 }
0x1336   : > { %16422 = vmatpush3.msra.mxu1 %v5233_v60  ;;  %v5275_v60 = vld [vmem:[%s23737_s2 + $0x10] sm:$0xff] }
0x1337   : > { %16468 = vmatprep.subr.mxu1 %v20400_v26 }
0x13b0   : > { %v9883_v63 = vpop.f32.mrf.mxu0 }
0x13b1   : > { %v9893_v22 = vadd.f32 %v14893_v21, %v9883_v63  ;;  %v5274_v63 = vld [vmem:[%s23737_s2 + $0x8] sm:$0xff] }
0x13b2   : > { %v16383_v4 = vpop.f32.mrf.mxu0  ;;  %v5302_v21 = vld [vmem:[#allocation61 + $0x30] sm:$0xff] }
0x13b3   : > { %v9519_v5 = vpop.f32.mrf.mxu1  ;;  %v5548_v4 = vld [vmem:[#allocation107 + $0x8] sm:$0xff] }
0x13b4   : > { %v9529_v12 = vadd.f32 %v14890_v11, %v9519_v5  ;;  %v5273_v5 = vld [vmem:[%s23737_s2] sm:$0xff]  ;;  %s23741_s2 = smov %s23740_s0 }
0x13b5   : > { %v16264_v6 = vpop.f32.mrf.mxu1  ;;  %v10107_v9 = vpop.f32.mrf.mxu0 }
0x13b6   : > { %16466 = vmatmul.mubr.f32.vlgmr.msra.gmra.mxu0 %v10107_v9  ;;  %v9673_v14 = vadd.f32 %v22547_v3, %v9529_v12  ;;  %v5547_v6 = vld [vmem:[#allocation107] sm:$0xff] }
0x13b7   : > { %v16432_v10 = vpop.f32.mrf.mxu0  ;;  %16518 = vmatprep.mubr.msk.f32.mxu0 %vm20402_vm3, %v20400_v26 }
0x13d3   : > { %v9740_v61 = vpop.f32.mrf.mxu1 }
0x13d4   : > { %v22671_v15 = vadd.f32 %v9740_v61, %v9673_v14 }
0x13d5   : > { %v16341_v0 = vpop.f32.mrf.mxu1 }
0x13d7   : > { %v9963_v1 = vpop.f32.mrf.mxu1 }
0x13d8   : > { %16424 = vmatmul.mubr.f32.vlgmr.msra.gmra.mxu1 %v9963_v1  ;;  %v5295_v1 = vld [vmem:[#allocation59] sm:$0xff] }
0x13d9   : > { %v16390_v17 = vpop.f32.mrf.mxu1  ;;  %16470 = vmatprep.mubr.msk.f32.mxu1 %vm20402_vm3, %v20400_v26 }
0x1476   : > { %v10177_v18 = vpop.f32.mrf.mxu0 }
0x1478   : > { %v16467_v20 = vpop.f32.mrf.mxu0 }
0x1479   : > { %v5562_v20 = vld [vmem:[#allocation109 + $0x38] sm:$0xff] }
0x1498   : > { %v10033_v23 = vpop.f32.mrf.mxu1 }
0x1499   : > { %v10037_v28 = vadd.f32 %v10033_v23, %v9893_v22  ;;  %v5561_v22 = vld [vmem:[#allocation109 + $0x30] sm:$0xff] }
0x149a   : > { %v16425_v29 = vpop.f32.mrf.mxu1  ;;  %v5301_v23 = vld [vmem:[#allocation61 + $0x28] sm:$0xff] }
0x149b   : > { %v10181_v3 = vadd.f32 %v10177_v18, %v10037_v28  ;;  %v5303_v18 = vld [vmem:[#allocation61 + $0x38] sm:$0xff]  ;;  %v5560_v28 = vld [vmem:[#allocation109 + $0x28] sm:$0xff] }
0x149c   : > { %v5300_v29 = vld [vmem:[#allocation61 + $0x20] sm:$0xff] }
0x149d   : > { %v22675_v30 = vmax.f32 %v10181_v3, 0.0  ;;  %v5559_v3 = vld [vmem:[#allocation109 + $0x20] sm:$0xff] }
0x149f   : > { %16469 = vmatpush3.msra.mxu1 %v22675_v30  ;;  %16517 = vmatpush3.msra.mxu0 %v22675_v30 }
0x14a0   : > { %16471 = vmatmul.mubr.msk.f32.vlgmr.msra.gmra.mxu1 %vm10183_vm4, %v5292_v38  ;;  %16519 = vmatmul.mubr.msk.f32.vlgmr.msra.gmra.mxu0 %vm10183_vm4, %v5294_v44  ;;  %v5558_v38 = vld [vmem:[#allocation109 + $0x18] sm:$0xff] }
0x14a1   : > { %16473 = vmatprep.subr.mxu1 %v20400_v26  ;;  %16521 = vmatprep.subr.mxu0 %v20400_v26  ;;  %v5298_v44 = vld [vmem:[#allocation61 + $0x10] sm:$0xff] }
0x14a2   : > { %16474 = vmatpush3.msra.mxu1 %v5272_v32  ;;  %16522 = vmatpush3.msra.mxu0 %v5288_v33  ;;  %v5557_v32 = vld [vmem:[#allocation109 + $0x10] sm:$0xff] }
0x14a3   : > { %16475 = vmatprep.subr.mxu1 %v20400_v26  ;;  %16523 = vmatprep.subr.mxu0 %v20400_v26  ;;  %v5297_v33 = vld [vmem:[#allocation61 + $0x8] sm:$0xff] }
0x14a4   : > { %16476 = vmatpush3.msra.mxu1 %v5271_v48  ;;  %16524 = vmatpush3.msra.mxu0 %v5287_v34  ;;  %v5556_v48 = vld [vmem:[#allocation109 + $0x8] sm:$0xff] }
0x14a5   : > { %16477 = vmatprep.subr.mxu1 %v20400_v26  ;;  %16525 = vmatprep.subr.mxu0 %v20400_v26  ;;  %v5296_v34 = vld [vmem:[#allocation61] sm:$0xff] }
0x14a6   : > { %16478 = vmatpush3.msra.mxu1 %v5270_v35  ;;  %16526 = vmatpush3.msra.mxu0 %v5286_v36  ;;  %v5555_v35 = vld [vmem:[#allocation109] sm:$0xff]  ;;  %v14898_v36 = vld [vmem:[#allocation47] ss:$0 sm:$0xff] }
0x14a7   : > { %16479 = vmatprep.subr.mxu1 %v20400_v26  ;;  %16527 = vmatprep.subr.mxu0 %v20400_v26 }
0x14a8   : > { %16480 = vmatpush3.msra.mxu1 %v5269_v49  ;;  %16528 = vmatpush3.msra.mxu0 %v5285_v37 }
0x14a9   : > { %16481 = vmatprep.subr.mxu1 %v20400_v26  ;;  %16529 = vmatprep.subr.mxu0 %v20400_v26 }
0x14aa   : > { %16482 = vmatpush3.msra.mxu1 %v5268_v39  ;;  %16530 = vmatpush3.msra.mxu0 %v5284_v40 }
0x14ab   : > { %16483 = vmatprep.subr.mxu1 %v20400_v26  ;;  %16531 = vmatprep.subr.mxu0 %v20400_v26 }
0x14ac   : > { %16484 = vmatpush3.msra.mxu1 %v5267_v41  ;;  %16532 = vmatpush3.msra.mxu0 %v5283_v16 }
0x14ad   : > { %16485 = vmatprep.subr.mxu1 %v20400_v26  ;;  %16533 = vmatprep.subr.mxu0 %v20400_v26 }
0x14ae   : > { %16486 = vmatpush3.msra.mxu1 %v5266_v27  ;;  %16534 = vmatpush3.msra.mxu0 %v5282_v24  ;;  %v5589_v27 = vld [vmem:[#allocation118 + $0x38] sm:$0xff] }
0x14af   : > { %16487 = vmatprep.subr.mxu1 %v20400_v26  ;;  %16535 = vmatprep.subr.mxu0 %v20400_v26 }
0x14b0   : > { %16488 = vmatpush3.msra.mxu1 %v5265_v42  ;;  %16536 = vmatpush3.msra.mxu0 %v5281_v25  ;;  %v5588_v25 = vld [vmem:[#allocation118 + $0x30] sm:$0xff] }
0x14b1   : > { %16489 = vmatprep.mubr.msk.f32.mxu1 %vm20402_vm3, %v20400_v26  ;;  %16492 = vmatprep.subr.mxu1 %v20400_v26 }
0x14b2   : > { %16537 = vmatprep.mubr.msk.f32.mxu0 %vm20402_vm3, %v20400_v26  ;;  %16564 = vmatprep.subr.mxu0 %v20400_v26 }
0x1560   : > { %v10253_v43 = vpop.f32.mrf.mxu1  ;;  %v10553_v45 = vpop.f32.mrf.mxu0 }
0x1561   : > { %16490 = vmatmul.mubr.msk.f32.vlgmr.msra.gmra.mxu1 %vm6181_vm2, %v10253_v43  ;;  %16538 = vmatmul.mubr.msk.f32.vlgmr.msra.gmra.mxu0 %vm6181_vm2, %v10553_v45 }
0x1562   : > { %16493 = vmatpush3.msra.mxu1 %v22675_v30  ;;  %16565 = vmatpush3.msra.mxu0 %v22289_v31  ;;  %v16472_v46 = vpop.f32.mrf.mxu1  ;;  %v16520_v7 = vpop.f32.mrf.mxu0  ;;  %v5299_v30 = vld [vmem:[#allocation61 + $0x18] sm:$0xff] }
0x1563   : > { %16566 = vmatprep.subr.mxu0 %v20400_v26  ;;  %16494 = vmatprep.mubr.msk.f32.mxu1 %vm20402_vm3, %v20400_v26  ;;  %v22805_v46 = vld [vmem:[#allocation115] sm:$0xff] }
0x1564   : > { %16567 = vmatpush3.msra.mxu0 %v22267_v13  ;;  %16568 = vmatprep.mubr.msk.f32.mxu0 %vm20402_vm3, %v20400_v26  ;;  %v5585_v7 = vld [vmem:[#allocation118 + $0x18] sm:$0xff] }
0x1565   : > { %16495 = vmatmul.mubr.msk.f32.vlgmr.msra.gmra.mxu1 %vm10183_vm4, %v5293_v50  ;;  %16569 = vmatmul.mubr.msk.f32.vlgmr.msra.gmra.mxu0 %vm5660_vm0, %v22715_v2  ;;  %v5587_v50 = vld [vmem:[#allocation118 + $0x28] sm:$0xff] }
0x1566   : > { %16497 = vmatprep.subr.mxu1 %v20400_v26  ;;  %16571 = vmatprep.subr.mxu0 %v20400_v26 }
0x1567   : > { %16498 = vmatpush3.msra.mxu1 %v5280_v8  ;;  %16572 = vmatpush3.msra.mxu0 %v5554_v51  ;;  %v5584_v8 = vld [vmem:[#allocation118 + $0x10] sm:$0xff] }
0x1568   : > { %16499 = vmatprep.subr.mxu1 %v20400_v26  ;;  %16573 = vmatprep.subr.mxu0 %v20400_v26  ;;  %v5568_v51 = vld [vmem:[#allocation110 + $0x28] sm:$0xff] }
0x1569   : > { %16500 = vmatpush3.msra.mxu1 %v5279_v52  ;;  %16574 = vmatpush3.msra.mxu0 %v5553_v53  ;;  %v5583_v52 = vld [vmem:[#allocation118 + $0x8] sm:$0xff] }
0x156a   : > { %16501 = vmatprep.subr.mxu1 %v20400_v26  ;;  %16575 = vmatprep.subr.mxu0 %v20400_v26  ;;  %v5567_v53 = vld [vmem:[#allocation110 + $0x20] sm:$0xff] }
0x156b   : > { %16502 = vmatpush3.msra.mxu1 %v5278_v54  ;;  %16576 = vmatpush3.msra.mxu0 %v5552_v55  ;;  %v5582_v54 = vld [vmem:[#allocation118] sm:$0xff] }
0x156c   : > { %16503 = vmatprep.subr.mxu1 %v20400_v26  ;;  %16577 = vmatprep.subr.mxu0 %v20400_v26  ;;  %v5566_v55 = vld [vmem:[#allocation110 + $0x18] sm:$0xff] }
0x156d   : > { %16504 = vmatpush3.msra.mxu1 %v5277_v56  ;;  %16578 = vmatpush3.msra.mxu0 %v5551_v57  ;;  %v11367_v56 = vmax.f32 %v22671_v15, 0.0  ;;  %v5565_v57 = vld [vmem:[#allocation110 + $0x10] sm:$0xff] }
0x156e   : > { %16505 = vmatprep.subr.mxu1 %v20400_v26  ;;  %16579 = vmatprep.subr.mxu0 %v20400_v26 }
0x156f   : > { %16506 = vmatpush3.msra.mxu1 %v5276_v58  ;;  %16580 = vmatpush3.msra.mxu0 %v5550_v59  ;;  %v5563_v58 = vld [vmem:[#allocation110] sm:$0xff] }
0x1570   : > { %16507 = vmatprep.subr.mxu1 %v20400_v26  ;;  %16581 = vmatprep.subr.mxu0 %v20400_v26  ;;  %v5304_v59 = vld [vmem:[#allocation62] sm:$0xff] }
0x1571   : > { %16508 = vmatpush3.msra.mxu1 %v5275_v60  ;;  %16582 = vmatpush3.msra.mxu0 %v5549_v62 }
0x1572   : > { %16509 = vmatprep.subr.mxu1 %v20400_v26  ;;  %16583 = vmatprep.subr.mxu0 %v20400_v26 }
0x1573   : > { %16513 = vmatprep.mubr.msk.f32.mxu1 %vm20402_vm3, %v20400_v26  ;;  %16587 = vmatprep.mubr.msk.f32.mxu0 %vm20402_vm3, %v20400_v26 }
0x1574   : > { %16510 = vmatpush3.msra.mxu1 %v5274_v63  ;;  %16584 = vmatpush3.msra.mxu0 %v5548_v4 }
0x1575   : > { %16511 = vmatprep.subr.mxu1 %v20400_v26  ;;  %16585 = vmatprep.subr.mxu0 %v20400_v26 }
0x1576   : > { %16512 = vmatpush3.msra.mxu1 %v5273_v5  ;;  %16586 = vmatpush3.msra.mxu0 %v5547_v6 }
0x1577   : > { %16540 = vmatprep.subr.mxu1 %v20400_v26  ;;  %16616 = vmatprep.subr.mxu0 %v20400_v26 }
0x1621   : > { %v22756_v9 = vpop.f32.mrf.mxu1  ;;  %v22758_v10 = vpop.f32.mrf.mxu0 }
0x1622   : > { %v10336_v49 = vadd.f32 %v14898_v36, %v22756_v9  ;;  %v5590_v36 = vld [vmem:[#allocation119] sm:$0xff] }
0x1623   : > { %v16491_v11 = vpop.f32.mrf.mxu1  ;;  %v16539_v12 = vpop.f32.mrf.mxu0 }
0x1625   : > { %v10406_v14 = vpop.f32.mrf.mxu1  ;;  %v10848_v61 = vpop.f32.mrf.mxu0 }
0x1626   : > { %16514 = vmatmul.mubr.msk.f32.vlgmr.msra.gmra.mxu1 %vm6181_vm2, %v10406_v14  ;;  %16588 = vmatmul.mubr.msk.f32.vlgmr.msra.gmra.mxu0 %vm6181_vm2, %v10848_v61  ;;  %v5578_v14 = vld [vmem:[#allocation112 + $0x38] sm:$0xff]  ;;  %v5575_v61 = vld [vmem:[#allocation112 + $0x20] sm:$0xff] }
0x1627   : > { %16541 = vmatpush3.msra.mxu1 %v22671_v15  ;;  %16617 = vmatpush3.msra.mxu0 %v22341_v47  ;;  %v16496_v0 = vpop.f32.mrf.mxu1  ;;  %v16570_v17 = vpop.f32.mrf.mxu0  ;;  %v5564_v15 = vld [vmem:[#allocation110 + $0x8] sm:$0xff] }
0x1628   : > { %16618 = vmatprep.subr.mxu0 %v20400_v26  ;;  %16542 = vmatprep.mubr.msk.f32.mxu1 %vm20402_vm3, %v20400_v26  ;;  %v5573_v17 = vld [vmem:[#allocation112 + $0x10] sm:$0xff] }
0x1629   : > { %16619 = vmatpush3.msra.mxu0 %v22339_v19  ;;  %16620 = vmatprep.mubr.msk.f32.mxu0 %vm20402_vm3, %v20400_v26 }
0x162a   : > { %16543 = vmatmul.mubr.msk.f32.vlgmr.msra.gmra.mxu1 %vm10183_vm4, %v5295_v1  ;;  %16621 = vmatmul.mubr.msk.f32.vlgmr.msra.gmra.mxu0 %vm5660_vm0, %v22715_v2  ;;  %v5586_v2 = vld [vmem:[#allocation118 + $0x20] sm:$0xff] }
0x162b   : > { %16545 = vmatprep.subr.mxu1 %v20400_v26  ;;  %16623 = vmatprep.subr.mxu0 %v20400_v26 }
0x162c   : > { %16546 = vmatpush3.msra.mxu1 %v5303_v18  ;;  %16624 = vmatpush3.msra.mxu0 %v5562_v20  ;;  %v5572_v18 = vld [vmem:[#allocation112 + $0x8] sm:$0xff]  ;;  %v5571_v20 = vld [vmem:[#allocation112] sm:$0xff] }
0x162d   : > { %16547 = vmatprep.subr.mxu1 %v20400_v26  ;;  %16625 = vmatprep.subr.mxu0 %v20400_v26 }
0x162e   : > { %16548 = vmatpush3.msra.mxu1 %v5302_v21  ;;  %16626 = vmatpush3.msra.mxu0 %v5561_v22  ;;  %v14907_v21 = vld [vmem:[#allocation106] ss:$0 sm:$0xff] }
0x162f   : > { %16549 = vmatprep.subr.mxu1 %v20400_v26  ;;  %16627 = vmatprep.subr.mxu0 %v20400_v26 }
0x1630   : > { %16550 = vmatpush3.msra.mxu1 %v5301_v23  ;;  %16628 = vmatpush3.msra.mxu0 %v5560_v28 }
0x1631   : > { %16551 = vmatprep.subr.mxu1 %v20400_v26  ;;  %16629 = vmatprep.subr.mxu0 %v20400_v26 }
0x1632   : > { %16552 = vmatpush3.msra.mxu1 %v5300_v29  ;;  %16630 = vmatpush3.msra.mxu0 %v5559_v3  ;;  %v5597_v3 = vld [vmem:[#allocation119 + $0x38] sm:$0xff] }
0x1633   : > { %16553 = vmatprep.subr.mxu1 %v20400_v26  ;;  %16631 = vmatprep.subr.mxu0 %v20400_v26 }
0x1634   : > { %16554 = vmatpush3.msra.mxu1 %v5299_v30  ;;  %16632 = vmatpush3.msra.mxu0 %v5558_v38  ;;  %v5596_v38 = vld [vmem:[#allocation119 + $0x30] sm:$0xff] }
0x1635   : > { %16555 = vmatprep.subr.mxu1 %v20400_v26  ;;  %16633 = vmatprep.subr.mxu0 %v20400_v26 }
0x1636   : > { %16556 = vmatpush3.msra.mxu1 %v5298_v44  ;;  %16634 = vmatpush3.msra.mxu0 %v5557_v32  ;;  %v5595_v32 = vld [vmem:[#allocation119 + $0x28] sm:$0xff] }
0x1637   : > { %16557 = vmatprep.subr.mxu1 %v20400_v26  ;;  %16635 = vmatprep.subr.mxu0 %v20400_v26 }
0x1638   : > { %16561 = vmatprep.mubr.msk.f32.mxu1 %vm20402_vm3, %v20400_v26  ;;  %16639 = vmatprep.mubr.msk.f32.mxu0 %vm20402_vm3, %v20400_v26 }
0x1639   : > { %16558 = vmatpush3.msra.mxu1 %v5297_v33  ;;  %16636 = vmatpush3.msra.mxu0 %v5556_v48  ;;  %v5594_v33 = vld [vmem:[#allocation119 + $0x20] sm:$0xff]  ;;  %v5593_v48 = vld [vmem:[#allocation119 + $0x18] sm:$0xff] }
0x163a   : > { %16559 = vmatprep.subr.mxu1 %v20400_v26  ;;  %16637 = vmatprep.subr.mxu0 %v20400_v26 }
0x163b   : > { %16560 = vmatpush3.msra.mxu1 %v5296_v34  ;;  %16638 = vmatpush3.msra.mxu0 %v5555_v35  ;;  %v5592_v34 = vld [vmem:[#allocation119 + $0x10] sm:$0xff]  ;;  %v5591_v35 = vld [vmem:[#allocation119 + $0x8] sm:$0xff] }
0x163c   : > { %16590 = vmatprep.subr.mxu1 %v20400_v26  ;;  %16668 = vmatprep.subr.mxu0 %v20400_v26 }
0x16e6   : > { %v10479_v37 = vpop.f32.mrf.mxu1  ;;  %v22796_v39 = vpop.f32.mrf.mxu0 }
0x16e7   : > { %v22798_v40 = vadd.f32 %v10479_v37, %v10336_v49  ;;  %v10931_v22 = vadd.f32 %v14907_v21, %v22796_v39  ;;  %v5381_v37 = vld [vmem:[%s23738_s10 + $0x78] sm:$0xff]  ;;  %v5380_v39 = vld [vmem:[%s23739_s1 + $0x70] sm:$0xff]  ;;  %s23742_s10 = sld [smem:[#allocation245_spill]]  ;;  %v11604_v21 = vpop.permute.xlu1 %11603 }
0x16e8   : > { %v16515_v41 = vpop.f32.mrf.mxu1  ;;  %v16589_v16 = vpop.f32.mrf.mxu0 }
0x16e9   : > { %v10630_v63 = vadd.f32 %v22758_v10, %v22798_v40  ;;  %v5577_v10 = vld [vmem:[#allocation112 + $0x30] sm:$0xff]  ;;  %v5377_v16 = vld [vmem:[%s23739_s1 + $0x58] sm:$0xff] }
0x16ea   : > { %v10700_v24 = vpop.f32.mrf.mxu1  ;;  %v11145_v42 = vpop.f32.mrf.mxu0  ;;  %v5379_v40 = vld [vmem:[%s23739_s1 + $0x68] sm:$0xff]  ;;  %v5378_v41 = vld [vmem:[%s23739_s1 + $0x60] sm:$0xff] }
0x16eb   : > { %16562 = vmatmul.mubr.msk.f32.vlgmr.msra.gmra.mxu1 %vm6181_vm2, %v10700_v24  ;;  %16640 = vmatmul.mubr.msk.f32.vlgmr.msra.gmra.mxu0 %vm6181_vm2, %v11145_v42  ;;  %v5375_v24 = vld [vmem:[%s23739_s1 + $0x48] sm:$0xff]  ;;  %v5374_v42 = vld [vmem:[%s23739_s1 + $0x40] sm:$0xff] }
0x16ec   : > { %16591 = vmatpush3.msra.mxu1 %v22289_v31  ;;  %16669 = vmatpush3.msra.mxu0 %v5589_v27  ;;  %v16544_v43 = vpop.f32.mrf.mxu1  ;;  %v16622_v45 = vpop.f32.mrf.mxu0  ;;  %v5570_v31 = vld [vmem:[#allocation110 + $0x38] sm:$0xff] }
0x16ed   : > { %16592 = vmatprep.subr.mxu1 %v20400_v26  ;;  %16670 = vmatprep.subr.mxu0 %v20400_v26  ;;  %v5376_v27 = vld [vmem:[%s23739_s1 + $0x50] sm:$0xff]  ;;  %s23743_s4 = smov %s23742_s10 }
0x16ee   : > { %16593 = vmatpush3.msra.mxu1 %v22267_v13  ;;  %16671 = vmatpush3.msra.mxu0 %v5588_v25  ;;  %v5569_v13 = vld [vmem:[#allocation110 + $0x30] sm:$0xff]  ;;  %v5373_v25 = vld [vmem:[%s23739_s1 + $0x38] sm:$0xff] }
0x16ef   : > { %16594 = vmatprep.mubr.msk.f32.mxu1 %vm20402_vm3, %v20400_v26  ;;  %16672 = vmatprep.subr.mxu0 %v20400_v26 }
0x16f0   : > { %16595 = vmatmul.mubr.msk.f32.vlgmr.msra.gmra.mxu1 %vm5660_vm0, %v22805_v46  ;;  %16673 = vmatpush3.msra.mxu0 %v5587_v50  ;;  %v5417_v50 = vld [vmem:[#allocation74] sm:$0xff] }
0x16f1   : > { %16674 = vmatprep.subr.mxu0 %v20400_v26  ;;  %16684 = vmatprep.mubr.msk.f32.mxu0 %vm20402_vm3, %v20400_v26 }
0x16f2   : > { %16675 = vmatpush3.msra.mxu0 %v5586_v2  ;;  %16597 = vmatprep.subr.mxu1 %v20400_v26 }
0x16f3   : > { %16676 = vmatprep.subr.mxu0 %v20400_v26  ;;  %16598 = vmatpush3.msra.mxu1 %v5570_v31  ;;  %v5418_v31 = vld [vmem:[#allocation76] sm:$0xff] }
0x16f4   : > { %16677 = vmatpush3.msra.mxu0 %v5585_v7  ;;  %16599 = vmatprep.subr.mxu1 %v20400_v26  ;;  %v5419_v7 = vld [vmem:[#allocation77] sm:$0xff] }
0x16f5   : > { %16678 = vmatprep.subr.mxu0 %v20400_v26  ;;  %16600 = vmatpush3.msra.mxu1 %v5569_v13  ;;  %v5365_v13 = vld [vmem:[%s23740_s0 + $0x78] sm:$0xff]  ;;  %s23744_s0 = sld [smem:[#allocation256_spill]] }
0x16f6   : > { %16679 = vmatpush3.msra.mxu0 %v5584_v8  ;;  %16601 = vmatprep.subr.mxu1 %v20400_v26  ;;  %v14915_v8 = vld [vmem:[#allocation116] ss:$0 sm:$0xff] }
0x16f7   : > { %16680 = vmatprep.subr.mxu0 %v20400_v26  ;;  %16602 = vmatpush3.msra.mxu1 %v5568_v51  ;;  %v5364_v51 = vld [vmem:[%s23741_s2 + $0x70] sm:$0xff] }
0x16f8   : > { %16681 = vmatpush3.msra.mxu0 %v5583_v52  ;;  %16603 = vmatprep.subr.mxu1 %v20400_v26  ;;  %v5363_v52 = vld [vmem:[%s23741_s2 + $0x68] sm:$0xff] }
0x16f9   : > { %16682 = vmatprep.subr.mxu0 %v20400_v26  ;;  %16604 = vmatpush3.msra.mxu1 %v5567_v53 }
0x16fa   : > { %16683 = vmatpush3.msra.mxu0 %v5582_v54  ;;  %16605 = vmatprep.subr.mxu1 %v20400_v26 }
0x16fb   : > { %16685 = vmatmul.mubr.msk.f32.vlgmr.msra.gmra.mxu0 %vm6181_vm2, %v11367_v56  ;;  %16606 = vmatpush3.msra.mxu1 %v5566_v55  ;;  %v5362_v55 = vld [vmem:[%s23741_s2 + $0x60] sm:$0xff] }
0x16fc   : > { %16607 = vmatprep.subr.mxu1 %v20400_v26  ;;  %16613 = vmatprep.mubr.msk.f32.mxu1 %vm20402_vm3, %v20400_v26 }
0x16fd   : > { %16608 = vmatpush3.msra.mxu1 %v5565_v57  ;;  %16706 = vmatprep.subr.mxu0 %v20400_v26 }
0x16fe   : > { %16609 = vmatprep.subr.mxu1 %v20400_v26  ;;  %16708 = vmatprep.mubr.msk.f32.mxu0 %vm20402_vm3, %v20400_v26 }
0x16ff   : > { %16610 = vmatpush3.msra.mxu1 %v5564_v15  ;;  %v5361_v15 = vld [vmem:[%s23741_s2 + $0x58] sm:$0xff] }
0x1700   : > { %16611 = vmatprep.subr.mxu1 %v20400_v26 }
0x1701   : > { %16612 = vmatpush3.msra.mxu1 %v5563_v58  ;;  %v5360_v58 = vld [vmem:[%s23741_s2 + $0x50] sm:$0xff] }
0x1702   : > { %16642 = vmatprep.subr.mxu1 %v20400_v26 }
0x17ab   : > { %v10773_v60 = vpop.f32.mrf.mxu1  ;;  %v22836_v62 = vpop.f32.mrf.mxu0 }
0x17ac   : > { %v10777_v4 = vmul.f32 %v10773_v60, %v5304_v59  ;;  %v5359_v59 = vld [vmem:[%s23741_s2 + $0x48] sm:$0xff]  ;;  %v5358_v60 = vld [vmem:[%s23741_s2 + $0x40] sm:$0xff] }
0x17ad   : > { %v16563_v5 = vpop.f32.mrf.mxu1  ;;  %v16641_v6 = vpop.f32.mrf.mxu0 }
0x17ae   : > { %v22840_v9 = vadd.f32 %v10777_v4, %v10630_v63  ;;  %v5356_v63 = vld [vmem:[%s23741_s2 + $0x30] sm:$0xff]  ;;  %v5355_v5 = vld [vmem:[%s23741_s2 + $0x28] sm:$0xff] }
0x17af   : > { %v5372_v4 = vld [vmem:[%s23739_s1 + $0x30] sm:$0xff]  ;;  %v5371_v6 = vld [vmem:[%s23739_s1 + $0x28] sm:$0xff] }
0x17b0   : > { %v11001_v11 = vpop.f32.mrf.mxu1  ;;  %v11448_v49 = vmax.f32 %v22840_v9, 0.0  ;;  %v5354_v9 = vld [vmem:[%s23741_s2 + $0x20] sm:$0xff] }
0x17b1   : > { %16614 = vmatmul.mubr.msk.f32.vlgmr.msra.gmra.mxu1 %vm6181_vm2, %v11001_v11  ;;  %v5370_v11 = vld [vmem:[%s23739_s1 + $0x20] sm:$0xff] }
0x17b2   : > { %16643 = vmatpush3.msra.mxu1 %v22341_v47  ;;  %v16596_v12 = vpop.f32.mrf.mxu1  ;;  %16646 = vmatprep.mubr.msk.f32.mxu1 %vm20402_vm3, %v20400_v26  ;;  %v5576_v47 = vld [vmem:[#allocation112 + $0x28] sm:$0xff] }
0x17b3   : > { %16644 = vmatprep.subr.mxu1 %v20400_v26  ;;  %v5353_v12 = vld [vmem:[%s23741_s2 + $0x18] sm:$0xff] }
0x17b4   : > { %16645 = vmatpush3.msra.mxu1 %v22339_v19  ;;  %v5574_v19 = vld [vmem:[#allocation112 + $0x18] sm:$0xff] }
0x17b5   : > { %16647 = vmatmul.mubr.msk.f32.vlgmr.msra.gmra.mxu1 %vm5660_vm0, %v22805_v46  ;;  %16649 = vmatprep.subr.mxu1 %v20400_v26 }
0x17b6   : > { %16650 = vmatpush3.msra.mxu1 %v5578_v14  ;;  %16665 = vmatprep.mubr.msk.f32.mxu1 %vm20402_vm3, %v20400_v26  ;;  %v5369_v14 = vld [vmem:[%s23739_s1 + $0x18] sm:$0xff] }
0x17b7   : > { %16651 = vmatprep.subr.mxu1 %v20400_v26 }
0x17b8   : > { %16652 = vmatpush3.msra.mxu1 %v5577_v10  ;;  %v5352_v10 = vld [vmem:[%s23741_s2 + $0x10] sm:$0xff] }
0x17b9   : > { %16653 = vmatprep.subr.mxu1 %v20400_v26 }
0x17ba   : > { %16654 = vmatpush3.msra.mxu1 %v5576_v47  ;;  %v5368_v47 = vld [vmem:[%s23739_s1 + $0x10] sm:$0xff] }
0x17bb   : > { %v22855_v0 = vpop.f32.mrf.mxu0  ;;  %16655 = vmatprep.subr.mxu1 %v20400_v26 }
0x17bc   : > { %16656 = vmatpush3.msra.mxu1 %v5575_v61  ;;  %v11447_v53 = vadd.f32 %v14915_v8, %v22855_v0  ;;  %v5351_v61 = vld [vmem:[%s23741_s2 + $0x8] sm:$0xff] }
0x17bd   : > { %v16686_v1 = vpop.f32.mrf.mxu0  ;;  %16657 = vmatprep.subr.mxu1 %v20400_v26  ;;  %v5367_v0 = vld [vmem:[%s23739_s1 + $0x8] sm:$0xff] }
0x17be   : > { %16658 = vmatpush3.msra.mxu1 %v5574_v19  ;;  %v5350_v19 = vld [vmem:[%s23741_s2] sm:$0xff] }
0x17bf   : > { %16659 = vmatprep.subr.mxu1 %v20400_v26  ;;  %v5366_v1 = vld [vmem:[%s23739_s1] sm:$0xff]  ;;  %s23745_s1 = smov %s23744_s0 }
0x17c0   : > { %16660 = vmatpush3.msra.mxu1 %v5573_v17  ;;  %v5449_v8 = vld [vmem:[%s23745_s1 + $0x58] sm:$0xff] }
0x17c1   : > { %16661 = vmatprep.subr.mxu1 %v20400_v26 }
0x17c2   : > { %16662 = vmatpush3.msra.mxu1 %v5572_v18  ;;  %v11526_v18 = vpop.permute.xlu0 %11525 }
0x17c3   : > { %16663 = vmatprep.subr.mxu1 %v20400_v26 }
0x17c4   : > { %16664 = vmatpush3.msra.mxu1 %v5571_v20 }
0x17c5   : > { %16687 = vmatprep.subr.mxu1 %v20400_v26 }
0x1871   : > { %v11074_v23 = vpop.f32.mrf.mxu1 }
0x1872   : > { %v11078_v28 = vadd.f32 %v11074_v23, %v10931_v22 }
0x1873   : > { %v16615_v29 = vpop.f32.mrf.mxu1 }
0x1874   : > { %v11222_v43 = vadd.f32 %v22836_v62, %v11078_v28  ;;  %v5357_v62 = vld [vmem:[%s23741_s2 + $0x38] sm:$0xff] }
0x1875   : > { %v11289_v30 = vpop.f32.mrf.mxu1 }
0x1876   : > { %16666 = vmatmul.mubr.msk.f32.vlgmr.msra.gmra.mxu1 %vm6181_vm2, %v11289_v30 }
0x1877   : > { %16688 = vmatpush3.msra.mxu1 %v5597_v3  ;;  %v16648_v44 = vpop.f32.mrf.mxu1  ;;  %16703 = vmatprep.mubr.msk.f32.mxu1 %vm20402_vm3, %v20400_v26  ;;  %v11683_v3 = vpop.permute.xlu0 %11682 }
0x1878   : > { %16689 = vmatprep.subr.mxu1 %v20400_v26 }
0x1879   : > { %16690 = vmatpush3.msra.mxu1 %v5596_v38 }
0x187a   : > { %16691 = vmatprep.subr.mxu1 %v20400_v26 }
0x187b   : > { %16692 = vmatpush3.msra.mxu1 %v5595_v32 }
0x187c   : > { %16693 = vmatprep.subr.mxu1 %v20400_v26 }
0x187d   : > { %16694 = vmatpush3.msra.mxu1 %v5594_v33 }
0x187e   : > { %16695 = vmatprep.subr.mxu1 %v20400_v26 }
0x187f   : > { %16696 = vmatpush3.msra.mxu1 %v5593_v48  ;;  %v5397_v48 = vld [vmem:[%s23742_s10 + $0x78] sm:$0xff]  ;;  %s23746_s10 = sld [smem:[#allocation261_spill]] }
0x1880   : > { %16697 = vmatprep.subr.mxu1 %v20400_v26 }
0x1881   : > { %16698 = vmatpush3.msra.mxu1 %v5592_v34  ;;  %v5396_v34 = vld [vmem:[%s23743_s4 + $0x70] sm:$0xff] }
0x1882   : > { %16699 = vmatprep.subr.mxu1 %v20400_v26 }
0x1883   : > { %16700 = vmatpush3.msra.mxu1 %v5591_v35  ;;  %v5395_v35 = vld [vmem:[%s23743_s4 + $0x68] sm:$0xff] }
0x1884   : > { %16701 = vmatprep.subr.mxu1 %v20400_v26 }
0x1885   : > { %16702 = vmatpush3.msra.mxu1 %v5590_v36  ;;  %v5394_v36 = vld [vmem:[%s23743_s4 + $0x60] sm:$0xff]  ;;  %s23747_s2 = smov %s23746_s10 }
0x1886   : > { %16704 = vmatmul.mubr.msk.f32.vlgmr.msra.gmra.mxu1 %vm6181_vm2, %v11448_v49  ;;  %16756 = vmatprep.subr.mxu1 %v20400_v26  ;;  %v5393_v49 = vld [vmem:[%s23743_s4 + $0x58] sm:$0xff] }
0x1887   : > { %16788 = vmatprep.mubr.msk.f32.mxu1 %vm20402_vm3, %v20400_v26  ;;  %16757 = vmatpush3.msra.mxu1 %v5381_v37  ;;  %v5392_v37 = vld [vmem:[%s23743_s4 + $0x50] sm:$0xff] }
0x1888   : > { %16758 = vmatprep.subr.mxu1 %v20400_v26 }
0x1889   : > { %16759 = vmatpush3.msra.mxu1 %v5380_v39  ;;  %v5391_v39 = vld [vmem:[%s23743_s4 + $0x48] sm:$0xff] }
0x188a   : > { %16760 = vmatprep.subr.mxu1 %v20400_v26 }
0x188b   : > { %16761 = vmatpush3.msra.mxu1 %v5379_v40  ;;  %v5390_v40 = vld [vmem:[%s23743_s4 + $0x40] sm:$0xff] }
0x188c   : > { %16762 = vmatprep.subr.mxu1 %v20400_v26 }
0x188d   : > { %16763 = vmatpush3.msra.mxu1 %v5378_v41  ;;  %v5389_v41 = vld [vmem:[%s23743_s4 + $0x38] sm:$0xff] }
0x188e   : > { %16764 = vmatprep.subr.mxu1 %v20400_v26 }
0x188f   : > { %16765 = vmatpush3.msra.mxu1 %v5377_v16  ;;  %v5388_v16 = vld [vmem:[%s23743_s4 + $0x30] sm:$0xff] }
0x1890   : > { %16766 = vmatprep.subr.mxu1 %v20400_v26 }
0x1891   : > { %16767 = vmatpush3.msra.mxu1 %v5376_v27  ;;  %v5387_v27 = vld [vmem:[%s23743_s4 + $0x28] sm:$0xff] }
0x1892   : > { %16768 = vmatprep.subr.mxu1 %v20400_v26 }
0x1893   : > { %16769 = vmatpush3.msra.mxu1 %v5375_v24  ;;  %v5386_v24 = vld [vmem:[%s23743_s4 + $0x20] sm:$0xff] }
0x1894   : > { %16770 = vmatprep.subr.mxu1 %v20400_v26 }
0x1895   : > { %16771 = vmatpush3.msra.mxu1 %v5374_v42  ;;  %v5385_v42 = vld [vmem:[%s23743_s4 + $0x18] sm:$0xff] }
0x1896   : > { %16772 = vmatprep.subr.mxu1 %v20400_v26 }
0x1897   : > { %16773 = vmatpush3.msra.mxu1 %v5373_v25  ;;  %v5384_v25 = vld [vmem:[%s23743_s4 + $0x10] sm:$0xff] }
0x1898   : > { %16774 = vmatprep.subr.mxu1 %v20400_v26 }
0x1899   : > { %16775 = vmatpush3.msra.mxu1 %v5372_v4 }
0x189a   : > { %16776 = vmatprep.subr.mxu1 %v20400_v26 }
0x189b   : > { %16777 = vmatpush3.msra.mxu1 %v5371_v6  ;;  %v14920_v6 = vld [vmem:[#allocation70] ss:$0 sm:$0xff] }
0x189c   : > { %16778 = vmatprep.subr.mxu1 %v20400_v26 }
0x189d   : > { %16779 = vmatpush3.msra.mxu1 %v5370_v11 }
0x189e   : > { %16780 = vmatprep.subr.mxu1 %v20400_v26 }
0x189f   : > { %16781 = vmatpush3.msra.mxu1 %v5369_v14  ;;  %v14922_v14 = vld [vmem:[#allocation73] ss:$0 sm:$0xff] }
0x18a0   : > { %16782 = vmatprep.subr.mxu1 %v20400_v26 }
0x18a1   : > { %16783 = vmatpush3.msra.mxu1 %v5368_v47 }
0x18a2   : > { %16784 = vmatprep.subr.mxu1 %v20400_v26 }
0x18a3   : > { %16785 = vmatpush3.msra.mxu1 %v5367_v0 }
0x18a4   : > { %16786 = vmatprep.subr.mxu1 %v20400_v26 }
0x18a5   : > { %16787 = vmatpush3.msra.mxu1 %v5366_v1  ;;  %v5420_v1 = vld [vmem:[#allocation79] sm:$0xf] }
0x18a6   : > { %16826 = vmatprep.subr.mxu1 %v20400_v26 }
0x1936   : > { %v11362_v45 = vpop.f32.mrf.mxu1 }
0x1937   : > { %v11366_v46 = vadd.f32 %v11362_v45, %v11222_v43  ;;  %v5383_v43 = vld [vmem:[%s23743_s4 + $0x8] sm:$0xff]  ;;  %v5382_v45 = vld [vmem:[%s23743_s4] sm:$0xff] }
0x1938   : > { %v16667_v2 = vpop.f32.mrf.mxu1 }
0x1939   : > { %16707 = vmatpush3.msra.mxu0 %v11366_v46  ;;  %v5453_v2 = vld [vmem:[%s23744_s0 + $0x78] sm:$0xff]  ;;  %s23748_s0 = sld [smem:[#allocation255_spill]] }
0x193a   : > { %16709 = vmatmul.mubr.msk.f32.vlgmr.msra.gmra.mxu0 %vm10183_vm4, %v5417_v50  ;;  %16711 = vmatprep.subr.mxu0 %v20400_v26  ;;  %v5455_v50 = vld [vmem:[#allocation83] sm:$0xf] }
0x193b   : > { %16712 = vmatpush3.msra.mxu0 %v11366_v46  ;;  %16713 = vmatprep.mubr.msk.f32.mxu0 %vm20402_vm3, %v20400_v26 }
0x193c   : > { %16716 = vmatprep.subr.mxu0 %v20400_v26 }
0x193e   : > { %16714 = vmatmul.mubr.msk.f32.vlgmr.msra.gmra.mxu0 %vm10183_vm4, %v5418_v31  ;;  %v5452_v31 = vld [vmem:[%s23745_s1 + $0x70] sm:$0xff] }
0x193f   : > { %16717 = vmatpush3.msra.mxu0 %v11366_v46  ;;  %16718 = vmatprep.mubr.msk.f32.mxu0 %vm20402_vm3, %v20400_v26  ;;  %s23749_s4 = smov %s23748_s0 }
0x1940   : > { %16721 = vmatprep.subr.mxu0 %v20400_v26 }
0x1942   : > { %16719 = vmatmul.mubr.msk.f32.vlgmr.msra.gmra.mxu0 %vm10183_vm4, %v5419_v7  ;;  %v5451_v7 = vld [vmem:[%s23745_s1 + $0x68] sm:$0xff] }
0x1943   : > { %16722 = vmatpush3.msra.mxu0 %v5365_v13  ;;  %16753 = vmatprep.mubr.msk.f32.mxu0 %vm20402_vm3, %v20400_v26  ;;  %v5450_v13 = vld [vmem:[%s23745_s1 + $0x60] sm:$0xff] }
0x1944   : > { %16723 = vmatprep.subr.mxu0 %v20400_v26 }
0x1945   : > { %16724 = vmatpush3.msra.mxu0 %v5364_v51  ;;  %v5448_v51 = vld [vmem:[%s23745_s1 + $0x50] sm:$0xff] }
0x1946   : > { %v11518_v54 = vpop.f32.mrf.mxu1  ;;  %16725 = vmatprep.subr.mxu0 %v20400_v26 }
0x1947   : > { %v22917_v56 = vadd.f32 %v11518_v54, %v11447_v53  ;;  %16726 = vmatpush3.msra.mxu0 %v5363_v52  ;;  %v5447_v52 = vld [vmem:[%s23745_s1 + $0x48] sm:$0xff]  ;;  %v5446_v53 = vld [vmem:[%s23745_s1 + $0x40] sm:$0xff]  ;;  %v5445_v54 = vld [vmem:[%s23745_s1 + $0x38] sm:$0xff] }
0x1948   : > { %v16705_v57 = vpop.f32.mrf.mxu1  ;;  %16727 = vmatprep.subr.mxu0 %v20400_v26 }
0x1949   : > { %16728 = vmatpush3.msra.mxu0 %v5362_v55  ;;  %v22995_v46 = vmax.f32 %v22917_v56, 0.0  ;;  %v5444_v55 = vld [vmem:[%s23745_s1 + $0x30] sm:$0xff]  ;;  %v5443_v56 = vld [vmem:[%s23745_s1 + $0x28] sm:$0xff]  ;;  %v5442_v57 = vld [vmem:[%s23745_s1 + $0x20] sm:$0xff] }
0x194a   : > { %16729 = vmatprep.subr.mxu0 %v20400_v26 }
0x194b   : > { %16730 = vmatpush3.msra.mxu0 %v5361_v15  ;;  %v5441_v15 = vld [vmem:[%s23745_s1 + $0x18] sm:$0xff] }
0x194c   : > { %16731 = vmatprep.subr.mxu0 %v20400_v26 }
0x194d   : > { %16732 = vmatpush3.msra.mxu0 %v5360_v58  ;;  %v5440_v58 = vld [vmem:[%s23745_s1 + $0x10] sm:$0xff] }
0x194e   : > { %16733 = vmatprep.subr.mxu0 %v20400_v26 }
0x194f   : > { %16734 = vmatpush3.msra.mxu0 %v5359_v59  ;;  %v5439_v59 = vld [vmem:[%s23745_s1 + $0x8] sm:$0xff] }
0x1950   : > { %16735 = vmatprep.subr.mxu0 %v20400_v26 }
0x1951   : > { %16736 = vmatpush3.msra.mxu0 %v5358_v60  ;;  %v5438_v60 = vld [vmem:[%s23745_s1] sm:$0xff] }
0x1952   : > { %16737 = vmatprep.subr.mxu0 %v20400_v26 }
0x1953   : > { %16738 = vmatpush3.msra.mxu0 %v5357_v62 }
0x1954   : > { %16739 = vmatprep.subr.mxu0 %v20400_v26 }
0x1955   : > { %16740 = vmatpush3.msra.mxu0 %v5356_v63 }
0x1956   : > { %16741 = vmatprep.subr.mxu0 %v20400_v26 }
0x1957   : > { %16742 = vmatpush3.msra.mxu0 %v5355_v5 }
0x1958   : > { %16743 = vmatprep.subr.mxu0 %v20400_v26 }
0x1959   : > { %16744 = vmatpush3.msra.mxu0 %v5354_v9  ;;  %v14921_v9 = vld [vmem:[#allocation71] ss:$0 sm:$0xff] }
0x195a   : > { %16745 = vmatprep.subr.mxu0 %v20400_v26 }
0x195b   : > { %16746 = vmatpush3.msra.mxu0 %v5353_v12 }
0x195c   : > { %16747 = vmatprep.subr.mxu0 %v20400_v26 }
0x195d   : > { %16748 = vmatpush3.msra.mxu0 %v5352_v10 }
0x195e   : > { %16749 = vmatprep.subr.mxu0 %v20400_v26 }
0x195f   : > { %16750 = vmatpush3.msra.mxu0 %v5351_v61 }
0x1960   : > { %16751 = vmatprep.subr.mxu0 %v20400_v26 }
0x1961   : > { %16752 = vmatpush3.msra.mxu0 %v5350_v19 }
0x1962   : > { %16791 = vmatprep.subr.mxu0 %v20400_v26 }
0x19fa   : > { %v11597_v17 = vpop.f32.mrf.mxu0 }
0x19fb   : > { %v11598_v29 = vadd.f32 %v11597_v17, %v11526_v18  ;;  %v5530_v18 = vld [vmem:[#allocation92] sm:$0xf] }
0x19fc   : > { %v16710_v20 = vpop.f32.mrf.mxu0 }
0x19fe   : > { %v11675_v22 = vpop.f32.mrf.mxu0 }
0x19ff   : > { %v11676_v23 = vadd.f32 %v11675_v22, %v11604_v21  ;;  %v5454_v21 = vld [vmem:[#allocation82] sm:$0xf]  ;;  %v5473_v22 = vld [vmem:[%s23746_s10 + $0x78] sm:$0xff]  ;;  %s23750_s10 = sld [smem:[#allocation246_spill]] }
0x1a00   : > { %v16715_v28 = vpop.f32.mrf.mxu0 }
0x1a01   : > { %v11679_v38 = vmax.f32 %v11598_v29, %v11676_v23  ;;  %v5437_v23 = vld [vmem:[%s23748_s0 + $0x78] sm:$0xff]  ;;  %v5472_v28 = vld [vmem:[%s23747_s2 + $0x70] sm:$0xff]  ;;  %s23752_s0 = sld [smem:[#allocation262_spill]] }
0x1a02   : > { %v11754_v30 = vpop.f32.mrf.mxu0  ;;  %v5436_v29 = vld [vmem:[%s23749_s4 + $0x70] sm:$0xff] }
0x1a03   : > { %v11755_v44 = vadd.f32 %v11754_v30, %v11683_v3  ;;  %v5471_v3 = vld [vmem:[%s23747_s2 + $0x68] sm:$0xff] }
0x1a04   : > { %v16720_v32 = vpop.f32.mrf.mxu0  ;;  %v5435_v30 = vld [vmem:[%s23749_s4 + $0x68] sm:$0xff] }
0x1a05   : > { %v11758_v33 = vmax.f32 %v11679_v38, %v11755_v44  ;;  %v5470_v38 = vld [vmem:[%s23747_s2 + $0x60] sm:$0xff]  ;;  %v5469_v32 = vld [vmem:[%s23747_s2 + $0x58] sm:$0xff]  ;;  %s23751_s1 = smov %s23750_s10 }
0x1a06   : > { %v5434_v44 = vld [vmem:[%s23749_s4 + $0x60] sm:$0xff] }
0x1a07   : > { %16754 = vmatmul.mubr.f32.vlgmr.msra.gmra.mxu0 %v11758_v33  ;;  %16789 = vmatmul.mubr.f32.vlgmr.msra.gmra.mxu1 %v11758_v33 }
0x1a08   : > { %16792 = vmatpush3.msra.mxu0 %v5397_v48  ;;  %16823 = vmatprep.mubr.msk.f32.mxu0 %vm20402_vm3, %v20400_v26  ;;  %v5468_v48 = vld [vmem:[%s23747_s2 + $0x50] sm:$0xff] }
0x1a09   : > { %16793 = vmatprep.subr.mxu0 %v20400_v26  ;;  %16828 = vmatprep.mubr.msk.f32.mxu1 %vm20402_vm3, %v20400_v26 }
0x1a0a   : > { %16794 = vmatpush3.msra.mxu0 %v5396_v34  ;;  %v5432_v34 = vld [vmem:[%s23749_s4 + $0x50] sm:$0xff] }
0x1a0b   : > { %16795 = vmatprep.subr.mxu0 %v20400_v26 }
0x1a0c   : > { %16796 = vmatpush3.msra.mxu0 %v5395_v35  ;;  %v5467_v35 = vld [vmem:[%s23747_s2 + $0x48] sm:$0xff] }
0x1a0d   : > { %16797 = vmatprep.subr.mxu0 %v20400_v26 }
0x1a0e   : > { %16798 = vmatpush3.msra.mxu0 %v5394_v36  ;;  %v5431_v36 = vld [vmem:[%s23749_s4 + $0x48] sm:$0xff] }
0x1a0f   : > { %16799 = vmatprep.subr.mxu0 %v20400_v26 }
0x1a10   : > { %16800 = vmatpush3.msra.mxu0 %v5393_v49  ;;  %v5466_v49 = vld [vmem:[%s23747_s2 + $0x40] sm:$0xff] }
0x1a11   : > { %16801 = vmatprep.subr.mxu0 %v20400_v26 }
0x1a12   : > { %16802 = vmatpush3.msra.mxu0 %v5392_v37  ;;  %v5430_v37 = vld [vmem:[%s23749_s4 + $0x40] sm:$0xff] }
0x1a13   : > { %16803 = vmatprep.subr.mxu0 %v20400_v26 }
0x1a14   : > { %16804 = vmatpush3.msra.mxu0 %v5391_v39  ;;  %v5465_v39 = vld [vmem:[%s23747_s2 + $0x38] sm:$0xff] }
0x1a15   : > { %16805 = vmatprep.subr.mxu0 %v20400_v26 }
0x1a16   : > { %16806 = vmatpush3.msra.mxu0 %v5390_v40  ;;  %v5429_v40 = vld [vmem:[%s23749_s4 + $0x38] sm:$0xff] }
0x1a17   : > { %16807 = vmatprep.subr.mxu0 %v20400_v26 }
0x1a18   : > { %16808 = vmatpush3.msra.mxu0 %v5389_v41  ;;  %v5464_v41 = vld [vmem:[%s23747_s2 + $0x30] sm:$0xff] }
0x1a19   : > { %16809 = vmatprep.subr.mxu0 %v20400_v26 }
0x1a1a   : > { %16810 = vmatpush3.msra.mxu0 %v5388_v16  ;;  %v5428_v16 = vld [vmem:[%s23749_s4 + $0x30] sm:$0xff] }
0x1a1b   : > { %16811 = vmatprep.subr.mxu0 %v20400_v26 }
0x1a1c   : > { %16812 = vmatpush3.msra.mxu0 %v5387_v27  ;;  %v5463_v27 = vld [vmem:[%s23747_s2 + $0x28] sm:$0xff] }
0x1a1d   : > { %16813 = vmatprep.subr.mxu0 %v20400_v26 }
0x1a1e   : > { %16814 = vmatpush3.msra.mxu0 %v5386_v24  ;;  %v5427_v24 = vld [vmem:[%s23749_s4 + $0x28] sm:$0xff] }
0x1a1f   : > { %16815 = vmatprep.subr.mxu0 %v20400_v26 }
0x1a20   : > { %16816 = vmatpush3.msra.mxu0 %v5385_v42  ;;  %v5462_v42 = vld [vmem:[%s23747_s2 + $0x20] sm:$0xff] }
0x1a21   : > { %16817 = vmatprep.subr.mxu0 %v20400_v26 }
0x1a22   : > { %16818 = vmatpush3.msra.mxu0 %v5384_v25  ;;  %v5426_v25 = vld [vmem:[%s23749_s4 + $0x20] sm:$0xff] }
0x1a23   : > { %16819 = vmatprep.subr.mxu0 %v20400_v26 }
0x1a24   : > { %16820 = vmatpush3.msra.mxu0 %v5383_v43  ;;  %v5461_v43 = vld [vmem:[%s23747_s2 + $0x18] sm:$0xff] }
0x1a25   : > { %16821 = vmatprep.subr.mxu0 %v20400_v26 }
0x1a26   : > { %16822 = vmatpush3.msra.mxu0 %v5382_v45  ;;  %v5425_v45 = vld [vmem:[%s23749_s4 + $0x18] sm:$0xff] }
0x1a27   : > { %16824 = vmatmul.mubr.f32.vlgmr.msra.gmra.mxu0 %v11758_v33  ;;  %16871 = vmatprep.subr.mxu0 %v20400_v26  ;;  %v5433_v33 = vld [vmem:[%s23749_s4 + $0x58] sm:$0xff] }
0x1a28   : > { %16872 = vmatpush3.msra.mxu0 %v22995_v46  ;;  %16873 = vmatprep.mubr.msk.f32.mxu0 %vm20402_vm3, %v20400_v26 }
0x1a29   : > { %16876 = vmatprep.subr.mxu0 %v20400_v26 }
0x1a2b   : > { %16874 = vmatmul.mubr.msk.f32.vlgmr.msra.gmra.mxu0 %vm10183_vm4, %v5455_v50  ;;  %v5460_v50 = vld [vmem:[%s23747_s2 + $0x10] sm:$0xff] }
0x1a2c   : > { %16908 = vmatprep.mubr.msk.f32.mxu0 %vm20402_vm3, %v20400_v26  ;;  %16877 = vmatpush3.msra.mxu0 %v5453_v2  ;;  %v5424_v2 = vld [vmem:[%s23749_s4 + $0x10] sm:$0xff] }
0x1a2d   : > { %16878 = vmatprep.subr.mxu0 %v20400_v26 }
0x1a2e   : > { %16879 = vmatpush3.msra.mxu0 %v5452_v31  ;;  %v5459_v31 = vld [vmem:[%s23747_s2 + $0x8] sm:$0xff] }
0x1a2f   : > { %16880 = vmatprep.subr.mxu0 %v20400_v26 }
0x1a30   : > { %16881 = vmatpush3.msra.mxu0 %v5451_v7  ;;  %v5423_v7 = vld [vmem:[%s23749_s4 + $0x8] sm:$0xff] }
0x1a31   : > { %16882 = vmatprep.subr.mxu0 %v20400_v26 }
0x1a32   : > { %16883 = vmatpush3.msra.mxu0 %v5450_v13  ;;  %v5458_v13 = vld [vmem:[%s23747_s2] sm:$0xff]  ;;  %s23753_s2 = smov %s23752_s0 }
0x1a33   : > { %16884 = vmatprep.subr.mxu0 %v20400_v26 }
0x1a34   : > { %16885 = vmatpush3.msra.mxu0 %v5449_v8  ;;  %v5422_v8 = vld [vmem:[%s23749_s4] sm:$0xff] }
0x1a35   : > { %16886 = vmatprep.subr.mxu0 %v20400_v26 }
0x1a36   : > { %16887 = vmatpush3.msra.mxu0 %v5448_v51 }
0x1a37   : > { %16888 = vmatprep.subr.mxu0 %v20400_v26 }
0x1a38   : > { %16889 = vmatpush3.msra.mxu0 %v5447_v52 }
0x1a39   : > { %16890 = vmatprep.subr.mxu0 %v20400_v26 }
0x1a3a   : > { %16891 = vmatpush3.msra.mxu0 %v5446_v53 }
0x1a3b   : > { %16892 = vmatprep.subr.mxu0 %v20400_v26 }
0x1a3c   : > { %16893 = vmatpush3.msra.mxu0 %v5445_v54 }
0x1a3d   : > { %16894 = vmatprep.subr.mxu0 %v20400_v26 }
0x1a3e   : > { %16895 = vmatpush3.msra.mxu0 %v5444_v55 }
0x1a3f   : > { %16896 = vmatprep.subr.mxu0 %v20400_v26 }
0x1a40   : > { %16897 = vmatpush3.msra.mxu0 %v5443_v56  ;;  %v5413_v56 = vld [vmem:[%s23750_s10 + $0x78] sm:$0xff]  ;;  %s23754_s10 = sld [smem:[#allocation263_spill]] }
0x1a41   : > { %16898 = vmatprep.subr.mxu0 %v20400_v26 }
0x1a42   : > { %16899 = vmatpush3.msra.mxu0 %v5442_v57 }
0x1a43   : > { %16900 = vmatprep.subr.mxu0 %v20400_v26 }
0x1a44   : > { %16901 = vmatpush3.msra.mxu0 %v5441_v15  ;;  %v5412_v15 = vld [vmem:[%s23751_s1 + $0x70] sm:$0xff] }
0x1a45   : > { %16902 = vmatprep.subr.mxu0 %v20400_v26 }
0x1a46   : > { %16903 = vmatpush3.msra.mxu0 %v5440_v58  ;;  %s23755_s4 = smov %s23754_s10 }
0x1a47   : > { %16904 = vmatprep.subr.mxu0 %v20400_v26 }
0x1a48   : > { %16905 = vmatpush3.msra.mxu0 %v5439_v59  ;;  %v5532_v59 = vld [vmem:[#allocation95] sm:$0xf] }
0x1a49   : > { %16906 = vmatprep.subr.mxu0 %v20400_v26 }
0x1a4a   : > { %16907 = vmatpush3.msra.mxu0 %v5438_v60 }
0x1a4b   : > { %16946 = vmatprep.subr.mxu0 %v20400_v26 }
0x1ac7   : > { %v11831_v62 = vpop.f32.mrf.mxu0  ;;  %v11907_v63 = vpop.f32.mrf.mxu1 }
0x1ac8   : > { %v11832_v11 = vadd.f32 %v14920_v6, %v11831_v62  ;;  %v11908_v12 = vadd.f32 %v14921_v9, %v11907_v63  ;;  %v5411_v62 = vld [vmem:[%s23751_s1 + $0x68] sm:$0xff]  ;;  %v5410_v63 = vld [vmem:[%s23751_s1 + $0x60] sm:$0xff] }
0x1ac9   : > { %v16755_v4 = vpop.f32.mrf.mxu0  ;;  %v16790_v5 = vpop.f32.mrf.mxu1  ;;  %v5407_v6 = vld [vmem:[%s23751_s1 + $0x48] sm:$0xff]  ;;  %v5406_v9 = vld [vmem:[%s23751_s1 + $0x40] sm:$0xff] }
0x1aca   : > { %v11911_v47 = vmax.f32 %v11832_v11, %v11908_v12  ;;  %v5409_v4 = vld [vmem:[%s23751_s1 + $0x58] sm:$0xff]  ;;  %v5408_v5 = vld [vmem:[%s23751_s1 + $0x50] sm:$0xff] }
0x1acb   : > { %v5405_v11 = vld [vmem:[%s23751_s1 + $0x38] sm:$0xff]  ;;  %v5404_v12 = vld [vmem:[%s23751_s1 + $0x30] sm:$0xff] }
0x1ae7   : > { %v11984_v10 = vpop.f32.mrf.mxu0 }
0x1ae8   : > { %v11985_v61 = vadd.f32 %v14922_v14, %v11984_v10  ;;  %v5403_v14 = vld [vmem:[%s23751_s1 + $0x28] sm:$0xff]  ;;  %v5402_v10 = vld [vmem:[%s23751_s1 + $0x20] sm:$0xff] }
0x1ae9   : > { %v16825_v0 = vpop.f32.mrf.mxu0 }
0x1aea   : > { %v11988_v19 = vmax.f32 %v11911_v47, %v11985_v61  ;;  %v5401_v47 = vld [vmem:[%s23751_s1 + $0x18] sm:$0xff]  ;;  %v5400_v61 = vld [vmem:[%s23751_s1 + $0x10] sm:$0xff]  ;;  %v5399_v0 = vld [vmem:[%s23751_s1 + $0x8] sm:$0xff] }
0x1aeb   : > { %v12282_v17 = vpop.f32.mrf.mxu0 }
0x1aec   : > { %16827 = vmatpush3.msra.mxu1 %v11988_v19  ;;  %16909 = vmatmul.mubr.f32.vlgmr.msra.gmra.mxu0 %v12282_v17  ;;  %v5398_v19 = vld [vmem:[%s23751_s1] sm:$0xff]  ;;  %v5489_v17 = vld [vmem:[%s23752_s0 + $0x78] sm:$0xff]  ;;  %s23756_s0 = sld [smem:[#allocation287_spill]] }
0x1aed   : > { %16947 = vmatpush3.msra.mxu0 %v22995_v46  ;;  %16829 = vmatmul.mubr.msk.f32.vlgmr.msra.gmra.mxu1 %vm10183_vm4, %v5420_v1  ;;  %v16875_v20 = vpop.f32.mrf.mxu0  ;;  %v5531_v1 = vld [vmem:[#allocation94] sm:$0xf] }
0x1aee   : > { %16831 = vmatprep.subr.mxu1 %v20400_v26  ;;  %16948 = vmatprep.mubr.msk.f32.mxu0 %vm20402_vm3, %v20400_v26  ;;  %v5505_v20 = vld [vmem:[%s23754_s10 + $0x78] sm:$0xff]  ;;  %s23758_s10 = sld [smem:[#allocation288_spill]] }
0x1aef   : > { %16832 = vmatpush3.msra.mxu1 %v22995_v46  ;;  %16833 = vmatprep.mubr.msk.f32.mxu1 %vm20402_vm3, %v20400_v26 }
0x1af0   : > { %16949 = vmatmul.mubr.msk.f32.vlgmr.msra.gmra.mxu0 %vm10183_vm4, %v5530_v18  ;;  %16951 = vmatprep.subr.mxu0 %v20400_v26  ;;  %v5488_v18 = vld [vmem:[%s23753_s2 + $0x70] sm:$0xff] }
0x1af1   : > { %16834 = vmatmul.mubr.msk.f32.vlgmr.msra.gmra.mxu1 %vm10183_vm4, %v5454_v21  ;;  %16836 = vmatprep.subr.mxu1 %v20400_v26  ;;  %v5487_v21 = vld [vmem:[%s23753_s2 + $0x68] sm:$0xff] }
0x1af2   : > { %16952 = vmatpush3.msra.mxu0 %v5473_v22  ;;  %16837 = vmatpush3.msra.mxu1 %v5437_v23  ;;  %v5503_v22 = vld [vmem:[%s23755_s4 + $0x68] sm:$0xff]  ;;  %v5486_v23 = vld [vmem:[%s23753_s2 + $0x60] sm:$0xff]  ;;  %s23757_s1 = smov %s23756_s0 }
0x1af3   : > { %16953 = vmatprep.subr.mxu0 %v20400_v26  ;;  %16838 = vmatprep.subr.mxu1 %v20400_v26 }
0x1af4   : > { %16954 = vmatpush3.msra.mxu0 %v5472_v28  ;;  %16839 = vmatpush3.msra.mxu1 %v5436_v29  ;;  %v5502_v28 = vld [vmem:[%s23755_s4 + $0x60] sm:$0xff]  ;;  %v5485_v29 = vld [vmem:[%s23753_s2 + $0x58] sm:$0xff] }
0x1af5   : > { %16955 = vmatprep.subr.mxu0 %v20400_v26  ;;  %16840 = vmatprep.subr.mxu1 %v20400_v26 }
0x1af6   : > { %16956 = vmatpush3.msra.mxu0 %v5471_v3  ;;  %16841 = vmatpush3.msra.mxu1 %v5435_v30  ;;  %v5501_v3 = vld [vmem:[%s23755_s4 + $0x58] sm:$0xff]  ;;  %v5484_v30 = vld [vmem:[%s23753_s2 + $0x50] sm:$0xff] }
0x1af7   : > { %16957 = vmatprep.subr.mxu0 %v20400_v26  ;;  %16842 = vmatprep.subr.mxu1 %v20400_v26 }
0x1af8   : > { %16958 = vmatpush3.msra.mxu0 %v5470_v38  ;;  %16843 = vmatpush3.msra.mxu1 %v5434_v44  ;;  %v5500_v38 = vld [vmem:[%s23755_s4 + $0x50] sm:$0xff]  ;;  %v5483_v44 = vld [vmem:[%s23753_s2 + $0x48] sm:$0xff] }
0x1af9   : > { %16959 = vmatprep.subr.mxu0 %v20400_v26  ;;  %16844 = vmatprep.subr.mxu1 %v20400_v26 }
0x1afa   : > { %16960 = vmatpush3.msra.mxu0 %v5469_v32  ;;  %16845 = vmatpush3.msra.mxu1 %v5433_v33  ;;  %v5499_v32 = vld [vmem:[%s23755_s4 + $0x48] sm:$0xff]  ;;  %v5482_v33 = vld [vmem:[%s23753_s2 + $0x40] sm:$0xff] }
0x1afb   : > { %16961 = vmatprep.subr.mxu0 %v20400_v26  ;;  %16846 = vmatprep.subr.mxu1 %v20400_v26 }
0x1afc   : > { %16962 = vmatpush3.msra.mxu0 %v5468_v48  ;;  %16847 = vmatpush3.msra.mxu1 %v5432_v34  ;;  %v5498_v48 = vld [vmem:[%s23755_s4 + $0x40] sm:$0xff]  ;;  %v5481_v34 = vld [vmem:[%s23753_s2 + $0x38] sm:$0xff] }
0x1afd   : > { %16963 = vmatprep.subr.mxu0 %v20400_v26  ;;  %16848 = vmatprep.subr.mxu1 %v20400_v26 }
0x1afe   : > { %16964 = vmatpush3.msra.mxu0 %v5467_v35  ;;  %16849 = vmatpush3.msra.mxu1 %v5431_v36  ;;  %v5497_v35 = vld [vmem:[%s23755_s4 + $0x38] sm:$0xff]  ;;  %v5480_v36 = vld [vmem:[%s23753_s2 + $0x30] sm:$0xff] }
0x1aff   : > { %16965 = vmatprep.subr.mxu0 %v20400_v26  ;;  %16850 = vmatprep.subr.mxu1 %v20400_v26 }
0x1b00   : > { %16966 = vmatpush3.msra.mxu0 %v5466_v49  ;;  %16851 = vmatpush3.msra.mxu1 %v5430_v37  ;;  %v5496_v49 = vld [vmem:[%s23755_s4 + $0x30] sm:$0xff]  ;;  %v5479_v37 = vld [vmem:[%s23753_s2 + $0x28] sm:$0xff] }
0x1b01   : > { %16967 = vmatprep.subr.mxu0 %v20400_v26  ;;  %16852 = vmatprep.subr.mxu1 %v20400_v26 }
0x1b02   : > { %16968 = vmatpush3.msra.mxu0 %v5465_v39  ;;  %16853 = vmatpush3.msra.mxu1 %v5429_v40  ;;  %v5495_v39 = vld [vmem:[%s23755_s4 + $0x28] sm:$0xff]  ;;  %v5478_v40 = vld [vmem:[%s23753_s2 + $0x20] sm:$0xff] }
0x1b03   : > { %16969 = vmatprep.subr.mxu0 %v20400_v26  ;;  %16854 = vmatprep.subr.mxu1 %v20400_v26 }
0x1b04   : > { %16970 = vmatpush3.msra.mxu0 %v5464_v41  ;;  %16855 = vmatpush3.msra.mxu1 %v5428_v16  ;;  %v5494_v41 = vld [vmem:[%s23755_s4 + $0x20] sm:$0xff]  ;;  %v5477_v16 = vld [vmem:[%s23753_s2 + $0x18] sm:$0xff] }
0x1b05   : > { %16971 = vmatprep.subr.mxu0 %v20400_v26  ;;  %16856 = vmatprep.subr.mxu1 %v20400_v26 }
0x1b06   : > { %16972 = vmatpush3.msra.mxu0 %v5463_v27  ;;  %16857 = vmatpush3.msra.mxu1 %v5427_v24  ;;  %v5493_v27 = vld [vmem:[%s23755_s4 + $0x18] sm:$0xff]  ;;  %v5476_v24 = vld [vmem:[%s23753_s2 + $0x10] sm:$0xff] }
0x1b07   : > { %16973 = vmatprep.subr.mxu0 %v20400_v26  ;;  %16858 = vmatprep.subr.mxu1 %v20400_v26 }
0x1b08   : > { %16974 = vmatpush3.msra.mxu0 %v5462_v42  ;;  %16859 = vmatpush3.msra.mxu1 %v5426_v25  ;;  %v5492_v42 = vld [vmem:[%s23755_s4 + $0x10] sm:$0xff]  ;;  %v5475_v25 = vld [vmem:[%s23753_s2 + $0x8] sm:$0xff] }
0x1b09   : > { %16975 = vmatprep.subr.mxu0 %v20400_v26  ;;  %16860 = vmatprep.subr.mxu1 %v20400_v26 }
0x1b0a   : > { %16976 = vmatpush3.msra.mxu0 %v5461_v43  ;;  %16861 = vmatpush3.msra.mxu1 %v5425_v45  ;;  %v5491_v43 = vld [vmem:[%s23755_s4 + $0x8] sm:$0xff]  ;;  %v5474_v45 = vld [vmem:[%s23753_s2] sm:$0xff] }
0x1b0b   : > { %16977 = vmatprep.subr.mxu0 %v20400_v26  ;;  %16862 = vmatprep.subr.mxu1 %v20400_v26 }
0x1b0c   : > { %16978 = vmatpush3.msra.mxu0 %v5460_v50  ;;  %16863 = vmatpush3.msra.mxu1 %v5424_v2  ;;  %v5490_v50 = vld [vmem:[%s23755_s4] sm:$0xff] }
0x1b0d   : > { %16979 = vmatprep.subr.mxu0 %v20400_v26  ;;  %16864 = vmatprep.subr.mxu1 %v20400_v26 }
0x1b0e   : > { %16983 = vmatprep.mubr.msk.f32.mxu0 %vm20402_vm3, %v20400_v26  ;;  %16868 = vmatprep.mubr.msk.f32.mxu1 %vm20402_vm3, %v20400_v26 }
0x1b0f   : > { %16980 = vmatpush3.msra.mxu0 %v5459_v31  ;;  %16865 = vmatpush3.msra.mxu1 %v5423_v7 }
0x1b10   : > { %16981 = vmatprep.subr.mxu0 %v20400_v26  ;;  %16866 = vmatprep.subr.mxu1 %v20400_v26 }
0x1b11   : > { %16982 = vmatpush3.msra.mxu0 %v5458_v13  ;;  %16867 = vmatpush3.msra.mxu1 %v5422_v8 }
0x1b12   : > { %17026 = vmatprep.subr.mxu0 %v20400_v26  ;;  %16911 = vmatprep.subr.mxu1 %v20400_v26 }
0x1bac   : > { %v23117_v51 = vpop.f32.mrf.mxu0 }
0x1bad   : > { %v12058_v52 = vpop.f32.mrf.mxu1 }
0x1bae   : > { %v16910_v53 = vpop.f32.mrf.mxu0 }
0x1baf   : > { %v16830_v54 = vpop.f32.mrf.mxu1  ;;  %v14925_v53 = vld [vmem:[#allocation80] ss:$0 sm:$0xff] }
0x1bb0   : > { %v12496_v55 = vpop.f32.mrf.mxu0 }
0x1bb1   : > { %v12132_v57 = vpop.f32.mrf.mxu1  ;;  %16984 = vmatmul.mubr.f32.vlgmr.msra.gmra.mxu0 %v12496_v55 }
0x1bb2   : > { %17027 = vmatpush3.msra.mxu0 %v22995_v46  ;;  %16869 = vmatmul.mubr.f32.vlgmr.msra.gmra.mxu1 %v12132_v57  ;;  %v16950_v58 = vpop.f32.mrf.mxu0 }
0x1bb3   : > { %16912 = vmatpush3.msra.mxu1 %v5413_v56  ;;  %v16835_v60 = vpop.f32.mrf.mxu1  ;;  %16943 = vmatprep.mubr.msk.f32.mxu1 %vm20402_vm3, %v20400_v26 }
0x1bb4   : > { %16913 = vmatprep.subr.mxu1 %v20400_v26  ;;  %17028 = vmatprep.mubr.msk.f32.mxu0 %vm20402_vm3, %v20400_v26 }
0x1bb5   : > { %16914 = vmatpush3.msra.mxu1 %v5412_v15  ;;  %17029 = vmatmul.mubr.msk.f32.vlgmr.msra.gmra.mxu0 %vm10183_vm4, %v5532_v59 }
0x1bb6   : > { %16915 = vmatprep.subr.mxu1 %v20400_v26  ;;  %17031 = vmatprep.subr.mxu0 %v20400_v26 }
0x1bb7   : > { %16916 = vmatpush3.msra.mxu1 %v5411_v62  ;;  %17063 = vmatprep.mubr.msk.f32.mxu0 %vm20402_vm3, %v20400_v26 }
0x1bb8   : > { %16917 = vmatprep.subr.mxu1 %v20400_v26  ;;  %17032 = vmatpush3.msra.mxu0 %v5505_v20  ;;  %v5509_v20 = vld [vmem:[#allocation88 + $0x18] sm:$0xff] }
0x1bb9   : > { %16918 = vmatpush3.msra.mxu1 %v5410_v63  ;;  %17033 = vmatprep.subr.mxu0 %v20400_v26  ;;  %v14928_v63 = vld [vmem:[#allocation85] ss:$0 sm:$0xff] }
0x1bba   : > { %16919 = vmatprep.subr.mxu1 %v20400_v26 }
0x1bbb   : > { %16920 = vmatpush3.msra.mxu1 %v5409_v4 }
0x1bbc   : > { %16921 = vmatprep.subr.mxu1 %v20400_v26 }
0x1bbd   : > { %16922 = vmatpush3.msra.mxu1 %v5408_v5 }
0x1bbe   : > { %16923 = vmatprep.subr.mxu1 %v20400_v26 }
0x1bbf   : > { %16924 = vmatpush3.msra.mxu1 %v5407_v6 }
0x1bc0   : > { %16925 = vmatprep.subr.mxu1 %v20400_v26 }
0x1bc1   : > { %16926 = vmatpush3.msra.mxu1 %v5406_v9 }
0x1bc2   : > { %16927 = vmatprep.subr.mxu1 %v20400_v26 }
0x1bc3   : > { %16928 = vmatpush3.msra.mxu1 %v5405_v11 }
0x1bc4   : > { %16929 = vmatprep.subr.mxu1 %v20400_v26 }
0x1bc5   : > { %16930 = vmatpush3.msra.mxu1 %v5404_v12  ;;  %v5533_v12 = vld [vmem:[#allocation97] sm:$0xf] }
0x1bc6   : > { %16931 = vmatprep.subr.mxu1 %v20400_v26 }
0x1bc7   : > { %16932 = vmatpush3.msra.mxu1 %v5403_v14  ;;  %v5535_v14 = vld [vmem:[#allocation100] sm:$0xf] }
0x1bc8   : > { %16933 = vmatprep.subr.mxu1 %v20400_v26 }
0x1bc9   : > { %16934 = vmatpush3.msra.mxu1 %v5402_v10  ;;  %v5513_v10 = vld [vmem:[#allocation88 + $0x38] sm:$0xff] }
0x1bca   : > { %16935 = vmatprep.subr.mxu1 %v20400_v26 }
0x1bcb   : > { %16936 = vmatpush3.msra.mxu1 %v5401_v47  ;;  %v5529_v47 = vld [vmem:[#allocation91 + $0x38] sm:$0xff] }
0x1bcc   : > { %16937 = vmatprep.subr.mxu1 %v20400_v26 }
0x1bcd   : > { %16938 = vmatpush3.msra.mxu1 %v5400_v61  ;;  %v5512_v61 = vld [vmem:[#allocation88 + $0x30] sm:$0xff] }
0x1bce   : > { %16939 = vmatprep.subr.mxu1 %v20400_v26 }
0x1bcf   : > { %16940 = vmatpush3.msra.mxu1 %v5399_v0  ;;  %v5528_v0 = vld [vmem:[#allocation91 + $0x30] sm:$0xff] }
0x1bd0   : > { %16941 = vmatprep.subr.mxu1 %v20400_v26 }
0x1bd1   : > { %16942 = vmatpush3.msra.mxu1 %v5398_v19  ;;  %v5511_v19 = vld [vmem:[#allocation88 + $0x28] sm:$0xff] }
0x1bd2   : > { %16944 = vmatmul.mubr.f32.vlgmr.msra.gmra.mxu1 %v12058_v52  ;;  %16986 = vmatprep.subr.mxu1 %v20400_v26 }
0x1bd3   : > { %16987 = vmatpush3.msra.mxu1 %v22995_v46  ;;  %16988 = vmatprep.mubr.msk.f32.mxu1 %vm20402_vm3, %v20400_v26  ;;  %v5504_v46 = vld [vmem:[%s23755_s4 + $0x70] sm:$0xff] }
0x1bd4   : > { %16991 = vmatprep.subr.mxu1 %v20400_v26  ;;  %17034 = vmatpush3.msra.mxu0 %v5504_v46  ;;  %v5525_v46 = vld [vmem:[#allocation91 + $0x18] sm:$0xff] }
0x1bd5   : > { %17035 = vmatprep.subr.mxu0 %v20400_v26 }
0x1bd6   : > { %16989 = vmatmul.mubr.msk.f32.vlgmr.msra.gmra.mxu1 %vm10183_vm4, %v5531_v1  ;;  %17036 = vmatpush3.msra.mxu0 %v5503_v22  ;;  %v5527_v1 = vld [vmem:[#allocation91 + $0x28] sm:$0xff]  ;;  %v5524_v22 = vld [vmem:[#allocation91 + $0x10] sm:$0xff] }
0x1bd7   : > { %17023 = vmatprep.mubr.msk.f32.mxu1 %vm20402_vm3, %v20400_v26  ;;  %16992 = vmatpush3.msra.mxu1 %v5489_v17  ;;  %v5510_v17 = vld [vmem:[#allocation88 + $0x20] sm:$0xff] }
0x1bd8   : > { %16993 = vmatprep.subr.mxu1 %v20400_v26  ;;  %17037 = vmatprep.subr.mxu0 %v20400_v26 }
0x1bd9   : > { %16994 = vmatpush3.msra.mxu1 %v5488_v18  ;;  %17038 = vmatpush3.msra.mxu0 %v5502_v28  ;;  %v5526_v18 = vld [vmem:[#allocation91 + $0x20] sm:$0xff]  ;;  %v5523_v28 = vld [vmem:[#allocation91 + $0x8] sm:$0xff] }
0x1bda   : > { %16995 = vmatprep.subr.mxu1 %v20400_v26  ;;  %17039 = vmatprep.subr.mxu0 %v20400_v26 }
0x1bdb   : > { %16996 = vmatpush3.msra.mxu1 %v5487_v21  ;;  %17040 = vmatpush3.msra.mxu0 %v5501_v3  ;;  %v5508_v21 = vld [vmem:[#allocation88 + $0x10] sm:$0xff]  ;;  %v5522_v3 = vld [vmem:[#allocation91] sm:$0xff] }
0x1bdc   : > { %16997 = vmatprep.subr.mxu1 %v20400_v26  ;;  %17041 = vmatprep.subr.mxu0 %v20400_v26 }
0x1bdd   : > { %16998 = vmatpush3.msra.mxu1 %v5486_v23  ;;  %17042 = vmatpush3.msra.mxu0 %v5500_v38  ;;  %v5507_v23 = vld [vmem:[#allocation88 + $0x8] sm:$0xff] }
0x1bde   : > { %16999 = vmatprep.subr.mxu1 %v20400_v26  ;;  %17043 = vmatprep.subr.mxu0 %v20400_v26 }
0x1bdf   : > { %17000 = vmatpush3.msra.mxu1 %v5485_v29  ;;  %17044 = vmatpush3.msra.mxu0 %v5499_v32  ;;  %v5506_v29 = vld [vmem:[#allocation88] sm:$0xff] }
0x1be0   : > { %17001 = vmatprep.subr.mxu1 %v20400_v26  ;;  %17045 = vmatprep.subr.mxu0 %v20400_v26  ;;  %v5605_v32 = vld [vmem:[%s23757_s1 + $0x30] sm:$0xff] }
0x1be1   : > { %17002 = vmatpush3.msra.mxu1 %v5484_v30  ;;  %17046 = vmatpush3.msra.mxu0 %v5498_v48  ;;  %v5606_v30 = vld [vmem:[%s23756_s0 + $0x38] sm:$0xff]  ;;  %v5534_v48 = vld [vmem:[#allocation98] sm:$0xf]  ;;  %s4907_s0 = sand.u32 1, %s20172_s7  }
0x1be2   : > { %17003 = vmatprep.subr.mxu1 %v20400_v26  ;;  %17047 = vmatprep.subr.mxu0 %v20400_v26  ;;  %s13634_s5 = scalar_lea.sflag [#allocation4], %s4907_s0 }
0x1be3   : > { %17004 = vmatpush3.msra.mxu1 %v5483_v44  ;;  %17048 = vmatpush3.msra.mxu0 %v5497_v35  ;;  %v5604_v35 = vld [vmem:[%s23757_s1 + $0x28] sm:$0xff] }
0x1be4   : > { %17005 = vmatprep.subr.mxu1 %v20400_v26  ;;  %17049 = vmatprep.subr.mxu0 %v20400_v26 }
0x1be5   : > { %17006 = vmatpush3.msra.mxu1 %v5482_v33  ;;  %17050 = vmatpush3.msra.mxu0 %v5496_v49  ;;  %v5603_v49 = vld [vmem:[%s23757_s1 + $0x20] sm:$0xff] }
0x1be6   : > { %17007 = vmatprep.subr.mxu1 %v20400_v26  ;;  %17051 = vmatprep.subr.mxu0 %v20400_v26 }
0x1be7   : > { %17008 = vmatpush3.msra.mxu1 %v5481_v34  ;;  %17052 = vmatpush3.msra.mxu0 %v5495_v39  ;;  %v5602_v39 = vld [vmem:[%s23757_s1 + $0x18] sm:$0xff] }
0x1be8   : > { %17009 = vmatprep.subr.mxu1 %v20400_v26  ;;  %17053 = vmatprep.subr.mxu0 %v20400_v26 }
0x1be9   : > { %17010 = vmatpush3.msra.mxu1 %v5480_v36  ;;  %17054 = vmatpush3.msra.mxu0 %v5494_v41  ;;  %v5521_v36 = vld [vmem:[#allocation89 + $0x38] sm:$0xff] }
0x1bea   : > { %17011 = vmatprep.subr.mxu1 %v20400_v26  ;;  %17055 = vmatprep.subr.mxu0 %v20400_v26  ;;  %v5601_v41 = vld [vmem:[%s23757_s1 + $0x10] sm:$0xff] }
0x1beb   : > { %17012 = vmatpush3.msra.mxu1 %v5479_v37  ;;  %17056 = vmatpush3.msra.mxu0 %v5493_v27  ;;  %v5520_v37 = vld [vmem:[#allocation89 + $0x30] sm:$0xff] }
0x1bec   : > { %17013 = vmatprep.subr.mxu1 %v20400_v26  ;;  %17057 = vmatprep.subr.mxu0 %v20400_v26  ;;  %v5600_v27 = vld [vmem:[%s23757_s1 + $0x8] sm:$0xff] }
0x1bed   : > { %17014 = vmatpush3.msra.mxu1 %v5478_v40  ;;  %17058 = vmatpush3.msra.mxu0 %v5492_v42  ;;  %v5519_v40 = vld [vmem:[#allocation89 + $0x28] sm:$0xff] }
0x1bee   : > { %17015 = vmatprep.subr.mxu1 %v20400_v26  ;;  %17059 = vmatprep.subr.mxu0 %v20400_v26  ;;  %v5599_v42 = vld [vmem:[%s23757_s1] sm:$0xff]  ;;  %s23759_s1 = smov %s23758_s10 }
0x1bef   : > { %17016 = vmatpush3.msra.mxu1 %v5477_v16  ;;  %17060 = vmatpush3.msra.mxu0 %v5491_v43  ;;  %v5518_v16 = vld [vmem:[#allocation89 + $0x20] sm:$0xff]  ;;  %v5515_v43 = vld [vmem:[#allocation89 + $0x8] sm:$0xff] }
0x1bf0   : > { %17017 = vmatprep.subr.mxu1 %v20400_v26  ;;  %17061 = vmatprep.subr.mxu0 %v20400_v26 }
0x1bf1   : > { %17018 = vmatpush3.msra.mxu1 %v5476_v24  ;;  %17062 = vmatpush3.msra.mxu0 %v5490_v50  ;;  %v5517_v24 = vld [vmem:[#allocation89 + $0x18] sm:$0xff] }
0x1bf2   : > { %17019 = vmatprep.subr.mxu1 %v20400_v26  ;;  %17114 = vmatprep.subr.mxu0 %v20400_v26 }
0x1bf3   : > { %17020 = vmatpush3.msra.mxu1 %v5475_v25  ;;  %v5516_v25 = vld [vmem:[#allocation89 + $0x10] sm:$0xff] }
0x1bf4   : > { %17021 = vmatprep.subr.mxu1 %v20400_v26 }
0x1bf5   : > { %17022 = vmatpush3.msra.mxu1 %v5474_v45  ;;  %v5514_v45 = vld [vmem:[#allocation89] sm:$0xff] }
0x1bf6   : > { %17066 = vmatprep.subr.mxu1 %v20400_v26 }
0x1c71   : > { %v12566_v2 = vpop.f32.mrf.mxu0 }
0x1c72   : > { %v12202_v31 = vpop.f32.mrf.mxu1  ;;  %v12576_v4 = vadd.f32 %v14928_v63, %v12566_v2  ;;  %v14934_v63 = vld [vmem:[#allocation86] ss:$0 sm:$0xff] }
0x1c73   : > { %v16985_v7 = vpop.f32.mrf.mxu0  ;;  %v12212_v54 = vadd.f32 %v14925_v53, %v12202_v31  ;;  %v5544_v53 = vld [vmem:[#allocation103 + $0x38] sm:$0xff] }
0x1c74   : > { %v16870_v13 = vpop.f32.mrf.mxu1 }
0x1c75   : > { %v12790_v8 = vpop.f32.mrf.mxu0  ;;  %v12356_v55 = vadd.f32 %v23117_v51, %v12212_v54  ;;  %v5543_v54 = vld [vmem:[#allocation103 + $0x30] sm:$0xff] }
0x1c76   : > { %17064 = vmatmul.mubr.f32.vlgmr.msra.gmra.mxu0 %v12790_v8 }
0x1c77   : > { %v17030_v52 = vpop.f32.mrf.mxu0  ;;  %17116 = vmatprep.mubr.msk.f32.mxu0 %vm20402_vm3, %v20400_v26 }
0x1c78   : > { %v5536_v52 = vld [vmem:[#allocation101] sm:$0xf] }
0x1c92   : > { %v12423_v56 = vpop.f32.mrf.mxu1 }
0x1c93   : > { %v23234_v57 = vadd.f32 %v12423_v56, %v12356_v55  ;;  %v5542_v55 = vld [vmem:[#allocation103 + $0x28] sm:$0xff]  ;;  %v5541_v56 = vld [vmem:[#allocation103 + $0x20] sm:$0xff] }
0x1c94   : > { %v16945_v15 = vpop.f32.mrf.mxu1 }
0x1c96   : > { %v12646_v58 = vpop.f32.mrf.mxu1 }
0x1c97   : > { %17024 = vmatmul.mubr.f32.vlgmr.msra.gmra.mxu1 %v12646_v58 }
0x1c98   : > { %v16990_v59 = vpop.f32.mrf.mxu1  ;;  %17068 = vmatprep.mubr.msk.f32.mxu1 %vm20402_vm3, %v20400_v26 }
0x1c99   : > { %v5539_v59 = vld [vmem:[#allocation103 + $0x10] sm:$0xff] }
0x1d36   : > { %v12860_v60 = vpop.f32.mrf.mxu0 }
0x1d38   : > { %v17065_v62 = vpop.f32.mrf.mxu0 }
0x1d39   : > { %v5537_v62 = vld [vmem:[#allocation103] sm:$0xff] }
0x1d57   : > { %v12716_v5 = vpop.f32.mrf.mxu1 }
0x1d58   : > { %v12720_v6 = vadd.f32 %v12716_v5, %v12576_v4 }
0x1d59   : > { %v17025_v9 = vpop.f32.mrf.mxu1 }
0x1d5a   : > { %v12864_v11 = vadd.f32 %v12860_v60, %v12720_v6  ;;  %v5538_v60 = vld [vmem:[#allocation103 + $0x8] sm:$0xff] }
0x1d5c   : > { %v23238_v51 = vmax.f32 %v12864_v11, 0.0  ;;  %v5614_v11 = vld [vmem:[%s23758_s10 + $0x38] sm:$0xff]  ;;  %s14946_s10 = sshll.u32 %s21100_s15, 4 }
0x1d5d   : > { %s13644_s4 = scalar_lea.hbm %s21077_s3, %s14946_s10 }
0x1d5e   : > { %17067 = vmatpush3.msk.msra.mxu1 %vm12870_vm5, %v23238_v51  ;;  %17115 = vmatpush3.msk.msra.mxu0 %vm12870_vm5, %v23238_v51 }
0x1d5f   : > { %17069 = vmatmul.mubr.msk.f32.vlgmr.msra.gmra.mxu1 %vm12866_vm6, %v5533_v12  ;;  %17117 = vmatmul.mubr.msk.f32.vlgmr.msra.gmra.mxu0 %vm12866_vm6, %v5535_v14  ;;  %v5613_v12 = vld [vmem:[%s23759_s1 + $0x30] sm:$0xff] }
0x1d60   : > { %17071 = vmatprep.subr.mxu1 %v20400_v26  ;;  %17119 = vmatprep.subr.mxu0 %v20400_v26 }
0x1d61   : > { %17072 = vmatpush3.msra.mxu1 %v5513_v10  ;;  %17120 = vmatpush3.msra.mxu0 %v5529_v47  ;;  %v5612_v10 = vld [vmem:[%s23759_s1 + $0x28] sm:$0xff]  ;;  %v5611_v47 = vld [vmem:[%s23759_s1 + $0x20] sm:$0xff] }
0x1d62   : > { %17073 = vmatprep.subr.mxu1 %v20400_v26  ;;  %17121 = vmatprep.subr.mxu0 %v20400_v26 }
0x1d63   : > { %17074 = vmatpush3.msra.mxu1 %v5512_v61  ;;  %17122 = vmatpush3.msra.mxu0 %v5528_v0  ;;  %v5610_v61 = vld [vmem:[%s23759_s1 + $0x18] sm:$0xff]  ;;  %v5609_v0 = vld [vmem:[%s23759_s1 + $0x10] sm:$0xff] }
0x1d64   : > { %17075 = vmatprep.subr.mxu1 %v20400_v26  ;;  %17123 = vmatprep.subr.mxu0 %v20400_v26 }
0x1d65   : > { %17076 = vmatpush3.msra.mxu1 %v5511_v19  ;;  %17124 = vmatpush3.msra.mxu0 %v5527_v1  ;;  %v5608_v19 = vld [vmem:[%s23759_s1 + $0x8] sm:$0xff]  ;;  %v5607_v1 = vld [vmem:[%s23759_s1] sm:$0xff]  ;;  %s4908_s1 = scalar_lea.vmem [#allocation128], %s4907_s0 }
0x1d66   : > { %17077 = vmatprep.subr.mxu1 %v20400_v26  ;;  %17125 = vmatprep.subr.mxu0 %v20400_v26  ;;  %s13646_s2 = sshll.u32 %s4908_s1, 4  ;;  %s13647_s2 = int_to_ptr.vmem [resolvable:$true] %s13646_s2 }
0x1d67   : > { %17078 = vmatpush3.msra.mxu1 %v5510_v17  ;;  %17126 = vmatpush3.msra.mxu0 %v5526_v18  ;;  %v5545_v17 = vld [vmem:[#allocation104] sm:$0xf]  ;;  %s19952_s6 = scalar_lea.vmem %s13647_s2, 16  ;;  %p19959_p13 = scmp.lt.s32.totalorder %s13647_s2, %s19957_s9 }
0x1d68   : > { %17079 = vmatprep.subr.mxu1 %v20400_v26  ;;  %17127 = vmatprep.subr.mxu0 %v20400_v26  ;;  %p19953_p7 = scmp.ne.s32.totalorder %s13647_s2, %s19952_s6  ;;  %p19960_p0 = scmp.lt.s32.totalorder %s19958_s12, %s19952_s6 }
0x1d69   : > { %17080 = vmatpush3.msra.mxu1 %v5509_v20  ;;  %17128 = vmatpush3.msra.mxu0 %v5525_v46 }
0x1d6a   : > { %17081 = vmatprep.subr.mxu1 %v20400_v26  ;;  %17129 = vmatprep.subr.mxu0 %v20400_v26  ;;  %p19954_p8 = pnand %p19953_p7, %p23760_p11  ;;  %p19961_p5 = por %p19960_p0, %p19959_p13 }
0x1d6b   : > { %17082 = vmatpush3.msra.mxu1 %v5508_v21  ;;  %17130 = vmatpush3.msra.mxu0 %v5524_v22 }
0x1d6c   : > { %17083 = vmatprep.subr.mxu1 %v20400_v26  ;;  %17131 = vmatprep.subr.mxu0 %v20400_v26  ;;  %p19955_p12 = pneg %p19954_p8 }
0x1d6d   : > { %17084 = vmatpush3.msra.mxu1 %v5507_v23  ;;  %17132 = vmatpush3.msra.mxu0 %v5523_v28 }
0x1d6e   : > { %17085 = vmatprep.subr.mxu1 %v20400_v26  ;;  %17133 = vmatprep.subr.mxu0 %v20400_v26  ;;  %p19962_p6 = pnand %p19961_p5, %p19955_p12 }
0x1d6f   : > { %17086 = vmatpush3.msra.mxu1 %v5506_v29  ;;  %17134 = vmatpush3.msra.mxu0 %v5522_v3 }
0x1d70   : > { %17087 = vmatprep.mubr.msk.f32.mxu1 %vm20402_vm3, %v20400_v26  ;;  %17090 = vmatprep.subr.mxu1 %v20400_v26 }
0x1d71   : > { %17135 = vmatprep.mubr.msk.f32.mxu0 %vm20402_vm3, %v20400_v26  ;;  %17162 = vmatprep.subr.mxu0 %v20400_v26 }
0x1e1f   : > { %v12940_v38 = vpop.f32.mrf.mxu1  ;;  %v13240_v44 = vpop.f32.mrf.mxu0 }
0x1e20   : > { %17088 = vmatmul.mubr.msk.f32.vlgmr.msra.gmra.mxu1 %vm6181_vm2, %v12940_v38  ;;  %17136 = vmatmul.mubr.msk.f32.vlgmr.msra.gmra.mxu0 %vm6181_vm2, %v13240_v44 }
0x1e21   : > { %17091 = vmatpush3.msk.msra.mxu1 %vm12870_vm5, %v23238_v51  ;;  %17163 = vmatpush3.msra.mxu0 %v5606_v30  ;;  %v17070_v33 = vpop.f32.mrf.mxu1  ;;  %v17118_v34 = vpop.f32.mrf.mxu0 }
0x1e22   : > { %17164 = vmatprep.subr.mxu0 %v20400_v26  ;;  %17092 = vmatprep.mubr.msk.f32.mxu1 %vm20402_vm3, %v20400_v26 }
0x1e23   : > { %17165 = vmatpush3.msra.mxu0 %v5605_v32  ;;  %17178 = vmatprep.mubr.msk.f32.mxu0 %vm20402_vm3, %v20400_v26 }
0x1e24   : > { %17166 = vmatprep.subr.mxu0 %v20400_v26  ;;  %17093 = vmatmul.mubr.msk.f32.vlgmr.msra.gmra.mxu1 %vm12866_vm6, %v5534_v48 }
0x1e25   : > { %17167 = vmatpush3.msra.mxu0 %v5604_v35  ;;  %17095 = vmatprep.subr.mxu1 %v20400_v26 }
0x1e26   : > { %17168 = vmatprep.subr.mxu0 %v20400_v26  ;;  %17096 = vmatpush3.msra.mxu1 %v5521_v36 }
0x1e27   : > { %17169 = vmatpush3.msra.mxu0 %v5603_v49  ;;  %17097 = vmatprep.subr.mxu1 %v20400_v26  ;;  %v5598_v49 = vld [vmem:[#allocation121] sm:$0x1] }
0x1e28   : > { %17170 = vmatprep.subr.mxu0 %v20400_v26  ;;  %17098 = vmatpush3.msra.mxu1 %v5520_v37 }
0x1e29   : > { %17171 = vmatpush3.msra.mxu0 %v5602_v39  ;;  %17099 = vmatprep.subr.mxu1 %v20400_v26 }
0x1e2a   : > { %17172 = vmatprep.subr.mxu0 %v20400_v26  ;;  %17100 = vmatpush3.msra.mxu1 %v5519_v40 }
0x1e2b   : > { %17173 = vmatpush3.msra.mxu0 %v5601_v41  ;;  %17101 = vmatprep.subr.mxu1 %v20400_v26 }
0x1e2c   : > { %17174 = vmatprep.subr.mxu0 %v20400_v26  ;;  %17102 = vmatpush3.msra.mxu1 %v5518_v16 }
0x1e2d   : > { %17175 = vmatpush3.msra.mxu0 %v5600_v27  ;;  %17103 = vmatprep.subr.mxu1 %v20400_v26 }
0x1e2e   : > { %17176 = vmatprep.subr.mxu0 %v20400_v26  ;;  %17104 = vmatpush3.msra.mxu1 %v5517_v24 }
0x1e2f   : > { %17177 = vmatpush3.msra.mxu0 %v5599_v42  ;;  %17105 = vmatprep.subr.mxu1 %v20400_v26 }
0x1e30   : > { %17179 = vmatmul.mubr.msk.f32.vlgmr.msra.gmra.mxu0 %vm6181_vm2, %v23234_v57  ;;  %17106 = vmatpush3.msra.mxu1 %v5516_v25 }
0x1e31   : > { %17107 = vmatprep.subr.mxu1 %v20400_v26  ;;  %17111 = vmatprep.mubr.msk.f32.mxu1 %vm20402_vm3, %v20400_v26 }
0x1e32   : > { %17108 = vmatpush3.msra.mxu1 %v5515_v43 }
0x1e33   : > { %17109 = vmatprep.subr.mxu1 %v20400_v26 }
0x1e34   : > { %17110 = vmatpush3.msra.mxu1 %v5514_v45 }
0x1e35   : > { %17138 = vmatprep.subr.mxu1 %v20400_v26 }
0x1ee0   : > { %v13013_v50 = vpop.f32.mrf.mxu1  ;;  %v23305_v2 = vpop.f32.mrf.mxu0 }
0x1ee1   : > { %v13023_v4 = vadd.f32 %v14934_v63, %v13013_v50 }
0x1ee2   : > { %v17089_v31 = vpop.f32.mrf.mxu1  ;;  %v17137_v7 = vpop.f32.mrf.mxu0 }
0x1ee4   : > { %v13093_v13 = vpop.f32.mrf.mxu1 }
0x1ee5   : > { %17112 = vmatmul.mubr.msk.f32.vlgmr.msra.gmra.mxu1 %vm6181_vm2, %v13093_v13 }
0x1ee6   : > { %17139 = vmatpush3.msk.msra.mxu1 %vm12870_vm5, %v23234_v57  ;;  %17140 = vmatprep.mubr.msk.f32.mxu1 %vm20402_vm3, %v20400_v26  ;;  %v17094_v8 = vpop.f32.mrf.mxu1  ;;  %v5540_v57 = vld [vmem:[#allocation103 + $0x18] sm:$0xff] }
0x1ee7   : > { %17143 = vmatprep.subr.mxu1 %v20400_v26 }
0x1ee9   : > { %17141 = vmatmul.mubr.msk.f32.vlgmr.msra.gmra.mxu1 %vm12866_vm6, %v5536_v52 }
0x1eea   : > { %17144 = vmatpush3.msra.mxu1 %v5544_v53  ;;  %17159 = vmatprep.mubr.msk.f32.mxu1 %vm20402_vm3, %v20400_v26 }
0x1eeb   : > { %17145 = vmatprep.subr.mxu1 %v20400_v26 }
0x1eec   : > { %17146 = vmatpush3.msra.mxu1 %v5543_v54 }
0x1eed   : > { %17147 = vmatprep.subr.mxu1 %v20400_v26 }
0x1eee   : > { %17148 = vmatpush3.msra.mxu1 %v5542_v55 }
0x1eef   : > { %17149 = vmatprep.subr.mxu1 %v20400_v26 }
0x1ef0   : > { %v13537_v15 = vpop.f32.mrf.mxu0  ;;  %17150 = vmatpush3.msra.mxu1 %v5541_v56 }
0x1ef1   : > { %17151 = vmatprep.subr.mxu1 %v20400_v26  ;;  %v13542_v23 = vsel %vm13541_vm7, %v13537_v15, 0.0 }
0x1ef2   : > { %v17180_v58 = vpop.f32.mrf.mxu0  ;;  %17152 = vmatpush3.msra.mxu1 %v5540_v57  ;;  %v13543_v28 = vrot.slane %v13542_v23, 4 }
0x1ef3   : > { %17153 = vmatprep.subr.mxu1 %v20400_v26 }
0x1ef4   : > { %17154 = vmatpush3.msra.mxu1 %v5539_v59  ;;  %v13544_v29 = vadd.f32 %v13543_v28, %v13542_v23 }
0x1ef5   : > { %17155 = vmatprep.subr.mxu1 %v20400_v26 }
0x1ef6   : > { %17156 = vmatpush3.msra.mxu1 %v5538_v60  ;;  %v13545_v3 = vrot.slane %v13544_v29, 2 }
0x1ef7   : > { %17157 = vmatprep.subr.mxu1 %v20400_v26 }
0x1ef8   : > { %17158 = vmatpush3.msra.mxu1 %v5537_v62  ;;  %v13546_v30 = vadd.f32 %v13545_v3, %v13544_v29 }
0x1ef9   : > { %17181 = vmatprep.subr.mxu1 %v20400_v26 }
0x1efa   : > { %v13547_v33 = vrot.slane %v13546_v30, 1 }
0x1efc   : > { %v13548_v35 = vadd.f32 %v13547_v33, %v13546_v30 }
0x1efe   : > { %v13549_v39 = vadd.f32 %v13548_v35, %v5598_v49 }
0x1fa5   : > { %v13166_v5 = vpop.f32.mrf.mxu1 }
0x1fa6   : > { %v13170_v6 = vadd.f32 %v13166_v5, %v13023_v4 }
0x1fa7   : > { %v17113_v9 = vpop.f32.mrf.mxu1 }
0x1fa8   : > { %v13317_v20 = vadd.f32 %v23305_v2, %v13170_v6 }
0x1fa9   : > { %v13390_v51 = vpop.f32.mrf.mxu1 }
0x1faa   : > { %17160 = vmatmul.mubr.msk.f32.vlgmr.msra.gmra.mxu1 %vm6181_vm2, %v13390_v51 }
0x1fab   : > { %v17142_v14 = vpop.f32.mrf.mxu1  ;;  %17182 = vmatpush3.msra.mxu1 %v5614_v11  ;;  %17197 = vmatprep.mubr.msk.f32.mxu1 %vm20402_vm3, %v20400_v26 }
0x1fac   : > { %17183 = vmatprep.subr.mxu1 %v20400_v26 }
0x1fad   : > { %17184 = vmatpush3.msra.mxu1 %v5613_v12 }
0x1fae   : > { %17185 = vmatprep.subr.mxu1 %v20400_v26 }
0x1faf   : > { %17186 = vmatpush3.msra.mxu1 %v5612_v10 }
0x1fb0   : > { %17187 = vmatprep.subr.mxu1 %v20400_v26 }
0x1fb1   : > { %17188 = vmatpush3.msra.mxu1 %v5611_v47 }
0x1fb2   : > { %17189 = vmatprep.subr.mxu1 %v20400_v26 }
0x1fb3   : > { %17190 = vmatpush3.msra.mxu1 %v5610_v61 }
0x1fb4   : > { %17191 = vmatprep.subr.mxu1 %v20400_v26 }
0x1fb5   : > { %17192 = vmatpush3.msra.mxu1 %v5609_v0 }
0x1fb6   : > { %17193 = vmatprep.subr.mxu1 %v20400_v26 }
0x1fb7   : > { %17194 = vmatpush3.msra.mxu1 %v5608_v19 }
0x1fb8   : > { %17195 = vmatprep.subr.mxu1 %v20400_v26 }
0x1fb9   : > { %17196 = vmatpush3.msra.mxu1 %v5607_v1 }
0x206a   : > { %v13463_v18 = vpop.f32.mrf.mxu1 }
0x206b   : > { %v13467_v46 = vmul.f32 %v13463_v18, %v5545_v17 }
0x206c   : > { %v17161_v21 = vpop.f32.mrf.mxu1 }
0x206d   : > { %v13468_v22 = vadd.f32 %v13467_v46, %v13317_v20 }
0x206f   : > { %17198 = vmatmul.mubr.msk.f32.vlgmr.msra.gmra.mxu1 %vm6181_vm2, %v13468_v22 }
0x212f   : > { %v13619_v38 = vpop.f32.mrf.mxu1 }
0x2130   : > { %v13623_v26 = vsel %vm13541_vm7, %v13619_v38, 0.0 }
0x2131   : > { %v13624_v44 = vrot.slane %v13623_v26, 4  ;;  %v17199_v32 = vpop.f32.mrf.mxu1 }
0x2133   : > { %v13625_v48 = vadd.f32 %v13624_v44, %v13623_v26 }
0x2135   : > { %v13626_v34 = vrot.slane %v13625_v48, 2 }
0x2137   : > { %v13627_v36 = vadd.f32 %v13626_v34, %v13625_v48 }
0x2139   : > { %v13628_v37 = vrot.slane %v13627_v36, 1 }
0x213b   : > { %v13629_v40 = vadd.f32 %v13628_v37, %v13627_v36 }
0x213d   : > { %v13630_v41 = vadd.f32 %v13629_v40, %v13549_v39 }
0x213f   : > { %13632 = vst.msk [vmem:[%s4908_s1] sm:$0x1] %vm13631_vm8, %v13630_v41 }
0x2140   : > { %19965 = shalt.err (!%p19962_p6)
}
0x2141   : > { %s19966_s15 = scalar_lea.hbm %s13644_s4, 16  ;;  %s19970_s1 = scalar_lea.hbm %s21077_s3, 32 }
0x2142   : > { %p19967_p1 = scmp.ne.s32.totalorder %s13644_s4, %s19966_s15  ;;  %p19971_p3 = scmp.lt.s32.totalorder %s13644_s4, %s21077_s3 }
0x2143   : > { %p19972_p4 = scmp.lt.s32.totalorder %s19970_s1, %s19966_s15 }
0x2144   : > { %p19968_p9 = pnand %p19967_p1, %p23760_p11 }
0x2145   : > { %p19973_p10 = por %p19972_p4, %p19971_p3 }
0x2146   : > { %p19969_p2 = pneg %p19968_p9 }
0x2148   : > { %p19974_p7 = pnand %p19973_p10, %p19969_p2 }
0x214a   : > { %19977 = shalt.err (!%p19974_p7)
}
0x214b   : > { %17532 = dma.vmem_to_hbm [thread:$0]  (%p23760_p11), %s13647_s2, 16, %s13644_s4, %s13634_s5  }
0x214c PF: > { %s23761_s9 = sld [smem:[#allocation295_spill]]  ;;  %p17704_p8 = scmp.ge.s32.totalorder %s20180_s11, 2 }
0x214d   : > { %s23762_s12 = sld [smem:[#allocation299_spill]] }
0x2152   : > { %s13658_s6 = sand.u32 1, %s23761_s9  }
0x2153   : > { %p23763_p12 = scmp.ne.s32.totalorder %s23762_s12, 0  ;;  %s13659_s8 = scalar_lea.sflag [#allocation4], %s13658_s6 }
0x2155   : > { %p17535_p13 = pnand %p17704_p8, %p23763_p12 }
0x2157   : > { %p17536_p0 = pneg %p17535_p13 }
0x2159   : > { %20163 = dma.done.wait (%p17536_p0), %s13659_s8, 16  }
0x215a   : > { %20165 = vsyncadd (%p17536_p0), %s13659_s8, 4294967280  ;;  %s23764_s11 = sld [smem:[#allocation297_spill]]  ;;  %s23767_s0 = smov %s20172_s7 }
0x215b   : > { %s23765_s10 = sld [smem:[#allocation296_spill]] }
0x215c   : > { %s23766_s15 = sld [smem:[#allocation298_spill]] }
0x2160   : > { %p319_p5 = scmp.ge.s32.totalorder %s23764_s11, 4  }
0x2161   : > { %s23768_s7 = smov %s23765_s10 }
0x2162   : > { %s23769_s10 = smov %s23766_s15  ;;  %321 = sbr.rel (!%p319_p5) target bundleno = 309 (0x135), region = 1053 }
0x2167   :  { %13663 = vsyncpa [#allocation3], 1 }
0x2168   :  { %13665 = vsyncpa [#allocation3 + $0x1], 1 }
0x2169   :  { %13666 = vsyncpa [#allocation6], 1 }
0x216a   :  { %13667 = vsyncpa [#allocation9], 1 }
0x216b   :  { %13668 = vsyncpa [#allocation12], 1 }
0x216c   :  { %13669 = vsyncpa [#allocation15], 1 }
0x216d   :  { %13670 = vsyncpa [#allocation18], 1 }
0x216e   :  { %13671 = vsyncpa [#allocation21], 1 }
0x216f   :  { %13672 = vsyncpa [#allocation24], 1 }
0x2170   :  { %13673 = vsyncpa [#allocation27], 1 }
0x2171   :  { %13674 = vsyncpa [#allocation30], 1 }
0x2172   :  { %13675 = vsyncpa [#allocation33], 1 }
0x2173   :  { %13676 = vsyncpa [#allocation36], 1 }
0x2174   :  { %13677 = vsyncpa [#allocation39], 1 }
0x2175   :  { %13678 = vsyncpa [#allocation42], 1 }
0x2176   :  { %13679 = vsyncpa [#allocation45], 1 }
0x2177   :  { %13680 = vsyncpa [#allocation48], 1 }
0x2178   :  { %13681 = vsyncpa [#allocation51], 1 }
0x2179   :  { %13682 = vsyncpa [#allocation54], 1 }
0x217a   :  { %13683 = vsyncpa [#allocation57], 1 }
0x217b   :  { %13684 = vsyncpa [#allocation60], 1 }
0x217c   :  { %13685 = vsyncpa [#allocation63], 1 }
0x217d   :  { %13686 = vsyncpa [#allocation66], 1 }
0x217e   :  { %13687 = vsyncpa [#allocation69], 1 }
0x217f   :  { %13688 = vsyncpa [#allocation72], 1 }
0x2180   :  { %13689 = vsyncpa [#allocation75], 1 }
0x2181   :  { %13690 = vsyncpa [#allocation78], 1 }
0x2182   :  { %13691 = vsyncpa [#allocation81], 1 }
0x2183   :  { %13692 = vsyncpa [#allocation84], 1 }
0x2184   :  { %13693 = vsyncpa [#allocation87], 1 }
0x2185   :  { %13694 = vsyncpa [#allocation90], 1 }
0x2186   :  { %13695 = vsyncpa [#allocation93], 1 }
0x2187   :  { %13696 = vsyncpa [#allocation96], 1 }
0x2188   :  { %13697 = vsyncpa [#allocation99], 1 }
0x2189   :  { %13698 = vsyncpa [#allocation102], 1 }
0x218a   :  { %13699 = vsyncpa [#allocation105], 1 }
0x218b   :  { %13700 = vsyncpa [#allocation108], 1 }
0x218c   :  { %13701 = vsyncpa [#allocation111], 1 }
0x218d   :  { %13702 = vsyncpa [#allocation114], 1 }
0x218e   :  { %13703 = vsyncpa [#allocation117], 1 }
0x218f   :  { %13704 = vsyncpa [#allocation120], 1 }
0x2190   :  { %13705 = vsyncpa [#allocation123], 1 }
0x2191   :  { %13706 = vsyncpa [#allocation126], 1 }
0x2192   :  { %13707 = vsyncpa [#allocation4], 1 }
0x2193   :  { %13709 = vsyncpa [#allocation4 + $0x1], 1 }

</bundles_post_ra>
